<compile_context>
chip_gen: v5e
topology: v5e:2x2
jax: 0.10.0
libtpu: 0.0.40
codegen_flags: <defaults>
</compile_context>

<pallas_src>
import functools

import jax
import jax.numpy as jnp
from jax.experimental import pallas as pl
from jax.experimental.pallas import tpu as pltpu


# ---------------------------------------------------------------------------
# Pallas kernels
# ---------------------------------------------------------------------------
def _conv_mm_kernel(x_ref, w_ref, b_ref, o_ref, acc_ref, *,
                    slope, instnorm, eps, pool):
    """Tiled y = epilogue(x @ w + b); K is the innermost reduction grid axis.

    Epilogue (all optional, fused, per (batch, row-tile, col-tile)):
      InstanceNorm over rows -> LeakyReLU -> mean over rows (global avg pool).
    InstanceNorm / pool require the row tile to cover one full instance
    (enforced by the wrapper: tm == Ho*Wo).
    """
    k = pl.program_id(3)

    @pl.when(k == 0)
    def _():
        acc_ref[...] = jnp.zeros_like(acc_ref)

    acc_ref[...] += jnp.dot(
        x_ref[...], w_ref[...], preferred_element_type=jnp.float32
    )

    @pl.when(k == pl.num_programs(3) - 1)
    def _():
        y = acc_ref[...] + b_ref[...]                    # b is (1, tn)
        if instnorm:                                     # per-instance, per-channel
            mean = jnp.mean(y, axis=0, keepdims=True)    # two-pass stats (f32)
            d = y - mean
            var = jnp.mean(d * d, axis=0, keepdims=True)
            y = d * jax.lax.rsqrt(var + eps)
        if slope is not None:                            # fused LeakyReLU
            y = jnp.where(y >= 0.0, y, slope * y)
        if pool:                                         # global average pool
            y = jnp.mean(y, axis=0, keepdims=True)       # (1, tn)
        o_ref[...] = y.astype(o_ref.dtype)


def _instnorm_lrelu_kernel(x_ref, o_ref, *, eps, slope):
    """Standalone fallback for large feature maps (not used at this size)."""
    x = x_ref[...].astype(jnp.float32)                   # (1, HW, Cblk)
    mean = jnp.mean(x, axis=1, keepdims=True)
    d = x - mean
    var = jnp.mean(d * d, axis=1, keepdims=True)
    y = d * jax.lax.rsqrt(var + eps)
    y = jnp.where(y >= 0.0, y, slope * y)
    o_ref[...] = y.astype(o_ref.dtype)


# ---------------------------------------------------------------------------
# Tiling helpers + pallas_call wrappers
# ---------------------------------------------------------------------------
def _pick_tile(dim, candidates):
    for c in candidates:
        if dim >= c and dim % c == 0:
            return c
    return dim                                           # fall back to full extent


def _pick_tile_n(n):
    # Prefer an N tile that yields >=2 column blocks (keeps v7x's 2nd core busy).
    for c in (256, 128):
        if n % c == 0 and n // c >= 2:
            return c
    for c in (256, 128):
        if n % c == 0:
            return c
    return n


def conv_matmul(p, w, b, *, slope=None, instnorm=False, pool=False,
                out_dtype=jnp.bfloat16, eps=1e-5):
    """p:[B,HW,K] bf16, w:[K,N] bf16, b:[N] f32 -> [B, HW|1, N] out_dtype."""
    B, HW, K = p.shape
    _, N = w.shape

    if instnorm or pool:
        tm = HW                                          # whole instance in one tile
    else:
        tm = _pick_tile(HW, (512, 256, 128, 64, 32, 16, 8))
    tn = _pick_tile_n(N)
    tk = _pick_tile(K, (2048, 1024, 512, 256, 128))

    grid = (B, HW // tm, N // tn, K // tk)
    out_hw = 1 if pool else HW
    out_tm = 1 if pool else tm

    kernel = functools.partial(
        _conv_mm_kernel, slope=slope, instnorm=instnorm, eps=eps, pool=pool)

    return pl.pallas_call(
        kernel,
        out_shape=jax.ShapeDtypeStruct((B, out_hw, N), out_dtype),
        grid_spec=pltpu.PrefetchScalarGridSpec(
            num_scalar_prefetch=0,
            grid=grid,
            in_specs=[
                pl.BlockSpec((None, tm, tk), lambda bb, i, j, kk: (bb, i, kk)),
                pl.BlockSpec((tk, tn), lambda bb, i, j, kk: (kk, j)),
                pl.BlockSpec((1, tn), lambda bb, i, j, kk: (0, j)),
            ],
            out_specs=pl.BlockSpec(
                (None, out_tm, tn),
                lambda bb, i, j, kk: (bb, 0 if pool else i, j)),
            scratch_shapes=[pltpu.VMEM((tm, tn), jnp.float32)],
        ),
        compiler_params=pltpu.CompilerParams(
            dimension_semantics=("parallel", "parallel", "parallel", "arbitrary"),
            vmem_limit_bytes=48 * 1024 * 1024,   # headroom for 512x2048 bf16 tiles (v5e default is 16 MiB)
        ),
    )(p, w, b.reshape(1, N).astype(jnp.float32))


def instnorm_lrelu(x, eps=1e-5, slope=0.2):
    """Fallback InstanceNorm2d(affine=False)+LeakyReLU(0.2), NHWC, bf16 out."""
    # TODO(synk): tile the HW axis (sum/sumsq accumulation pass) for very large maps.
    B, H, W, C = x.shape
    HW = H * W
    xr = x.reshape(B, HW, C)
    tc = 128 if C % 128 == 0 else C
    out = pl.pallas_call(
        functools.partial(_instnorm_lrelu_kernel, eps=eps, slope=slope),
        out_shape=jax.ShapeDtypeStruct((B, HW, C), jnp.bfloat16),
        grid=(B, C // tc),
        in_specs=[pl.BlockSpec((1, HW, tc), lambda b, c: (b, 0, c))],
        out_specs=pl.BlockSpec((1, HW, tc), lambda b, c: (b, 0, c)),
        compiler_params=pltpu.CompilerParams(
            dimension_semantics=("parallel", "parallel")),
    )(xr)
    return out.reshape(B, H, W, C)


# ---------------------------------------------------------------------------
# Glue: im2col conv wrapper (patch extraction in XLA, matmul+epilogue in Pallas)
# ---------------------------------------------------------------------------
def conv2d(x_nhwc, w_hwio, b, *, stride, pad, slope=None, instnorm=False,
           pool=False, out_dtype=jnp.bfloat16):
    k, _, cin, cout = w_hwio.shape
    xpd = jnp.pad(x_nhwc, ((0, 0), (pad, pad), (pad, pad), (0, 0)))
    B, Hp, Wp, C = xpd.shape
    Ho = (Hp - k) // stride + 1
    Wo = (Wp - k) // stride + 1
    patches = []
    for di in range(k):
        for dj in range(k):
            patches.append(
                jax.lax.slice(
                    xpd,
                    (0, di, dj, 0),
                    (B, di + stride * (Ho - 1) + 1, dj + stride * (Wo - 1) + 1, C),
                    (1, stride, stride, 1),
                )
            )
    p = jnp.stack(patches, axis=3)                       # [B, Ho, Wo, k*k, C]
    p = p.reshape(B, Ho * Wo, k * k * C)                 # cols ordered (kh, kw, cin)
    p = p.astype(jnp.bfloat16)                           # no-op for bf16 activations
    wm = w_hwio.reshape(k * k * cin, cout).astype(jnp.bfloat16)
    y = conv_matmul(p, wm, b, slope=slope, instnorm=instnorm, pool=pool,
                    out_dtype=out_dtype)
    if pool:
        return y.reshape(B, cout)                        # (B, 1, cout) -> (B, cout)
    return y.reshape(B, Ho, Wo, cout)


def conv_in_lrelu(x, w, b, *, stride, pad):
    """Conv2d -> InstanceNorm2d -> LeakyReLU(0.2); IN fused into the matmul
    epilogue whenever the whole instance fits in one row tile."""
    B, H, W, _ = x.shape
    k = w.shape[0]
    Ho = (H + 2 * pad - k) // stride + 1
    Wo = (W + 2 * pad - k) // stride + 1
    if Ho * Wo <= 1024:
        return conv2d(x, w, b, stride=stride, pad=pad, slope=0.2, instnorm=True)
    y = conv2d(x, w, b, stride=stride, pad=pad)          # large-map fallback
    return instnorm_lrelu(y)


# ---------------------------------------------------------------------------
# Model: parameters + forward
# ---------------------------------------------------------------------------
_CONV_SPECS = [  # (kernel, cin, cout) -- mirrors the nn.Sequential
    (4, 3, 64),
    (4, 64, 128),
    (4, 128, 256),
    (4, 256, 512),
    (4, 512, 1),
]


def init_params(key):
    """Synthetic deterministic init (HWIO layout). Only arrays in the pytree."""
    params = []
    for (k, cin, cout) in _CONV_SPECS:
        key, wk = jax.random.split(key)
        w = 0.02 * jax.random.normal(wk, (k, k, cin, cout), jnp.float32)
        b = jnp.zeros((cout,), jnp.float32)
        params.append((w, b))
    return params


def discriminator_forward(x_nchw, params):
    x = jnp.transpose(x_nchw, (0, 2, 3, 1)).astype(jnp.float32)   # NCHW -> NHWC

    (w1, b1), (w2, b2), (w3, b3), (w4, b4), (w5, b5) = params
    # Static conv geometry (stride, pad) — never traced.
    x = conv2d(x, w1, b1, stride=2, pad=1, slope=0.2)             # Conv + LReLU
    x = conv_in_lrelu(x, w2, b2, stride=2, pad=1)                 # Conv + IN + LReLU
    x = conv_in_lrelu(x, w3, b3, stride=2, pad=1)
    x = conv_in_lrelu(x, w4, b4, stride=1, pad=1)

    # Final conv: pad cout 1 -> 128 so matmul/pool stores are lane-dense;
    # the extra 127 columns are exactly zero and sliced away.
    pad_n = 128 - w5.shape[-1]
    w5p = jnp.pad(w5, ((0, 0), (0, 0), (0, 0), (0, pad_n)))
    b5p = jnp.pad(b5, ((0, pad_n),))
    B, H, W, _ = x.shape
    Ho = H + 2 - 3                                                # k=4, pad=1, stride=1
    Wo = W + 2 - 3
    if Ho * Wo <= 1024:
        pooled = conv2d(x, w5p, b5p, stride=1, pad=1, pool=True,
                        out_dtype=jnp.float32)                    # fused global avg pool
    else:
        y = conv2d(x, w5p, b5p, stride=1, pad=1, out_dtype=jnp.float32)
        pooled = jnp.mean(y.reshape(B, -1, 128), axis=1)          # large-map fallback
    return pooled[:, :1]                                          # [B, 1]


if __name__ == "__main__":
    img_size = 32
    key = jax.random.PRNGKey(0)
    kx, kp = jax.random.split(key)
    x = jax.random.normal(kx, (2, 3, img_size, img_size), jnp.float32)
    params = init_params(kp)

    out = jax.jit(discriminator_forward)(x, params)
    jax.block_until_ready(out)
    assert out.shape == (2, 1), out.shape
    print("KERNEL_OK")
</pallas_src>

<mosaic_0001>
module attributes {stable_mosaic.version = 11 : i64} {
  func.func @_conv_mm_kernel(%arg0: i32, %arg1: i32, %arg2: i32, %arg3: i32, %arg4: memref<1x256x48xbf16, #tpu.memory_space<vmem>>, %arg5: memref<48x64xbf16, #tpu.memory_space<vmem>>, %arg6: memref<1x64xf32, #tpu.memory_space<vmem>>, %arg7: memref<1x256x64xbf16, #tpu.memory_space<vmem>>, %arg8: memref<256x64xf32, #tpu.memory_space<vmem>>) attributes {dimension_semantics = [#tpu.dimension_semantics<parallel>, #tpu.dimension_semantics<parallel>, #tpu.dimension_semantics<parallel>, #tpu.dimension_semantics<arbitrary>], iteration_bounds = array<i64: 2, 1, 1, 1>, scalar_prefetch = 0 : i64, scratch_operands = 1 : i64, tpu.core_type = #tpu.core_type<tc>, window_params = [{transform_indices = @transform_0, window_bounds = array<i64: 1, 256, 48>}, {transform_indices = @transform_1, window_bounds = array<i64: 48, 64>}, {transform_indices = @transform_2, window_bounds = array<i64: 1, 64>}, {transform_indices = @transform_3, window_bounds = array<i64: 1, 256, 64>}]} {
    %c0_i32 = arith.constant 0 : i32
    %0 = arith.cmpi eq, %arg3, %c0_i32 : i32
    %1 = arith.extui %0 : i1 to i32
    %c0_i32_0 = arith.constant 0 : i32
    %2 = arith.cmpi ne, %1, %c0_i32_0 : i32
    scf.if %2 {
      %cst_11 = arith.constant 0.000000e+00 : f32
      %13 = vector.broadcast %cst_11 : f32 to vector<256x64xf32>
      %c0_12 = arith.constant 0 : index
      %c0_13 = arith.constant 0 : index
      %14 = vector.load %arg8[%c0_12, %c0_13] : memref<256x64xf32, #tpu.memory_space<vmem>>, vector<256x64xf32>
      tpu.vector_store %arg8[%c0_12, %c0_13], %13 {strides = array<i32>} : memref<256x64xf32, #tpu.memory_space<vmem>>, vector<256x64xf32>,
    } else {
    }
    %c0 = arith.constant 0 : index
    %c0_1 = arith.constant 0 : index
    %3 = vector.load %arg8[%c0, %c0_1] : memref<256x64xf32, #tpu.memory_space<vmem>>, vector<256x64xf32>
    %c0_2 = arith.constant 0 : index
    %c0_3 = arith.constant 0 : index
    %c0_4 = arith.constant 0 : index
    %4 = vector.load %arg4[%c0_2, %c0_3, %c0_4] : memref<1x256x48xbf16, #tpu.memory_space<vmem>>, vector<1x256x48xbf16>
    %5 = vector.shape_cast %4 : vector<1x256x48xbf16> to vector<256x48xbf16>
    %c0_5 = arith.constant 0 : index
    %c0_6 = arith.constant 0 : index
    %6 = vector.load %arg5[%c0_5, %c0_6] : memref<48x64xbf16, #tpu.memory_space<vmem>>, vector<48x64xbf16>
    %cst = arith.constant dense<0.000000e+00> : vector<256x64xf32>
    %7 = tpu.matmul %5, %6, %cst {dimension_numbers = #tpu.dot_dimension_numbers<[1], [0], [0], [1], [0, 0, 1, 1], [], []>} : vector<256x48xbf16>, vector<48x64xbf16>, vector<256x64xf32> -> vector<256x64xf32>
    %8 = arith.addf %3, %7 : vector<256x64xf32>
    %c0_7 = arith.constant 0 : index
    %c0_8 = arith.constant 0 : index
    %9 = vector.load %arg8[%c0_7, %c0_8] : memref<256x64xf32, #tpu.memory_space<vmem>>, vector<256x64xf32>
    tpu.vector_store %arg8[%c0_7, %c0_8], %8 {strides = array<i32>} : memref<256x64xf32, #tpu.memory_space<vmem>>, vector<256x64xf32>,
    %c0_i32_9 = arith.constant 0 : i32
    %10 = arith.cmpi eq, %arg3, %c0_i32_9 : i32
    %11 = arith.extui %10 : i1 to i32
    %c0_i32_10 = arith.constant 0 : i32
    %12 = arith.cmpi ne, %11, %c0_i32_10 : i32
    scf.if %12 {
      %c0_11 = arith.constant 0 : index
      %c0_12 = arith.constant 0 : index
      %13 = vector.load %arg8[%c0_11, %c0_12] : memref<256x64xf32, #tpu.memory_space<vmem>>, vector<256x64xf32>
      %c0_13 = arith.constant 0 : index
      %c0_14 = arith.constant 0 : index
      %14 = vector.load %arg6[%c0_13, %c0_14] : memref<1x64xf32, #tpu.memory_space<vmem>>, vector<1x64xf32>
      %15 = vector.broadcast %14 : vector<1x64xf32> to vector<256x64xf32>
      %16 = arith.addf %13, %15 : vector<256x64xf32>
      %cst_15 = arith.constant 0.000000e+00 : f32
      %17 = vector.broadcast %cst_15 : f32 to vector<256x64xf32>
      %18 = arith.cmpf oge, %16, %17 : vector<256x64xf32>
      %cst_16 = arith.constant 2.000000e-01 : f32
      %19 = vector.broadcast %cst_16 : f32 to vector<256x64xf32>
      %20 = arith.mulf %19, %16 : vector<256x64xf32>
      %21 = arith.select %18, %16, %20 : vector<256x64xi1>, vector<256x64xf32>
      %22 = arith.truncf %21 : vector<256x64xf32> to vector<256x64xbf16>
      %c0_17 = arith.constant 0 : index
      %c0_18 = arith.constant 0 : index
      %c0_19 = arith.constant 0 : index
      %23 = vector.load %arg7[%c0_17, %c0_18, %c0_19] : memref<1x256x64xbf16, #tpu.memory_space<vmem>>, vector<1x256x64xbf16>
      %24 = vector.shape_cast %23 : vector<1x256x64xbf16> to vector<256x64xbf16>
      %25 = vector.shape_cast %22 : vector<256x64xbf16> to vector<1x256x64xbf16>
      tpu.vector_store %arg7[%c0_17, %c0_18, %c0_19], %25 {strides = array<i32>} : memref<1x256x64xbf16, #tpu.memory_space<vmem>>, vector<1x256x64xbf16>,
    } else {
    }
    return
  }
  func.func @transform_0(%arg0: i32, %arg1: i32, %arg2: i32, %arg3: i32) -> (i32, i32, i32) {
    %c0_i32 = arith.constant 0 : i32
    return %arg0, %arg1, %arg3 : i32, i32, i32
  }
  func.func @transform_1(%arg0: i32, %arg1: i32, %arg2: i32, %arg3: i32) -> (i32, i32) {
    %c0_i32 = arith.constant 0 : i32
    return %arg3, %arg2 : i32, i32
  }
  func.func @transform_2(%arg0: i32, %arg1: i32, %arg2: i32, %arg3: i32) -> (i32, i32) {
    %c0_i32 = arith.constant 0 : i32
    %c0_i32_0 = arith.constant 0 : i32
    return %c0_i32, %arg2 : i32, i32
  }
  func.func @transform_3(%arg0: i32, %arg1: i32, %arg2: i32, %arg3: i32) -> (i32, i32, i32) {
    %c0_i32 = arith.constant 0 : i32
    return %arg0, %arg1, %arg2 : i32, i32, i32
  }
}

module attributes {stable_mosaic.version = 11 : i64} {
  func.func @_conv_mm_kernel(%arg0: i32, %arg1: i32, %arg2: i32, %arg3: i32, %arg4: memref<1x64x1024xbf16, #tpu.memory_space<vmem>>, %arg5: memref<1024x128xbf16, #tpu.memory_space<vmem>>, %arg6: memref<1x128xf32, #tpu.memory_space<vmem>>, %arg7: memref<1x64x128xbf16, #tpu.memory_space<vmem>>, %arg8: memref<64x128xf32, #tpu.memory_space<vmem>>) attributes {dimension_semantics = [#tpu.dimension_semantics<parallel>, #tpu.dimension_semantics<parallel>, #tpu.dimension_semantics<parallel>, #tpu.dimension_semantics<arbitrary>], iteration_bounds = array<i64: 2, 1, 1, 1>, scalar_prefetch = 0 : i64, scratch_operands = 1 : i64, tpu.core_type = #tpu.core_type<tc>, window_params = [{transform_indices = @transform_0, window_bounds = array<i64: 1, 64, 1024>}, {transform_indices = @transform_1, window_bounds = array<i64: 1024, 128>}, {transform_indices = @transform_2, window_bounds = array<i64: 1, 128>}, {transform_indices = @transform_3, window_bounds = array<i64: 1, 64, 128>}]} {
    %c0_i32 = arith.constant 0 : i32
    %0 = arith.cmpi eq, %arg3, %c0_i32 : i32
    %1 = arith.extui %0 : i1 to i32
    %c0_i32_0 = arith.constant 0 : i32
    %2 = arith.cmpi ne, %1, %c0_i32_0 : i32
    scf.if %2 {
      %cst_11 = arith.constant 0.000000e+00 : f32
      %13 = vector.broadcast %cst_11 : f32 to vector<64x128xf32>
      %c0_12 = arith.constant 0 : index
      %c0_13 = arith.constant 0 : index
      %14 = vector.load %arg8[%c0_12, %c0_13] : memref<64x128xf32, #tpu.memory_space<vmem>>, vector<64x128xf32>
      tpu.vector_store %arg8[%c0_12, %c0_13], %13 {strides = array<i32>} : memref<64x128xf32, #tpu.memory_space<vmem>>, vector<64x128xf32>,
    } else {
    }
    %c0 = arith.constant 0 : index
    %c0_1 = arith.constant 0 : index
    %3 = vector.load %arg8[%c0, %c0_1] : memref<64x128xf32, #tpu.memory_space<vmem>>, vector<64x128xf32>
    %c0_2 = arith.constant 0 : index
    %c0_3 = arith.constant 0 : index
    %c0_4 = arith.constant 0 : index
    %4 = vector.load %arg4[%c0_2, %c0_3, %c0_4] : memref<1x64x1024xbf16, #tpu.memory_space<vmem>>, vector<1x64x1024xbf16>
    %5 = vector.shape_cast %4 : vector<1x64x1024xbf16> to vector<64x1024xbf16>
    %c0_5 = arith.constant 0 : index
    %c0_6 = arith.constant 0 : index
    %6 = vector.load %arg5[%c0_5, %c0_6] : memref<1024x128xbf16, #tpu.memory_space<vmem>>, vector<1024x128xbf16>
    %cst = arith.constant dense<0.000000e+00> : vector<64x128xf32>
    %7 = tpu.matmul %5, %6, %cst {dimension_numbers = #tpu.dot_dimension_numbers<[1], [0], [0], [1], [0, 0, 1, 1], [], []>} : vector<64x1024xbf16>, vector<1024x128xbf16>, vector<64x128xf32> -> vector<64x128xf32>
    %8 = arith.addf %3, %7 : vector<64x128xf32>
    %c0_7 = arith.constant 0 : index
    %c0_8 = arith.constant 0 : index
    %9 = vector.load %arg8[%c0_7, %c0_8] : memref<64x128xf32, #tpu.memory_space<vmem>>, vector<64x128xf32>
    tpu.vector_store %arg8[%c0_7, %c0_8], %8 {strides = array<i32>} : memref<64x128xf32, #tpu.memory_space<vmem>>, vector<64x128xf32>,
    %c0_i32_9 = arith.constant 0 : i32
    %10 = arith.cmpi eq, %arg3, %c0_i32_9 : i32
    %11 = arith.extui %10 : i1 to i32
    %c0_i32_10 = arith.constant 0 : i32
    %12 = arith.cmpi ne, %11, %c0_i32_10 : i32
    scf.if %12 {
      %c0_11 = arith.constant 0 : index
      %c0_12 = arith.constant 0 : index
      %13 = vector.load %arg8[%c0_11, %c0_12] : memref<64x128xf32, #tpu.memory_space<vmem>>, vector<64x128xf32>
      %c0_13 = arith.constant 0 : index
      %c0_14 = arith.constant 0 : index
      %14 = vector.load %arg6[%c0_13, %c0_14] : memref<1x128xf32, #tpu.memory_space<vmem>>, vector<1x128xf32>
      %15 = vector.broadcast %14 : vector<1x128xf32> to vector<64x128xf32>
      %16 = arith.addf %13, %15 : vector<64x128xf32>
      %cst_15 = arith.constant dense<0.000000e+00> : vector<128xf32>
      %17 = vector.multi_reduction <add>, %16, %cst_15 [0] : vector<64x128xf32> to vector<128xf32>
      %18 = vector.shape_cast %17 : vector<128xf32> to vector<1x128xf32>
      %cst_16 = arith.constant 6.400000e+01 : f32
      %19 = vector.broadcast %cst_16 : f32 to vector<1x128xf32>
      %20 = arith.divf %18, %19 : vector<1x128xf32>
      %21 = vector.broadcast %20 : vector<1x128xf32> to vector<64x128xf32>
      %22 = arith.subf %16, %21 : vector<64x128xf32>
      %23 = arith.mulf %22, %22 : vector<64x128xf32>
      %cst_17 = arith.constant dense<0.000000e+00> : vector<128xf32>
      %24 = vector.multi_reduction <add>, %23, %cst_17 [0] : vector<64x128xf32> to vector<128xf32>
      %25 = vector.shape_cast %24 : vector<128xf32> to vector<1x128xf32>
      %cst_18 = arith.constant 6.400000e+01 : f32
      %26 = vector.broadcast %cst_18 : f32 to vector<1x128xf32>
      %27 = arith.divf %25, %26 : vector<1x128xf32>
      %cst_19 = arith.constant 9.99999974E-6 : f32
      %28 = vector.broadcast %cst_19 : f32 to vector<1x128xf32>
      %29 = arith.addf %27, %28 : vector<1x128xf32>
      %30 = math.rsqrt %29 : vector<1x128xf32>
      %31 = vector.broadcast %30 : vector<1x128xf32> to vector<64x128xf32>
      %32 = arith.mulf %22, %31 : vector<64x128xf32>
      %cst_20 = arith.constant 0.000000e+00 : f32
      %33 = vector.broadcast %cst_20 : f32 to vector<64x128xf32>
      %34 = arith.cmpf oge, %32, %33 : vector<64x128xf32>
      %cst_21 = arith.constant 2.000000e-01 : f32
      %35 = vector.broadcast %cst_21 : f32 to vector<64x128xf32>
      %36 = arith.mulf %35, %32 : vector<64x128xf32>
      %37 = arith.select %34, %32, %36 : vector<64x128xi1>, vector<64x128xf32>
      %38 = arith.truncf %37 : vector<64x128xf32> to vector<64x128xbf16>
      %c0_22 = arith.constant 0 : index
      %c0_23 = arith.constant 0 : index
      %c0_24 = arith.constant 0 : index
      %39 = vector.load %arg7[%c0_22, %c0_23, %c0_24] : memref<1x64x128xbf16, #tpu.memory_space<vmem>>, vector<1x64x128xbf16>
      %40 = vector.shape_cast %39 : vector<1x64x128xbf16> to vector<64x128xbf16>
      %41 = vector.shape_cast %38 : vector<64x128xbf16> to vector<1x64x128xbf16>
      tpu.vector_store %arg7[%c0_22, %c0_23, %c0_24], %41 {strides = array<i32>} : memref<1x64x128xbf16, #tpu.memory_space<vmem>>, vector<1x64x128xbf16>,
    } else {
    }
    return
  }
  func.func @transform_0(%arg0: i32, %arg1: i32, %arg2: i32, %arg3: i32) -> (i32, i32, i32) {
    %c0_i32 = arith.constant 0 : i32
    return %arg0, %arg1, %arg3 : i32, i32, i32
  }
  func.func @transform_1(%arg0: i32, %arg1: i32, %arg2: i32, %arg3: i32) -> (i32, i32) {
    %c0_i32 = arith.constant 0 : i32
    return %arg3, %arg2 : i32, i32
  }
  func.func @transform_2(%arg0: i32, %arg1: i32, %arg2: i32, %arg3: i32) -> (i32, i32) {
    %c0_i32 = arith.constant 0 : i32
    %c0_i32_0 = arith.constant 0 : i32
    return %c0_i32, %arg2 : i32, i32
  }
  func.func @transform_3(%arg0: i32, %arg1: i32, %arg2: i32, %arg3: i32) -> (i32, i32, i32) {
    %c0_i32 = arith.constant 0 : i32
    return %arg0, %arg1, %arg2 : i32, i32, i32
  }
}

module attributes {stable_mosaic.version = 11 : i64} {
  func.func @_conv_mm_kernel(%arg0: i32, %arg1: i32, %arg2: i32, %arg3: i32, %arg4: memref<1x16x2048xbf16, #tpu.memory_space<vmem>>, %arg5: memref<2048x128xbf16, #tpu.memory_space<vmem>>, %arg6: memref<1x128xf32, #tpu.memory_space<vmem>>, %arg7: memref<1x16x128xbf16, #tpu.memory_space<vmem>>, %arg8: memref<16x128xf32, #tpu.memory_space<vmem>>) attributes {dimension_semantics = [#tpu.dimension_semantics<parallel>, #tpu.dimension_semantics<parallel>, #tpu.dimension_semantics<parallel>, #tpu.dimension_semantics<arbitrary>], iteration_bounds = array<i64: 2, 1, 2, 1>, scalar_prefetch = 0 : i64, scratch_operands = 1 : i64, tpu.core_type = #tpu.core_type<tc>, window_params = [{transform_indices = @transform_0, window_bounds = array<i64: 1, 16, 2048>}, {transform_indices = @transform_1, window_bounds = array<i64: 2048, 128>}, {transform_indices = @transform_2, window_bounds = array<i64: 1, 128>}, {transform_indices = @transform_3, window_bounds = array<i64: 1, 16, 128>}]} {
    %c0_i32 = arith.constant 0 : i32
    %0 = arith.cmpi eq, %arg3, %c0_i32 : i32
    %1 = arith.extui %0 : i1 to i32
    %c0_i32_0 = arith.constant 0 : i32
    %2 = arith.cmpi ne, %1, %c0_i32_0 : i32
    scf.if %2 {
      %cst_11 = arith.constant 0.000000e+00 : f32
      %13 = vector.broadcast %cst_11 : f32 to vector<16x128xf32>
      %c0_12 = arith.constant 0 : index
      %c0_13 = arith.constant 0 : index
      %14 = vector.load %arg8[%c0_12, %c0_13] : memref<16x128xf32, #tpu.memory_space<vmem>>, vector<16x128xf32>
      tpu.vector_store %arg8[%c0_12, %c0_13], %13 {strides = array<i32>} : memref<16x128xf32, #tpu.memory_space<vmem>>, vector<16x128xf32>,
    } else {
    }
    %c0 = arith.constant 0 : index
    %c0_1 = arith.constant 0 : index
    %3 = vector.load %arg8[%c0, %c0_1] : memref<16x128xf32, #tpu.memory_space<vmem>>, vector<16x128xf32>
    %c0_2 = arith.constant 0 : index
    %c0_3 = arith.constant 0 : index
    %c0_4 = arith.constant 0 : index
    %4 = vector.load %arg4[%c0_2, %c0_3, %c0_4] : memref<1x16x2048xbf16, #tpu.memory_space<vmem>>, vector<1x16x2048xbf16>
    %5 = vector.shape_cast %4 : vector<1x16x2048xbf16> to vector<16x2048xbf16>
    %c0_5 = arith.constant 0 : index
    %c0_6 = arith.constant 0 : index
    %6 = vector.load %arg5[%c0_5, %c0_6] : memref<2048x128xbf16, #tpu.memory_space<vmem>>, vector<2048x128xbf16>
    %cst = arith.constant dense<0.000000e+00> : vector<16x128xf32>
    %7 = tpu.matmul %5, %6, %cst {dimension_numbers = #tpu.dot_dimension_numbers<[1], [0], [0], [1], [0, 0, 1, 1], [], []>} : vector<16x2048xbf16>, vector<2048x128xbf16>, vector<16x128xf32> -> vector<16x128xf32>
    %8 = arith.addf %3, %7 : vector<16x128xf32>
    %c0_7 = arith.constant 0 : index
    %c0_8 = arith.constant 0 : index
    %9 = vector.load %arg8[%c0_7, %c0_8] : memref<16x128xf32, #tpu.memory_space<vmem>>, vector<16x128xf32>
    tpu.vector_store %arg8[%c0_7, %c0_8], %8 {strides = array<i32>} : memref<16x128xf32, #tpu.memory_space<vmem>>, vector<16x128xf32>,
    %c0_i32_9 = arith.constant 0 : i32
    %10 = arith.cmpi eq, %arg3, %c0_i32_9 : i32
    %11 = arith.extui %10 : i1 to i32
    %c0_i32_10 = arith.constant 0 : i32
    %12 = arith.cmpi ne, %11, %c0_i32_10 : i32
    scf.if %12 {
      %c0_11 = arith.constant 0 : index
      %c0_12 = arith.constant 0 : index
      %13 = vector.load %arg8[%c0_11, %c0_12] : memref<16x128xf32, #tpu.memory_space<vmem>>, vector<16x128xf32>
      %c0_13 = arith.constant 0 : index
      %c0_14 = arith.constant 0 : index
      %14 = vector.load %arg6[%c0_13, %c0_14] : memref<1x128xf32, #tpu.memory_space<vmem>>, vector<1x128xf32>
      %15 = vector.broadcast %14 : vector<1x128xf32> to vector<16x128xf32>
      %16 = arith.addf %13, %15 : vector<16x128xf32>
      %cst_15 = arith.constant dense<0.000000e+00> : vector<128xf32>
      %17 = vector.multi_reduction <add>, %16, %cst_15 [0] : vector<16x128xf32> to vector<128xf32>
      %18 = vector.shape_cast %17 : vector<128xf32> to vector<1x128xf32>
      %cst_16 = arith.constant 1.600000e+01 : f32
      %19 = vector.broadcast %cst_16 : f32 to vector<1x128xf32>
      %20 = arith.divf %18, %19 : vector<1x128xf32>
      %21 = vector.broadcast %20 : vector<1x128xf32> to vector<16x128xf32>
      %22 = arith.subf %16, %21 : vector<16x128xf32>
      %23 = arith.mulf %22, %22 : vector<16x128xf32>
      %cst_17 = arith.constant dense<0.000000e+00> : vector<128xf32>
      %24 = vector.multi_reduction <add>, %23, %cst_17 [0] : vector<16x128xf32> to vector<128xf32>
      %25 = vector.shape_cast %24 : vector<128xf32> to vector<1x128xf32>
      %cst_18 = arith.constant 1.600000e+01 : f32
      %26 = vector.broadcast %cst_18 : f32 to vector<1x128xf32>
      %27 = arith.divf %25, %26 : vector<1x128xf32>
      %cst_19 = arith.constant 9.99999974E-6 : f32
      %28 = vector.broadcast %cst_19 : f32 to vector<1x128xf32>
      %29 = arith.addf %27, %28 : vector<1x128xf32>
      %30 = math.rsqrt %29 : vector<1x128xf32>
      %31 = vector.broadcast %30 : vector<1x128xf32> to vector<16x128xf32>
      %32 = arith.mulf %22, %31 : vector<16x128xf32>
      %cst_20 = arith.constant 0.000000e+00 : f32
      %33 = vector.broadcast %cst_20 : f32 to vector<16x128xf32>
      %34 = arith.cmpf oge, %32, %33 : vector<16x128xf32>
      %cst_21 = arith.constant 2.000000e-01 : f32
      %35 = vector.broadcast %cst_21 : f32 to vector<16x128xf32>
      %36 = arith.mulf %35, %32 : vector<16x128xf32>
      %37 = arith.select %34, %32, %36 : vector<16x128xi1>, vector<16x128xf32>
      %38 = arith.truncf %37 : vector<16x128xf32> to vector<16x128xbf16>
      %c0_22 = arith.constant 0 : index
      %c0_23 = arith.constant 0 : index
      %c0_24 = arith.constant 0 : index
      %39 = vector.load %arg7[%c0_22, %c0_23, %c0_24] : memref<1x16x128xbf16, #tpu.memory_space<vmem>>, vector<1x16x128xbf16>
      %40 = vector.shape_cast %39 : vector<1x16x128xbf16> to vector<16x128xbf16>
      %41 = vector.shape_cast %38 : vector<16x128xbf16> to vector<1x16x128xbf16>
      tpu.vector_store %arg7[%c0_22, %c0_23, %c0_24], %41 {strides = array<i32>} : memref<1x16x128xbf16, #tpu.memory_space<vmem>>, vector<1x16x128xbf16>,
    } else {
    }
    return
  }
  func.func @transform_0(%arg0: i32, %arg1: i32, %arg2: i32, %arg3: i32) -> (i32, i32, i32) {
    %c0_i32 = arith.constant 0 : i32
    return %arg0, %arg1, %arg3 : i32, i32, i32
  }
  func.func @transform_1(%arg0: i32, %arg1: i32, %arg2: i32, %arg3: i32) -> (i32, i32) {
    %c0_i32 = arith.constant 0 : i32
    return %arg3, %arg2 : i32, i32
  }
  func.func @transform_2(%arg0: i32, %arg1: i32, %arg2: i32, %arg3: i32) -> (i32, i32) {
    %c0_i32 = arith.constant 0 : i32
    %c0_i32_0 = arith.constant 0 : i32
    return %c0_i32, %arg2 : i32, i32
  }
  func.func @transform_3(%arg0: i32, %arg1: i32, %arg2: i32, %arg3: i32) -> (i32, i32, i32) {
    %c0_i32 = arith.constant 0 : i32
    return %arg0, %arg1, %arg2 : i32, i32, i32
  }
}

module attributes {stable_mosaic.version = 11 : i64} {
  func.func @_conv_mm_kernel(%arg0: i32, %arg1: i32, %arg2: i32, %arg3: i32, %arg4: memref<1x9x2048xbf16, #tpu.memory_space<vmem>>, %arg5: memref<2048x256xbf16, #tpu.memory_space<vmem>>, %arg6: memref<1x256xf32, #tpu.memory_space<vmem>>, %arg7: memref<1x9x256xbf16, #tpu.memory_space<vmem>>, %arg8: memref<9x256xf32, #tpu.memory_space<vmem>>) attributes {dimension_semantics = [#tpu.dimension_semantics<parallel>, #tpu.dimension_semantics<parallel>, #tpu.dimension_semantics<parallel>, #tpu.dimension_semantics<arbitrary>], iteration_bounds = array<i64: 2, 1, 2, 2>, scalar_prefetch = 0 : i64, scratch_operands = 1 : i64, tpu.core_type = #tpu.core_type<tc>, window_params = [{transform_indices = @transform_0, window_bounds = array<i64: 1, 9, 2048>}, {transform_indices = @transform_1, window_bounds = array<i64: 2048, 256>}, {transform_indices = @transform_2, window_bounds = array<i64: 1, 256>}, {transform_indices = @transform_3, window_bounds = array<i64: 1, 9, 256>}]} {
    %c0_i32 = arith.constant 0 : i32
    %0 = arith.cmpi eq, %arg3, %c0_i32 : i32
    %1 = arith.extui %0 : i1 to i32
    %c0_i32_0 = arith.constant 0 : i32
    %2 = arith.cmpi ne, %1, %c0_i32_0 : i32
    scf.if %2 {
      %cst_10 = arith.constant 0.000000e+00 : f32
      %13 = vector.broadcast %cst_10 : f32 to vector<9x256xf32>
      %c0_11 = arith.constant 0 : index
      %c0_12 = arith.constant 0 : index
      %14 = vector.load %arg8[%c0_11, %c0_12] : memref<9x256xf32, #tpu.memory_space<vmem>>, vector<9x256xf32>
      tpu.vector_store %arg8[%c0_11, %c0_12], %13 {strides = array<i32>} : memref<9x256xf32, #tpu.memory_space<vmem>>, vector<9x256xf32>,
    } else {
    }
    %c0 = arith.constant 0 : index
    %c0_1 = arith.constant 0 : index
    %3 = vector.load %arg8[%c0, %c0_1] : memref<9x256xf32, #tpu.memory_space<vmem>>, vector<9x256xf32>
    %c0_2 = arith.constant 0 : index
    %c0_3 = arith.constant 0 : index
    %c0_4 = arith.constant 0 : index
    %4 = vector.load %arg4[%c0_2, %c0_3, %c0_4] : memref<1x9x2048xbf16, #tpu.memory_space<vmem>>, vector<1x9x2048xbf16>
    %5 = vector.shape_cast %4 : vector<1x9x2048xbf16> to vector<9x2048xbf16>
    %c0_5 = arith.constant 0 : index
    %c0_6 = arith.constant 0 : index
    %6 = vector.load %arg5[%c0_5, %c0_6] : memref<2048x256xbf16, #tpu.memory_space<vmem>>, vector<2048x256xbf16>
    %cst = arith.constant dense<0.000000e+00> : vector<9x256xf32>
    %7 = tpu.matmul %5, %6, %cst {dimension_numbers = #tpu.dot_dimension_numbers<[1], [0], [0], [1], [0, 0, 1, 1], [], []>} : vector<9x2048xbf16>, vector<2048x256xbf16>, vector<9x256xf32> -> vector<9x256xf32>
    %8 = arith.addf %3, %7 : vector<9x256xf32>
    %c0_7 = arith.constant 0 : index
    %c0_8 = arith.constant 0 : index
    %9 = vector.load %arg8[%c0_7, %c0_8] : memref<9x256xf32, #tpu.memory_space<vmem>>, vector<9x256xf32>
    tpu.vector_store %arg8[%c0_7, %c0_8], %8 {strides = array<i32>} : memref<9x256xf32, #tpu.memory_space<vmem>>, vector<9x256xf32>,
    %c1_i32 = arith.constant 1 : i32
    %10 = arith.cmpi eq, %arg3, %c1_i32 : i32
    %11 = arith.extui %10 : i1 to i32
    %c0_i32_9 = arith.constant 0 : i32
    %12 = arith.cmpi ne, %11, %c0_i32_9 : i32
    scf.if %12 {
      %c0_10 = arith.constant 0 : index
      %c0_11 = arith.constant 0 : index
      %13 = vector.load %arg8[%c0_10, %c0_11] : memref<9x256xf32, #tpu.memory_space<vmem>>, vector<9x256xf32>
      %c0_12 = arith.constant 0 : index
      %c0_13 = arith.constant 0 : index
      %14 = vector.load %arg6[%c0_12, %c0_13] : memref<1x256xf32, #tpu.memory_space<vmem>>, vector<1x256xf32>
      %15 = vector.broadcast %14 : vector<1x256xf32> to vector<9x256xf32>
      %16 = arith.addf %13, %15 : vector<9x256xf32>
      %cst_14 = arith.constant dense<0.000000e+00> : vector<256xf32>
      %17 = vector.multi_reduction <add>, %16, %cst_14 [0] : vector<9x256xf32> to vector<256xf32>
      %18 = vector.shape_cast %17 : vector<256xf32> to vector<1x256xf32>
      %cst_15 = arith.constant 9.000000e+00 : f32
      %19 = vector.broadcast %cst_15 : f32 to vector<1x256xf32>
      %20 = arith.divf %18, %19 : vector<1x256xf32>
      %21 = vector.broadcast %20 : vector<1x256xf32> to vector<9x256xf32>
      %22 = arith.subf %16, %21 : vector<9x256xf32>
      %23 = arith.mulf %22, %22 : vector<9x256xf32>
      %cst_16 = arith.constant dense<0.000000e+00> : vector<256xf32>
      %24 = vector.multi_reduction <add>, %23, %cst_16 [0] : vector<9x256xf32> to vector<256xf32>
      %25 = vector.shape_cast %24 : vector<256xf32> to vector<1x256xf32>
      %cst_17 = arith.constant 9.000000e+00 : f32
      %26 = vector.broadcast %cst_17 : f32 to vector<1x256xf32>
      %27 = arith.divf %25, %26 : vector<1x256xf32>
      %cst_18 = arith.constant 9.99999974E-6 : f32
      %28 = vector.broadcast %cst_18 : f32 to vector<1x256xf32>
      %29 = arith.addf %27, %28 : vector<1x256xf32>
      %30 = math.rsqrt %29 : vector<1x256xf32>
      %31 = vector.broadcast %30 : vector<1x256xf32> to vector<9x256xf32>
      %32 = arith.mulf %22, %31 : vector<9x256xf32>
      %cst_19 = arith.constant 0.000000e+00 : f32
      %33 = vector.broadcast %cst_19 : f32 to vector<9x256xf32>
      %34 = arith.cmpf oge, %32, %33 : vector<9x256xf32>
      %cst_20 = arith.constant 2.000000e-01 : f32
      %35 = vector.broadcast %cst_20 : f32 to vector<9x256xf32>
      %36 = arith.mulf %35, %32 : vector<9x256xf32>
      %37 = arith.select %34, %32, %36 : vector<9x256xi1>, vector<9x256xf32>
      %38 = arith.truncf %37 : vector<9x256xf32> to vector<9x256xbf16>
      %c0_21 = arith.constant 0 : index
      %c0_22 = arith.constant 0 : index
      %c0_23 = arith.constant 0 : index
      %39 = vector.load %arg7[%c0_21, %c0_22, %c0_23] : memref<1x9x256xbf16, #tpu.memory_space<vmem>>, vector<1x9x256xbf16>
      %40 = vector.shape_cast %39 : vector<1x9x256xbf16> to vector<9x256xbf16>
      %41 = vector.shape_cast %38 : vector<9x256xbf16> to vector<1x9x256xbf16>
      tpu.vector_store %arg7[%c0_21, %c0_22, %c0_23], %41 {strides = array<i32>} : memref<1x9x256xbf16, #tpu.memory_space<vmem>>, vector<1x9x256xbf16>,
    } else {
    }
    return
  }
  func.func @transform_0(%arg0: i32, %arg1: i32, %arg2: i32, %arg3: i32) -> (i32, i32, i32) {
    %c0_i32 = arith.constant 0 : i32
    return %arg0, %arg1, %arg3 : i32, i32, i32
  }
  func.func @transform_1(%arg0: i32, %arg1: i32, %arg2: i32, %arg3: i32) -> (i32, i32) {
    %c0_i32 = arith.constant 0 : i32
    return %arg3, %arg2 : i32, i32
  }
  func.func @transform_2(%arg0: i32, %arg1: i32, %arg2: i32, %arg3: i32) -> (i32, i32) {
    %c0_i32 = arith.constant 0 : i32
    %c0_i32_0 = arith.constant 0 : i32
    return %c0_i32, %arg2 : i32, i32
  }
  func.func @transform_3(%arg0: i32, %arg1: i32, %arg2: i32, %arg3: i32) -> (i32, i32, i32) {
    %c0_i32 = arith.constant 0 : i32
    return %arg0, %arg1, %arg2 : i32, i32, i32
  }
}

module attributes {stable_mosaic.version = 11 : i64} {
  func.func @_conv_mm_kernel(%arg0: i32, %arg1: i32, %arg2: i32, %arg3: i32, %arg4: memref<1x4x2048xbf16, #tpu.memory_space<vmem>>, %arg5: memref<2048x128xbf16, #tpu.memory_space<vmem>>, %arg6: memref<1x128xf32, #tpu.memory_space<vmem>>, %arg7: memref<1x1x128xf32, #tpu.memory_space<vmem>>, %arg8: memref<4x128xf32, #tpu.memory_space<vmem>>) attributes {dimension_semantics = [#tpu.dimension_semantics<parallel>, #tpu.dimension_semantics<parallel>, #tpu.dimension_semantics<parallel>, #tpu.dimension_semantics<arbitrary>], iteration_bounds = array<i64: 2, 1, 1, 4>, scalar_prefetch = 0 : i64, scratch_operands = 1 : i64, tpu.core_type = #tpu.core_type<tc>, window_params = [{transform_indices = @transform_0, window_bounds = array<i64: 1, 4, 2048>}, {transform_indices = @transform_1, window_bounds = array<i64: 2048, 128>}, {transform_indices = @transform_2, window_bounds = array<i64: 1, 128>}, {transform_indices = @transform_3, window_bounds = array<i64: 1, 1, 128>}]} {
    %c0_i32 = arith.constant 0 : i32
    %0 = arith.cmpi eq, %arg3, %c0_i32 : i32
    %1 = arith.extui %0 : i1 to i32
    %c0_i32_0 = arith.constant 0 : i32
    %2 = arith.cmpi ne, %1, %c0_i32_0 : i32
    scf.if %2 {
      %cst_10 = arith.constant 0.000000e+00 : f32
      %13 = vector.broadcast %cst_10 : f32 to vector<4x128xf32>
      %c0_11 = arith.constant 0 : index
      %c0_12 = arith.constant 0 : index
      %14 = vector.load %arg8[%c0_11, %c0_12] : memref<4x128xf32, #tpu.memory_space<vmem>>, vector<4x128xf32>
      tpu.vector_store %arg8[%c0_11, %c0_12], %13 {strides = array<i32>} : memref<4x128xf32, #tpu.memory_space<vmem>>, vector<4x128xf32>,
    } else {
    }
    %c0 = arith.constant 0 : index
    %c0_1 = arith.constant 0 : index
    %3 = vector.load %arg8[%c0, %c0_1] : memref<4x128xf32, #tpu.memory_space<vmem>>, vector<4x128xf32>
    %c0_2 = arith.constant 0 : index
    %c0_3 = arith.constant 0 : index
    %c0_4 = arith.constant 0 : index
    %4 = vector.load %arg4[%c0_2, %c0_3, %c0_4] : memref<1x4x2048xbf16, #tpu.memory_space<vmem>>, vector<1x4x2048xbf16>
    %5 = vector.shape_cast %4 : vector<1x4x2048xbf16> to vector<4x2048xbf16>
    %c0_5 = arith.constant 0 : index
    %c0_6 = arith.constant 0 : index
    %6 = vector.load %arg5[%c0_5, %c0_6] : memref<2048x128xbf16, #tpu.memory_space<vmem>>, vector<2048x128xbf16>
    %cst = arith.constant dense<0.000000e+00> : vector<4x128xf32>
    %7 = tpu.matmul %5, %6, %cst {dimension_numbers = #tpu.dot_dimension_numbers<[1], [0], [0], [1], [0, 0, 1, 1], [], []>} : vector<4x2048xbf16>, vector<2048x128xbf16>, vector<4x128xf32> -> vector<4x128xf32>
    %8 = arith.addf %3, %7 : vector<4x128xf32>
    %c0_7 = arith.constant 0 : index
    %c0_8 = arith.constant 0 : index
    %9 = vector.load %arg8[%c0_7, %c0_8] : memref<4x128xf32, #tpu.memory_space<vmem>>, vector<4x128xf32>
    tpu.vector_store %arg8[%c0_7, %c0_8], %8 {strides = array<i32>} : memref<4x128xf32, #tpu.memory_space<vmem>>, vector<4x128xf32>,
    %c3_i32 = arith.constant 3 : i32
    %10 = arith.cmpi eq, %arg3, %c3_i32 : i32
    %11 = arith.extui %10 : i1 to i32
    %c0_i32_9 = arith.constant 0 : i32
    %12 = arith.cmpi ne, %11, %c0_i32_9 : i32
    scf.if %12 {
      %c0_10 = arith.constant 0 : index
      %c0_11 = arith.constant 0 : index
      %13 = vector.load %arg8[%c0_10, %c0_11] : memref<4x128xf32, #tpu.memory_space<vmem>>, vector<4x128xf32>
      %c0_12 = arith.constant 0 : index
      %c0_13 = arith.constant 0 : index
      %14 = vector.load %arg6[%c0_12, %c0_13] : memref<1x128xf32, #tpu.memory_space<vmem>>, vector<1x128xf32>
      %15 = vector.broadcast %14 : vector<1x128xf32> to vector<4x128xf32>
      %16 = arith.addf %13, %15 : vector<4x128xf32>
      %cst_14 = arith.constant dense<0.000000e+00> : vector<128xf32>
      %17 = vector.multi_reduction <add>, %16, %cst_14 [0] : vector<4x128xf32> to vector<128xf32>
      %18 = vector.shape_cast %17 : vector<128xf32> to vector<1x128xf32>
      %cst_15 = arith.constant 4.000000e+00 : f32
      %19 = vector.broadcast %cst_15 : f32 to vector<1x128xf32>
      %20 = arith.divf %18, %19 : vector<1x128xf32>
      %c0_16 = arith.constant 0 : index
      %c0_17 = arith.constant 0 : index
      %c0_18 = arith.constant 0 : index
      %21 = vector.load %arg7[%c0_16, %c0_17, %c0_18] : memref<1x1x128xf32, #tpu.memory_space<vmem>>, vector<1x1x128xf32>
      %22 = vector.shape_cast %21 : vector<1x1x128xf32> to vector<1x128xf32>
      %23 = vector.shape_cast %20 : vector<1x128xf32> to vector<1x1x128xf32>
      tpu.vector_store %arg7[%c0_16, %c0_17, %c0_18], %23 {strides = array<i32>} : memref<1x1x128xf32, #tpu.memory_space<vmem>>, vector<1x1x128xf32>,
    } else {
    }
    return
  }
  func.func @transform_0(%arg0: i32, %arg1: i32, %arg2: i32, %arg3: i32) -> (i32, i32, i32) {
    %c0_i32 = arith.constant 0 : i32
    return %arg0, %arg1, %arg3 : i32, i32, i32
  }
  func.func @transform_1(%arg0: i32, %arg1: i32, %arg2: i32, %arg3: i32) -> (i32, i32) {
    %c0_i32 = arith.constant 0 : i32
    return %arg3, %arg2 : i32, i32
  }
  func.func @transform_2(%arg0: i32, %arg1: i32, %arg2: i32, %arg3: i32) -> (i32, i32) {
    %c0_i32 = arith.constant 0 : i32
    %c0_i32_0 = arith.constant 0 : i32
    return %c0_i32, %arg2 : i32, i32
  }
  func.func @transform_3(%arg0: i32, %arg1: i32, %arg2: i32, %arg3: i32) -> (i32, i32, i32) {
    %c0_i32 = arith.constant 0 : i32
    %c0_i32_0 = arith.constant 0 : i32
    return %arg0, %c0_i32, %arg2 : i32, i32, i32
  }
}

</mosaic_0001>

<bundles_post_ra>
// kernel: discriminator_forward.5
= control target key start
LH: loop header
LB: loop body
LE: loop exit
PB: predicated region body
PF: predicated region fallthrough
CT: control target
= control target key end

     0   :  { %s1273_s12 = smov 0   ;;  %s1275_s13 = smov 0   ;;  %s1523_s0 = inlined_call_operand.vmem [shape: bf16[2,256,48], index: 0, kind: input, shape index: {}]   ;;  %s1524_s1 = inlined_call_operand.vmem [shape: bf16[48,64], index: 1, kind: input, shape index: {}]   ;;  %s1525_s2 = inlined_call_operand.vmem [shape: f32[1,64], index: 2, kind: input, shape index: {}]   ;;  %s1526_s3 = inlined_call_operand.vmem [shape: bf16[2,256,64], index: 3, kind: output, shape index: {}]  }
   0x1   :  { %s1277_s14 = smov 0  }
   0x2 LB: > { %s39_s15 = sadd.s32 1, %s1246_s13  ;;  %p1073_p0 = scmp.ge.s32.totalorder %s1250_s14, 1  ;;  %s1250_s14 = sphi %s1277_s14, %s13_s14   ;;  %s1246_s13 = sphi %s1275_s13, %s1528_s13   ;;  %s1242_s12 = sphi %s1273_s12, %s1527_s12  }
   0x3   : > { %p41_p1 = scmp.ge.s32.totalorder %s39_s15, 2  ;;  %p203_p2 = scmp.lt.s32.totalorder %s1250_s14, 3 }
   0x5   : > { %s1530_s15 = smov (%p41_p1, %s39_s15), 0  ;;  %p204_p3 = pnand %p1073_p0, %p203_p2 }
   0x6   : > { %p253_p4 = scmp.lt.s32.totalorder (!%p204_p3), %s1242_s12, 1 }
   0x7   : > { %207 = sbr.rel (%p204_p3) target bundleno = 235 (0xeb), region = 32 }
   0xc   : > { %v1192_v0 = vld [vmem:[%s1524_s1 + $0x10] sm:$0xff]  ;;  %v1191_v1 = vld [vmem:[%s1524_s1 + $0x8] sm:$0xff]  ;;  %s1532_s12 = smov (!%p253_p4, %s1242_s12), 1  ;;  %v1190_v2 = vld [vmem:[%s1524_s1] sm:$0xff]  ;;  %vm496_vm0 = vcmask 392192   ;;  %vm295_vm1 = vcmask 523264  }
   0xd   : > { %550 = vmatpush.bf16.msra.mxu0 %v1192_v0  ;;  %1193 = vmatpush.bf16.msra.mxu1 %v1192_v0  ;;  %s1172_s20 = sshll.u32 %s1532_s12, 7  ;;  %v1252_v11 = vmov 0.0   ;;  %v1379_v30 = vld [vmem:[%s1525_s2] ss:$0 sm:$0xff]  ;;  %vm898_vm4 = vcmask 519168  }
   0xe   : > { %1194 = vmatpush.bf16.msra.mxu2 %v1192_v0  ;;  %1195 = vmatpush.bf16.msra.mxu3 %v1192_v0  ;;  %s1308_s25 = scalar_lea.vmem %s1523_s0, %s1172_s20  ;;  %296 = vst.msk [vmem:[#allocation2] sm:$0xff] %vm295_vm1, %v1252_v11  ;;  %s1392_s30 = scalar_lea.vmem %s1526_s3, %s1172_s20 }
   0xf   : > { %v1174_v3 = vld [vmem:[%s1308_s25] sm:$0xff]  ;;  %v1175_v7 = vld [vmem:[%s1308_s25 + $0x8] sm:$0xff]  ;;  %297 = vst.msk [vmem:[#allocation2 + $0x8] sm:$0xff] %vm295_vm1, %v1252_v11  ;;  %v1176_v12 = vld [vmem:[%s1308_s25 + $0x10] sm:$0xff] }
  0x10   : > { %v1178_v4 = vld [vmem:[%s1308_s25 + $0x20] sm:$0xff]  ;;  %v1179_v8 = vld [vmem:[%s1308_s25 + $0x28] sm:$0xff]  ;;  %298 = vst.msk [vmem:[#allocation2 + $0x10] sm:$0xff] %vm295_vm1, %v1252_v11  ;;  %v1180_v13 = vld [vmem:[%s1308_s25 + $0x30] sm:$0xff] }
  0x11   : > { %551 = vmatpush.bf16.msra.mxu0 %v1191_v1  ;;  %1196 = vmatpush.bf16.msra.mxu1 %v1191_v1  ;;  %v1182_v5 = vld [vmem:[%s1308_s25 + $0x40] sm:$0xff]  ;;  %v1183_v9 = vld [vmem:[%s1308_s25 + $0x48] sm:$0xff]  ;;  %299 = vst.msk [vmem:[#allocation2 + $0x18] sm:$0xff] %vm295_vm1, %v1252_v11  ;;  %v1184_v14 = vld [vmem:[%s1308_s25 + $0x50] sm:$0xff] }
  0x12   : > { %1197 = vmatpush.bf16.msra.mxu2 %v1191_v1  ;;  %1198 = vmatpush.bf16.msra.mxu3 %v1191_v1  ;;  %v1186_v6 = vld [vmem:[%s1308_s25 + $0x60] sm:$0xff]  ;;  %v1187_v10 = vld [vmem:[%s1308_s25 + $0x68] sm:$0xff]  ;;  %300 = vst.msk [vmem:[#allocation2 + $0x20] sm:$0xff] %vm295_vm1, %v1252_v11  ;;  %v1188_v15 = vld [vmem:[%s1308_s25 + $0x70] sm:$0xff] }
  0x13   : > { %301 = vst.msk [vmem:[#allocation2 + $0x28] sm:$0xff] %vm295_vm1, %v1252_v11  ;;  %v1177_v16 = vld [vmem:[%s1308_s25 + $0x18] sm:$0xff] }
  0x14   : > { %302 = vst.msk [vmem:[#allocation2 + $0x30] sm:$0xff] %vm295_vm1, %v1252_v11  ;;  %v1181_v17 = vld [vmem:[%s1308_s25 + $0x38] sm:$0xff] }
  0x15   : > { %552 = vmatpush.bf16.msra.mxu0 %v1190_v2  ;;  %1199 = vmatpush.bf16.msra.mxu1 %v1190_v2  ;;  %303 = vst.msk [vmem:[#allocation2 + $0x38] sm:$0xff] %vm295_vm1, %v1252_v11  ;;  %v1185_v18 = vld [vmem:[%s1308_s25 + $0x58] sm:$0xff]  ;;  %v328_v20 = vld [vmem:[#allocation2] sm:$0xff] }
  0x16   : > { %1200 = vmatpush.bf16.msra.mxu2 %v1190_v2  ;;  %1201 = vmatpush.bf16.msra.mxu3 %v1190_v2  ;;  %304 = vst.msk [vmem:[#allocation2 + $0x40] sm:$0xff] %vm295_vm1, %v1252_v11  ;;  %v1189_v19 = vld [vmem:[%s1308_s25 + $0x78] sm:$0xff]  ;;  %v329_v28 = vld [vmem:[#allocation2 + $0x8] sm:$0xff] }
  0x17   : > { %305 = vst.msk [vmem:[#allocation2 + $0x48] sm:$0xff] %vm295_vm1, %v1252_v11  ;;  %v330_v50 = vld [vmem:[#allocation2 + $0x10] sm:$0xff] }
  0x18   : > { %1154 = vmatmul.msk.bf16.vlgmr.msra.gmra.mxu0 %vm496_vm0, %v1174_v3  ;;  %1158 = vmatmul.msk.bf16.vlgmr.msra.gmra.mxu1 %vm496_vm0, %v1178_v4  ;;  %306 = vst.msk [vmem:[#allocation2 + $0x50] sm:$0xff] %vm295_vm1, %v1252_v11 }
  0x19   : > { %1162 = vmatmul.msk.bf16.vlgmr.msra.gmra.mxu2 %vm496_vm0, %v1182_v5  ;;  %1166 = vmatmul.msk.bf16.vlgmr.msra.gmra.mxu3 %vm496_vm0, %v1186_v6  ;;  %307 = vst.msk [vmem:[#allocation2 + $0x58] sm:$0xff] %vm295_vm1, %v1252_v11 }
  0x1a   : > { %308 = vst.msk [vmem:[#allocation2 + $0x60] sm:$0xff] %vm295_vm1, %v1252_v11 }
  0x1b   : > { %309 = vst.msk [vmem:[#allocation2 + $0x68] sm:$0xff] %vm295_vm1, %v1252_v11 }
  0x1c   : > { %310 = vst.msk [vmem:[#allocation2 + $0x70] sm:$0xff] %vm295_vm1, %v1252_v11 }
  0x1d   : > { %311 = vst.msk [vmem:[#allocation2 + $0x78] sm:$0xff] %vm295_vm1, %v1252_v11  ;;  %v336_v21 = vld [vmem:[#allocation2 + $0x40] sm:$0xff] }
  0x1e   : > { %312 = vst.msk [vmem:[#allocation2 + $0x80] sm:$0xff] %vm295_vm1, %v1252_v11  ;;  %v337_v29 = vld [vmem:[#allocation2 + $0x48] sm:$0xff] }
  0x1f   : > { %313 = vst.msk [vmem:[#allocation2 + $0x88] sm:$0xff] %vm295_vm1, %v1252_v11  ;;  %v338_v55 = vld [vmem:[#allocation2 + $0x50] sm:$0xff] }
  0x20   : > { %314 = vst.msk [vmem:[#allocation2 + $0x90] sm:$0xff] %vm295_vm1, %v1252_v11 }
  0x21   : > { %315 = vst.msk [vmem:[#allocation2 + $0x98] sm:$0xff] %vm295_vm1, %v1252_v11 }
  0x22   : > { %316 = vst.msk [vmem:[#allocation2 + $0xa0] sm:$0xff] %vm295_vm1, %v1252_v11 }
  0x23   : > { %317 = vst.msk [vmem:[#allocation2 + $0xa8] sm:$0xff] %vm295_vm1, %v1252_v11 }
  0x24   : > { %318 = vst.msk [vmem:[#allocation2 + $0xb0] sm:$0xff] %vm295_vm1, %v1252_v11 }
  0x25   : > { %319 = vst.msk [vmem:[#allocation2 + $0xb8] sm:$0xff] %vm295_vm1, %v1252_v11  ;;  %v344_v26 = vld [vmem:[#allocation2 + $0x80] sm:$0xff] }
  0x26   : > { %320 = vst.msk [vmem:[#allocation2 + $0xc0] sm:$0xff] %vm295_vm1, %v1252_v11  ;;  %v345_v44 = vld [vmem:[#allocation2 + $0x88] sm:$0xff] }
  0x27   : > { %321 = vst.msk [vmem:[#allocation2 + $0xc8] sm:$0xff] %vm295_vm1, %v1252_v11 }
  0x28   : > { %1155 = vmatmul.msk.bf16.gmra.mxu0 %vm496_vm0, %v1175_v7  ;;  %1159 = vmatmul.msk.bf16.gmra.mxu1 %vm496_vm0, %v1179_v8  ;;  %322 = vst.msk [vmem:[#allocation2 + $0xd0] sm:$0xff] %vm295_vm1, %v1252_v11 }
  0x29   : > { %1163 = vmatmul.msk.bf16.gmra.mxu2 %vm496_vm0, %v1183_v9  ;;  %1167 = vmatmul.msk.bf16.gmra.mxu3 %vm496_vm0, %v1187_v10  ;;  %323 = vst.msk [vmem:[#allocation2 + $0xd8] sm:$0xff] %vm295_vm1, %v1252_v11  ;;  %v346_v9 = vld [vmem:[#allocation2 + $0x90] sm:$0xff] }
  0x2a   : > { %324 = vst.msk [vmem:[#allocation2 + $0xe0] sm:$0xff] %vm295_vm1, %v1252_v11 }
  0x2b   : > { %325 = vst.msk [vmem:[#allocation2 + $0xe8] sm:$0xff] %vm295_vm1, %v1252_v11 }
  0x2c   : > { %326 = vst.msk [vmem:[#allocation2 + $0xf0] sm:$0xff] %vm295_vm1, %v1252_v11 }
  0x2d   : > { %327 = vst.msk [vmem:[#allocation2 + $0xf8] sm:$0xff] %vm295_vm1, %v1252_v11  ;;  %v352_v27 = vld [vmem:[#allocation2 + $0xc0] sm:$0xff] }
  0x2e   : > { %v353_v46 = vld [vmem:[#allocation2 + $0xc8] sm:$0xff] }
  0x38   : > { %1156 = vmatmul.msk.bf16.gmra.mxu0 %vm496_vm0, %v1176_v12  ;;  %1160 = vmatmul.msk.bf16.gmra.mxu1 %vm496_vm0, %v1180_v13 }
  0x39   : > { %1164 = vmatmul.msk.bf16.gmra.mxu2 %vm496_vm0, %v1184_v14  ;;  %1168 = vmatmul.msk.bf16.gmra.mxu3 %vm496_vm0, %v1188_v15  ;;  %v354_v14 = vld [vmem:[#allocation2 + $0xd0] sm:$0xff] }
  0x48   : > { %1157 = vmatmul.msk.bf16.gmra.mxu0 %vm496_vm0, %v1177_v16  ;;  %1161 = vmatmul.msk.bf16.gmra.mxu1 %vm496_vm0, %v1181_v17 }
  0x49   : > { %1165 = vmatmul.msk.bf16.gmra.mxu2 %vm496_vm0, %v1185_v18  ;;  %1169 = vmatmul.msk.bf16.gmra.mxu3 %vm496_vm0, %v1189_v19  ;;  %v331_v18 = vld [vmem:[#allocation2 + $0x18] sm:$0xff] }
  0x95   : > { %v554_v22 = vpop.f32.mrf.mxu0  ;;  %v574_v23 = vpop.f32.mrf.mxu1 }
  0x96   : > { %v634_v24 = vadd.f32 %v554_v22, %v328_v20  ;;  %v642_v25 = vadd.f32 %v574_v23, %v336_v21 }
  0x98   : > { %667 = vst.msk [vmem:[#allocation2] sm:$0xff] %vm295_vm1, %v634_v24  ;;  %v339_v24 = vld [vmem:[#allocation2 + $0x58] sm:$0xff] }
  0x99   : > { %675 = vst.msk [vmem:[#allocation2 + $0x40] sm:$0xff] %vm295_vm1, %v642_v25 }
  0x9c   : > { %v594_v31 = vpop.f32.mrf.mxu2  ;;  %v614_v32 = vpop.f32.mrf.mxu3 }
  0x9d   : > { %v650_v33 = vadd.f32 %v594_v31, %v344_v26  ;;  %v658_v34 = vadd.f32 %v614_v32, %v352_v27  ;;  %v556_v35 = vpop.f32.mrf.mxu0  ;;  %v576_v36 = vpop.f32.mrf.mxu1 }
  0x9e   : > { %v635_v37 = vadd.f32 %v556_v35, %v329_v28  ;;  %v643_v38 = vadd.f32 %v576_v36, %v337_v29  ;;  %v347_v35 = vld [vmem:[#allocation2 + $0x98] sm:$0xff] }
  0x9f   : > { %v702_v39 = vld [vmem:[#allocation2] sm:$0xff]  ;;  %683 = vst.msk [vmem:[#allocation2 + $0x80] sm:$0xff] %vm295_vm1, %v650_v33 }
  0xa0   : > { %v738_v40 = vadd.f32 %v1379_v30, %v702_v39  ;;  %v710_v41 = vld [vmem:[#allocation2 + $0x40] sm:$0xff]  ;;  %691 = vst.msk [vmem:[#allocation2 + $0xc0] sm:$0xff] %vm295_vm1, %v658_v34 }
  0xa1   : > { %v746_v42 = vadd.f32 %v1379_v30, %v710_v41  ;;  %668 = vst.msk [vmem:[#allocation2 + $0x8] sm:$0xff] %vm295_vm1, %v635_v37 }
  0xa2   : > { %vm770_vm2 = vcmp.ge.f32.partialorder %v738_v40, 0.0  ;;  %v802_v43 = vmul.f32 0.2, %v738_v40  ;;  %676 = vst.msk [vmem:[#allocation2 + $0x48] sm:$0xff] %vm295_vm1, %v643_v38 }
  0xa3   : > { %vm778_vm3 = vcmp.ge.f32.partialorder %v746_v42, 0.0  ;;  %v810_v45 = vmul.f32 0.2, %v746_v42 }
  0xa4   : > { %v834_v47 = vsel %vm770_vm2, %v738_v40, %v802_v43  ;;  %v596_v48 = vpop.f32.mrf.mxu2  ;;  %v616_v49 = vpop.f32.mrf.mxu3 }
  0xa5   : > { %v866_v51 = vpack.c.bf16 %v834_v47, %v834_v47  ;;  %v842_v52 = vsel %vm778_vm3, %v746_v42, %v810_v45  ;;  %v651_v53 = vadd.f32 %v596_v48, %v345_v44  ;;  %v559_v54 = vpop.f32.mrf.mxu0  ;;  %v579_v56 = vpop.f32.mrf.mxu1  ;;  %v659_v59 = vadd.f32 %v616_v49, %v353_v46  ;;  %v355_v46 = vld [vmem:[#allocation2 + $0xd8] sm:$0xff] }
  0xa6   : > { %v874_v57 = vpack.c.bf16 %v842_v52, %v842_v52  ;;  %v718_v58 = vld [vmem:[#allocation2 + $0x80] sm:$0xff]  ;;  %v636_v62 = vadd.f32 %v559_v54, %v330_v50  ;;  %v644_v1 = vadd.f32 %v579_v56, %v338_v55 }
  0xa7   : > { %899 = vst.msk [vmem:[%s1392_s30] sm:$0xf] %vm898_vm4, %v866_v51  ;;  %v754_v60 = vadd.f32 %v1379_v30, %v718_v58  ;;  %v726_v61 = vld [vmem:[#allocation2 + $0xc0] sm:$0xff] }
  0xa8   : > { %907 = vst.msk [vmem:[%s1392_s30 + $0x20] sm:$0xf] %vm898_vm4, %v874_v57  ;;  %v762_v63 = vadd.f32 %v1379_v30, %v726_v61  ;;  %v703_v0 = vld [vmem:[#allocation2 + $0x8] sm:$0xff]  ;;  %v332_v52 = vld [vmem:[#allocation2 + $0x20] sm:$0xff] }
  0xa9   : > { %vm786_vm5 = vcmp.ge.f32.partialorder %v754_v60, 0.0  ;;  %v818_v2 = vmul.f32 0.2, %v754_v60  ;;  %v739_v3 = vadd.f32 %v1379_v30, %v703_v0  ;;  %v711_v4 = vld [vmem:[#allocation2 + $0x48] sm:$0xff]  ;;  %684 = vst.msk [vmem:[#allocation2 + $0x88] sm:$0xff] %vm295_vm1, %v651_v53  ;;  %v340_v55 = vld [vmem:[#allocation2 + $0x60] sm:$0xff] }
  0xaa   : > { %vm794_vm6 = vcmp.ge.f32.partialorder %v762_v63, 0.0  ;;  %v826_v5 = vmul.f32 0.2, %v762_v63  ;;  %v747_v6 = vadd.f32 %v1379_v30, %v711_v4  ;;  %692 = vst.msk [vmem:[#allocation2 + $0xc8] sm:$0xff] %vm295_vm1, %v659_v59  ;;  %v356_v4 = vld [vmem:[#allocation2 + $0xe0] sm:$0xff] }
  0xab   : > { %v850_v7 = vsel %vm786_vm5, %v754_v60, %v818_v2  ;;  %vm771_vm7 = vcmp.ge.f32.partialorder %v739_v3, 0.0  ;;  %v803_v8 = vmul.f32 0.2, %v739_v3  ;;  %669 = vst.msk [vmem:[#allocation2 + $0x10] sm:$0xff] %vm295_vm1, %v636_v62 }
  0xac   : > { %v882_v10 = vpack.c.bf16 %v850_v7, %v850_v7  ;;  %v858_v11 = vsel %vm794_vm6, %v762_v63, %v826_v5  ;;  %vm779_vm8 = vcmp.ge.f32.partialorder %v747_v6, 0.0  ;;  %v811_v12 = vmul.f32 0.2, %v747_v6  ;;  %677 = vst.msk [vmem:[#allocation2 + $0x50] sm:$0xff] %vm295_vm1, %v644_v1  ;;  %v599_v13 = vpop.f32.mrf.mxu2  ;;  %v619_v15 = vpop.f32.mrf.mxu3  ;;  %v348_v1 = vld [vmem:[#allocation2 + $0xa0] sm:$0xff] }
  0xad   : > { %v890_v16 = vpack.c.bf16 %v858_v11, %v858_v11  ;;  %v835_v17 = vsel %vm771_vm7, %v739_v3, %v803_v8  ;;  %v561_v19 = vpop.f32.mrf.mxu0  ;;  %v581_v20 = vpop.f32.mrf.mxu1  ;;  %v652_v23 = vadd.f32 %v599_v13, %v346_v9  ;;  %v660_v26 = vadd.f32 %v619_v15, %v354_v14 }
  0xae   : > { %915 = vst.msk [vmem:[%s1392_s30 + $0x40] sm:$0xf] %vm898_vm4, %v882_v10  ;;  %v867_v21 = vpack.c.bf16 %v835_v17, %v835_v17  ;;  %v843_v22 = vsel %vm779_vm8, %v747_v6, %v811_v12  ;;  %v637_v28 = vadd.f32 %v561_v19, %v331_v18  ;;  %v645_v32 = vadd.f32 %v581_v20, %v339_v24  ;;  %v333_v19 = vld [vmem:[#allocation2 + $0x28] sm:$0xff] }
  0xaf   : > { %923 = vst.msk [vmem:[%s1392_s30 + $0x60] sm:$0xf] %vm898_vm4, %v890_v16  ;;  %v875_v25 = vpack.c.bf16 %v843_v22, %v843_v22 }
  0xb0   : > { %900 = vst.msk [vmem:[%s1392_s30 + $0x4] sm:$0xf] %vm898_vm4, %v867_v21  ;;  %v719_v27 = vld [vmem:[#allocation2 + $0x88] sm:$0xff] }
  0xb1   : > { %908 = vst.msk [vmem:[%s1392_s30 + $0x24] sm:$0xf] %vm898_vm4, %v875_v25  ;;  %v755_v29 = vadd.f32 %v1379_v30, %v719_v27  ;;  %v727_v31 = vld [vmem:[#allocation2 + $0xc8] sm:$0xff] }
  0xb2   : > { %v763_v33 = vadd.f32 %v1379_v30, %v727_v31  ;;  %v704_v34 = vld [vmem:[#allocation2 + $0x10] sm:$0xff]  ;;  %685 = vst.msk [vmem:[#allocation2 + $0x90] sm:$0xff] %vm295_vm1, %v652_v23  ;;  %v341_v23 = vld [vmem:[#allocation2 + $0x68] sm:$0xff] }
  0xb3   : > { %vm787_vm9 = vcmp.ge.f32.partialorder %v755_v29, 0.0  ;;  %v819_v36 = vmul.f32 0.2, %v755_v29  ;;  %v740_v37 = vadd.f32 %v1379_v30, %v704_v34  ;;  %v712_v38 = vld [vmem:[#allocation2 + $0x50] sm:$0xff]  ;;  %693 = vst.msk [vmem:[#allocation2 + $0xd0] sm:$0xff] %vm295_vm1, %v660_v26  ;;  %v349_v31 = vld [vmem:[#allocation2 + $0xa8] sm:$0xff] }
  0xb4   : > { %vm795_vm10 = vcmp.ge.f32.partialorder %v763_v33, 0.0  ;;  %v827_v39 = vmul.f32 0.2, %v763_v33  ;;  %v748_v40 = vadd.f32 %v1379_v30, %v712_v38  ;;  %670 = vst.msk [vmem:[#allocation2 + $0x18] sm:$0xff] %vm295_vm1, %v637_v28  ;;  %v601_v41 = vpop.f32.mrf.mxu2  ;;  %v621_v42 = vpop.f32.mrf.mxu3 }
  0xb5   : > { %v851_v43 = vsel %vm787_vm9, %v755_v29, %v819_v36  ;;  %vm772_vm11 = vcmp.ge.f32.partialorder %v740_v37, 0.0  ;;  %v804_v44 = vmul.f32 0.2, %v740_v37  ;;  %678 = vst.msk [vmem:[#allocation2 + $0x58] sm:$0xff] %vm295_vm1, %v645_v32  ;;  %v653_v45 = vadd.f32 %v601_v41, %v347_v35  ;;  %v564_v47 = vpop.f32.mrf.mxu0  ;;  %v584_v48 = vpop.f32.mrf.mxu1  ;;  %v357_v35 = vld [vmem:[#allocation2 + $0xe8] sm:$0xff] }
  0xb6   : > { %v883_v49 = vpack.c.bf16 %v851_v43, %v851_v43  ;;  %v859_v50 = vsel %vm795_vm10, %v763_v33, %v827_v39  ;;  %vm780_vm12 = vcmp.ge.f32.partialorder %v748_v40, 0.0  ;;  %v812_v51 = vmul.f32 0.2, %v748_v40 }
  0xb7   : > { %v891_v53 = vpack.c.bf16 %v859_v50, %v859_v50  ;;  %v836_v54 = vsel %vm772_vm11, %v740_v37, %v804_v44  ;;  %686 = vst.msk [vmem:[#allocation2 + $0x98] sm:$0xff] %vm295_vm1, %v653_v45  ;;  %v661_v58 = vadd.f32 %v621_v42, %v355_v46  ;;  %v638_v61 = vadd.f32 %v564_v47, %v332_v52  ;;  %v334_v37 = vld [vmem:[#allocation2 + $0x30] sm:$0xff] }
  0xb8   : > { %916 = vst.msk [vmem:[%s1392_s30 + $0x44] sm:$0xf] %vm898_vm4, %v883_v49  ;;  %v868_v56 = vpack.c.bf16 %v836_v54, %v836_v54  ;;  %v844_v57 = vsel %vm780_vm12, %v748_v40, %v812_v51  ;;  %v646_v0 = vadd.f32 %v584_v48, %v340_v55 }
  0xb9   : > { %924 = vst.msk [vmem:[%s1392_s30 + $0x64] sm:$0xf] %vm898_vm4, %v891_v53  ;;  %v876_v59 = vpack.c.bf16 %v844_v57, %v844_v57  ;;  %v720_v60 = vld [vmem:[#allocation2 + $0x90] sm:$0xff] }
  0xba   : > { %901 = vst.msk [vmem:[%s1392_s30 + $0x8] sm:$0xf] %vm898_vm4, %v868_v56  ;;  %v756_v62 = vadd.f32 %v1379_v30, %v720_v60  ;;  %v728_v63 = vld [vmem:[#allocation2 + $0xd0] sm:$0xff] }
  0xbb   : > { %909 = vst.msk [vmem:[%s1392_s30 + $0x28] sm:$0xf] %vm898_vm4, %v876_v59  ;;  %v764_v2 = vadd.f32 %v1379_v30, %v728_v63  ;;  %v705_v3 = vld [vmem:[#allocation2 + $0x18] sm:$0xff]  ;;  %v342_v63 = vld [vmem:[#allocation2 + $0x70] sm:$0xff] }
  0xbc   : > { %vm788_vm13 = vcmp.ge.f32.partialorder %v756_v62, 0.0  ;;  %v820_v5 = vmul.f32 0.2, %v756_v62  ;;  %v741_v6 = vadd.f32 %v1379_v30, %v705_v3  ;;  %v713_v7 = vld [vmem:[#allocation2 + $0x58] sm:$0xff]  ;;  %694 = vst.msk [vmem:[#allocation2 + $0xd8] sm:$0xff] %vm295_vm1, %v661_v58  ;;  %v604_v8 = vpop.f32.mrf.mxu2  ;;  %v624_v9 = vpop.f32.mrf.mxu3  ;;  %v350_v3 = vld [vmem:[#allocation2 + $0xb0] sm:$0xff] }
  0xbd   : > { %vm796_vm14 = vcmp.ge.f32.partialorder %v764_v2, 0.0  ;;  %v828_v10 = vmul.f32 0.2, %v764_v2  ;;  %v749_v11 = vadd.f32 %v1379_v30, %v713_v7  ;;  %671 = vst.msk [vmem:[#allocation2 + $0x20] sm:$0xff] %vm295_vm1, %v638_v61  ;;  %v654_v12 = vadd.f32 %v604_v8, %v348_v1  ;;  %v566_v13 = vpop.f32.mrf.mxu0  ;;  %v586_v14 = vpop.f32.mrf.mxu1 }
  0xbe   : > { %v852_v15 = vsel %vm788_vm13, %v756_v62, %v820_v5  ;;  %vm773_vm15 = vcmp.ge.f32.partialorder %v741_v6, 0.0  ;;  %v805_v16 = vmul.f32 0.2, %v741_v6  ;;  %v721_v17 = vld [vmem:[#allocation2 + $0x98] sm:$0xff]  ;;  %679 = vst.msk [vmem:[#allocation2 + $0x60] sm:$0xff] %vm295_vm1, %v646_v0  ;;  %v662_v18 = vadd.f32 %v624_v9, %v356_v4 }
  0xbf   : > { %v884_v20 = vpack.c.bf16 %v852_v15, %v852_v15  ;;  %v860_v21 = vsel %vm796_vm14, %v764_v2, %v828_v10  ;;  %vm781_vm0 = vcmp.ge.f32.partialorder %v749_v11, 0.0  ;;  %v813_v22 = vmul.f32 0.2, %v749_v11  ;;  %687 = vst.msk [vmem:[#allocation2 + $0xa0] sm:$0xff] %vm295_vm1, %v654_v12 }
  0xc0   : > { %v892_v24 = vpack.c.bf16 %v860_v21, %v860_v21  ;;  %v837_v25 = vsel %vm773_vm15, %v741_v6, %v805_v16  ;;  %v757_v26 = vadd.f32 %v1379_v30, %v721_v17  ;;  %695 = vst.msk [vmem:[#allocation2 + $0xe0] sm:$0xff] %vm295_vm1, %v662_v18  ;;  %v639_v29 = vadd.f32 %v566_v13, %v333_v19  ;;  %v358_v6 = vld [vmem:[#allocation2 + $0xf0] sm:$0xff]  ;;  %v335_v13 = vld [vmem:[#allocation2 + $0x38] sm:$0xff] }
  0xc1   : > { %917 = vst.msk [vmem:[%s1392_s30 + $0x48] sm:$0xf] %vm898_vm4, %v884_v20  ;;  %v869_v27 = vpack.c.bf16 %v837_v25, %v837_v25  ;;  %v845_v28 = vsel %vm781_vm0, %v749_v11, %v813_v22  ;;  %v647_v34 = vadd.f32 %v586_v14, %v341_v23  ;;  %v343_v21 = vld [vmem:[#allocation2 + $0x78] sm:$0xff] }
  0xc2   : > { %925 = vst.msk [vmem:[%s1392_s30 + $0x68] sm:$0xf] %vm898_vm4, %v892_v24  ;;  %v877_v32 = vpack.c.bf16 %v845_v28, %v845_v28  ;;  %vm789_vm2 = vcmp.ge.f32.partialorder %v757_v26, 0.0  ;;  %v821_v33 = vmul.f32 0.2, %v757_v26 }
  0xc3   : > { %902 = vst.msk [vmem:[%s1392_s30 + $0xc] sm:$0xf] %vm898_vm4, %v869_v27  ;;  %v729_v36 = vld [vmem:[#allocation2 + $0xd8] sm:$0xff] }
  0xc4   : > { %910 = vst.msk [vmem:[%s1392_s30 + $0x2c] sm:$0xf] %vm898_vm4, %v877_v32  ;;  %v853_v38 = vsel %vm789_vm2, %v757_v26, %v821_v33  ;;  %v765_v39 = vadd.f32 %v1379_v30, %v729_v36  ;;  %v706_v40 = vld [vmem:[#allocation2 + $0x20] sm:$0xff]  ;;  %v606_v41 = vpop.f32.mrf.mxu2  ;;  %v626_v42 = vpop.f32.mrf.mxu3 }
  0xc5   : > { %v885_v43 = vpack.c.bf16 %v853_v38, %v853_v38  ;;  %v742_v44 = vadd.f32 %v1379_v30, %v706_v40  ;;  %v714_v45 = vld [vmem:[#allocation2 + $0x60] sm:$0xff]  ;;  %672 = vst.msk [vmem:[#allocation2 + $0x28] sm:$0xff] %vm295_vm1, %v639_v29  ;;  %v655_v46 = vadd.f32 %v606_v41, %v349_v31  ;;  %v663_v47 = vadd.f32 %v626_v42, %v357_v35  ;;  %v569_v48 = vpop.f32.mrf.mxu0  ;;  %v589_v49 = vpop.f32.mrf.mxu1  ;;  %v351_v40 = vld [vmem:[#allocation2 + $0xb8] sm:$0xff] }
  0xc6   : > { %vm797_vm3 = vcmp.ge.f32.partialorder %v765_v39, 0.0  ;;  %v829_v50 = vmul.f32 0.2, %v765_v39  ;;  %v750_v51 = vadd.f32 %v1379_v30, %v714_v45  ;;  %v722_v52 = vld [vmem:[#allocation2 + $0xa0] sm:$0xff]  ;;  %680 = vst.msk [vmem:[#allocation2 + $0x68] sm:$0xff] %vm295_vm1, %v647_v34  ;;  %v640_v53 = vadd.f32 %v569_v48, %v334_v37 }
  0xc7   : > { %918 = vst.msk [vmem:[%s1392_s30 + $0x4c] sm:$0xf] %vm898_vm4, %v885_v43  ;;  %vm774_vm5 = vcmp.ge.f32.partialorder %v742_v44, 0.0  ;;  %v806_v54 = vmul.f32 0.2, %v742_v44  ;;  %v758_v55 = vadd.f32 %v1379_v30, %v722_v52  ;;  %v730_v56 = vld [vmem:[#allocation2 + $0xe0] sm:$0xff]  ;;  %v648_v10 = vadd.f32 %v589_v49, %v342_v63 }
  0xc8   : > { %v861_v57 = vsel %vm797_vm3, %v765_v39, %v829_v50  ;;  %vm782_vm6 = vcmp.ge.f32.partialorder %v750_v51, 0.0  ;;  %v814_v58 = vmul.f32 0.2, %v750_v51  ;;  %v766_v59 = vadd.f32 %v1379_v30, %v730_v56  ;;  %688 = vst.msk [vmem:[#allocation2 + $0xa8] sm:$0xff] %vm295_vm1, %v655_v46  ;;  %v359_v43 = vld [vmem:[#allocation2 + $0xf8] sm:$0xff] }
  0xc9   : > { %v893_v60 = vpack.c.bf16 %v861_v57, %v861_v57  ;;  %v838_v61 = vsel %vm774_vm5, %v742_v44, %v806_v54  ;;  %vm790_vm7 = vcmp.ge.f32.partialorder %v758_v55, 0.0  ;;  %v822_v62 = vmul.f32 0.2, %v758_v55  ;;  %696 = vst.msk [vmem:[#allocation2 + $0xe8] sm:$0xff] %vm295_vm1, %v663_v47 }
  0xca   : > { %v870_v0 = vpack.c.bf16 %v838_v61, %v838_v61  ;;  %v846_v1 = vsel %vm782_vm6, %v750_v51, %v814_v58  ;;  %vm798_vm8 = vcmp.ge.f32.partialorder %v766_v59, 0.0  ;;  %v830_v2 = vmul.f32 0.2, %v766_v59  ;;  %673 = vst.msk [vmem:[#allocation2 + $0x30] sm:$0xff] %vm295_vm1, %v640_v53 }
  0xcb   : > { %926 = vst.msk [vmem:[%s1392_s30 + $0x6c] sm:$0xf] %vm898_vm4, %v893_v60  ;;  %v878_v4 = vpack.c.bf16 %v846_v1, %v846_v1  ;;  %v854_v5 = vsel %vm790_vm7, %v758_v55, %v822_v62 }
  0xcc   : > { %903 = vst.msk [vmem:[%s1392_s30 + $0x10] sm:$0xf] %vm898_vm4, %v870_v0  ;;  %v886_v7 = vpack.c.bf16 %v854_v5, %v854_v5  ;;  %v862_v8 = vsel %vm798_vm8, %v766_v59, %v830_v2  ;;  %v707_v9 = vld [vmem:[#allocation2 + $0x28] sm:$0xff]  ;;  %v609_v11 = vpop.f32.mrf.mxu2  ;;  %v629_v12 = vpop.f32.mrf.mxu3 }
  0xcd   : > { %911 = vst.msk [vmem:[%s1392_s30 + $0x30] sm:$0xf] %vm898_vm4, %v878_v4  ;;  %v894_v14 = vpack.c.bf16 %v862_v8, %v862_v8  ;;  %v743_v15 = vadd.f32 %v1379_v30, %v707_v9  ;;  %v715_v16 = vld [vmem:[#allocation2 + $0x68] sm:$0xff]  ;;  %v656_v17 = vadd.f32 %v609_v11, %v350_v3  ;;  %v571_v18 = vpop.f32.mrf.mxu0  ;;  %v664_v20 = vadd.f32 %v629_v12, %v358_v6  ;;  %v591_v22 = vpop.f32.mrf.mxu1 }
  0xce   : > { %919 = vst.msk [vmem:[%s1392_s30 + $0x50] sm:$0xf] %vm898_vm4, %v886_v7  ;;  %v751_v19 = vadd.f32 %v1379_v30, %v715_v16  ;;  %v641_v25 = vadd.f32 %v571_v18, %v335_v13  ;;  %v649_v33 = vadd.f32 %v591_v22, %v343_v21 }
  0xcf   : > { %927 = vst.msk [vmem:[%s1392_s30 + $0x70] sm:$0xf] %vm898_vm4, %v894_v14  ;;  %vm775_vm9 = vcmp.ge.f32.partialorder %v743_v15, 0.0  ;;  %v807_v23 = vmul.f32 0.2, %v743_v15  ;;  %v723_v24 = vld [vmem:[#allocation2 + $0xa8] sm:$0xff] }
  0xd0   : > { %vm783_vm10 = vcmp.ge.f32.partialorder %v751_v19, 0.0  ;;  %v815_v26 = vmul.f32 0.2, %v751_v19  ;;  %v759_v27 = vadd.f32 %v1379_v30, %v723_v24  ;;  %v731_v28 = vld [vmem:[#allocation2 + $0xe8] sm:$0xff]  ;;  %681 = vst.msk [vmem:[#allocation2 + $0x70] sm:$0xff] %vm295_vm1, %v648_v10 }
  0xd1   : > { %v839_v29 = vsel %vm775_vm9, %v743_v15, %v807_v23  ;;  %v767_v31 = vadd.f32 %v1379_v30, %v731_v28  ;;  %v708_v32 = vld [vmem:[#allocation2 + $0x30] sm:$0xff]  ;;  %689 = vst.msk [vmem:[#allocation2 + $0xb0] sm:$0xff] %vm295_vm1, %v656_v17 }
  0xd2   : > { %v871_v34 = vpack.c.bf16 %v839_v29, %v839_v29  ;;  %v847_v35 = vsel %vm783_vm10, %v751_v19, %v815_v26  ;;  %vm791_vm11 = vcmp.ge.f32.partialorder %v759_v27, 0.0  ;;  %v823_v36 = vmul.f32 0.2, %v759_v27  ;;  %697 = vst.msk [vmem:[#allocation2 + $0xf0] sm:$0xff] %vm295_vm1, %v664_v20 }
  0xd3   : > { %v879_v37 = vpack.c.bf16 %v847_v35, %v847_v35  ;;  %vm799_vm12 = vcmp.ge.f32.partialorder %v767_v31, 0.0  ;;  %v831_v38 = vmul.f32 0.2, %v767_v31  ;;  %v744_v39 = vadd.f32 %v1379_v30, %v708_v32  ;;  %674 = vst.msk [vmem:[#allocation2 + $0x38] sm:$0xff] %vm295_vm1, %v641_v25 }
  0xd4   : > { %904 = vst.msk [vmem:[%s1392_s30 + $0x14] sm:$0xf] %vm898_vm4, %v871_v34  ;;  %v855_v41 = vsel %vm791_vm11, %v759_v27, %v823_v36  ;;  %v611_v42 = vpop.f32.mrf.mxu2  ;;  %v631_v44 = vpop.f32.mrf.mxu3 }
  0xd5   : > { %912 = vst.msk [vmem:[%s1392_s30 + $0x34] sm:$0xf] %vm898_vm4, %v879_v37  ;;  %v887_v45 = vpack.c.bf16 %v855_v41, %v855_v41  ;;  %v863_v46 = vsel %vm799_vm12, %v767_v31, %v831_v38  ;;  %vm776_vm13 = vcmp.ge.f32.partialorder %v744_v39, 0.0  ;;  %v808_v47 = vmul.f32 0.2, %v744_v39 }
  0xd6   : > { %v895_v48 = vpack.c.bf16 %v863_v46, %v863_v46  ;;  %682 = vst.msk [vmem:[#allocation2 + $0x78] sm:$0xff] %vm295_vm1, %v649_v33  ;;  %v657_v49 = vadd.f32 %v611_v42, %v351_v40  ;;  %v665_v52 = vadd.f32 %v631_v44, %v359_v43 }
  0xd7   : > { %920 = vst.msk [vmem:[%s1392_s30 + $0x54] sm:$0xf] %vm898_vm4, %v887_v45  ;;  %v840_v50 = vsel %vm776_vm13, %v744_v39, %v808_v47  ;;  %v716_v51 = vld [vmem:[#allocation2 + $0x70] sm:$0xff] }
  0xd8   : > { %928 = vst.msk [vmem:[%s1392_s30 + $0x74] sm:$0xf] %vm898_vm4, %v895_v48  ;;  %v872_v53 = vpack.c.bf16 %v840_v50, %v840_v50  ;;  %v752_v54 = vadd.f32 %v1379_v30, %v716_v51  ;;  %v724_v55 = vld [vmem:[#allocation2 + $0xb0] sm:$0xff] }
  0xd9   : > { %v760_v56 = vadd.f32 %v1379_v30, %v724_v55  ;;  %v732_v57 = vld [vmem:[#allocation2 + $0xf0] sm:$0xff]  ;;  %690 = vst.msk [vmem:[#allocation2 + $0xb8] sm:$0xff] %vm295_vm1, %v657_v49 }
  0xda   : > { %905 = vst.msk [vmem:[%s1392_s30 + $0x18] sm:$0xf] %vm898_vm4, %v872_v53  ;;  %vm784_vm14 = vcmp.ge.f32.partialorder %v752_v54, 0.0  ;;  %v816_v58 = vmul.f32 0.2, %v752_v54  ;;  %v768_v59 = vadd.f32 %v1379_v30, %v732_v57  ;;  %v709_v60 = vld [vmem:[#allocation2 + $0x38] sm:$0xff] }
  0xdb   : > { %vm792_vm15 = vcmp.ge.f32.partialorder %v760_v56, 0.0  ;;  %v824_v61 = vmul.f32 0.2, %v760_v56  ;;  %v745_v62 = vadd.f32 %v1379_v30, %v709_v60  ;;  %698 = vst.msk [vmem:[#allocation2 + $0xf8] sm:$0xff] %vm295_vm1, %v665_v52 }
  0xdc   : > { %v848_v63 = vsel %vm784_vm14, %v752_v54, %v816_v58  ;;  %vm800_vm0 = vcmp.ge.f32.partialorder %v768_v59, 0.0  ;;  %v832_v0 = vmul.f32 0.2, %v768_v59 }
  0xdd   : > { %v880_v1 = vpack.c.bf16 %v848_v63, %v848_v63  ;;  %v856_v2 = vsel %vm792_vm15, %v760_v56, %v824_v61  ;;  %vm777_vm2 = vcmp.ge.f32.partialorder %v745_v62, 0.0  ;;  %v809_v3 = vmul.f32 0.2, %v745_v62  ;;  %v717_v4 = vld [vmem:[#allocation2 + $0x78] sm:$0xff] }
  0xde   : > { %v888_v5 = vpack.c.bf16 %v856_v2, %v856_v2  ;;  %v864_v6 = vsel %vm800_vm0, %v768_v59, %v832_v0  ;;  %v753_v7 = vadd.f32 %v1379_v30, %v717_v4 }
  0xdf   : > { %913 = vst.msk [vmem:[%s1392_s30 + $0x38] sm:$0xf] %vm898_vm4, %v880_v1  ;;  %v896_v8 = vpack.c.bf16 %v864_v6, %v864_v6  ;;  %v841_v9 = vsel %vm777_vm2, %v745_v62, %v809_v3 }
  0xe0   : > { %921 = vst.msk [vmem:[%s1392_s30 + $0x58] sm:$0xf] %vm898_vm4, %v888_v5  ;;  %v873_v10 = vpack.c.bf16 %v841_v9, %v841_v9  ;;  %vm785_vm1 = vcmp.ge.f32.partialorder %v753_v7, 0.0  ;;  %v817_v11 = vmul.f32 0.2, %v753_v7  ;;  %v725_v12 = vld [vmem:[#allocation2 + $0xb8] sm:$0xff] }
  0xe1   : > { %929 = vst.msk [vmem:[%s1392_s30 + $0x78] sm:$0xf] %vm898_vm4, %v896_v8  ;;  %v761_v13 = vadd.f32 %v1379_v30, %v725_v12 }
  0xe2   : > { %906 = vst.msk [vmem:[%s1392_s30 + $0x1c] sm:$0xf] %vm898_vm4, %v873_v10  ;;  %v849_v14 = vsel %vm785_vm1, %v753_v7, %v817_v11  ;;  %v733_v15 = vld [vmem:[#allocation2 + $0xf8] sm:$0xff] }
  0xe3   : > { %v881_v16 = vpack.c.bf16 %v849_v14, %v849_v14  ;;  %vm793_vm3 = vcmp.ge.f32.partialorder %v761_v13, 0.0  ;;  %v825_v17 = vmul.f32 0.2, %v761_v13  ;;  %v769_v18 = vadd.f32 %v1379_v30, %v733_v15 }
  0xe5   : > { %914 = vst.msk [vmem:[%s1392_s30 + $0x3c] sm:$0xf] %vm898_vm4, %v881_v16  ;;  %v857_v19 = vsel %vm793_vm3, %v761_v13, %v825_v17  ;;  %vm801_vm5 = vcmp.ge.f32.partialorder %v769_v18, 0.0  ;;  %v833_v20 = vmul.f32 0.2, %v769_v18 }
  0xe6   : > { %v889_v21 = vpack.c.bf16 %v857_v19, %v857_v19 }
  0xe7   : > { %v865_v22 = vsel %vm801_vm5, %v769_v18, %v833_v20 }
  0xe8   : > { %922 = vst.msk [vmem:[%s1392_s30 + $0x5c] sm:$0xf] %vm898_vm4, %v889_v21  ;;  %v897_v23 = vpack.c.bf16 %v865_v22, %v865_v22 }
  0xea   : > { %930 = vst.msk [vmem:[%s1392_s30 + $0x7c] sm:$0xf] %vm898_vm4, %v897_v23 }
  0xeb PF: > { %s13_s14 = sadd.s32 1, %s1250_s14   ;;  %s1527_s12 = smov %s1246_s13 }
  0xec   : > { %p10_p5 = scmp.ge.s32.totalorder %s13_s14, 4   ;;  %s1528_s13 = smov %s1530_s15 }
  0xee   :  { %12 = sbr.rel (!%p10_p5) target bundleno = 2 (0x2), region = 76 }

// kernel: discriminator_forward.6
= control target key start
LH: loop header
LB: loop body
LE: loop exit
PB: predicated region body
PF: predicated region fallthrough
CT: control target
= control target key end

     0   :  { %s2135_s12 = smov 0   ;;  %s2137_s13 = smov 0   ;;  %s2486_s0 = inlined_call_operand.vmem [shape: bf16[2,64,1024], index: 0, kind: input, shape index: {}]   ;;  %s2487_s1 = inlined_call_operand.vmem [shape: bf16[1024,128], index: 1, kind: input, shape index: {}]   ;;  %s2488_s2 = inlined_call_operand.vmem [shape: f32[1,128], index: 2, kind: input, shape index: {}]   ;;  %s2489_s3 = inlined_call_operand.vmem [shape: bf16[2,64,128], index: 3, kind: output, shape index: {}]  }
   0x1   :  { %s2139_s14 = smov 0  }
   0x2 LB: > { %s39_s15 = sadd.s32 1, %s2108_s13  ;;  %p1548_p0 = scmp.ge.s32.totalorder %s2112_s14, 1  ;;  %s2112_s14 = sphi %s2139_s14, %s13_s14   ;;  %s2108_s13 = sphi %s2137_s13, %s2491_s13   ;;  %s2104_s12 = sphi %s2135_s12, %s2490_s12  }
   0x3   : > { %p41_p1 = scmp.ge.s32.totalorder %s39_s15, 2  ;;  %p206_p2 = scmp.lt.s32.totalorder %s2112_s14, 3 }
   0x5   : > { %s2493_s15 = smov (%p41_p1, %s39_s15), 0  ;;  %p207_p3 = pnand %p1548_p0, %p206_p2 }
   0x6   : > { %p259_p4 = scmp.lt.s32.totalorder (!%p207_p3), %s2104_s12, 1 }
   0x7   : > { %210 = sbr.rel (%p207_p3) target bundleno = 386 (0x182), region = 32 }
   0xc   : > { %v1980_v0 = vld [vmem:[%s2487_s1 + $0x38] sm:$0xff]  ;;  %v1979_v4 = vld [vmem:[%s2487_s1 + $0x30] sm:$0xff]  ;;  %v1978_v8 = vld [vmem:[%s2487_s1 + $0x28] sm:$0xff]  ;;  %s2495_s12 = smov (!%p259_p4, %s2104_s12), 1 }
   0xd   : > { %v1988_v1 = vld [vmem:[%s2487_s1 + $0x78] sm:$0xff]  ;;  %1022 = vmatpush.bf16.msra.mxu0 %v1980_v0  ;;  %v1987_v5 = vld [vmem:[%s2487_s1 + $0x70] sm:$0xff]  ;;  %v1986_v9 = vld [vmem:[%s2487_s1 + $0x68] sm:$0xff]  ;;  %s1939_s18 = sshll.u32 %s2495_s12, 8  ;;  %s1940_s10 = sshll.u32 %s2495_s12, 5 }
   0xe   : > { %v1996_v2 = vld [vmem:[%s2487_s1 + $0xb8] sm:$0xff]  ;;  %1051 = vmatpush.bf16.msra.mxu1 %v1988_v1  ;;  %v1995_v6 = vld [vmem:[%s2487_s1 + $0xb0] sm:$0xff]  ;;  %v1994_v10 = vld [vmem:[%s2487_s1 + $0xa8] sm:$0xff]  ;;  %s2241_s25 = scalar_lea.vmem %s2486_s0, %s1939_s18  ;;  %s296_s12 = scalar_lea.vmem %s2489_s3, %s1940_s10 }
   0xf   : > { %v2004_v3 = vld [vmem:[%s2487_s1 + $0xf8] sm:$0xff]  ;;  %1080 = vmatpush.bf16.msra.mxu2 %v1996_v2  ;;  %v2003_v7 = vld [vmem:[%s2487_s1 + $0xf0] sm:$0xff]  ;;  %v2002_v11 = vld [vmem:[%s2487_s1 + $0xe8] sm:$0xff] }
  0x10   : > { %1109 = vmatpush.bf16.msra.mxu3 %v2004_v3  ;;  %v1977_v12 = vld [vmem:[%s2487_s1 + $0x20] sm:$0xff]  ;;  %v1976_v16 = vld [vmem:[%s2487_s1 + $0x18] sm:$0xff]  ;;  %v1975_v20 = vld [vmem:[%s2487_s1 + $0x10] sm:$0xff] }
  0x11   : > { %1023 = vmatpush.bf16.msra.mxu0 %v1979_v4  ;;  %v1985_v13 = vld [vmem:[%s2487_s1 + $0x60] sm:$0xff]  ;;  %v1984_v17 = vld [vmem:[%s2487_s1 + $0x58] sm:$0xff]  ;;  %v1983_v21 = vld [vmem:[%s2487_s1 + $0x50] sm:$0xff] }
  0x12   : > { %1052 = vmatpush.bf16.msra.mxu1 %v1987_v5  ;;  %v1993_v14 = vld [vmem:[%s2487_s1 + $0xa0] sm:$0xff]  ;;  %v1992_v18 = vld [vmem:[%s2487_s1 + $0x98] sm:$0xff]  ;;  %v1991_v22 = vld [vmem:[%s2487_s1 + $0x90] sm:$0xff] }
  0x13   : > { %1081 = vmatpush.bf16.msra.mxu2 %v1995_v6  ;;  %v2001_v15 = vld [vmem:[%s2487_s1 + $0xe0] sm:$0xff]  ;;  %v2000_v19 = vld [vmem:[%s2487_s1 + $0xd8] sm:$0xff]  ;;  %v1999_v23 = vld [vmem:[%s2487_s1 + $0xd0] sm:$0xff] }
  0x14   : > { %1110 = vmatpush.bf16.msra.mxu3 %v2003_v7  ;;  %v1974_v24 = vld [vmem:[%s2487_s1 + $0x8] sm:$0xff]  ;;  %v1973_v28 = vld [vmem:[%s2487_s1] sm:$0xff]  ;;  %v2028_v40 = vld [vmem:[%s2487_s1 + $0x1b8] sm:$0xff] }
  0x15   : > { %1024 = vmatpush.bf16.msra.mxu0 %v1978_v8  ;;  %v1982_v25 = vld [vmem:[%s2487_s1 + $0x48] sm:$0xff]  ;;  %v1981_v29 = vld [vmem:[%s2487_s1 + $0x40] sm:$0xff]  ;;  %v2012_v41 = vld [vmem:[%s2487_s1 + $0x138] sm:$0xff] }
  0x16   : > { %1053 = vmatpush.bf16.msra.mxu1 %v1986_v9  ;;  %v1990_v26 = vld [vmem:[%s2487_s1 + $0x88] sm:$0xff]  ;;  %v1989_v30 = vld [vmem:[%s2487_s1 + $0x80] sm:$0xff]  ;;  %v2036_v46 = vld [vmem:[%s2487_s1 + $0x1f8] sm:$0xff] }
  0x17   : > { %1082 = vmatpush.bf16.msra.mxu2 %v1994_v10  ;;  %v1998_v27 = vld [vmem:[%s2487_s1 + $0xc8] sm:$0xff]  ;;  %v1997_v31 = vld [vmem:[%s2487_s1 + $0xc0] sm:$0xff]  ;;  %v2020_v47 = vld [vmem:[%s2487_s1 + $0x178] sm:$0xff] }
  0x18   : > { %1111 = vmatpush.bf16.msra.mxu3 %v2002_v11  ;;  %v1555_v32 = vld [vmem:[%s2241_s25] sm:$0xf]  ;;  %v1941_v34 = vld [vmem:[%s2241_s25 + $0x4] sm:$0xf]  ;;  %v1563_v36 = vld [vmem:[%s2241_s25 + $0x8] sm:$0xf] }
  0x19   : > { %1025 = vmatpush.bf16.msra.mxu0 %v1977_v12  ;;  %v1945_v33 = vld [vmem:[%s2241_s25 + $0x1c] sm:$0xf0]  ;;  %v1557_v35 = vld [vmem:[%s2241_s25 + $0x20] sm:$0xf0]  ;;  %v1946_v37 = vld [vmem:[%s2241_s25 + $0x24] sm:$0xf0] }
  0x1a   : > { %1054 = vmatpush.bf16.msra.mxu1 %v1985_v13  ;;  %v1942_v38 = vld [vmem:[%s2241_s25 + $0xc] sm:$0xf]  ;;  %v1556_v42 = vor.u32 %v1945_v33, %v1555_v32  ;;  %v1560_v43 = vor.u32 %v1941_v34, %v1557_v35  ;;  %v1564_v44 = vor.u32 %v1946_v37, %v1563_v36  ;;  %v2027_v48 = vld [vmem:[%s2487_s1 + $0x1b0] sm:$0xff]  ;;  %v1587_v56 = vld [vmem:[%s2241_s25 + $0x40] sm:$0xf] }
  0x1b   : > { %1083 = vmatpush.bf16.msra.mxu2 %v1993_v14  ;;  %v1565_v39 = vld [vmem:[%s2241_s25 + $0x28] sm:$0xf0]  ;;  %v2011_v49 = vld [vmem:[%s2487_s1 + $0x130] sm:$0xff]  ;;  %v2025_v57 = vld [vmem:[%s2487_s1 + $0x1a0] sm:$0xff] }
  0x1c   : > { %1112 = vmatpush.bf16.msra.mxu3 %v2001_v15  ;;  %v1568_v45 = vor.u32 %v1942_v38, %v1565_v39  ;;  %v2035_v50 = vld [vmem:[%s2487_s1 + $0x1f0] sm:$0xff]  ;;  %v2026_v52 = vld [vmem:[%s2487_s1 + $0x1a8] sm:$0xff]  ;;  %v2009_v58 = vld [vmem:[%s2487_s1 + $0x120] sm:$0xff] }
  0x1d   : > { %1026 = vmatpush.bf16.msra.mxu0 %v1976_v16  ;;  %v2019_v51 = vld [vmem:[%s2487_s1 + $0x170] sm:$0xff]  ;;  %v2010_v53 = vld [vmem:[%s2487_s1 + $0x128] sm:$0xff]  ;;  %v1953_v59 = vld [vmem:[%s2241_s25 + $0x5c] sm:$0xf0] }
  0x1e   : > { %1055 = vmatpush.bf16.msra.mxu1 %v1984_v17  ;;  %v2034_v54 = vld [vmem:[%s2487_s1 + $0x1e8] sm:$0xff]  ;;  %v1949_v60 = vld [vmem:[%s2241_s25 + $0x44] sm:$0xf]  ;;  %v2024_v4 = vld [vmem:[%s2487_s1 + $0x198] sm:$0xff]  ;;  %v1588_v6 = vor.u32 %v1953_v59, %v1587_v56 }
  0x1f   : > { %1084 = vmatpush.bf16.msra.mxu2 %v1992_v18  ;;  %v2018_v55 = vld [vmem:[%s2487_s1 + $0x168] sm:$0xff]  ;;  %v1589_v61 = vld [vmem:[%s2241_s25 + $0x60] sm:$0xf0]  ;;  %v2008_v5 = vld [vmem:[%s2487_s1 + $0x118] sm:$0xff] }
  0x20   : > { %1113 = vmatpush.bf16.msra.mxu3 %v2000_v19  ;;  %v1595_v62 = vld [vmem:[%s2241_s25 + $0x48] sm:$0xf]  ;;  %v1950_v0 = vld [vmem:[%s2241_s25 + $0x4c] sm:$0xf]  ;;  %v2033_v2 = vld [vmem:[%s2487_s1 + $0x1e0] sm:$0xff]  ;;  %v1592_v7 = vor.u32 %v1949_v60, %v1589_v61 }
  0x21   : > { %1027 = vmatpush.bf16.msra.mxu0 %v1975_v20  ;;  %v1954_v63 = vld [vmem:[%s2241_s25 + $0x64] sm:$0xf0]  ;;  %v1597_v1 = vld [vmem:[%s2241_s25 + $0x68] sm:$0xf0]  ;;  %v2017_v3 = vld [vmem:[%s2487_s1 + $0x160] sm:$0xff] }
  0x22   : > { %1056 = vmatpush.bf16.msra.mxu1 %v1983_v21  ;;  %v1596_v8 = vor.u32 %v1954_v63, %v1595_v62  ;;  %v1600_v9 = vor.u32 %v1950_v0, %v1597_v1  ;;  %v2032_v10 = vld [vmem:[%s2487_s1 + $0x1d8] sm:$0xff]  ;;  %v2023_v12 = vld [vmem:[%s2487_s1 + $0x190] sm:$0xff]  ;;  %v2022_v16 = vld [vmem:[%s2487_s1 + $0x188] sm:$0xff] }
  0x23   : > { %1085 = vmatpush.bf16.msra.mxu2 %v1991_v22  ;;  %v2016_v11 = vld [vmem:[%s2487_s1 + $0x158] sm:$0xff]  ;;  %v2007_v13 = vld [vmem:[%s2487_s1 + $0x110] sm:$0xff]  ;;  %v2006_v17 = vld [vmem:[%s2487_s1 + $0x108] sm:$0xff] }
  0x24   : > { %1114 = vmatpush.bf16.msra.mxu3 %v1999_v23  ;;  %v2031_v14 = vld [vmem:[%s2487_s1 + $0x1d0] sm:$0xff]  ;;  %v2030_v18 = vld [vmem:[%s2487_s1 + $0x1c8] sm:$0xff]  ;;  %v1619_v20 = vld [vmem:[%s2241_s25 + $0x80] sm:$0xf] }
  0x25   : > { %1028 = vmatpush.bf16.msra.mxu0 %v1974_v24  ;;  %v2015_v15 = vld [vmem:[%s2487_s1 + $0x150] sm:$0xff]  ;;  %v2014_v19 = vld [vmem:[%s2487_s1 + $0x148] sm:$0xff]  ;;  %v2021_v21 = vld [vmem:[%s2487_s1 + $0x180] sm:$0xff] }
  0x26   : > { %1057 = vmatpush.bf16.msra.mxu1 %v1982_v25  ;;  %v2005_v22 = vld [vmem:[%s2487_s1 + $0x100] sm:$0xff]  ;;  %v1603_v60 = vld [vmem:[%s2241_s25 + $0x50] sm:$0xf]  ;;  %v1951_v62 = vld [vmem:[%s2241_s25 + $0x54] sm:$0xf] }
  0x27   : > { %1086 = vmatpush.bf16.msra.mxu2 %v1990_v26  ;;  %v1961_v23 = vld [vmem:[%s2241_s25 + $0x9c] sm:$0xf0]  ;;  %v1957_v24 = vld [vmem:[%s2241_s25 + $0x84] sm:$0xf]  ;;  %v1627_v26 = vld [vmem:[%s2241_s25 + $0x88] sm:$0xf] }
  0x28   : > { %1115 = vmatpush.bf16.msra.mxu3 %v1998_v27  ;;  %v1621_v25 = vld [vmem:[%s2241_s25 + $0xa0] sm:$0xf0]  ;;  %v1962_v27 = vld [vmem:[%s2241_s25 + $0xa4] sm:$0xf0]  ;;  %v1620_v32 = vor.u32 %v1961_v23, %v1619_v20  ;;  %v1651_v36 = vld [vmem:[%s2241_s25 + $0xc0] sm:$0xf] }
  0x29   : > { %1029 = vmatpush.bf16.msra.mxu0 %v1973_v28  ;;  %v1958_v28 = vld [vmem:[%s2241_s25 + $0x8c] sm:$0xf]  ;;  %v1624_v33 = vor.u32 %v1957_v24, %v1621_v25  ;;  %v1628_v34 = vor.u32 %v1962_v27, %v1627_v26  ;;  %v1969_v37 = vld [vmem:[%s2241_s25 + $0xdc] sm:$0xf0]  ;;  %v1965_v38 = vld [vmem:[%s2241_s25 + $0xc4] sm:$0xf] }
  0x2a   : > { %1058 = vmatpush.bf16.msra.mxu1 %v1981_v29  ;;  %v1629_v29 = vld [vmem:[%s2241_s25 + $0xa8] sm:$0xf0]  ;;  %v1653_v39 = vld [vmem:[%s2241_s25 + $0xe0] sm:$0xf0]  ;;  %v1955_v61 = vld [vmem:[%s2241_s25 + $0x6c] sm:$0xf0] }
  0x2b   : > { %1087 = vmatpush.bf16.msra.mxu2 %v1989_v30  ;;  %v2029_v30 = vld [vmem:[%s2487_s1 + $0x1c0] sm:$0xff]  ;;  %v1632_v35 = vor.u32 %v1958_v28, %v1629_v29  ;;  %v1605_v63 = vld [vmem:[%s2241_s25 + $0x70] sm:$0xf0]  ;;  %v1611_v0 = vld [vmem:[%s2241_s25 + $0x58] sm:$0xf] }
  0x2c   : > { %1116 = vmatpush.bf16.msra.mxu3 %v1997_v31  ;;  %1030 = vmatmul.bf16.vlgmr.msra.gmra.mxu0 %v1556_v42  ;;  %v2013_v31 = vld [vmem:[%s2487_s1 + $0x140] sm:$0xff]  ;;  %v1966_v42 = vld [vmem:[%s2241_s25 + $0xcc] sm:$0xf]  ;;  %v1956_v1 = vld [vmem:[%s2241_s25 + $0x74] sm:$0xf0] }
  0x2d   : > { %1138 = vmatpush.bf16.msrb.mxu0 %v2012_v41  ;;  %1059 = vmatmul.bf16.vlgmr.msra.gmra.mxu1 %v1560_v43  ;;  %v1970_v41 = vld [vmem:[%s2241_s25 + $0xe4] sm:$0xf0]  ;;  %v1661_v43 = vld [vmem:[%s2241_s25 + $0xe8] sm:$0xf0]  ;;  %v1667_v20 = vld [vmem:[%s2241_s25 + $0xd0] sm:$0xf] }
  0x2e   : > { %1088 = vmatmul.bf16.vlgmr.msra.gmra.mxu2 %v1564_v44  ;;  %1167 = vmatpush.bf16.msrb.mxu1 %v2020_v47  ;;  %v1652_v44 = vor.u32 %v1969_v37, %v1651_v36  ;;  %v1664_v47 = vor.u32 %v1966_v42, %v1661_v43  ;;  %v1669_v23 = vld [vmem:[%s2241_s25 + $0xf0] sm:$0xf0]  ;;  %v1675_v24 = vld [vmem:[%s2241_s25 + $0xd8] sm:$0xf]  ;;  %v1968_v26 = vld [vmem:[%s2241_s25 + $0xdc] sm:$0xf] }
  0x2f   : > { %1196 = vmatpush.bf16.msrb.mxu2 %v2028_v40  ;;  %1117 = vmatmul.bf16.vlgmr.msra.gmra.mxu3 %v1568_v45  ;;  %v1659_v40 = vld [vmem:[%s2241_s25 + $0xc8] sm:$0xf]  ;;  %v1656_v45 = vor.u32 %v1965_v38, %v1653_v39  ;;  %v1972_v25 = vld [vmem:[%s2241_s25 + $0xf4] sm:$0xf0]  ;;  %v1677_v27 = vld [vmem:[%s2241_s25 + $0xf8] sm:$0xf0] }
  0x30   : > { %1225 = vmatpush.bf16.msrb.mxu3 %v2036_v46  ;;  %v1660_v46 = vor.u32 %v1970_v41, %v1659_v40 }
  0x31   : > { %1139 = vmatpush.bf16.msrb.mxu0 %v2011_v49  ;;  %v1947_v49 = vld [vmem:[%s2241_s25 + $0x2c] sm:$0xf0] }
  0x32   : > { %1168 = vmatpush.bf16.msrb.mxu1 %v2019_v51  ;;  %v1573_v51 = vld [vmem:[%s2241_s25 + $0x30] sm:$0xf0] }
  0x33   : > { %1197 = vmatpush.bf16.msrb.mxu2 %v2027_v48  ;;  %v1571_v48 = vld [vmem:[%s2241_s25 + $0x10] sm:$0xf] }
  0x34   : > { %1226 = vmatpush.bf16.msrb.mxu3 %v2035_v50  ;;  %v1943_v50 = vld [vmem:[%s2241_s25 + $0x14] sm:$0xf]  ;;  %v1572_v56 = vor.u32 %v1947_v49, %v1571_v48 }
  0x35   : > { %1140 = vmatpush.bf16.msrb.mxu0 %v2010_v53  ;;  %v1948_v53 = vld [vmem:[%s2241_s25 + $0x34] sm:$0xf0] }
  0x36   : > { %1169 = vmatpush.bf16.msrb.mxu1 %v2018_v55  ;;  %v1581_v55 = vld [vmem:[%s2241_s25 + $0x38] sm:$0xf0] }
  0x37   : > { %1198 = vmatpush.bf16.msrb.mxu2 %v2026_v52  ;;  %v1579_v52 = vld [vmem:[%s2241_s25 + $0x18] sm:$0xf] }
  0x38   : > { %1227 = vmatpush.bf16.msrb.mxu3 %v2034_v54  ;;  %v1944_v54 = vld [vmem:[%s2241_s25 + $0x1c] sm:$0xf] }
  0x39   : > { %1141 = vmatpush.bf16.msrb.mxu0 %v2009_v58  ;;  %v1580_v58 = vor.u32 %v1948_v53, %v1579_v52  ;;  %v1584_v59 = vor.u32 %v1944_v54, %v1581_v55 }
  0x3a   : > { %1170 = vmatpush.bf16.msrb.mxu1 %v2017_v3  ;;  %v1613_v3 = vld [vmem:[%s2241_s25 + $0x78] sm:$0xf0] }
  0x3b   : > { %1199 = vmatpush.bf16.msrb.mxu2 %v2025_v57  ;;  %v1576_v57 = vor.u32 %v1943_v50, %v1573_v51 }
  0x3c   : > { %1228 = vmatpush.bf16.msrb.mxu3 %v2033_v2  ;;  %1035 = vmatmul.bf16.gmra.mxu0 %v1588_v6  ;;  %v1952_v2 = vld [vmem:[%s2241_s25 + $0x5c] sm:$0xf]  ;;  %v1612_v6 = vor.u32 %v1956_v1, %v1611_v0 }
  0x3d   : > { %1142 = vmatpush.bf16.msrb.mxu0 %v2008_v5  ;;  %1064 = vmatmul.bf16.gmra.mxu1 %v1592_v7  ;;  %v1608_v5 = vor.u32 %v1951_v62, %v1605_v63  ;;  %v1616_v7 = vor.u32 %v1952_v2, %v1613_v3 }
  0x3e   : > { %1093 = vmatmul.bf16.gmra.mxu2 %v1596_v8  ;;  %1171 = vmatpush.bf16.msrb.mxu1 %v2016_v11  ;;  %v1635_v8 = vld [vmem:[%s2241_s25 + $0x90] sm:$0xf]  ;;  %v1637_v11 = vld [vmem:[%s2241_s25 + $0xb0] sm:$0xf0] }
  0x3f   : > { %1200 = vmatpush.bf16.msrb.mxu2 %v2024_v4  ;;  %1122 = vmatmul.bf16.gmra.mxu3 %v1600_v9  ;;  %v1604_v4 = vor.u32 %v1955_v61, %v1603_v60  ;;  %v1963_v9 = vld [vmem:[%s2241_s25 + $0xac] sm:$0xf0] }
  0x40   : > { %1229 = vmatpush.bf16.msrb.mxu3 %v2032_v10  ;;  %v1959_v10 = vld [vmem:[%s2241_s25 + $0x94] sm:$0xf] }
  0x41   : > { %1143 = vmatpush.bf16.msrb.mxu0 %v2007_v13  ;;  %v1964_v13 = vld [vmem:[%s2241_s25 + $0xb4] sm:$0xf0] }
  0x42   : > { %1172 = vmatpush.bf16.msrb.mxu1 %v2015_v15  ;;  %v1645_v15 = vld [vmem:[%s2241_s25 + $0xb8] sm:$0xf0] }
  0x43   : > { %1201 = vmatpush.bf16.msrb.mxu2 %v2023_v12  ;;  %v1643_v12 = vld [vmem:[%s2241_s25 + $0x98] sm:$0xf] }
  0x44   : > { %1230 = vmatpush.bf16.msrb.mxu3 %v2031_v14  ;;  %v1960_v14 = vld [vmem:[%s2241_s25 + $0x9c] sm:$0xf] }
  0x45   : > { %1144 = vmatpush.bf16.msrb.mxu0 %v2006_v17  ;;  %v1640_v17 = vor.u32 %v1959_v10, %v1637_v11 }
  0x46   : > { %1173 = vmatpush.bf16.msrb.mxu1 %v2014_v19  ;;  %v1648_v19 = vor.u32 %v1960_v14, %v1645_v15 }
  0x47   : > { %1202 = vmatpush.bf16.msrb.mxu2 %v2022_v16  ;;  %v1636_v16 = vor.u32 %v1963_v9, %v1635_v8 }
  0x48   : > { %1231 = vmatpush.bf16.msrb.mxu3 %v2030_v18  ;;  %v1644_v18 = vor.u32 %v1964_v13, %v1643_v12 }
  0x49   : > { %1145 = vmatpush.bf16.msrb.mxu0 %v2005_v22  ;;  %v1967_v22 = vld [vmem:[%s2241_s25 + $0xd4] sm:$0xf] }
  0x4a   : > { %1174 = vmatpush.bf16.msrb.mxu1 %v2013_v31  ;;  %v1672_v29 = vor.u32 %v1967_v22, %v1669_v23  ;;  %v1680_v31 = vor.u32 %v1968_v26, %v1677_v27 }
  0x4b   : > { %1203 = vmatpush.bf16.msrb.mxu2 %v2021_v21  ;;  %v1971_v21 = vld [vmem:[%s2241_s25 + $0xec] sm:$0xf0] }
  0x4c   : > { %1232 = vmatpush.bf16.msrb.mxu3 %v2029_v30  ;;  %1040 = vmatmul.bf16.gmra.mxu0 %v1620_v32  ;;  %v1668_v28 = vor.u32 %v1971_v21, %v1667_v20  ;;  %v1676_v30 = vor.u32 %v1972_v25, %v1675_v24 }
  0x4d   : > { %1069 = vmatmul.bf16.gmra.mxu1 %v1624_v33 }
  0x4e   : > { %1098 = vmatmul.bf16.gmra.mxu2 %v1628_v34 }
  0x4f   : > { %1127 = vmatmul.bf16.gmra.mxu3 %v1632_v35 }
  0x5c   : > { %1045 = vmatmul.bf16.gmra.mxu0 %v1652_v44 }
  0x5d   : > { %1074 = vmatmul.bf16.gmra.mxu1 %v1656_v45 }
  0x5e   : > { %1103 = vmatmul.bf16.gmra.mxu2 %v1660_v46 }
  0x5f   : > { %1132 = vmatmul.bf16.gmra.mxu3 %v1664_v47 }
  0x6c   : > { %1146 = vmatmul.bf16.vlgmr.msrb.gmra.mxu0 %v1572_v56 }
  0x6d   : > { %1175 = vmatmul.bf16.vlgmr.msrb.gmra.mxu1 %v1576_v57 }
  0x6e   : > { %1204 = vmatmul.bf16.vlgmr.msrb.gmra.mxu2 %v1580_v58 }
  0x6f   : > { %1233 = vmatmul.bf16.vlgmr.msrb.gmra.mxu3 %v1584_v59 }
  0x7c   : > { %1151 = vmatmul.bf16.gmra.mxu0 %v1604_v4 }
  0x7d   : > { %1180 = vmatmul.bf16.gmra.mxu1 %v1608_v5 }
  0x7e   : > { %1209 = vmatmul.bf16.gmra.mxu2 %v1612_v6 }
  0x7f   : > { %1238 = vmatmul.bf16.gmra.mxu3 %v1616_v7 }
  0x8c   : > { %1156 = vmatmul.bf16.gmra.mxu0 %v1636_v16 }
  0x8d   : > { %1185 = vmatmul.bf16.gmra.mxu1 %v1640_v17 }
  0x8e   : > { %1214 = vmatmul.bf16.gmra.mxu2 %v1644_v18 }
  0x8f   : > { %1243 = vmatmul.bf16.gmra.mxu3 %v1648_v19 }
  0x9c   : > { %1161 = vmatmul.bf16.gmra.mxu0 %v1668_v28 }
  0x9d   : > { %1190 = vmatmul.bf16.gmra.mxu1 %v1672_v29 }
  0x9e   : > { %1219 = vmatmul.bf16.gmra.mxu2 %v1676_v30 }
  0x9f   : > { %1248 = vmatmul.bf16.gmra.mxu3 %v1680_v31 }
  0xa9   : > { %v1031_v32 = vpop.f32.mrf.mxu0 }
  0xaa   : > { %v1060_v33 = vpop.f32.mrf.mxu1 }
  0xab   : > { %v1061_v34 = vadd.f32 %v1060_v33, %v1031_v32  ;;  %v2434_v32 = vld [vmem:[%s2488_s2] ss:$0 sm:$0xff] }
  0xb1   : > { %v1089_v35 = vpop.f32.mrf.mxu2  ;;  %v1033_v38 = vpop.f32.mrf.mxu0 }
  0xb2   : > { %v1118_v36 = vpop.f32.mrf.mxu3  ;;  %v1090_v37 = vadd.f32 %v1089_v35, %v1061_v34  ;;  %v1062_v39 = vpop.f32.mrf.mxu1 }
  0xb3   : > { %v1063_v40 = vadd.f32 %v1062_v39, %v1033_v38 }
  0xb4   : > { %v1119_v41 = vadd.f32 %v1118_v36, %v1090_v37 }
  0xb9   : > { %v1091_v42 = vpop.f32.mrf.mxu2  ;;  %v1036_v45 = vpop.f32.mrf.mxu0 }
  0xba   : > { %v1120_v43 = vpop.f32.mrf.mxu3  ;;  %v1092_v44 = vadd.f32 %v1091_v42, %v1063_v40  ;;  %v1065_v46 = vpop.f32.mrf.mxu1 }
  0xbb   : > { %v1066_v47 = vadd.f32 %v1065_v46, %v1036_v45 }
  0xbc   : > { %v1121_v48 = vadd.f32 %v1120_v43, %v1092_v44 }
  0xc1   : > { %v1094_v49 = vpop.f32.mrf.mxu2  ;;  %v1038_v52 = vpop.f32.mrf.mxu0 }
  0xc2   : > { %v1123_v50 = vpop.f32.mrf.mxu3  ;;  %v1095_v51 = vadd.f32 %v1094_v49, %v1066_v47  ;;  %v1067_v53 = vpop.f32.mrf.mxu1 }
  0xc3   : > { %v1068_v54 = vadd.f32 %v1067_v53, %v1038_v52 }
  0xc4   : > { %v1124_v55 = vadd.f32 %v1123_v50, %v1095_v51 }
  0xc9   : > { %v1096_v56 = vpop.f32.mrf.mxu2  ;;  %v1041_v59 = vpop.f32.mrf.mxu0 }
  0xca   : > { %v1125_v57 = vpop.f32.mrf.mxu3  ;;  %v1097_v58 = vadd.f32 %v1096_v56, %v1068_v54  ;;  %v1070_v60 = vpop.f32.mrf.mxu1 }
  0xcb   : > { %v1071_v61 = vadd.f32 %v1070_v60, %v1041_v59 }
  0xcc   : > { %v1126_v62 = vadd.f32 %v1125_v57, %v1097_v58 }
  0xd1   : > { %v1099_v63 = vpop.f32.mrf.mxu2  ;;  %v1043_v2 = vpop.f32.mrf.mxu0 }
  0xd2   : > { %v1128_v0 = vpop.f32.mrf.mxu3  ;;  %v1100_v1 = vadd.f32 %v1099_v63, %v1071_v61  ;;  %v1072_v3 = vpop.f32.mrf.mxu1 }
  0xd3   : > { %v1073_v4 = vadd.f32 %v1072_v3, %v1043_v2 }
  0xd4   : > { %v1129_v5 = vadd.f32 %v1128_v0, %v1100_v1 }
  0xd9   : > { %v1101_v6 = vpop.f32.mrf.mxu2  ;;  %v1046_v9 = vpop.f32.mrf.mxu0 }
  0xda   : > { %v1130_v7 = vpop.f32.mrf.mxu3  ;;  %v1102_v8 = vadd.f32 %v1101_v6, %v1073_v4  ;;  %v1075_v10 = vpop.f32.mrf.mxu1 }
  0xdb   : > { %v1076_v3 = vadd.f32 %v1075_v10, %v1046_v9 }
  0xdc   : > { %v1131_v11 = vadd.f32 %v1130_v7, %v1102_v8 }
  0xe1   : > { %v1104_v12 = vpop.f32.mrf.mxu2  ;;  %v2423_v14 = vpop.f32.mrf.mxu0 }
  0xe2   : > { %v2421_v13 = vpop.f32.mrf.mxu3  ;;  %v2425_v15 = vpop.f32.mrf.mxu1  ;;  %v1105_v7 = vadd.f32 %v1104_v12, %v1076_v3 }
  0xe9   : > { %v2427_v16 = vpop.f32.mrf.mxu2  ;;  %v1147_v18 = vpop.f32.mrf.mxu0 }
  0xea   : > { %v2429_v17 = vpop.f32.mrf.mxu3  ;;  %v1176_v19 = vpop.f32.mrf.mxu1  ;;  %v1148_v20 = vadd.f32 %v1147_v18, %v1119_v41 }
  0xec   : > { %v1177_v25 = vadd.f32 %v1176_v19, %v1148_v20 }
  0xf1   : > { %v1205_v21 = vpop.f32.mrf.mxu2  ;;  %v1149_v23 = vpop.f32.mrf.mxu0 }
  0xf2   : > { %v1234_v22 = vpop.f32.mrf.mxu3  ;;  %v1178_v24 = vpop.f32.mrf.mxu1  ;;  %v1150_v26 = vadd.f32 %v1149_v23, %v1121_v48  ;;  %v1206_v27 = vadd.f32 %v1205_v21, %v1177_v25  ;;  %v1134_v21 = vadd.f32 %v2421_v13, %v1105_v7 }
  0xf4   : > { %v1179_v28 = vadd.f32 %v1178_v24, %v1150_v26  ;;  %v1235_v31 = vadd.f32 %v1234_v22, %v1206_v27  ;;  %v1078_v24 = vadd.f32 %v2425_v15, %v2423_v14 }
  0xf6   : > { %v2437_v38 = vadd.f32 %v2434_v32, %v1235_v31  ;;  %v1107_v9 = vadd.f32 %v2427_v16, %v1078_v24 }
  0xf9   : > { %v1207_v29 = vpop.f32.mrf.mxu2  ;;  %v1152_v34 = vpop.f32.mrf.mxu0 }
  0xfa   : > { %v1236_v30 = vpop.f32.mrf.mxu3  ;;  %v1208_v33 = vadd.f32 %v1207_v29, %v1179_v28  ;;  %v1181_v35 = vpop.f32.mrf.mxu1  ;;  %v1153_v37 = vadd.f32 %v1152_v34, %v1124_v55 }
  0xfc   : > { %v1237_v36 = vadd.f32 %v1236_v30, %v1208_v33  ;;  %v1182_v41 = vadd.f32 %v1181_v35, %v1153_v37  ;;  %v1136_v30 = vadd.f32 %v2429_v17, %v1107_v9  ;;  %v2114_v33 = vmov 64.0  }
  0xfd   : > { %2086 = vrcp.f32 %v2114_v33 }
  0xfe   : > { %v2440_v39 = vadd.f32 %v2434_v32, %v1237_v36 }
 0x100   : > { %v1293_v40 = vadd.f32 %v2440_v39, %v2437_v38 }
 0x101   : > { %v1210_v42 = vpop.f32.mrf.mxu2  ;;  %v1154_v45 = vpop.f32.mrf.mxu0 }
 0x102   : > { %v1239_v43 = vpop.f32.mrf.mxu3  ;;  %v1211_v44 = vadd.f32 %v1210_v42, %v1182_v41  ;;  %v1183_v46 = vpop.f32.mrf.mxu1  ;;  %v1155_v48 = vadd.f32 %v1154_v45, %v1126_v62 }
 0x103   : > { %v2087_v36 = vpop.eup %2086 }
 0x104   : > { %v1240_v47 = vadd.f32 %v1239_v43, %v1211_v44  ;;  %v1184_v51 = vadd.f32 %v1183_v46, %v1155_v48  ;;  %v1307_v43 = vmul.f32 64.0, %v2087_v36  ;;  %vm1311_vm0 = vweird.f32 %v2087_v36 }
 0x106   : > { %v2445_v49 = vadd.f32 %v2434_v32, %v1240_v47  ;;  %v1308_v17 = vsub.f32 1.0, %v1307_v43 }
 0x108   : > { %v1294_v50 = vadd.f32 %v1293_v40, %v2445_v49  ;;  %v1309_v48 = vmul.f32 %v2087_v36, %v1308_v17 }
 0x109   : > { %v1212_v52 = vpop.f32.mrf.mxu2  ;;  %v1157_v55 = vpop.f32.mrf.mxu0 }
 0x10a   : > { %v1241_v53 = vpop.f32.mrf.mxu3  ;;  %v1213_v54 = vadd.f32 %v1212_v52, %v1184_v51  ;;  %v1186_v56 = vpop.f32.mrf.mxu1  ;;  %v1158_v58 = vadd.f32 %v1157_v55, %v1129_v5  ;;  %v1310_v52 = vadd.f32 %v2087_v36, %v1309_v48 }
 0x10c   : > { %v1242_v57 = vadd.f32 %v1241_v53, %v1213_v54  ;;  %v1187_v61 = vadd.f32 %v1186_v56, %v1158_v58  ;;  %v1312_v55 = vsel %vm1311_vm0, %v2087_v36, %v1310_v52 }
 0x10e   : > { %v2449_v59 = vadd.f32 %v2434_v32, %v1242_v57 }
 0x110   : > { %v1295_v60 = vadd.f32 %v1294_v50, %v2449_v59 }
 0x111   : > { %v1215_v62 = vpop.f32.mrf.mxu2  ;;  %v1159_v1 = vpop.f32.mrf.mxu0 }
 0x112   : > { %v1244_v63 = vpop.f32.mrf.mxu3  ;;  %v1216_v0 = vadd.f32 %v1215_v62, %v1187_v61  ;;  %v1188_v2 = vpop.f32.mrf.mxu1  ;;  %v1160_v6 = vadd.f32 %v1159_v1, %v1131_v11 }
 0x114   : > { %v1245_v4 = vadd.f32 %v1244_v63, %v1216_v0  ;;  %v1189_v19 = vadd.f32 %v1188_v2, %v1160_v6 }
 0x116   : > { %v1289_v8 = vadd.f32 %v2434_v32, %v1245_v4 }
 0x118   : > { %v1296_v18 = vadd.f32 %v1295_v60, %v1289_v8 }
 0x119   : > { %v1217_v5 = vpop.f32.mrf.mxu2  ;;  %v1162_v23 = vpop.f32.mrf.mxu0 }
 0x11a   : > { %v1246_v20 = vpop.f32.mrf.mxu3  ;;  %v1218_v22 = vadd.f32 %v1217_v5, %v1189_v19  ;;  %v1163_v26 = vadd.f32 %v1162_v23, %v1134_v21  ;;  %v1191_v27 = vpop.f32.mrf.mxu1 }
 0x11c   : > { %v1247_v25 = vadd.f32 %v1246_v20, %v1218_v22  ;;  %v1192_v12 = vadd.f32 %v1191_v27, %v1163_v26 }
 0x11e   : > { %v1290_v10 = vadd.f32 %v2434_v32, %v1247_v25 }
 0x120   : > { %v1297_v11 = vadd.f32 %v1296_v18, %v1290_v10 }
 0x121   : > { %v1220_v28 = vpop.f32.mrf.mxu2  ;;  %v1164_v13 = vpop.f32.mrf.mxu0 }
 0x122   : > { %v1249_v29 = vpop.f32.mrf.mxu3  ;;  %v1221_v31 = vadd.f32 %v1220_v28, %v1192_v12  ;;  %v1165_v35 = vadd.f32 %v1164_v13, %v1136_v30  ;;  %v1193_v15 = vpop.f32.mrf.mxu1 }
 0x124   : > { %v1250_v34 = vadd.f32 %v1249_v29, %v1221_v31  ;;  %v1194_v16 = vadd.f32 %v1193_v15, %v1165_v35 }
 0x126   : > { %v1291_v14 = vadd.f32 %v2434_v32, %v1250_v34 }
 0x128   : > { %v1298_v37 = vadd.f32 %v1297_v11, %v1291_v14 }
 0x129   : > { %v1222_v40 = vpop.f32.mrf.mxu2 }
 0x12a   : > { %v1223_v41 = vadd.f32 %v1222_v40, %v1194_v16  ;;  %v1251_v42 = vpop.f32.mrf.mxu3 }
 0x12c   : > { %v1252_v44 = vadd.f32 %v1251_v42, %v1223_v41 }
 0x12e   : > { %v1292_v45 = vadd.f32 %v2434_v32, %v1252_v44 }
 0x130   : > { %v1299_v46 = vadd.f32 %v1298_v37, %v1292_v45 }
 0x132   : > { %v1300_v47 = vrot.slane %v1299_v46, 4 }
 0x134   : > { %v1301_v50 = vadd.f32 %v1300_v47, %v1299_v46 }
 0x136   : > { %v1302_v51 = vrot.slane %v1301_v50, 2 }
 0x138   : > { %v1303_v53 = vadd.f32 %v1302_v51, %v1301_v50 }
 0x13a   : > { %v1304_v54 = vrot.slane %v1303_v53, 1 }
 0x13c   : > { %v1305_v56 = vadd.f32 %v1304_v54, %v1303_v53 }
 0x13e   : > { %v1313_v57 = vmul.f32 %v1312_v55, %v1305_v56 }
 0x140   : > { %v1314_v58 = vsub.f32 %v2437_v38, %v1313_v57  ;;  %v1315_v60 = vsub.f32 %v2440_v39, %v1313_v57  ;;  %v1316_v61 = vsub.f32 %v2445_v49, %v1313_v57  ;;  %v1317_v32 = vsub.f32 %v2449_v59, %v1313_v57 }
 0x141   : > { %v1318_v62 = vsub.f32 %v1289_v8, %v1313_v57  ;;  %v1319_v63 = vsub.f32 %v1290_v10, %v1313_v57  ;;  %v1320_v0 = vsub.f32 %v1291_v14, %v1313_v57  ;;  %v1321_v5 = vsub.f32 %v1292_v45, %v1313_v57 }
 0x142   : > { %v1322_v1 = vmul.f32 %v1314_v58, %v1314_v58  ;;  %v1323_v2 = vmul.f32 %v1315_v60, %v1315_v60  ;;  %v1324_v3 = vmul.f32 %v1316_v61, %v1316_v61  ;;  %v1325_v6 = vmul.f32 %v1317_v32, %v1317_v32 }
 0x143   : > { %v1326_v18 = vmul.f32 %v1318_v62, %v1318_v62  ;;  %v1327_v20 = vmul.f32 %v1319_v63, %v1319_v63  ;;  %v1328_v21 = vmul.f32 %v1320_v0, %v1320_v0  ;;  %v1329_v22 = vmul.f32 %v1321_v5, %v1321_v5 }
 0x144   : > { %v1330_v4 = vadd.f32 %v1323_v2, %v1322_v1 }
 0x146   : > { %v1331_v7 = vadd.f32 %v1330_v4, %v1324_v3 }
 0x148   : > { %v1332_v19 = vadd.f32 %v1331_v7, %v1325_v6 }
 0x14a   : > { %v1333_v38 = vadd.f32 %v1332_v19, %v1326_v18 }
 0x14c   : > { %v1334_v39 = vadd.f32 %v1333_v38, %v1327_v20 }
 0x14e   : > { %v1335_v49 = vadd.f32 %v1334_v39, %v1328_v21 }
 0x150   : > { %v1336_v23 = vadd.f32 %v1335_v49, %v1329_v22 }
 0x152   : > { %v1337_v59 = vrot.slane %v1336_v23, 4 }
 0x154   : > { %v1338_v8 = vadd.f32 %v1337_v59, %v1336_v23 }
 0x156   : > { %v1339_v24 = vrot.slane %v1338_v8, 2 }
 0x158   : > { %v1340_v25 = vadd.f32 %v1339_v24, %v1338_v8 }
 0x15a   : > { %v1341_v26 = vrot.slane %v1340_v25, 1 }
 0x15c   : > { %v1342_v27 = vadd.f32 %v1341_v26, %v1340_v25 }
 0x15e   : > { %v1343_v9 = vmul.f32 %v1342_v27, %v1312_v55 }
 0x160   : > { %v1344_v10 = vadd.f32 1e-05, %v1343_v9 }
 0x162   : > { %2088 = vrsqrt.f32 %v1344_v10  ;;  %vm1351_vm2 = vweird.f32 %v1344_v10 }
 0x168   : > { %v2089_v11 = vpop.eup %2088 }
 0x169   : > { %v1346_v12 = vmul.f32 %v2089_v11, %v1344_v10  ;;  %vm1352_vm1 = vweird.f32 %v2089_v11 }
 0x16a   : > { %vm1353_vm3 = vmor %vm1351_vm2, %vm1352_vm1 }
 0x16b   : > { %v1347_v28 = vmul.f32 %v2089_v11, %v1346_v12 }
 0x16d   : > { %v1348_v29 = vmul.f32 0.5, %v1347_v28 }
 0x16f   : > { %v1349_v30 = vsub.f32 1.5, %v1348_v29 }
 0x171   : > { %v1350_v31 = vmul.f32 %v2089_v11, %v1349_v30 }
 0x173   : > { %v1354_v13 = vsel %vm1353_vm3, %v2089_v11, %v1350_v31 }
 0x174   : > { %v1355_v33 = vmul.f32 %v1354_v13, %v1314_v58  ;;  %v1356_v34 = vmul.f32 %v1354_v13, %v1315_v60  ;;  %v1357_v35 = vmul.f32 %v1354_v13, %v1316_v61  ;;  %v1358_v14 = vmul.f32 %v1354_v13, %v1317_v32 }
 0x175   : > { %v1359_v15 = vmul.f32 %v1354_v13, %v1318_v62  ;;  %v1360_v36 = vmul.f32 %v1354_v13, %v1319_v63  ;;  %v1361_v37 = vmul.f32 %v1354_v13, %v1320_v0  ;;  %v1362_v16 = vmul.f32 %v1354_v13, %v1321_v5 }
 0x176   : > { %vm1363_vm4 = vcmp.ge.f32.partialorder %v1355_v33, 0.0  ;;  %vm1364_vm5 = vcmp.ge.f32.partialorder %v1356_v34, 0.0  ;;  %vm1365_vm6 = vcmp.ge.f32.partialorder %v1357_v35, 0.0  ;;  %vm1366_vm7 = vcmp.ge.f32.partialorder %v1358_v14, 0.0 }
 0x177   : > { %vm1367_vm8 = vcmp.ge.f32.partialorder %v1359_v15, 0.0  ;;  %vm1368_vm9 = vcmp.ge.f32.partialorder %v1360_v36, 0.0  ;;  %vm1369_vm10 = vcmp.ge.f32.partialorder %v1361_v37, 0.0  ;;  %vm1370_vm11 = vcmp.ge.f32.partialorder %v1362_v16, 0.0 }
 0x178   : > { %v1371_v40 = vmul.f32 0.2, %v1355_v33  ;;  %v1372_v41 = vmul.f32 0.2, %v1356_v34  ;;  %v1373_v42 = vmul.f32 0.2, %v1357_v35 }
 0x179   : > { %v1374_v43 = vmul.f32 0.2, %v1358_v14  ;;  %v1375_v44 = vmul.f32 0.2, %v1359_v15  ;;  %v1376_v45 = vmul.f32 0.2, %v1360_v36 }
 0x17a   : > { %v1377_v17 = vmul.f32 0.2, %v1361_v37  ;;  %v1378_v46 = vmul.f32 0.2, %v1362_v16  ;;  %v1379_v47 = vsel %vm1363_vm4, %v1355_v33, %v1371_v40  ;;  %v1380_v48 = vsel %vm1364_vm5, %v1356_v34, %v1372_v41 }
 0x17b   : > { %v1381_v50 = vsel %vm1365_vm6, %v1357_v35, %v1373_v42  ;;  %v1382_v51 = vsel %vm1366_vm7, %v1358_v14, %v1374_v43  ;;  %v1383_v52 = vsel %vm1367_vm8, %v1359_v15, %v1375_v44  ;;  %v1384_v53 = vsel %vm1368_vm9, %v1360_v36, %v1376_v45 }
 0x17c   : > { %v1385_v54 = vsel %vm1369_vm10, %v1361_v37, %v1377_v17  ;;  %v1386_v55 = vsel %vm1370_vm11, %v1362_v16, %v1378_v46  ;;  %v2040_v56 = vpack.c.bf16 %v1380_v48, %v1379_v47  ;;  %v2045_v57 = vpack.c.bf16 %v1382_v51, %v1381_v50 }
 0x17d   : > { %v2050_v58 = vpack.c.bf16 %v1384_v53, %v1383_v52  ;;  %v2055_v60 = vpack.c.bf16 %v1386_v55, %v1385_v54 }
 0x17e   : > { %2041 = vst [vmem:[%s296_s12] sm:$0xff] %v2040_v56  }
 0x17f   : > { %2057 = vst [vmem:[%s296_s12 + $0x8] sm:$0xff] %v2045_v57  }
 0x180   : > { %2058 = vst [vmem:[%s296_s12 + $0x10] sm:$0xff] %v2050_v58  }
 0x181   : > { %2059 = vst [vmem:[%s296_s12 + $0x18] sm:$0xff] %v2055_v60  }
 0x182 PF: > { %s13_s14 = sadd.s32 1, %s2112_s14   ;;  %s2490_s12 = smov %s2108_s13 }
 0x183   : > { %p10_p5 = scmp.ge.s32.totalorder %s13_s14, 4   ;;  %s2491_s13 = smov %s2493_s15 }
 0x185   :  { %12 = sbr.rel (!%p10_p5) target bundleno = 2 (0x2), region = 76 }

// kernel: discriminator_forward.7
= control target key start
LH: loop header
LB: loop body
LE: loop exit
PB: predicated region body
PF: predicated region fallthrough
CT: control target
= control target key end

     0   :  { %s4894_s12 = smov 0   ;;  %s4896_s13 = smov 0   ;;  %s5710_s0 = inlined_call_operand.vmem [shape: bf16[2,16,2048], index: 0, kind: input, shape index: {}]   ;;  %s5711_s1 = inlined_call_operand.vmem [shape: bf16[2048,256], index: 1, kind: input, shape index: {}]   ;;  %s5712_s2 = inlined_call_operand.vmem [shape: f32[1,256], index: 2, kind: input, shape index: {}]   ;;  %s5713_s3 = inlined_call_operand.vmem [shape: bf16[2,16,256], index: 3, kind: output, shape index: {}]  }
   0x1   :  { %s4898_s14 = smov 0   ;;  %s4900_s15 = smov 0  }
   0x2   :  { %s4902_s16 = smov 0   ;;  %s4904_s17 = smov 0  }
   0x3   :  { %s4906_s18 = smov 0   ;;  %s4908_s19 = smov 0  }
   0x4   :  { %s4910_s20 = smov 0  }
   0x5 LB: > { %s3981_s21 = sadd.s32 4294967295, %s4871_s20   ;;  %s31_s22 = sadd.s32 1, %s4863_s18  ;;  %s4871_s20 = sphi %s4910_s20, %s13_s20   ;;  %s4867_s19 = sphi %s4908_s19, %s5722_s19   ;;  %s4863_s18 = sphi %s4906_s18, %s5721_s18   ;;  %s4859_s17 = sphi %s4904_s17, %s5720_s17   ;;  %s4855_s16 = sphi %s4902_s16, %s5719_s16   ;;  %s4851_s15 = sphi %s4900_s15, %s5718_s15   ;;  %s4847_s14 = sphi %s4898_s14, %s5717_s14   ;;  %s4843_s13 = sphi %s4896_s13, %s5716_s13   ;;  %s4839_s12 = sphi %s4894_s12, %s5715_s12  }
   0x6   : > { %p33_p0 = scmp.ge.s32.totalorder %s31_s22, 2  ;;  %s39_s23 = sadd.s32 1, %s4867_s19 }
   0x7   : > { %s78_s24 = sadd.s32 1, %s4851_s15  ;;  %p85_p1 = scmp.ne.s32.totalorder %s4851_s15, %s4847_s14 }
   0x8   : > { %s5724_s22 = smov (%p33_p0, %s31_s22), 0  ;;  %s5726_s23 = smov (!%p33_p0, %s39_s23), %s4867_s19 }
   0x9   : > { %s74_s25 = ssub.s32 %s4863_s18, %s5724_s22  ;;  %p86_p2 = scmp.eq.s32.totalorder %s4871_s20, 0 }
   0xa   : > { %p41_p3 = scmp.ge.s32.totalorder %s5726_s23, 2  ;;  %p76_p4 = scmp.eq.s32.totalorder %s74_s25, 0 }
   0xb   : > { %p87_p5 = por %p86_p2, %p85_p1  ;;  %s134_s26 = sadd.s32 1, %s4843_s13 }
   0xc   : > { %s5728_s23 = smov (%p41_p3, %s5726_s23), 0  ;;  %p144_p6 = scmp.ne.s32.totalorder %s4843_s13, %s4839_s12 }
   0xd   : > { %s4955_s27 = scalar_select %p76_p4, %s4851_s15, %s78_s24  }
   0xe   : > { %s127_s28 = ssub.s32 %s4867_s19, %s5728_s23  ;;  %p145_p7 = scmp.eq.s32.totalorder %s3981_s21, 3 }
   0xf   : > { %s131_s29 = sor.u32 %s127_s28, %s74_s25  ;;  %p3984_p10 = scmp.ge.s32.totalorder %s4871_s20, 4 }
  0x10   : > { %p132_p8 = scmp.eq.s32.totalorder %s131_s29, 0  ;;  %p4961_p9 = por %p145_p7, %p144_p6 }
  0x11   : > { %167 = sbr.rel (%p3984_p10) target bundleno = 282 (0x11a), region = 16 }
  0x12   : > { %s4966_s4 = scalar_select %p132_p8, %s4843_s13, %s134_s26  }
  0x16   : > { %189 = sbr.rel (!%p87_p5) target bundleno = 282 (0x11a), region = 24  ;;  %s191_s5 = sand.u32 (%p87_p5), 1, %s4851_s15  }
  0x17   : > { %s3986_s6 = sshll.u32 (%p87_p5), %s4863_s18, 2  ;;  %s3985_s7 = sshll.u32 (%p87_p5), %s191_s5, 10 }
  0x18   : > { %s4974_s10 = scalar_lea.vmem (%p87_p5), %s5711_s1, %s3986_s6  ;;  %s4978_s11 = scalar_lea.vmem (%p87_p5), [#allocation3], %s3985_s7 }
  0x19   : > { %v215_v0 = vld [vmem:[%s4974_s10] sm:$0xf] (%p87_p5)  ;;  %v217_v1 = vld [vmem:[%s4974_s10 + $0x8] sm:$0xf] (%p87_p5)  ;;  %v219_v2 = vld [vmem:[%s4974_s10 + $0x10] sm:$0xf] (%p87_p5) }
  0x1a   : > { %216 = vst [vmem:[%s4978_s11] sm:$0xf] (%p87_p5), %v215_v0  ;;  %v221_v3 = vld [vmem:[%s4974_s10 + $0x18] sm:$0xf] (%p87_p5)  ;;  %v223_v4 = vld [vmem:[%s4974_s10 + $0x20] sm:$0xf] (%p87_p5) }
  0x1b   : > { %218 = vst [vmem:[%s4978_s11 + $0x4] sm:$0xf] %v217_v1  ;;  %v225_v5 = vld [vmem:[%s4974_s10 + $0x28] sm:$0xf]  ;;  %v227_v6 = vld [vmem:[%s4974_s10 + $0x30] sm:$0xf] }
  0x1c   : > { %220 = vst [vmem:[%s4978_s11 + $0x8] sm:$0xf] %v219_v2  ;;  %v229_v7 = vld [vmem:[%s4974_s10 + $0x38] sm:$0xf]  ;;  %v231_v8 = vld [vmem:[%s4974_s10 + $0x40] sm:$0xf] }
  0x1d   : > { %222 = vst [vmem:[%s4978_s11 + $0xc] sm:$0xf] %v221_v3  ;;  %v233_v9 = vld [vmem:[%s4974_s10 + $0x48] sm:$0xf]  ;;  %v235_v10 = vld [vmem:[%s4974_s10 + $0x50] sm:$0xf] }
  0x1e   : > { %224 = vst [vmem:[%s4978_s11 + $0x10] sm:$0xf] %v223_v4  ;;  %v237_v11 = vld [vmem:[%s4974_s10 + $0x58] sm:$0xf]  ;;  %v239_v12 = vld [vmem:[%s4974_s10 + $0x60] sm:$0xf] }
  0x1f   : > { %226 = vst [vmem:[%s4978_s11 + $0x14] sm:$0xf] %v225_v5  ;;  %v241_v13 = vld [vmem:[%s4974_s10 + $0x68] sm:$0xf]  ;;  %v243_v14 = vld [vmem:[%s4974_s10 + $0x70] sm:$0xf] }
  0x20   : > { %228 = vst [vmem:[%s4978_s11 + $0x18] sm:$0xf] %v227_v6  ;;  %v245_v15 = vld [vmem:[%s4974_s10 + $0x78] sm:$0xf]  ;;  %v247_v16 = vld [vmem:[%s4974_s10 + $0x80] sm:$0xf] }
  0x21   : > { %230 = vst [vmem:[%s4978_s11 + $0x1c] sm:$0xf] %v229_v7  ;;  %v249_v17 = vld [vmem:[%s4974_s10 + $0x88] sm:$0xf]  ;;  %v251_v18 = vld [vmem:[%s4974_s10 + $0x90] sm:$0xf] }
  0x22   : > { %232 = vst [vmem:[%s4978_s11 + $0x20] sm:$0xf] %v231_v8  ;;  %v253_v19 = vld [vmem:[%s4974_s10 + $0x98] sm:$0xf]  ;;  %v255_v20 = vld [vmem:[%s4974_s10 + $0xa0] sm:$0xf] }
  0x23   : > { %234 = vst [vmem:[%s4978_s11 + $0x24] sm:$0xf] %v233_v9  ;;  %v257_v21 = vld [vmem:[%s4974_s10 + $0xa8] sm:$0xf]  ;;  %v259_v22 = vld [vmem:[%s4974_s10 + $0xb0] sm:$0xf] }
  0x24   : > { %236 = vst [vmem:[%s4978_s11 + $0x28] sm:$0xf] %v235_v10  ;;  %v261_v23 = vld [vmem:[%s4974_s10 + $0xb8] sm:$0xf]  ;;  %v263_v24 = vld [vmem:[%s4974_s10 + $0xc0] sm:$0xf] }
  0x25   : > { %238 = vst [vmem:[%s4978_s11 + $0x2c] sm:$0xf] %v237_v11  ;;  %v265_v25 = vld [vmem:[%s4974_s10 + $0xc8] sm:$0xf]  ;;  %v267_v26 = vld [vmem:[%s4974_s10 + $0xd0] sm:$0xf] }
  0x26   : > { %240 = vst [vmem:[%s4978_s11 + $0x30] sm:$0xf] %v239_v12  ;;  %v269_v27 = vld [vmem:[%s4974_s10 + $0xd8] sm:$0xf]  ;;  %v271_v28 = vld [vmem:[%s4974_s10 + $0xe0] sm:$0xf] }
  0x27   : > { %242 = vst [vmem:[%s4978_s11 + $0x34] sm:$0xf] %v241_v13  ;;  %v273_v29 = vld [vmem:[%s4974_s10 + $0xe8] sm:$0xf]  ;;  %v275_v30 = vld [vmem:[%s4974_s10 + $0xf0] sm:$0xf] }
  0x28   : > { %244 = vst [vmem:[%s4978_s11 + $0x38] sm:$0xf] %v243_v14  ;;  %v277_v31 = vld [vmem:[%s4974_s10 + $0xf8] sm:$0xf]  ;;  %v279_v32 = vld [vmem:[%s4974_s10 + $0x100] sm:$0xf] }
  0x29   : > { %246 = vst [vmem:[%s4978_s11 + $0x3c] sm:$0xf] %v245_v15  ;;  %v281_v33 = vld [vmem:[%s4974_s10 + $0x108] sm:$0xf]  ;;  %v283_v34 = vld [vmem:[%s4974_s10 + $0x110] sm:$0xf] }
  0x2a   : > { %248 = vst [vmem:[%s4978_s11 + $0x40] sm:$0xf] %v247_v16  ;;  %v285_v35 = vld [vmem:[%s4974_s10 + $0x118] sm:$0xf]  ;;  %v287_v36 = vld [vmem:[%s4974_s10 + $0x120] sm:$0xf] }
  0x2b   : > { %250 = vst [vmem:[%s4978_s11 + $0x44] sm:$0xf] %v249_v17  ;;  %v289_v37 = vld [vmem:[%s4974_s10 + $0x128] sm:$0xf]  ;;  %v291_v38 = vld [vmem:[%s4974_s10 + $0x130] sm:$0xf] }
  0x2c   : > { %252 = vst [vmem:[%s4978_s11 + $0x48] sm:$0xf] %v251_v18  ;;  %v293_v39 = vld [vmem:[%s4974_s10 + $0x138] sm:$0xf]  ;;  %v295_v40 = vld [vmem:[%s4974_s10 + $0x140] sm:$0xf] }
  0x2d   : > { %254 = vst [vmem:[%s4978_s11 + $0x4c] sm:$0xf] %v253_v19  ;;  %v297_v41 = vld [vmem:[%s4974_s10 + $0x148] sm:$0xf]  ;;  %v299_v42 = vld [vmem:[%s4974_s10 + $0x150] sm:$0xf] }
  0x2e   : > { %256 = vst [vmem:[%s4978_s11 + $0x50] sm:$0xf] %v255_v20  ;;  %v301_v43 = vld [vmem:[%s4974_s10 + $0x158] sm:$0xf]  ;;  %v303_v44 = vld [vmem:[%s4974_s10 + $0x160] sm:$0xf] }
  0x2f   : > { %258 = vst [vmem:[%s4978_s11 + $0x54] sm:$0xf] %v257_v21  ;;  %v305_v45 = vld [vmem:[%s4974_s10 + $0x168] sm:$0xf]  ;;  %v307_v46 = vld [vmem:[%s4974_s10 + $0x170] sm:$0xf] }
  0x30   : > { %260 = vst [vmem:[%s4978_s11 + $0x58] sm:$0xf] %v259_v22  ;;  %v309_v47 = vld [vmem:[%s4974_s10 + $0x178] sm:$0xf]  ;;  %v311_v48 = vld [vmem:[%s4974_s10 + $0x180] sm:$0xf] }
  0x31   : > { %262 = vst [vmem:[%s4978_s11 + $0x5c] sm:$0xf] %v261_v23  ;;  %v313_v49 = vld [vmem:[%s4974_s10 + $0x188] sm:$0xf]  ;;  %v315_v50 = vld [vmem:[%s4974_s10 + $0x190] sm:$0xf] }
  0x32   : > { %264 = vst [vmem:[%s4978_s11 + $0x60] sm:$0xf] %v263_v24  ;;  %v317_v51 = vld [vmem:[%s4974_s10 + $0x198] sm:$0xf]  ;;  %v319_v52 = vld [vmem:[%s4974_s10 + $0x1a0] sm:$0xf] }
  0x33   : > { %266 = vst [vmem:[%s4978_s11 + $0x64] sm:$0xf] %v265_v25  ;;  %v321_v53 = vld [vmem:[%s4974_s10 + $0x1a8] sm:$0xf]  ;;  %v323_v54 = vld [vmem:[%s4974_s10 + $0x1b0] sm:$0xf] }
  0x34   : > { %268 = vst [vmem:[%s4978_s11 + $0x68] sm:$0xf] %v267_v26  ;;  %v325_v55 = vld [vmem:[%s4974_s10 + $0x1b8] sm:$0xf]  ;;  %v327_v56 = vld [vmem:[%s4974_s10 + $0x1c0] sm:$0xf] }
  0x35   : > { %270 = vst [vmem:[%s4978_s11 + $0x6c] sm:$0xf] %v269_v27  ;;  %v329_v57 = vld [vmem:[%s4974_s10 + $0x1c8] sm:$0xf]  ;;  %v331_v58 = vld [vmem:[%s4974_s10 + $0x1d0] sm:$0xf] }
  0x36   : > { %272 = vst [vmem:[%s4978_s11 + $0x70] sm:$0xf] %v271_v28  ;;  %v333_v59 = vld [vmem:[%s4974_s10 + $0x1d8] sm:$0xf]  ;;  %v335_v60 = vld [vmem:[%s4974_s10 + $0x1e0] sm:$0xf] }
  0x37   : > { %274 = vst [vmem:[%s4978_s11 + $0x74] sm:$0xf] %v273_v29  ;;  %v337_v61 = vld [vmem:[%s4974_s10 + $0x1e8] sm:$0xf]  ;;  %v339_v62 = vld [vmem:[%s4974_s10 + $0x1f0] sm:$0xf] }
  0x38   : > { %276 = vst [vmem:[%s4978_s11 + $0x78] sm:$0xf] %v275_v30  ;;  %v341_v63 = vld [vmem:[%s4974_s10 + $0x1f8] sm:$0xf]  ;;  %v343_v0 = vld [vmem:[%s4974_s10 + $0x200] sm:$0xf] }
  0x39   : > { %278 = vst [vmem:[%s4978_s11 + $0x7c] sm:$0xf] %v277_v31  ;;  %v345_v1 = vld [vmem:[%s4974_s10 + $0x208] sm:$0xf]  ;;  %v347_v2 = vld [vmem:[%s4974_s10 + $0x210] sm:$0xf] }
  0x3a   : > { %280 = vst [vmem:[%s4978_s11 + $0x80] sm:$0xf] %v279_v32  ;;  %v349_v3 = vld [vmem:[%s4974_s10 + $0x218] sm:$0xf]  ;;  %v351_v4 = vld [vmem:[%s4974_s10 + $0x220] sm:$0xf] }
  0x3b   : > { %282 = vst [vmem:[%s4978_s11 + $0x84] sm:$0xf] %v281_v33  ;;  %v353_v5 = vld [vmem:[%s4974_s10 + $0x228] sm:$0xf]  ;;  %v355_v6 = vld [vmem:[%s4974_s10 + $0x230] sm:$0xf] }
  0x3c   : > { %284 = vst [vmem:[%s4978_s11 + $0x88] sm:$0xf] %v283_v34  ;;  %v357_v7 = vld [vmem:[%s4974_s10 + $0x238] sm:$0xf]  ;;  %v359_v8 = vld [vmem:[%s4974_s10 + $0x240] sm:$0xf] }
  0x3d   : > { %286 = vst [vmem:[%s4978_s11 + $0x8c] sm:$0xf] %v285_v35  ;;  %v361_v9 = vld [vmem:[%s4974_s10 + $0x248] sm:$0xf]  ;;  %v363_v10 = vld [vmem:[%s4974_s10 + $0x250] sm:$0xf] }
  0x3e   : > { %288 = vst [vmem:[%s4978_s11 + $0x90] sm:$0xf] %v287_v36  ;;  %v365_v11 = vld [vmem:[%s4974_s10 + $0x258] sm:$0xf]  ;;  %v367_v12 = vld [vmem:[%s4974_s10 + $0x260] sm:$0xf] }
  0x3f   : > { %290 = vst [vmem:[%s4978_s11 + $0x94] sm:$0xf] %v289_v37  ;;  %v369_v13 = vld [vmem:[%s4974_s10 + $0x268] sm:$0xf]  ;;  %v371_v14 = vld [vmem:[%s4974_s10 + $0x270] sm:$0xf] }
  0x40   : > { %292 = vst [vmem:[%s4978_s11 + $0x98] sm:$0xf] %v291_v38  ;;  %v373_v15 = vld [vmem:[%s4974_s10 + $0x278] sm:$0xf]  ;;  %v375_v16 = vld [vmem:[%s4974_s10 + $0x280] sm:$0xf] }
  0x41   : > { %294 = vst [vmem:[%s4978_s11 + $0x9c] sm:$0xf] %v293_v39  ;;  %v377_v17 = vld [vmem:[%s4974_s10 + $0x288] sm:$0xf]  ;;  %v379_v18 = vld [vmem:[%s4974_s10 + $0x290] sm:$0xf] }
  0x42   : > { %296 = vst [vmem:[%s4978_s11 + $0xa0] sm:$0xf] %v295_v40  ;;  %v381_v19 = vld [vmem:[%s4974_s10 + $0x298] sm:$0xf]  ;;  %v383_v20 = vld [vmem:[%s4974_s10 + $0x2a0] sm:$0xf] }
  0x43   : > { %298 = vst [vmem:[%s4978_s11 + $0xa4] sm:$0xf] %v297_v41  ;;  %v385_v21 = vld [vmem:[%s4974_s10 + $0x2a8] sm:$0xf]  ;;  %v387_v22 = vld [vmem:[%s4974_s10 + $0x2b0] sm:$0xf] }
  0x44   : > { %300 = vst [vmem:[%s4978_s11 + $0xa8] sm:$0xf] %v299_v42  ;;  %v389_v23 = vld [vmem:[%s4974_s10 + $0x2b8] sm:$0xf]  ;;  %v391_v24 = vld [vmem:[%s4974_s10 + $0x2c0] sm:$0xf] }
  0x45   : > { %302 = vst [vmem:[%s4978_s11 + $0xac] sm:$0xf] %v301_v43  ;;  %v393_v25 = vld [vmem:[%s4974_s10 + $0x2c8] sm:$0xf]  ;;  %v395_v26 = vld [vmem:[%s4974_s10 + $0x2d0] sm:$0xf] }
  0x46   : > { %304 = vst [vmem:[%s4978_s11 + $0xb0] sm:$0xf] %v303_v44  ;;  %v397_v27 = vld [vmem:[%s4974_s10 + $0x2d8] sm:$0xf]  ;;  %v399_v28 = vld [vmem:[%s4974_s10 + $0x2e0] sm:$0xf] }
  0x47   : > { %306 = vst [vmem:[%s4978_s11 + $0xb4] sm:$0xf] %v305_v45  ;;  %v401_v29 = vld [vmem:[%s4974_s10 + $0x2e8] sm:$0xf]  ;;  %v403_v30 = vld [vmem:[%s4974_s10 + $0x2f0] sm:$0xf] }
  0x48   : > { %308 = vst [vmem:[%s4978_s11 + $0xb8] sm:$0xf] %v307_v46  ;;  %v405_v31 = vld [vmem:[%s4974_s10 + $0x2f8] sm:$0xf]  ;;  %v407_v32 = vld [vmem:[%s4974_s10 + $0x300] sm:$0xf] }
  0x49   : > { %310 = vst [vmem:[%s4978_s11 + $0xbc] sm:$0xf] %v309_v47  ;;  %v409_v33 = vld [vmem:[%s4974_s10 + $0x308] sm:$0xf]  ;;  %v411_v34 = vld [vmem:[%s4974_s10 + $0x310] sm:$0xf] }
  0x4a   : > { %312 = vst [vmem:[%s4978_s11 + $0xc0] sm:$0xf] %v311_v48  ;;  %v413_v35 = vld [vmem:[%s4974_s10 + $0x318] sm:$0xf]  ;;  %v415_v36 = vld [vmem:[%s4974_s10 + $0x320] sm:$0xf] }
  0x4b   : > { %314 = vst [vmem:[%s4978_s11 + $0xc4] sm:$0xf] %v313_v49  ;;  %v417_v37 = vld [vmem:[%s4974_s10 + $0x328] sm:$0xf]  ;;  %v419_v38 = vld [vmem:[%s4974_s10 + $0x330] sm:$0xf] }
  0x4c   : > { %316 = vst [vmem:[%s4978_s11 + $0xc8] sm:$0xf] %v315_v50  ;;  %v421_v39 = vld [vmem:[%s4974_s10 + $0x338] sm:$0xf]  ;;  %v423_v40 = vld [vmem:[%s4974_s10 + $0x340] sm:$0xf] }
  0x4d   : > { %318 = vst [vmem:[%s4978_s11 + $0xcc] sm:$0xf] %v317_v51  ;;  %v425_v41 = vld [vmem:[%s4974_s10 + $0x348] sm:$0xf]  ;;  %v427_v42 = vld [vmem:[%s4974_s10 + $0x350] sm:$0xf] }
  0x4e   : > { %320 = vst [vmem:[%s4978_s11 + $0xd0] sm:$0xf] %v319_v52  ;;  %v429_v43 = vld [vmem:[%s4974_s10 + $0x358] sm:$0xf]  ;;  %v431_v44 = vld [vmem:[%s4974_s10 + $0x360] sm:$0xf] }
  0x4f   : > { %322 = vst [vmem:[%s4978_s11 + $0xd4] sm:$0xf] %v321_v53  ;;  %v433_v45 = vld [vmem:[%s4974_s10 + $0x368] sm:$0xf]  ;;  %v435_v46 = vld [vmem:[%s4974_s10 + $0x370] sm:$0xf] }
  0x50   : > { %324 = vst [vmem:[%s4978_s11 + $0xd8] sm:$0xf] %v323_v54  ;;  %v437_v47 = vld [vmem:[%s4974_s10 + $0x378] sm:$0xf]  ;;  %v439_v48 = vld [vmem:[%s4974_s10 + $0x380] sm:$0xf] }
  0x51   : > { %326 = vst [vmem:[%s4978_s11 + $0xdc] sm:$0xf] %v325_v55  ;;  %v441_v49 = vld [vmem:[%s4974_s10 + $0x388] sm:$0xf]  ;;  %v443_v50 = vld [vmem:[%s4974_s10 + $0x390] sm:$0xf] }
  0x52   : > { %328 = vst [vmem:[%s4978_s11 + $0xe0] sm:$0xf] %v327_v56  ;;  %v445_v51 = vld [vmem:[%s4974_s10 + $0x398] sm:$0xf]  ;;  %v447_v52 = vld [vmem:[%s4974_s10 + $0x3a0] sm:$0xf] }
  0x53   : > { %330 = vst [vmem:[%s4978_s11 + $0xe4] sm:$0xf] %v329_v57  ;;  %v449_v53 = vld [vmem:[%s4974_s10 + $0x3a8] sm:$0xf]  ;;  %v451_v54 = vld [vmem:[%s4974_s10 + $0x3b0] sm:$0xf] }
  0x54   : > { %332 = vst [vmem:[%s4978_s11 + $0xe8] sm:$0xf] %v331_v58  ;;  %v453_v55 = vld [vmem:[%s4974_s10 + $0x3b8] sm:$0xf]  ;;  %v455_v56 = vld [vmem:[%s4974_s10 + $0x3c0] sm:$0xf] }
  0x55   : > { %334 = vst [vmem:[%s4978_s11 + $0xec] sm:$0xf] %v333_v59  ;;  %v457_v57 = vld [vmem:[%s4974_s10 + $0x3c8] sm:$0xf]  ;;  %v459_v58 = vld [vmem:[%s4974_s10 + $0x3d0] sm:$0xf] }
  0x56   : > { %336 = vst [vmem:[%s4978_s11 + $0xf0] sm:$0xf] %v335_v60  ;;  %v461_v59 = vld [vmem:[%s4974_s10 + $0x3d8] sm:$0xf]  ;;  %v463_v60 = vld [vmem:[%s4974_s10 + $0x3e0] sm:$0xf] }
  0x57   : > { %338 = vst [vmem:[%s4978_s11 + $0xf4] sm:$0xf] %v337_v61  ;;  %v465_v61 = vld [vmem:[%s4974_s10 + $0x3e8] sm:$0xf] }
  0x58   : > { %340 = vst [vmem:[%s4978_s11 + $0xf8] sm:$0xf] %v339_v62  ;;  %v467_v62 = vld [vmem:[%s4974_s10 + $0x3f0] sm:$0xf] }
  0x59   : > { %342 = vst [vmem:[%s4978_s11 + $0xfc] sm:$0xf] %v341_v63  ;;  %v469_v63 = vld [vmem:[%s4974_s10 + $0x3f8] sm:$0xf] }
  0x5a   : > { %344 = vst [vmem:[%s4978_s11 + $0x100] sm:$0xf] %v343_v0  ;;  %v471_v0 = vld [vmem:[%s4974_s10 + $0x400] sm:$0xf] }
  0x5b   : > { %346 = vst [vmem:[%s4978_s11 + $0x104] sm:$0xf] %v345_v1  ;;  %v473_v1 = vld [vmem:[%s4974_s10 + $0x408] sm:$0xf] }
  0x5c   : > { %348 = vst [vmem:[%s4978_s11 + $0x108] sm:$0xf] %v347_v2  ;;  %v475_v2 = vld [vmem:[%s4974_s10 + $0x410] sm:$0xf] }
  0x5d   : > { %350 = vst [vmem:[%s4978_s11 + $0x10c] sm:$0xf] %v349_v3  ;;  %v477_v3 = vld [vmem:[%s4974_s10 + $0x418] sm:$0xf] }
  0x5e   : > { %352 = vst [vmem:[%s4978_s11 + $0x110] sm:$0xf] %v351_v4  ;;  %v479_v4 = vld [vmem:[%s4974_s10 + $0x420] sm:$0xf] }
  0x5f   : > { %354 = vst [vmem:[%s4978_s11 + $0x114] sm:$0xf] %v353_v5  ;;  %v481_v5 = vld [vmem:[%s4974_s10 + $0x428] sm:$0xf] }
  0x60   : > { %356 = vst [vmem:[%s4978_s11 + $0x118] sm:$0xf] %v355_v6  ;;  %v483_v6 = vld [vmem:[%s4974_s10 + $0x430] sm:$0xf] }
  0x61   : > { %358 = vst [vmem:[%s4978_s11 + $0x11c] sm:$0xf] %v357_v7  ;;  %v485_v7 = vld [vmem:[%s4974_s10 + $0x438] sm:$0xf] }
  0x62   : > { %360 = vst [vmem:[%s4978_s11 + $0x120] sm:$0xf] %v359_v8  ;;  %v487_v8 = vld [vmem:[%s4974_s10 + $0x440] sm:$0xf] }
  0x63   : > { %362 = vst [vmem:[%s4978_s11 + $0x124] sm:$0xf] %v361_v9  ;;  %v489_v9 = vld [vmem:[%s4974_s10 + $0x448] sm:$0xf] }
  0x64   : > { %364 = vst [vmem:[%s4978_s11 + $0x128] sm:$0xf] %v363_v10  ;;  %v491_v10 = vld [vmem:[%s4974_s10 + $0x450] sm:$0xf] }
  0x65   : > { %366 = vst [vmem:[%s4978_s11 + $0x12c] sm:$0xf] %v365_v11  ;;  %v493_v11 = vld [vmem:[%s4974_s10 + $0x458] sm:$0xf] }
  0x66   : > { %368 = vst [vmem:[%s4978_s11 + $0x130] sm:$0xf] %v367_v12  ;;  %v495_v12 = vld [vmem:[%s4974_s10 + $0x460] sm:$0xf] }
  0x67   : > { %370 = vst [vmem:[%s4978_s11 + $0x134] sm:$0xf] %v369_v13  ;;  %v497_v13 = vld [vmem:[%s4974_s10 + $0x468] sm:$0xf] }
  0x68   : > { %372 = vst [vmem:[%s4978_s11 + $0x138] sm:$0xf] %v371_v14  ;;  %v499_v14 = vld [vmem:[%s4974_s10 + $0x470] sm:$0xf] }
  0x69   : > { %374 = vst [vmem:[%s4978_s11 + $0x13c] sm:$0xf] %v373_v15  ;;  %v501_v15 = vld [vmem:[%s4974_s10 + $0x478] sm:$0xf] }
  0x6a   : > { %376 = vst [vmem:[%s4978_s11 + $0x140] sm:$0xf] %v375_v16  ;;  %v503_v16 = vld [vmem:[%s4974_s10 + $0x480] sm:$0xf] }
  0x6b   : > { %378 = vst [vmem:[%s4978_s11 + $0x144] sm:$0xf] %v377_v17  ;;  %v505_v17 = vld [vmem:[%s4974_s10 + $0x488] sm:$0xf] }
  0x6c   : > { %380 = vst [vmem:[%s4978_s11 + $0x148] sm:$0xf] %v379_v18  ;;  %v507_v18 = vld [vmem:[%s4974_s10 + $0x490] sm:$0xf] }
  0x6d   : > { %382 = vst [vmem:[%s4978_s11 + $0x14c] sm:$0xf] %v381_v19  ;;  %v509_v19 = vld [vmem:[%s4974_s10 + $0x498] sm:$0xf] }
  0x6e   : > { %384 = vst [vmem:[%s4978_s11 + $0x150] sm:$0xf] %v383_v20  ;;  %v511_v20 = vld [vmem:[%s4974_s10 + $0x4a0] sm:$0xf] }
  0x6f   : > { %386 = vst [vmem:[%s4978_s11 + $0x154] sm:$0xf] %v385_v21  ;;  %v513_v21 = vld [vmem:[%s4974_s10 + $0x4a8] sm:$0xf] }
  0x70   : > { %388 = vst [vmem:[%s4978_s11 + $0x158] sm:$0xf] %v387_v22  ;;  %v515_v22 = vld [vmem:[%s4974_s10 + $0x4b0] sm:$0xf] }
  0x71   : > { %390 = vst [vmem:[%s4978_s11 + $0x15c] sm:$0xf] %v389_v23  ;;  %v517_v23 = vld [vmem:[%s4974_s10 + $0x4b8] sm:$0xf] }
  0x72   : > { %392 = vst [vmem:[%s4978_s11 + $0x160] sm:$0xf] %v391_v24  ;;  %v519_v24 = vld [vmem:[%s4974_s10 + $0x4c0] sm:$0xf] }
  0x73   : > { %394 = vst [vmem:[%s4978_s11 + $0x164] sm:$0xf] %v393_v25  ;;  %v521_v25 = vld [vmem:[%s4974_s10 + $0x4c8] sm:$0xf] }
  0x74   : > { %396 = vst [vmem:[%s4978_s11 + $0x168] sm:$0xf] %v395_v26  ;;  %v523_v26 = vld [vmem:[%s4974_s10 + $0x4d0] sm:$0xf] }
  0x75   : > { %398 = vst [vmem:[%s4978_s11 + $0x16c] sm:$0xf] %v397_v27  ;;  %v525_v27 = vld [vmem:[%s4974_s10 + $0x4d8] sm:$0xf] }
  0x76   : > { %400 = vst [vmem:[%s4978_s11 + $0x170] sm:$0xf] %v399_v28  ;;  %v527_v28 = vld [vmem:[%s4974_s10 + $0x4e0] sm:$0xf] }
  0x77   : > { %402 = vst [vmem:[%s4978_s11 + $0x174] sm:$0xf] %v401_v29  ;;  %v529_v29 = vld [vmem:[%s4974_s10 + $0x4e8] sm:$0xf] }
  0x78   : > { %404 = vst [vmem:[%s4978_s11 + $0x178] sm:$0xf] %v403_v30  ;;  %v531_v30 = vld [vmem:[%s4974_s10 + $0x4f0] sm:$0xf] }
  0x79   : > { %406 = vst [vmem:[%s4978_s11 + $0x17c] sm:$0xf] %v405_v31  ;;  %v533_v31 = vld [vmem:[%s4974_s10 + $0x4f8] sm:$0xf] }
  0x7a   : > { %408 = vst [vmem:[%s4978_s11 + $0x180] sm:$0xf] %v407_v32  ;;  %v535_v32 = vld [vmem:[%s4974_s10 + $0x500] sm:$0xf] }
  0x7b   : > { %410 = vst [vmem:[%s4978_s11 + $0x184] sm:$0xf] %v409_v33  ;;  %v537_v33 = vld [vmem:[%s4974_s10 + $0x508] sm:$0xf] }
  0x7c   : > { %412 = vst [vmem:[%s4978_s11 + $0x188] sm:$0xf] %v411_v34  ;;  %v539_v34 = vld [vmem:[%s4974_s10 + $0x510] sm:$0xf] }
  0x7d   : > { %414 = vst [vmem:[%s4978_s11 + $0x18c] sm:$0xf] %v413_v35  ;;  %v541_v35 = vld [vmem:[%s4974_s10 + $0x518] sm:$0xf] }
  0x7e   : > { %416 = vst [vmem:[%s4978_s11 + $0x190] sm:$0xf] %v415_v36  ;;  %v543_v36 = vld [vmem:[%s4974_s10 + $0x520] sm:$0xf] }
  0x7f   : > { %418 = vst [vmem:[%s4978_s11 + $0x194] sm:$0xf] %v417_v37  ;;  %v545_v37 = vld [vmem:[%s4974_s10 + $0x528] sm:$0xf] }
  0x80   : > { %420 = vst [vmem:[%s4978_s11 + $0x198] sm:$0xf] %v419_v38  ;;  %v547_v38 = vld [vmem:[%s4974_s10 + $0x530] sm:$0xf] }
  0x81   : > { %422 = vst [vmem:[%s4978_s11 + $0x19c] sm:$0xf] %v421_v39  ;;  %v549_v39 = vld [vmem:[%s4974_s10 + $0x538] sm:$0xf] }
  0x82   : > { %424 = vst [vmem:[%s4978_s11 + $0x1a0] sm:$0xf] %v423_v40  ;;  %v551_v40 = vld [vmem:[%s4974_s10 + $0x540] sm:$0xf] }
  0x83   : > { %426 = vst [vmem:[%s4978_s11 + $0x1a4] sm:$0xf] %v425_v41  ;;  %v553_v41 = vld [vmem:[%s4974_s10 + $0x548] sm:$0xf] }
  0x84   : > { %428 = vst [vmem:[%s4978_s11 + $0x1a8] sm:$0xf] %v427_v42  ;;  %v555_v42 = vld [vmem:[%s4974_s10 + $0x550] sm:$0xf] }
  0x85   : > { %430 = vst [vmem:[%s4978_s11 + $0x1ac] sm:$0xf] %v429_v43  ;;  %v557_v43 = vld [vmem:[%s4974_s10 + $0x558] sm:$0xf] }
  0x86   : > { %432 = vst [vmem:[%s4978_s11 + $0x1b0] sm:$0xf] %v431_v44  ;;  %v559_v44 = vld [vmem:[%s4974_s10 + $0x560] sm:$0xf] }
  0x87   : > { %434 = vst [vmem:[%s4978_s11 + $0x1b4] sm:$0xf] %v433_v45  ;;  %v561_v45 = vld [vmem:[%s4974_s10 + $0x568] sm:$0xf] }
  0x88   : > { %436 = vst [vmem:[%s4978_s11 + $0x1b8] sm:$0xf] %v435_v46  ;;  %v563_v46 = vld [vmem:[%s4974_s10 + $0x570] sm:$0xf] }
  0x89   : > { %438 = vst [vmem:[%s4978_s11 + $0x1bc] sm:$0xf] %v437_v47  ;;  %v565_v47 = vld [vmem:[%s4974_s10 + $0x578] sm:$0xf] }
  0x8a   : > { %440 = vst [vmem:[%s4978_s11 + $0x1c0] sm:$0xf] %v439_v48  ;;  %v567_v48 = vld [vmem:[%s4974_s10 + $0x580] sm:$0xf] }
  0x8b   : > { %442 = vst [vmem:[%s4978_s11 + $0x1c4] sm:$0xf] %v441_v49  ;;  %v569_v49 = vld [vmem:[%s4974_s10 + $0x588] sm:$0xf] }
  0x8c   : > { %444 = vst [vmem:[%s4978_s11 + $0x1c8] sm:$0xf] %v443_v50  ;;  %v571_v50 = vld [vmem:[%s4974_s10 + $0x590] sm:$0xf] }
  0x8d   : > { %446 = vst [vmem:[%s4978_s11 + $0x1cc] sm:$0xf] %v445_v51  ;;  %v573_v51 = vld [vmem:[%s4974_s10 + $0x598] sm:$0xf] }
  0x8e   : > { %448 = vst [vmem:[%s4978_s11 + $0x1d0] sm:$0xf] %v447_v52  ;;  %v575_v52 = vld [vmem:[%s4974_s10 + $0x5a0] sm:$0xf] }
  0x8f   : > { %450 = vst [vmem:[%s4978_s11 + $0x1d4] sm:$0xf] %v449_v53  ;;  %v577_v53 = vld [vmem:[%s4974_s10 + $0x5a8] sm:$0xf] }
  0x90   : > { %452 = vst [vmem:[%s4978_s11 + $0x1d8] sm:$0xf] %v451_v54  ;;  %v579_v54 = vld [vmem:[%s4974_s10 + $0x5b0] sm:$0xf] }
  0x91   : > { %454 = vst [vmem:[%s4978_s11 + $0x1dc] sm:$0xf] %v453_v55  ;;  %v581_v55 = vld [vmem:[%s4974_s10 + $0x5b8] sm:$0xf] }
  0x92   : > { %456 = vst [vmem:[%s4978_s11 + $0x1e0] sm:$0xf] %v455_v56  ;;  %v583_v56 = vld [vmem:[%s4974_s10 + $0x5c0] sm:$0xf] }
  0x93   : > { %458 = vst [vmem:[%s4978_s11 + $0x1e4] sm:$0xf] %v457_v57  ;;  %v585_v57 = vld [vmem:[%s4974_s10 + $0x5c8] sm:$0xf] }
  0x94   : > { %460 = vst [vmem:[%s4978_s11 + $0x1e8] sm:$0xf] %v459_v58  ;;  %v587_v58 = vld [vmem:[%s4974_s10 + $0x5d0] sm:$0xf] }
  0x95   : > { %462 = vst [vmem:[%s4978_s11 + $0x1ec] sm:$0xf] %v461_v59  ;;  %v589_v59 = vld [vmem:[%s4974_s10 + $0x5d8] sm:$0xf] }
  0x96   : > { %464 = vst [vmem:[%s4978_s11 + $0x1f0] sm:$0xf] %v463_v60  ;;  %v591_v60 = vld [vmem:[%s4974_s10 + $0x5e0] sm:$0xf] }
  0x97   : > { %466 = vst [vmem:[%s4978_s11 + $0x1f4] sm:$0xf] %v465_v61  ;;  %v593_v61 = vld [vmem:[%s4974_s10 + $0x5e8] sm:$0xf] }
  0x98   : > { %468 = vst [vmem:[%s4978_s11 + $0x1f8] sm:$0xf] %v467_v62  ;;  %v595_v62 = vld [vmem:[%s4974_s10 + $0x5f0] sm:$0xf] }
  0x99   : > { %470 = vst [vmem:[%s4978_s11 + $0x1fc] sm:$0xf] %v469_v63  ;;  %v597_v63 = vld [vmem:[%s4974_s10 + $0x5f8] sm:$0xf] }
  0x9a   : > { %472 = vst [vmem:[%s4978_s11 + $0x200] sm:$0xf] %v471_v0  ;;  %v599_v0 = vld [vmem:[%s4974_s10 + $0x600] sm:$0xf] }
  0x9b   : > { %474 = vst [vmem:[%s4978_s11 + $0x204] sm:$0xf] %v473_v1  ;;  %v601_v1 = vld [vmem:[%s4974_s10 + $0x608] sm:$0xf] }
  0x9c   : > { %476 = vst [vmem:[%s4978_s11 + $0x208] sm:$0xf] %v475_v2  ;;  %v603_v2 = vld [vmem:[%s4974_s10 + $0x610] sm:$0xf] }
  0x9d   : > { %478 = vst [vmem:[%s4978_s11 + $0x20c] sm:$0xf] %v477_v3  ;;  %v605_v3 = vld [vmem:[%s4974_s10 + $0x618] sm:$0xf] }
  0x9e   : > { %480 = vst [vmem:[%s4978_s11 + $0x210] sm:$0xf] %v479_v4  ;;  %v607_v4 = vld [vmem:[%s4974_s10 + $0x620] sm:$0xf] }
  0x9f   : > { %482 = vst [vmem:[%s4978_s11 + $0x214] sm:$0xf] %v481_v5  ;;  %v609_v5 = vld [vmem:[%s4974_s10 + $0x628] sm:$0xf] }
  0xa0   : > { %484 = vst [vmem:[%s4978_s11 + $0x218] sm:$0xf] %v483_v6  ;;  %v611_v6 = vld [vmem:[%s4974_s10 + $0x630] sm:$0xf] }
  0xa1   : > { %486 = vst [vmem:[%s4978_s11 + $0x21c] sm:$0xf] %v485_v7  ;;  %v613_v7 = vld [vmem:[%s4974_s10 + $0x638] sm:$0xf] }
  0xa2   : > { %488 = vst [vmem:[%s4978_s11 + $0x220] sm:$0xf] %v487_v8  ;;  %v615_v8 = vld [vmem:[%s4974_s10 + $0x640] sm:$0xf] }
  0xa3   : > { %490 = vst [vmem:[%s4978_s11 + $0x224] sm:$0xf] %v489_v9  ;;  %v617_v9 = vld [vmem:[%s4974_s10 + $0x648] sm:$0xf] }
  0xa4   : > { %492 = vst [vmem:[%s4978_s11 + $0x228] sm:$0xf] %v491_v10  ;;  %v619_v10 = vld [vmem:[%s4974_s10 + $0x650] sm:$0xf] }
  0xa5   : > { %494 = vst [vmem:[%s4978_s11 + $0x22c] sm:$0xf] %v493_v11  ;;  %v621_v11 = vld [vmem:[%s4974_s10 + $0x658] sm:$0xf] }
  0xa6   : > { %496 = vst [vmem:[%s4978_s11 + $0x230] sm:$0xf] %v495_v12  ;;  %v623_v12 = vld [vmem:[%s4974_s10 + $0x660] sm:$0xf] }
  0xa7   : > { %498 = vst [vmem:[%s4978_s11 + $0x234] sm:$0xf] %v497_v13  ;;  %v625_v13 = vld [vmem:[%s4974_s10 + $0x668] sm:$0xf] }
  0xa8   : > { %500 = vst [vmem:[%s4978_s11 + $0x238] sm:$0xf] %v499_v14  ;;  %v627_v14 = vld [vmem:[%s4974_s10 + $0x670] sm:$0xf] }
  0xa9   : > { %502 = vst [vmem:[%s4978_s11 + $0x23c] sm:$0xf] %v501_v15  ;;  %v629_v15 = vld [vmem:[%s4974_s10 + $0x678] sm:$0xf] }
  0xaa   : > { %504 = vst [vmem:[%s4978_s11 + $0x240] sm:$0xf] %v503_v16  ;;  %v631_v16 = vld [vmem:[%s4974_s10 + $0x680] sm:$0xf] }
  0xab   : > { %506 = vst [vmem:[%s4978_s11 + $0x244] sm:$0xf] %v505_v17  ;;  %v633_v17 = vld [vmem:[%s4974_s10 + $0x688] sm:$0xf] }
  0xac   : > { %508 = vst [vmem:[%s4978_s11 + $0x248] sm:$0xf] %v507_v18  ;;  %v635_v18 = vld [vmem:[%s4974_s10 + $0x690] sm:$0xf] }
  0xad   : > { %510 = vst [vmem:[%s4978_s11 + $0x24c] sm:$0xf] %v509_v19  ;;  %v637_v19 = vld [vmem:[%s4974_s10 + $0x698] sm:$0xf] }
  0xae   : > { %512 = vst [vmem:[%s4978_s11 + $0x250] sm:$0xf] %v511_v20  ;;  %v639_v20 = vld [vmem:[%s4974_s10 + $0x6a0] sm:$0xf] }
  0xaf   : > { %514 = vst [vmem:[%s4978_s11 + $0x254] sm:$0xf] %v513_v21  ;;  %v641_v21 = vld [vmem:[%s4974_s10 + $0x6a8] sm:$0xf] }
  0xb0   : > { %516 = vst [vmem:[%s4978_s11 + $0x258] sm:$0xf] %v515_v22  ;;  %v643_v22 = vld [vmem:[%s4974_s10 + $0x6b0] sm:$0xf] }
  0xb1   : > { %518 = vst [vmem:[%s4978_s11 + $0x25c] sm:$0xf] %v517_v23  ;;  %v645_v23 = vld [vmem:[%s4974_s10 + $0x6b8] sm:$0xf] }
  0xb2   : > { %520 = vst [vmem:[%s4978_s11 + $0x260] sm:$0xf] %v519_v24  ;;  %v647_v24 = vld [vmem:[%s4974_s10 + $0x6c0] sm:$0xf] }
  0xb3   : > { %522 = vst [vmem:[%s4978_s11 + $0x264] sm:$0xf] %v521_v25  ;;  %v649_v25 = vld [vmem:[%s4974_s10 + $0x6c8] sm:$0xf] }
  0xb4   : > { %524 = vst [vmem:[%s4978_s11 + $0x268] sm:$0xf] %v523_v26  ;;  %v651_v26 = vld [vmem:[%s4974_s10 + $0x6d0] sm:$0xf] }
  0xb5   : > { %526 = vst [vmem:[%s4978_s11 + $0x26c] sm:$0xf] %v525_v27  ;;  %v653_v27 = vld [vmem:[%s4974_s10 + $0x6d8] sm:$0xf] }
  0xb6   : > { %528 = vst [vmem:[%s4978_s11 + $0x270] sm:$0xf] %v527_v28  ;;  %v655_v28 = vld [vmem:[%s4974_s10 + $0x6e0] sm:$0xf] }
  0xb7   : > { %530 = vst [vmem:[%s4978_s11 + $0x274] sm:$0xf] %v529_v29  ;;  %v657_v29 = vld [vmem:[%s4974_s10 + $0x6e8] sm:$0xf] }
  0xb8   : > { %532 = vst [vmem:[%s4978_s11 + $0x278] sm:$0xf] %v531_v30  ;;  %v659_v30 = vld [vmem:[%s4974_s10 + $0x6f0] sm:$0xf] }
  0xb9   : > { %534 = vst [vmem:[%s4978_s11 + $0x27c] sm:$0xf] %v533_v31  ;;  %v661_v31 = vld [vmem:[%s4974_s10 + $0x6f8] sm:$0xf] }
  0xba   : > { %536 = vst [vmem:[%s4978_s11 + $0x280] sm:$0xf] %v535_v32  ;;  %v663_v32 = vld [vmem:[%s4974_s10 + $0x700] sm:$0xf] }
  0xbb   : > { %538 = vst [vmem:[%s4978_s11 + $0x284] sm:$0xf] %v537_v33  ;;  %v665_v33 = vld [vmem:[%s4974_s10 + $0x708] sm:$0xf] }
  0xbc   : > { %540 = vst [vmem:[%s4978_s11 + $0x288] sm:$0xf] %v539_v34  ;;  %v667_v34 = vld [vmem:[%s4974_s10 + $0x710] sm:$0xf] }
  0xbd   : > { %542 = vst [vmem:[%s4978_s11 + $0x28c] sm:$0xf] %v541_v35  ;;  %v669_v35 = vld [vmem:[%s4974_s10 + $0x718] sm:$0xf] }
  0xbe   : > { %544 = vst [vmem:[%s4978_s11 + $0x290] sm:$0xf] %v543_v36  ;;  %v671_v36 = vld [vmem:[%s4974_s10 + $0x720] sm:$0xf] }
  0xbf   : > { %546 = vst [vmem:[%s4978_s11 + $0x294] sm:$0xf] %v545_v37  ;;  %v673_v37 = vld [vmem:[%s4974_s10 + $0x728] sm:$0xf] }
  0xc0   : > { %548 = vst [vmem:[%s4978_s11 + $0x298] sm:$0xf] %v547_v38  ;;  %v675_v38 = vld [vmem:[%s4974_s10 + $0x730] sm:$0xf] }
  0xc1   : > { %550 = vst [vmem:[%s4978_s11 + $0x29c] sm:$0xf] %v549_v39  ;;  %v677_v39 = vld [vmem:[%s4974_s10 + $0x738] sm:$0xf] }
  0xc2   : > { %552 = vst [vmem:[%s4978_s11 + $0x2a0] sm:$0xf] %v551_v40  ;;  %v679_v40 = vld [vmem:[%s4974_s10 + $0x740] sm:$0xf] }
  0xc3   : > { %554 = vst [vmem:[%s4978_s11 + $0x2a4] sm:$0xf] %v553_v41  ;;  %v681_v41 = vld [vmem:[%s4974_s10 + $0x748] sm:$0xf] }
  0xc4   : > { %556 = vst [vmem:[%s4978_s11 + $0x2a8] sm:$0xf] %v555_v42  ;;  %v683_v42 = vld [vmem:[%s4974_s10 + $0x750] sm:$0xf] }
  0xc5   : > { %558 = vst [vmem:[%s4978_s11 + $0x2ac] sm:$0xf] %v557_v43  ;;  %v685_v43 = vld [vmem:[%s4974_s10 + $0x758] sm:$0xf] }
  0xc6   : > { %560 = vst [vmem:[%s4978_s11 + $0x2b0] sm:$0xf] %v559_v44  ;;  %v687_v44 = vld [vmem:[%s4974_s10 + $0x760] sm:$0xf] }
  0xc7   : > { %562 = vst [vmem:[%s4978_s11 + $0x2b4] sm:$0xf] %v561_v45  ;;  %v689_v45 = vld [vmem:[%s4974_s10 + $0x768] sm:$0xf] }
  0xc8   : > { %564 = vst [vmem:[%s4978_s11 + $0x2b8] sm:$0xf] %v563_v46  ;;  %v691_v46 = vld [vmem:[%s4974_s10 + $0x770] sm:$0xf] }
  0xc9   : > { %566 = vst [vmem:[%s4978_s11 + $0x2bc] sm:$0xf] %v565_v47  ;;  %v693_v47 = vld [vmem:[%s4974_s10 + $0x778] sm:$0xf] }
  0xca   : > { %568 = vst [vmem:[%s4978_s11 + $0x2c0] sm:$0xf] %v567_v48  ;;  %v695_v48 = vld [vmem:[%s4974_s10 + $0x780] sm:$0xf] }
  0xcb   : > { %570 = vst [vmem:[%s4978_s11 + $0x2c4] sm:$0xf] %v569_v49  ;;  %v697_v49 = vld [vmem:[%s4974_s10 + $0x788] sm:$0xf] }
  0xcc   : > { %572 = vst [vmem:[%s4978_s11 + $0x2c8] sm:$0xf] %v571_v50  ;;  %v699_v50 = vld [vmem:[%s4974_s10 + $0x790] sm:$0xf] }
  0xcd   : > { %574 = vst [vmem:[%s4978_s11 + $0x2cc] sm:$0xf] %v573_v51  ;;  %v701_v51 = vld [vmem:[%s4974_s10 + $0x798] sm:$0xf] }
  0xce   : > { %576 = vst [vmem:[%s4978_s11 + $0x2d0] sm:$0xf] %v575_v52  ;;  %v703_v52 = vld [vmem:[%s4974_s10 + $0x7a0] sm:$0xf] }
  0xcf   : > { %578 = vst [vmem:[%s4978_s11 + $0x2d4] sm:$0xf] %v577_v53  ;;  %v705_v53 = vld [vmem:[%s4974_s10 + $0x7a8] sm:$0xf] }
  0xd0   : > { %580 = vst [vmem:[%s4978_s11 + $0x2d8] sm:$0xf] %v579_v54  ;;  %v707_v54 = vld [vmem:[%s4974_s10 + $0x7b0] sm:$0xf] }
  0xd1   : > { %582 = vst [vmem:[%s4978_s11 + $0x2dc] sm:$0xf] %v581_v55  ;;  %v709_v55 = vld [vmem:[%s4974_s10 + $0x7b8] sm:$0xf] }
  0xd2   : > { %584 = vst [vmem:[%s4978_s11 + $0x2e0] sm:$0xf] %v583_v56  ;;  %v711_v56 = vld [vmem:[%s4974_s10 + $0x7c0] sm:$0xf] }
  0xd3   : > { %586 = vst [vmem:[%s4978_s11 + $0x2e4] sm:$0xf] %v585_v57  ;;  %v713_v57 = vld [vmem:[%s4974_s10 + $0x7c8] sm:$0xf] }
  0xd4   : > { %588 = vst [vmem:[%s4978_s11 + $0x2e8] sm:$0xf] %v587_v58  ;;  %v715_v58 = vld [vmem:[%s4974_s10 + $0x7d0] sm:$0xf] }
  0xd5   : > { %590 = vst [vmem:[%s4978_s11 + $0x2ec] sm:$0xf] %v589_v59  ;;  %v717_v59 = vld [vmem:[%s4974_s10 + $0x7d8] sm:$0xf] }
  0xd6   : > { %592 = vst [vmem:[%s4978_s11 + $0x2f0] sm:$0xf] %v591_v60  ;;  %v719_v60 = vld [vmem:[%s4974_s10 + $0x7e0] sm:$0xf] }
  0xd7   : > { %594 = vst [vmem:[%s4978_s11 + $0x2f4] sm:$0xf] %v593_v61  ;;  %v721_v61 = vld [vmem:[%s4974_s10 + $0x7e8] sm:$0xf] }
  0xd8   : > { %596 = vst [vmem:[%s4978_s11 + $0x2f8] sm:$0xf] %v595_v62  ;;  %v723_v62 = vld [vmem:[%s4974_s10 + $0x7f0] sm:$0xf] }
  0xd9   : > { %598 = vst [vmem:[%s4978_s11 + $0x2fc] sm:$0xf] %v597_v63  ;;  %v725_v63 = vld [vmem:[%s4974_s10 + $0x7f8] sm:$0xf] }
  0xda   : > { %600 = vst [vmem:[%s4978_s11 + $0x300] sm:$0xf] %v599_v0 }
  0xdb   : > { %602 = vst [vmem:[%s4978_s11 + $0x304] sm:$0xf] %v601_v1 }
  0xdc   : > { %604 = vst [vmem:[%s4978_s11 + $0x308] sm:$0xf] %v603_v2 }
  0xdd   : > { %606 = vst [vmem:[%s4978_s11 + $0x30c] sm:$0xf] %v605_v3 }
  0xde   : > { %608 = vst [vmem:[%s4978_s11 + $0x310] sm:$0xf] %v607_v4 }
  0xdf   : > { %610 = vst [vmem:[%s4978_s11 + $0x314] sm:$0xf] %v609_v5 }
  0xe0   : > { %612 = vst [vmem:[%s4978_s11 + $0x318] sm:$0xf] %v611_v6 }
  0xe1   : > { %614 = vst [vmem:[%s4978_s11 + $0x31c] sm:$0xf] %v613_v7 }
  0xe2   : > { %616 = vst [vmem:[%s4978_s11 + $0x320] sm:$0xf] %v615_v8 }
  0xe3   : > { %618 = vst [vmem:[%s4978_s11 + $0x324] sm:$0xf] %v617_v9 }
  0xe4   : > { %620 = vst [vmem:[%s4978_s11 + $0x328] sm:$0xf] %v619_v10 }
  0xe5   : > { %622 = vst [vmem:[%s4978_s11 + $0x32c] sm:$0xf] %v621_v11 }
  0xe6   : > { %624 = vst [vmem:[%s4978_s11 + $0x330] sm:$0xf] %v623_v12 }
  0xe7   : > { %626 = vst [vmem:[%s4978_s11 + $0x334] sm:$0xf] %v625_v13 }
  0xe8   : > { %628 = vst [vmem:[%s4978_s11 + $0x338] sm:$0xf] %v627_v14 }
  0xe9   : > { %630 = vst [vmem:[%s4978_s11 + $0x33c] sm:$0xf] %v629_v15 }
  0xea   : > { %632 = vst [vmem:[%s4978_s11 + $0x340] sm:$0xf] %v631_v16 }
  0xeb   : > { %634 = vst [vmem:[%s4978_s11 + $0x344] sm:$0xf] %v633_v17 }
  0xec   : > { %636 = vst [vmem:[%s4978_s11 + $0x348] sm:$0xf] %v635_v18 }
  0xed   : > { %638 = vst [vmem:[%s4978_s11 + $0x34c] sm:$0xf] %v637_v19 }
  0xee   : > { %640 = vst [vmem:[%s4978_s11 + $0x350] sm:$0xf] %v639_v20 }
  0xef   : > { %642 = vst [vmem:[%s4978_s11 + $0x354] sm:$0xf] %v641_v21 }
  0xf0   : > { %644 = vst [vmem:[%s4978_s11 + $0x358] sm:$0xf] %v643_v22 }
  0xf1   : > { %646 = vst [vmem:[%s4978_s11 + $0x35c] sm:$0xf] %v645_v23 }
  0xf2   : > { %648 = vst [vmem:[%s4978_s11 + $0x360] sm:$0xf] %v647_v24 }
  0xf3   : > { %650 = vst [vmem:[%s4978_s11 + $0x364] sm:$0xf] %v649_v25 }
  0xf4   : > { %652 = vst [vmem:[%s4978_s11 + $0x368] sm:$0xf] %v651_v26 }
  0xf5   : > { %654 = vst [vmem:[%s4978_s11 + $0x36c] sm:$0xf] %v653_v27 }
  0xf6   : > { %656 = vst [vmem:[%s4978_s11 + $0x370] sm:$0xf] %v655_v28 }
  0xf7   : > { %658 = vst [vmem:[%s4978_s11 + $0x374] sm:$0xf] %v657_v29 }
  0xf8   : > { %660 = vst [vmem:[%s4978_s11 + $0x378] sm:$0xf] %v659_v30 }
  0xf9   : > { %662 = vst [vmem:[%s4978_s11 + $0x37c] sm:$0xf] %v661_v31 }
  0xfa   : > { %664 = vst [vmem:[%s4978_s11 + $0x380] sm:$0xf] %v663_v32 }
  0xfb   : > { %666 = vst [vmem:[%s4978_s11 + $0x384] sm:$0xf] %v665_v33 }
  0xfc   : > { %668 = vst [vmem:[%s4978_s11 + $0x388] sm:$0xf] %v667_v34 }
  0xfd   : > { %670 = vst [vmem:[%s4978_s11 + $0x38c] sm:$0xf] %v669_v35 }
  0xfe   : > { %672 = vst [vmem:[%s4978_s11 + $0x390] sm:$0xf] %v671_v36 }
  0xff   : > { %674 = vst [vmem:[%s4978_s11 + $0x394] sm:$0xf] %v673_v37 }
 0x100   : > { %676 = vst [vmem:[%s4978_s11 + $0x398] sm:$0xf] %v675_v38 }
 0x101   : > { %678 = vst [vmem:[%s4978_s11 + $0x39c] sm:$0xf] %v677_v39 }
 0x102   : > { %680 = vst [vmem:[%s4978_s11 + $0x3a0] sm:$0xf] %v679_v40 }
 0x103   : > { %682 = vst [vmem:[%s4978_s11 + $0x3a4] sm:$0xf] %v681_v41 }
 0x104   : > { %684 = vst [vmem:[%s4978_s11 + $0x3a8] sm:$0xf] %v683_v42 }
 0x105   : > { %686 = vst [vmem:[%s4978_s11 + $0x3ac] sm:$0xf] %v685_v43 }
 0x106   : > { %688 = vst [vmem:[%s4978_s11 + $0x3b0] sm:$0xf] %v687_v44 }
 0x107   : > { %690 = vst [vmem:[%s4978_s11 + $0x3b4] sm:$0xf] %v689_v45 }
 0x108   : > { %692 = vst [vmem:[%s4978_s11 + $0x3b8] sm:$0xf] %v691_v46 }
 0x109   : > { %694 = vst [vmem:[%s4978_s11 + $0x3bc] sm:$0xf] %v693_v47 }
 0x10a   : > { %696 = vst [vmem:[%s4978_s11 + $0x3c0] sm:$0xf] %v695_v48 }
 0x10b   : > { %698 = vst [vmem:[%s4978_s11 + $0x3c4] sm:$0xf] %v697_v49 }
 0x10c   : > { %700 = vst [vmem:[%s4978_s11 + $0x3c8] sm:$0xf] %v699_v50 }
 0x10d   : > { %702 = vst [vmem:[%s4978_s11 + $0x3cc] sm:$0xf] %v701_v51 }
 0x10e   : > { %704 = vst [vmem:[%s4978_s11 + $0x3d0] sm:$0xf] %v703_v52 }
 0x10f   : > { %706 = vst [vmem:[%s4978_s11 + $0x3d4] sm:$0xf] %v705_v53 }
 0x110   : > { %708 = vst [vmem:[%s4978_s11 + $0x3d8] sm:$0xf] %v707_v54 }
 0x111   : > { %710 = vst [vmem:[%s4978_s11 + $0x3dc] sm:$0xf] %v709_v55 }
 0x112   : > { %712 = vst [vmem:[%s4978_s11 + $0x3e0] sm:$0xf] %v711_v56 }
 0x113   : > { %714 = vst [vmem:[%s4978_s11 + $0x3e4] sm:$0xf] %v713_v57 }
 0x114   : > { %716 = vst [vmem:[%s4978_s11 + $0x3e8] sm:$0xf] %v715_v58 }
 0x115   : > { %718 = vst [vmem:[%s4978_s11 + $0x3ec] sm:$0xf] %v717_v59 }
 0x116   : > { %720 = vst [vmem:[%s4978_s11 + $0x3f0] sm:$0xf] %v719_v60 }
 0x117   : > { %722 = vst [vmem:[%s4978_s11 + $0x3f4] sm:$0xf] %v721_v61 }
 0x118   : > { %724 = vst [vmem:[%s4978_s11 + $0x3f8] sm:$0xf] %v723_v62 }
 0x119   : > { %726 = vst [vmem:[%s4978_s11 + $0x3fc] sm:$0xf] %v725_v63 }
 0x11a PF: > { %p3987_p11 = scmp.ge.s32.totalorder %s4871_s20, 1  ;;  %p2317_p12 = scmp.lt.s32.totalorder %s4871_s20, 5 }
 0x11c   : > { %p2318_p13 = pnand %p3987_p11, %p2317_p12 }
 0x11d   : > { %s2324_s21 = sand.u32 (!%p2318_p13), 1, %s4847_s14   ;;  %p2365_p0 = scmp.lt.s32.totalorder (!%p2318_p13), %s4859_s17, 1 }
 0x11e   : > { %2321 = sbr.rel (%p2318_p13) target bundleno = 640 (0x280), region = 80  ;;  %s3988_s24 = sshll.u32 (!%p2318_p13), %s2324_s21, 10 }
 0x11f   : > { %s5493_s25 = scalar_lea.vmem (!%p2318_p13), [#allocation3], %s3988_s24  ;;  %p2380_p1 = scmp.lt.s32.totalorder (!%p2318_p13), %s4855_s16, 1 }
 0x120   : > { %s2360_s21 = sand.u32 (!%p2318_p13), 1, %s4839_s12  }
 0x121   : > { %s3989_s24 = sshll.u32 (!%p2318_p13), %s2360_s21, 3 }
 0x123   : > { %v4597_v0 = vld [vmem:[%s5493_s25 + $0x38] sm:$0xff]  ;;  %v4596_v4 = vld [vmem:[%s5493_s25 + $0x30] sm:$0xff]  ;;  %v4595_v8 = vld [vmem:[%s5493_s25 + $0x28] sm:$0xff]  ;;  %s2366_s14 = scalar_select %p2365_p0, %s4859_s17, 1 }
 0x124   : > { %v4605_v1 = vld [vmem:[%s5493_s25 + $0x78] sm:$0xff]  ;;  %3512 = vmatpush.bf16.msra.mxu0 %v4597_v0  ;;  %v4604_v5 = vld [vmem:[%s5493_s25 + $0x70] sm:$0xff]  ;;  %v4603_v9 = vld [vmem:[%s5493_s25 + $0x68] sm:$0xff]  ;;  %s5664_s6 = scalar_select %p2380_p1, %s4855_s16, 1 }
 0x125   : > { %v4613_v2 = vld [vmem:[%s5493_s25 + $0xb8] sm:$0xff]  ;;  %3526 = vmatpush.bf16.msra.mxu1 %v4605_v1  ;;  %v4612_v6 = vld [vmem:[%s5493_s25 + $0xb0] sm:$0xff]  ;;  %v4611_v10 = vld [vmem:[%s5493_s25 + $0xa8] sm:$0xff]  ;;  %s4573_s26 = sshll.u32 %s2366_s14, 7  ;;  %s4569_s12 = sshll.u32 (%p4961_p9), %s4859_s17, 2 }
 0x126   : > { %v4621_v3 = vld [vmem:[%s5493_s25 + $0xf8] sm:$0xff]  ;;  %3540 = vmatpush.bf16.msra.mxu2 %v4613_v2  ;;  %v4620_v7 = vld [vmem:[%s5493_s25 + $0xf0] sm:$0xff]  ;;  %v4619_v11 = vld [vmem:[%s5493_s25 + $0xe8] sm:$0xff]  ;;  %s5528_s5 = scalar_lea.vmem %s5710_s0, %s4573_s26  ;;  %s2382_s9 = scalar_lea.vmem %s5712_s2, %s5664_s6 }
 0x127   : > { %3554 = vmatpush.bf16.msra.mxu3 %v4621_v3  ;;  %v4594_v12 = vld [vmem:[%s5493_s25 + $0x20] sm:$0xff]  ;;  %v4593_v16 = vld [vmem:[%s5493_s25 + $0x18] sm:$0xff]  ;;  %v4592_v20 = vld [vmem:[%s5493_s25 + $0x10] sm:$0xff]  ;;  %s3812_s14 = sadd.s32 (%p4961_p9), %s4855_s16, %s4569_s12 }
 0x128   : > { %3513 = vmatpush.bf16.msra.mxu0 %v4596_v4  ;;  %v4602_v13 = vld [vmem:[%s5493_s25 + $0x60] sm:$0xff]  ;;  %v4601_v17 = vld [vmem:[%s5493_s25 + $0x58] sm:$0xff]  ;;  %v4600_v21 = vld [vmem:[%s5493_s25 + $0x50] sm:$0xff]  ;;  %s4570_s26 = sshll.u32 (%p4961_p9), %s3812_s14, 2 }
 0x129   : > { %3527 = vmatpush.bf16.msra.mxu1 %v4604_v5  ;;  %v4610_v14 = vld [vmem:[%s5493_s25 + $0xa0] sm:$0xff]  ;;  %v4609_v18 = vld [vmem:[%s5493_s25 + $0x98] sm:$0xff]  ;;  %v4608_v22 = vld [vmem:[%s5493_s25 + $0x90] sm:$0xff] }
 0x12a   : > { %3541 = vmatpush.bf16.msra.mxu2 %v4612_v6  ;;  %v4618_v15 = vld [vmem:[%s5493_s25 + $0xe0] sm:$0xff]  ;;  %v4617_v19 = vld [vmem:[%s5493_s25 + $0xd8] sm:$0xff]  ;;  %v4616_v23 = vld [vmem:[%s5493_s25 + $0xd0] sm:$0xff] }
 0x12b   : > { %3555 = vmatpush.bf16.msra.mxu3 %v4620_v7  ;;  %v4591_v24 = vld [vmem:[%s5493_s25 + $0x8] sm:$0xff]  ;;  %v4590_v28 = vld [vmem:[%s5493_s25] sm:$0xff]  ;;  %v4629_v32 = vld [vmem:[%s5493_s25 + $0x138] sm:$0xff] }
 0x12c   : > { %3514 = vmatpush.bf16.msra.mxu0 %v4595_v8  ;;  %v4599_v25 = vld [vmem:[%s5493_s25 + $0x48] sm:$0xff]  ;;  %v4598_v29 = vld [vmem:[%s5493_s25 + $0x40] sm:$0xff]  ;;  %v4637_v33 = vld [vmem:[%s5493_s25 + $0x178] sm:$0xff] }
 0x12d   : > { %3528 = vmatpush.bf16.msra.mxu1 %v4603_v9  ;;  %v4607_v26 = vld [vmem:[%s5493_s25 + $0x88] sm:$0xff]  ;;  %v4606_v30 = vld [vmem:[%s5493_s25 + $0x80] sm:$0xff]  ;;  %v4645_v42 = vld [vmem:[%s5493_s25 + $0x1b8] sm:$0xff] }
 0x12e   : > { %3542 = vmatpush.bf16.msra.mxu2 %v4611_v10  ;;  %v4615_v27 = vld [vmem:[%s5493_s25 + $0xc8] sm:$0xff]  ;;  %v4614_v31 = vld [vmem:[%s5493_s25 + $0xc0] sm:$0xff]  ;;  %v4653_v43 = vld [vmem:[%s5493_s25 + $0x1f8] sm:$0xff] }
 0x12f   : > { %3556 = vmatpush.bf16.msra.mxu3 %v4619_v11  ;;  %v3994_v34 = vld [vmem:[%s5528_s5] sm:$0xf]  ;;  %v4002_v36 = vld [vmem:[%s5528_s5 + $0x8] sm:$0xf]  ;;  %v4574_v38 = vld [vmem:[%s5528_s5 + $0x4] sm:$0xf] }
 0x130   : > { %3515 = vmatpush.bf16.msra.mxu0 %v4594_v12  ;;  %v4582_v35 = vld [vmem:[%s5528_s5 + $0x3c] sm:$0xf0]  ;;  %v4583_v37 = vld [vmem:[%s5528_s5 + $0x44] sm:$0xf0]  ;;  %v3996_v39 = vld [vmem:[%s5528_s5 + $0x40] sm:$0xf0] }
 0x131   : > { %3529 = vmatpush.bf16.msra.mxu1 %v4602_v13  ;;  %v4575_v40 = vld [vmem:[%s5528_s5 + $0xc] sm:$0xf]  ;;  %v3995_v44 = vor.u32 %v4582_v35, %v3994_v34  ;;  %v4003_v45 = vor.u32 %v4583_v37, %v4002_v36  ;;  %v3999_v46 = vor.u32 %v4574_v38, %v3996_v39  ;;  %v4628_v48 = vld [vmem:[%s5493_s25 + $0x130] sm:$0xff]  ;;  %v4626_v56 = vld [vmem:[%s5493_s25 + $0x120] sm:$0xff] }
 0x132   : > { %3543 = vmatpush.bf16.msra.mxu2 %v4610_v14  ;;  %v4004_v41 = vld [vmem:[%s5528_s5 + $0x48] sm:$0xf0]  ;;  %v4636_v49 = vld [vmem:[%s5493_s25 + $0x170] sm:$0xff]  ;;  %v4634_v57 = vld [vmem:[%s5493_s25 + $0x160] sm:$0xff] }
 0x133   : > { %3557 = vmatpush.bf16.msra.mxu3 %v4618_v15  ;;  %v4007_v47 = vor.u32 %v4575_v40, %v4004_v41  ;;  %v4644_v50 = vld [vmem:[%s5493_s25 + $0x1b0] sm:$0xff]  ;;  %v4627_v52 = vld [vmem:[%s5493_s25 + $0x128] sm:$0xff]  ;;  %v4642_v58 = vld [vmem:[%s5493_s25 + $0x1a0] sm:$0xff] }
 0x134   : > { %3516 = vmatpush.bf16.msra.mxu0 %v4593_v16  ;;  %v4652_v51 = vld [vmem:[%s5493_s25 + $0x1f0] sm:$0xff]  ;;  %v4635_v53 = vld [vmem:[%s5493_s25 + $0x168] sm:$0xff]  ;;  %v4650_v59 = vld [vmem:[%s5493_s25 + $0x1e0] sm:$0xff] }
 0x135   : > { %3530 = vmatpush.bf16.msra.mxu1 %v4601_v17  ;;  %v4643_v54 = vld [vmem:[%s5493_s25 + $0x1a8] sm:$0xff]  ;;  %v4625_v60 = vld [vmem:[%s5493_s25 + $0x118] sm:$0xff]  ;;  %v4624_v0 = vld [vmem:[%s5493_s25 + $0x110] sm:$0xff] }
 0x136   : > { %3544 = vmatpush.bf16.msra.mxu2 %v4609_v18  ;;  %v4651_v55 = vld [vmem:[%s5493_s25 + $0x1e8] sm:$0xff]  ;;  %v4633_v61 = vld [vmem:[%s5493_s25 + $0x158] sm:$0xff]  ;;  %v4632_v1 = vld [vmem:[%s5493_s25 + $0x150] sm:$0xff] }
 0x137   : > { %3558 = vmatpush.bf16.msra.mxu3 %v4617_v19  ;;  %v4641_v62 = vld [vmem:[%s5493_s25 + $0x198] sm:$0xff]  ;;  %v4640_v2 = vld [vmem:[%s5493_s25 + $0x190] sm:$0xff]  ;;  %v4623_v4 = vld [vmem:[%s5493_s25 + $0x108] sm:$0xff] }
 0x138   : > { %3517 = vmatpush.bf16.msra.mxu0 %v4592_v20  ;;  %v4649_v63 = vld [vmem:[%s5493_s25 + $0x1d8] sm:$0xff]  ;;  %v4648_v3 = vld [vmem:[%s5493_s25 + $0x1d0] sm:$0xff]  ;;  %v4631_v5 = vld [vmem:[%s5493_s25 + $0x148] sm:$0xff] }
 0x139   : > { %3531 = vmatpush.bf16.msra.mxu1 %v4600_v21  ;;  %v4639_v6 = vld [vmem:[%s5493_s25 + $0x188] sm:$0xff]  ;;  %v4622_v8 = vld [vmem:[%s5493_s25 + $0x100] sm:$0xff]  ;;  %v4661_v12 = vld [vmem:[%s5493_s25 + $0x238] sm:$0xff] }
 0x13a   : > { %3545 = vmatpush.bf16.msra.mxu2 %v4608_v22  ;;  %v4647_v7 = vld [vmem:[%s5493_s25 + $0x1c8] sm:$0xff]  ;;  %v4630_v9 = vld [vmem:[%s5493_s25 + $0x140] sm:$0xff]  ;;  %v4669_v13 = vld [vmem:[%s5493_s25 + $0x278] sm:$0xff] }
 0x13b   : > { %3559 = vmatpush.bf16.msra.mxu3 %v4616_v23  ;;  %v4638_v10 = vld [vmem:[%s5493_s25 + $0x180] sm:$0xff]  ;;  %v4010_v14 = vld [vmem:[%s5528_s5 + $0x10] sm:$0xf]  ;;  %v4018_v16 = vld [vmem:[%s5528_s5 + $0x18] sm:$0xf] }
 0x13c   : > { %3518 = vmatpush.bf16.msra.mxu0 %v4591_v24  ;;  %v4646_v11 = vld [vmem:[%s5493_s25 + $0x1c0] sm:$0xff]  ;;  %v4584_v15 = vld [vmem:[%s5528_s5 + $0x4c] sm:$0xf0]  ;;  %v4585_v17 = vld [vmem:[%s5528_s5 + $0x54] sm:$0xf0] }
 0x13d   : > { %3532 = vmatpush.bf16.msra.mxu1 %v4599_v25  ;;  %v4576_v18 = vld [vmem:[%s5528_s5 + $0x14] sm:$0xf]  ;;  %v4577_v20 = vld [vmem:[%s5528_s5 + $0x1c] sm:$0xf]  ;;  %v4011_v24 = vor.u32 %v4584_v15, %v4010_v14  ;;  %v4019_v25 = vor.u32 %v4585_v17, %v4018_v16  ;;  %v4675_v34 = vld [vmem:[%s5493_s25 + $0x2a8] sm:$0xff] }
 0x13e   : > { %3546 = vmatpush.bf16.msra.mxu2 %v4607_v26  ;;  %v4012_v19 = vld [vmem:[%s5528_s5 + $0x50] sm:$0xf0]  ;;  %v4020_v21 = vld [vmem:[%s5528_s5 + $0x58] sm:$0xf0]  ;;  %v4683_v35 = vld [vmem:[%s5493_s25 + $0x2e8] sm:$0xff] }
 0x13f   : > { %3560 = vmatpush.bf16.msra.mxu3 %v4615_v27  ;;  %v4677_v22 = vld [vmem:[%s5493_s25 + $0x2b8] sm:$0xff]  ;;  %v4015_v26 = vor.u32 %v4576_v18, %v4012_v19  ;;  %v4023_v27 = vor.u32 %v4577_v20, %v4020_v21  ;;  %v4658_v36 = vld [vmem:[%s5493_s25 + $0x220] sm:$0xff]  ;;  %v4707_v14 = vld [vmem:[%s5493_s25 + $0x3a8] sm:$0xff] }
 0x140   : > { %3519 = vmatpush.bf16.msra.mxu0 %v4590_v28  ;;  %v4685_v23 = vld [vmem:[%s5493_s25 + $0x2f8] sm:$0xff]  ;;  %v4660_v28 = vld [vmem:[%s5493_s25 + $0x230] sm:$0xff]  ;;  %v4666_v37 = vld [vmem:[%s5493_s25 + $0x260] sm:$0xff] }
 0x141   : > { %3533 = vmatpush.bf16.msra.mxu1 %v4598_v29  ;;  %v4668_v29 = vld [vmem:[%s5493_s25 + $0x270] sm:$0xff]  ;;  %v4674_v38 = vld [vmem:[%s5493_s25 + $0x2a0] sm:$0xff]  ;;  %v4657_v40 = vld [vmem:[%s5493_s25 + $0x218] sm:$0xff] }
 0x142   : > { %3547 = vmatpush.bf16.msra.mxu2 %v4606_v30  ;;  %v4676_v30 = vld [vmem:[%s5493_s25 + $0x2b0] sm:$0xff]  ;;  %v4682_v39 = vld [vmem:[%s5493_s25 + $0x2e0] sm:$0xff]  ;;  %v4665_v41 = vld [vmem:[%s5493_s25 + $0x258] sm:$0xff] }
 0x143   : > { %3561 = vmatpush.bf16.msra.mxu3 %v4614_v31  ;;  %3520 = vmatmul.bf16.vlgmr.msra.gmra.mxu0 %v3995_v44  ;;  %v4684_v31 = vld [vmem:[%s5493_s25 + $0x2f0] sm:$0xff]  ;;  %v4715_v15 = vld [vmem:[%s5493_s25 + $0x3e8] sm:$0xff]  ;;  %v4690_v16 = vld [vmem:[%s5493_s25 + $0x320] sm:$0xff] }
 0x144   : > { %3568 = vmatpush.bf16.msrb.mxu0 %v4629_v32  ;;  %3534 = vmatmul.bf16.vlgmr.msra.gmra.mxu1 %v3999_v46  ;;  %v4659_v32 = vld [vmem:[%s5493_s25 + $0x228] sm:$0xff]  ;;  %v4656_v44 = vld [vmem:[%s5493_s25 + $0x210] sm:$0xff]  ;;  %v4698_v17 = vld [vmem:[%s5493_s25 + $0x360] sm:$0xff] }
 0x145   : > { %3582 = vmatpush.bf16.msrb.mxu1 %v4637_v33  ;;  %3548 = vmatmul.bf16.vlgmr.msra.gmra.mxu2 %v4003_v45  ;;  %v4667_v33 = vld [vmem:[%s5493_s25 + $0x268] sm:$0xff]  ;;  %v4664_v45 = vld [vmem:[%s5493_s25 + $0x250] sm:$0xff]  ;;  %v4706_v18 = vld [vmem:[%s5493_s25 + $0x3a0] sm:$0xff] }
 0x146   : > { %3596 = vmatpush.bf16.msrb.mxu2 %v4645_v42  ;;  %3562 = vmatmul.bf16.vlgmr.msra.gmra.mxu3 %v4007_v47  ;;  %v4673_v42 = vld [vmem:[%s5493_s25 + $0x298] sm:$0xff]  ;;  %v4672_v46 = vld [vmem:[%s5493_s25 + $0x290] sm:$0xff]  ;;  %v4714_v19 = vld [vmem:[%s5493_s25 + $0x3e0] sm:$0xff] }
 0x147   : > { %3610 = vmatpush.bf16.msrb.mxu3 %v4653_v43  ;;  %v4681_v43 = vld [vmem:[%s5493_s25 + $0x2d8] sm:$0xff]  ;;  %v4680_v47 = vld [vmem:[%s5493_s25 + $0x2d0] sm:$0xff] }
 0x148   : > { %3569 = vmatpush.bf16.msrb.mxu0 %v4628_v48  ;;  %v4655_v48 = vld [vmem:[%s5493_s25 + $0x208] sm:$0xff]  ;;  %v4689_v20 = vld [vmem:[%s5493_s25 + $0x318] sm:$0xff] }
 0x149   : > { %3583 = vmatpush.bf16.msrb.mxu1 %v4636_v49  ;;  %v4663_v49 = vld [vmem:[%s5493_s25 + $0x248] sm:$0xff]  ;;  %v4697_v21 = vld [vmem:[%s5493_s25 + $0x358] sm:$0xff] }
 0x14a   : > { %3597 = vmatpush.bf16.msrb.mxu2 %v4644_v50  ;;  %v4671_v50 = vld [vmem:[%s5493_s25 + $0x288] sm:$0xff] }
 0x14b   : > { %3611 = vmatpush.bf16.msrb.mxu3 %v4652_v51  ;;  %v4679_v51 = vld [vmem:[%s5493_s25 + $0x2c8] sm:$0xff] }
 0x14c   : > { %3570 = vmatpush.bf16.msrb.mxu0 %v4627_v52  ;;  %v4654_v52 = vld [vmem:[%s5493_s25 + $0x200] sm:$0xff] }
 0x14d   : > { %3584 = vmatpush.bf16.msrb.mxu1 %v4635_v53  ;;  %v4662_v53 = vld [vmem:[%s5493_s25 + $0x240] sm:$0xff] }
 0x14e   : > { %3598 = vmatpush.bf16.msrb.mxu2 %v4643_v54  ;;  %v4670_v54 = vld [vmem:[%s5493_s25 + $0x280] sm:$0xff] }
 0x14f   : > { %3612 = vmatpush.bf16.msrb.mxu3 %v4651_v55  ;;  %v4678_v55 = vld [vmem:[%s5493_s25 + $0x2c0] sm:$0xff] }
 0x150   : > { %3571 = vmatpush.bf16.msrb.mxu0 %v4626_v56  ;;  %v4693_v56 = vld [vmem:[%s5493_s25 + $0x338] sm:$0xff] }
 0x151   : > { %3585 = vmatpush.bf16.msrb.mxu1 %v4634_v57  ;;  %v4701_v57 = vld [vmem:[%s5493_s25 + $0x378] sm:$0xff] }
 0x152   : > { %3599 = vmatpush.bf16.msrb.mxu2 %v4642_v58  ;;  %v4026_v58 = vld [vmem:[%s5528_s5 + $0x20] sm:$0xf] }
 0x153   : > { %3613 = vmatpush.bf16.msrb.mxu3 %v4650_v59  ;;  %v4586_v59 = vld [vmem:[%s5528_s5 + $0x5c] sm:$0xf0] }
 0x154   : > { %3572 = vmatpush.bf16.msrb.mxu0 %v4625_v60  ;;  %v4034_v60 = vld [vmem:[%s5528_s5 + $0x28] sm:$0xf] }
 0x155   : > { %3586 = vmatpush.bf16.msrb.mxu1 %v4633_v61  ;;  %v4587_v61 = vld [vmem:[%s5528_s5 + $0x64] sm:$0xf0] }
 0x156   : > { %3600 = vmatpush.bf16.msrb.mxu2 %v4641_v62  ;;  %v4578_v62 = vld [vmem:[%s5528_s5 + $0x24] sm:$0xf] }
 0x157   : > { %3614 = vmatpush.bf16.msrb.mxu3 %v4649_v63  ;;  %v4028_v63 = vld [vmem:[%s5528_s5 + $0x60] sm:$0xf0] }
 0x158   : > { %3573 = vmatpush.bf16.msrb.mxu0 %v4624_v0  ;;  %v4579_v0 = vld [vmem:[%s5528_s5 + $0x2c] sm:$0xf] }
 0x159   : > { %3587 = vmatpush.bf16.msrb.mxu1 %v4632_v1  ;;  %v4036_v1 = vld [vmem:[%s5528_s5 + $0x68] sm:$0xf0] }
 0x15a   : > { %3601 = vmatpush.bf16.msrb.mxu2 %v4640_v2  ;;  %v4709_v2 = vld [vmem:[%s5493_s25 + $0x3b8] sm:$0xff] }
 0x15b   : > { %3615 = vmatpush.bf16.msrb.mxu3 %v4648_v3  ;;  %v4717_v3 = vld [vmem:[%s5493_s25 + $0x3f8] sm:$0xff] }
 0x15c   : > { %3574 = vmatpush.bf16.msrb.mxu0 %v4623_v4  ;;  %v4027_v4 = vor.u32 %v4586_v59, %v4026_v58 }
 0x15d   : > { %3588 = vmatpush.bf16.msrb.mxu1 %v4631_v5  ;;  %v4035_v5 = vor.u32 %v4587_v61, %v4034_v60 }
 0x15e   : > { %3602 = vmatpush.bf16.msrb.mxu2 %v4639_v6  ;;  %v4031_v6 = vor.u32 %v4578_v62, %v4028_v63 }
 0x15f   : > { %3616 = vmatpush.bf16.msrb.mxu3 %v4647_v7  ;;  %v4039_v7 = vor.u32 %v4579_v0, %v4036_v1 }
 0x160   : > { %3575 = vmatpush.bf16.msrb.mxu0 %v4622_v8  ;;  %v4692_v8 = vld [vmem:[%s5493_s25 + $0x330] sm:$0xff] }
 0x161   : > { %3589 = vmatpush.bf16.msrb.mxu1 %v4630_v9  ;;  %v4700_v9 = vld [vmem:[%s5493_s25 + $0x370] sm:$0xff] }
 0x162   : > { %3603 = vmatpush.bf16.msrb.mxu2 %v4638_v10  ;;  %v4708_v10 = vld [vmem:[%s5493_s25 + $0x3b0] sm:$0xff] }
 0x163   : > { %3617 = vmatpush.bf16.msrb.mxu3 %v4646_v11  ;;  %3576 = vmatmul.bf16.vlgmr.msrb.gmra.mxu0 %v4011_v24  ;;  %v4716_v11 = vld [vmem:[%s5493_s25 + $0x3f0] sm:$0xff] }
 0x164   : > { %3624 = vmatpush.bf16.msra.mxu0 %v4661_v12  ;;  %3590 = vmatmul.bf16.vlgmr.msrb.gmra.mxu1 %v4015_v26  ;;  %v4691_v12 = vld [vmem:[%s5493_s25 + $0x328] sm:$0xff]  ;;  %v4688_v24 = vld [vmem:[%s5493_s25 + $0x310] sm:$0xff] }
 0x165   : > { %3638 = vmatpush.bf16.msra.mxu1 %v4669_v13  ;;  %3604 = vmatmul.bf16.vlgmr.msrb.gmra.mxu2 %v4019_v25  ;;  %v4699_v13 = vld [vmem:[%s5493_s25 + $0x368] sm:$0xff]  ;;  %v4696_v25 = vld [vmem:[%s5493_s25 + $0x350] sm:$0xff] }
 0x166   : > { %3652 = vmatpush.bf16.msra.mxu2 %v4677_v22  ;;  %3618 = vmatmul.bf16.vlgmr.msrb.gmra.mxu3 %v4023_v27  ;;  %v4705_v22 = vld [vmem:[%s5493_s25 + $0x398] sm:$0xff]  ;;  %v4704_v26 = vld [vmem:[%s5493_s25 + $0x390] sm:$0xff] }
 0x167   : > { %3666 = vmatpush.bf16.msra.mxu3 %v4685_v23  ;;  %v4713_v23 = vld [vmem:[%s5493_s25 + $0x3d8] sm:$0xff]  ;;  %v4712_v27 = vld [vmem:[%s5493_s25 + $0x3d0] sm:$0xff] }
 0x168   : > { %3625 = vmatpush.bf16.msra.mxu0 %v4660_v28  ;;  %v4687_v28 = vld [vmem:[%s5493_s25 + $0x308] sm:$0xff] }
 0x169   : > { %3639 = vmatpush.bf16.msra.mxu1 %v4668_v29  ;;  %v4695_v29 = vld [vmem:[%s5493_s25 + $0x348] sm:$0xff] }
 0x16a   : > { %3653 = vmatpush.bf16.msra.mxu2 %v4676_v30  ;;  %v4703_v30 = vld [vmem:[%s5493_s25 + $0x388] sm:$0xff] }
 0x16b   : > { %3667 = vmatpush.bf16.msra.mxu3 %v4684_v31  ;;  %v4711_v31 = vld [vmem:[%s5493_s25 + $0x3c8] sm:$0xff] }
 0x16c   : > { %3626 = vmatpush.bf16.msra.mxu0 %v4659_v32  ;;  %v4686_v32 = vld [vmem:[%s5493_s25 + $0x300] sm:$0xff] }
 0x16d   : > { %3640 = vmatpush.bf16.msra.mxu1 %v4667_v33  ;;  %v4694_v33 = vld [vmem:[%s5493_s25 + $0x340] sm:$0xff] }
 0x16e   : > { %3654 = vmatpush.bf16.msra.mxu2 %v4675_v34  ;;  %v4702_v34 = vld [vmem:[%s5493_s25 + $0x380] sm:$0xff] }
 0x16f   : > { %3668 = vmatpush.bf16.msra.mxu3 %v4683_v35  ;;  %v4710_v35 = vld [vmem:[%s5493_s25 + $0x3c0] sm:$0xff]  ;;  %s2362_s25 = scalar_lea.vmem [#allocation4], %s3989_s24 }
 0x170   : > { %3627 = vmatpush.bf16.msra.mxu0 %v4658_v36  ;;  %v4042_v36 = vld [vmem:[%s5528_s5 + $0x30] sm:$0xf] }
 0x171   : > { %3641 = vmatpush.bf16.msra.mxu1 %v4666_v37  ;;  %v4588_v37 = vld [vmem:[%s5528_s5 + $0x6c] sm:$0xf0] }
 0x172   : > { %3655 = vmatpush.bf16.msra.mxu2 %v4674_v38  ;;  %v4580_v38 = vld [vmem:[%s5528_s5 + $0x34] sm:$0xf] }
 0x173   : > { %3669 = vmatpush.bf16.msra.mxu3 %v4682_v39  ;;  %v4044_v39 = vld [vmem:[%s5528_s5 + $0x70] sm:$0xf0] }
 0x174   : > { %3628 = vmatpush.bf16.msra.mxu0 %v4657_v40  ;;  %v4050_v40 = vld [vmem:[%s5528_s5 + $0x38] sm:$0xf] }
 0x175   : > { %3642 = vmatpush.bf16.msra.mxu1 %v4665_v41  ;;  %v4589_v41 = vld [vmem:[%s5528_s5 + $0x74] sm:$0xf0] }
 0x176   : > { %3656 = vmatpush.bf16.msra.mxu2 %v4673_v42  ;;  %v4581_v42 = vld [vmem:[%s5528_s5 + $0x3c] sm:$0xf] }
 0x177   : > { %3670 = vmatpush.bf16.msra.mxu3 %v4681_v43  ;;  %v4052_v43 = vld [vmem:[%s5528_s5 + $0x78] sm:$0xf0]  ;;  %s3814_s5 = scalar_lea.vmem (%p4961_p9), %s5713_s3, %s4570_s26 }
 0x178   : > { %3629 = vmatpush.bf16.msra.mxu0 %v4656_v44  ;;  %v4043_v44 = vor.u32 %v4588_v37, %v4042_v36  ;;  %v4873_v36 = vmov 16.0  }
 0x179   : > { %3643 = vmatpush.bf16.msra.mxu1 %v4664_v45  ;;  %v4047_v45 = vor.u32 %v4580_v38, %v4044_v39  ;;  %4797 = vrcp.f32 %v4873_v36 }
 0x17a   : > { %3657 = vmatpush.bf16.msra.mxu2 %v4672_v46  ;;  %v4051_v46 = vor.u32 %v4589_v41, %v4050_v40 }
 0x17b   : > { %3671 = vmatpush.bf16.msra.mxu3 %v4680_v47  ;;  %v4055_v47 = vor.u32 %v4581_v42, %v4052_v43 }
 0x17c   : > { %3630 = vmatpush.bf16.msra.mxu0 %v4655_v48 }
 0x17d   : > { %3644 = vmatpush.bf16.msra.mxu1 %v4663_v49 }
 0x17e   : > { %3658 = vmatpush.bf16.msra.mxu2 %v4671_v50 }
 0x17f   : > { %3672 = vmatpush.bf16.msra.mxu3 %v4679_v51  ;;  %v4798_v41 = vpop.eup %4797 }
 0x180   : > { %3631 = vmatpush.bf16.msra.mxu0 %v4654_v52  ;;  %vm3763_vm0 = vweird.f32 %v4798_v41 }
 0x181   : > { %3645 = vmatpush.bf16.msra.mxu1 %v4662_v53 }
 0x182   : > { %3659 = vmatpush.bf16.msra.mxu2 %v4670_v54 }
 0x183   : > { %3673 = vmatpush.bf16.msra.mxu3 %v4678_v55  ;;  %3632 = vmatmul.bf16.vlgmr.msra.gmra.mxu0 %v4027_v4 }
 0x184   : > { %3680 = vmatpush.bf16.msrb.mxu0 %v4693_v56  ;;  %3646 = vmatmul.bf16.vlgmr.msra.gmra.mxu1 %v4031_v6 }
 0x185   : > { %3694 = vmatpush.bf16.msrb.mxu1 %v4701_v57  ;;  %3660 = vmatmul.bf16.vlgmr.msra.gmra.mxu2 %v4035_v5 }
 0x186   : > { %3708 = vmatpush.bf16.msrb.mxu2 %v4709_v2  ;;  %3674 = vmatmul.bf16.vlgmr.msra.gmra.mxu3 %v4039_v7 }
 0x187   : > { %3722 = vmatpush.bf16.msrb.mxu3 %v4717_v3 }
 0x188   : > { %3681 = vmatpush.bf16.msrb.mxu0 %v4692_v8 }
 0x189   : > { %3695 = vmatpush.bf16.msrb.mxu1 %v4700_v9 }
 0x18a   : > { %3709 = vmatpush.bf16.msrb.mxu2 %v4708_v10 }
 0x18b   : > { %3723 = vmatpush.bf16.msrb.mxu3 %v4716_v11 }
 0x18c   : > { %3682 = vmatpush.bf16.msrb.mxu0 %v4691_v12 }
 0x18d   : > { %3696 = vmatpush.bf16.msrb.mxu1 %v4699_v13 }
 0x18e   : > { %3710 = vmatpush.bf16.msrb.mxu2 %v4707_v14 }
 0x18f   : > { %3724 = vmatpush.bf16.msrb.mxu3 %v4715_v15 }
 0x190   : > { %3683 = vmatpush.bf16.msrb.mxu0 %v4690_v16 }
 0x191   : > { %3697 = vmatpush.bf16.msrb.mxu1 %v4698_v17 }
 0x192   : > { %3711 = vmatpush.bf16.msrb.mxu2 %v4706_v18 }
 0x193   : > { %3725 = vmatpush.bf16.msrb.mxu3 %v4714_v19 }
 0x194   : > { %3684 = vmatpush.bf16.msrb.mxu0 %v4689_v20 }
 0x195   : > { %3698 = vmatpush.bf16.msrb.mxu1 %v4697_v21 }
 0x196   : > { %3712 = vmatpush.bf16.msrb.mxu2 %v4705_v22 }
 0x197   : > { %3726 = vmatpush.bf16.msrb.mxu3 %v4713_v23 }
 0x198   : > { %3685 = vmatpush.bf16.msrb.mxu0 %v4688_v24 }
 0x199   : > { %3699 = vmatpush.bf16.msrb.mxu1 %v4696_v25 }
 0x19a   : > { %3713 = vmatpush.bf16.msrb.mxu2 %v4704_v26 }
 0x19b   : > { %3727 = vmatpush.bf16.msrb.mxu3 %v4712_v27 }
 0x19c   : > { %3686 = vmatpush.bf16.msrb.mxu0 %v4687_v28 }
 0x19d   : > { %3700 = vmatpush.bf16.msrb.mxu1 %v4695_v29 }
 0x19e   : > { %3714 = vmatpush.bf16.msrb.mxu2 %v4703_v30 }
 0x19f   : > { %3728 = vmatpush.bf16.msrb.mxu3 %v4711_v31 }
 0x1a0   : > { %3687 = vmatpush.bf16.msrb.mxu0 %v4686_v32 }
 0x1a1   : > { %3701 = vmatpush.bf16.msrb.mxu1 %v4694_v33 }
 0x1a2   : > { %3715 = vmatpush.bf16.msrb.mxu2 %v4702_v34 }
 0x1a3   : > { %3729 = vmatpush.bf16.msrb.mxu3 %v4710_v35  ;;  %3688 = vmatmul.bf16.vlgmr.msrb.gmra.mxu0 %v4043_v44 }
 0x1a4   : > { %3702 = vmatmul.bf16.vlgmr.msrb.gmra.mxu1 %v4047_v45  ;;  %v4796_v45 = vld [vmem:[%s2382_s9] ss:$0 sm:$0xff] }
 0x1a5   : > { %3716 = vmatmul.bf16.vlgmr.msrb.gmra.mxu2 %v4051_v46 }
 0x1a6   : > { %3730 = vmatmul.bf16.vlgmr.msrb.gmra.mxu3 %v4055_v47 }
 0x1c0   : > { %v3521_v48 = vpop.f32.mrf.mxu0 }
 0x1c1   : > { %v3535_v49 = vpop.f32.mrf.mxu1 }
 0x1c2   : > { %v3536_v58 = vadd.f32 %v3535_v49, %v3521_v48  ;;  %v3759_v48 = vmul.f32 16.0, %v4798_v41 }
 0x1c8   : > { %v3549_v50 = vpop.f32.mrf.mxu2  ;;  %v3523_v52 = vpop.f32.mrf.mxu0 }
 0x1c9   : > { %v3563_v51 = vpop.f32.mrf.mxu3  ;;  %v3537_v53 = vpop.f32.mrf.mxu1  ;;  %v3550_v61 = vadd.f32 %v3549_v50, %v3536_v58 }
 0x1ca   : > { %v3538_v0 = vadd.f32 %v3537_v53, %v3523_v52  ;;  %v3760_v52 = vsub.f32 1.0, %v3759_v48 }
 0x1cb   : > { %v3564_v63 = vadd.f32 %v3563_v51, %v3550_v61 }
 0x1d0   : > { %v3551_v54 = vpop.f32.mrf.mxu2 }
 0x1d1   : > { %v3565_v55 = vpop.f32.mrf.mxu3  ;;  %v3552_v2 = vadd.f32 %v3551_v54, %v3538_v0 }
 0x1d3   : > { %v3566_v7 = vadd.f32 %v3565_v55, %v3552_v2  ;;  %v3761_v55 = vmul.f32 %v4798_v41, %v3760_v52 }
 0x1d5   : > { %v3762_v58 = vadd.f32 %v4798_v41, %v3761_v55 }
 0x1d7   : > { %v3764_v61 = vsel %vm3763_vm0, %v4798_v41, %v3762_v58 }
 0x1e0   : > { %v3577_v56 = vpop.f32.mrf.mxu0 }
 0x1e1   : > { %v3591_v57 = vpop.f32.mrf.mxu1  ;;  %v3578_v3 = vadd.f32 %v3577_v56, %v3564_v63 }
 0x1e3   : > { %v3592_v8 = vadd.f32 %v3591_v57, %v3578_v3 }
 0x1e8   : > { %v3605_v59 = vpop.f32.mrf.mxu2  ;;  %v3579_v62 = vpop.f32.mrf.mxu0 }
 0x1e9   : > { %v3619_v60 = vpop.f32.mrf.mxu3  ;;  %v3593_v1 = vpop.f32.mrf.mxu1  ;;  %v3580_v10 = vadd.f32 %v3579_v62, %v3566_v7  ;;  %v3606_v11 = vadd.f32 %v3605_v59, %v3592_v8 }
 0x1eb   : > { %v3594_v14 = vadd.f32 %v3593_v1, %v3580_v10  ;;  %v3620_v15 = vadd.f32 %v3619_v60, %v3606_v11 }
 0x1f0   : > { %v3607_v4 = vpop.f32.mrf.mxu2 }
 0x1f1   : > { %v3621_v5 = vpop.f32.mrf.mxu3  ;;  %v3608_v16 = vadd.f32 %v3607_v4, %v3594_v14 }
 0x1f3   : > { %v3622_v20 = vadd.f32 %v3621_v5, %v3608_v16 }
 0x200   : > { %v3633_v6 = vpop.f32.mrf.mxu0 }
 0x201   : > { %v3647_v9 = vpop.f32.mrf.mxu1  ;;  %v3634_v18 = vadd.f32 %v3633_v6, %v3620_v15 }
 0x203   : > { %v3648_v21 = vadd.f32 %v3647_v9, %v3634_v18 }
 0x208   : > { %v3661_v12 = vpop.f32.mrf.mxu2  ;;  %v3635_v17 = vpop.f32.mrf.mxu0 }
 0x209   : > { %v3675_v13 = vpop.f32.mrf.mxu3  ;;  %v3649_v19 = vpop.f32.mrf.mxu1  ;;  %v3636_v22 = vadd.f32 %v3635_v17, %v3622_v20  ;;  %v3662_v25 = vadd.f32 %v3661_v12, %v3648_v21 }
 0x20b   : > { %v3650_v27 = vadd.f32 %v3649_v19, %v3636_v22  ;;  %v3676_v29 = vadd.f32 %v3675_v13, %v3662_v25 }
 0x210   : > { %v3663_v23 = vpop.f32.mrf.mxu2 }
 0x211   : > { %v3677_v24 = vpop.f32.mrf.mxu3  ;;  %v3664_v30 = vadd.f32 %v3663_v23, %v3650_v27 }
 0x213   : > { %v3678_v34 = vadd.f32 %v3677_v24, %v3664_v30 }
 0x220   : > { %v3689_v26 = vpop.f32.mrf.mxu0 }
 0x221   : > { %v3703_v28 = vpop.f32.mrf.mxu1  ;;  %v3690_v31 = vadd.f32 %v3689_v26, %v3676_v29 }
 0x223   : > { %v3704_v37 = vadd.f32 %v3703_v28, %v3690_v31 }
 0x228   : > { %v3717_v32 = vpop.f32.mrf.mxu2  ;;  %v3691_v35 = vpop.f32.mrf.mxu0 }
 0x229   : > { %v3731_v33 = vpop.f32.mrf.mxu3  ;;  %v3692_v38 = vadd.f32 %v3691_v35, %v3678_v34  ;;  %v3718_v39 = vadd.f32 %v3717_v32, %v3704_v37  ;;  %v3705_v40 = vpop.f32.mrf.mxu1 }
 0x22b   : > { %v3706_v42 = vadd.f32 %v3705_v40, %v3692_v38  ;;  %v3732_v44 = vadd.f32 %v3731_v33, %v3718_v39 }
 0x22d   : > { %v3749_v50 = vadd.f32 %v4796_v45, %v3732_v44 }
 0x230   : > { %v3719_v43 = vpop.f32.mrf.mxu2 }
 0x231   : > { %v3720_v46 = vadd.f32 %v3719_v43, %v3706_v42  ;;  %v3733_v47 = vpop.f32.mrf.mxu3 }
 0x233   : > { %v3734_v49 = vadd.f32 %v3733_v47, %v3720_v46 }
 0x235   : > { %v3750_v51 = vadd.f32 %v4796_v45, %v3734_v49 }
 0x237   : > { %v3751_v53 = vadd.f32 %v3750_v51, %v3749_v50 }
 0x239   : > { %v3752_v54 = vrot.slane %v3751_v53, 4 }
 0x23b   : > { %v3753_v56 = vadd.f32 %v3752_v54, %v3751_v53 }
 0x23d   : > { %v3754_v57 = vrot.slane %v3753_v56, 2 }
 0x23f   : > { %v3755_v59 = vadd.f32 %v3754_v57, %v3753_v56 }
 0x241   : > { %v3756_v60 = vrot.slane %v3755_v59, 1 }
 0x243   : > { %v3757_v62 = vadd.f32 %v3756_v60, %v3755_v59 }
 0x245   : > { %v3765_v63 = vmul.f32 %v3764_v61, %v3757_v62 }
 0x247   : > { %v3766_v0 = vsub.f32 %v3749_v50, %v3765_v63  ;;  %v3767_v1 = vsub.f32 %v3750_v51, %v3765_v63 }
 0x249   : > { %v3768_v2 = vmul.f32 %v3766_v0, %v3766_v0  ;;  %v3769_v3 = vmul.f32 %v3767_v1, %v3767_v1 }
 0x24b   : > { %v3770_v4 = vadd.f32 %v3769_v3, %v3768_v2 }
 0x24d   : > { %v3771_v5 = vrot.slane %v3770_v4, 4 }
 0x24f   : > { %v3772_v6 = vadd.f32 %v3771_v5, %v3770_v4 }
 0x251   : > { %v3773_v7 = vrot.slane %v3772_v6, 2 }
 0x253   : > { %v3774_v8 = vadd.f32 %v3773_v7, %v3772_v6 }
 0x255   : > { %v3775_v9 = vrot.slane %v3774_v8, 1 }
 0x257   : > { %v3776_v10 = vadd.f32 %v3775_v9, %v3774_v8 }
 0x259   : > { %v3777_v11 = vmul.f32 %v3776_v10, %v3764_v61 }
 0x25b   : > { %v3778_v12 = vadd.f32 1e-05, %v3777_v11 }
 0x25d   : > { %4799 = vrsqrt.f32 %v3778_v12  ;;  %vm3785_vm2 = vweird.f32 %v3778_v12 }
 0x263   : > { %v4800_v13 = vpop.eup %4799 }
 0x264   : > { %v3780_v14 = vmul.f32 %v4800_v13, %v3778_v12  ;;  %vm3786_vm1 = vweird.f32 %v4800_v13 }
 0x265   : > { %vm3787_vm3 = vmor %vm3785_vm2, %vm3786_vm1 }
 0x266   : > { %v3781_v15 = vmul.f32 %v4800_v13, %v3780_v14 }
 0x268   : > { %v3782_v16 = vmul.f32 0.5, %v3781_v15 }
 0x26a   : > { %v3783_v17 = vsub.f32 1.5, %v3782_v16 }
 0x26c   : > { %v3784_v18 = vmul.f32 %v4800_v13, %v3783_v17 }
 0x26e   : > { %v3788_v19 = vsel %vm3787_vm3, %v4800_v13, %v3784_v18 }
 0x26f   : > { %v3789_v20 = vmul.f32 %v3788_v19, %v3766_v0  ;;  %v3790_v21 = vmul.f32 %v3788_v19, %v3767_v1 }
 0x271   : > { %vm3791_vm4 = vcmp.ge.f32.partialorder %v3789_v20, 0.0  ;;  %vm3792_vm5 = vcmp.ge.f32.partialorder %v3790_v21, 0.0  ;;  %v3793_v22 = vmul.f32 0.2, %v3789_v20  ;;  %v3794_v23 = vmul.f32 0.2, %v3790_v21 }
 0x272   : > { %3807 = sbr.rel (!%p4961_p9) target bundleno = 640 (0x280), region = 96 }
 0x273   : > { %v3795_v24 = vsel %vm3791_vm4, %v3789_v20, %v3793_v22  ;;  %v3796_v25 = vsel %vm3792_vm5, %v3790_v21, %v3794_v23 }
 0x274   : > { %v4721_v26 = vpack.c.bf16 %v3796_v25, %v3795_v24 }
 0x276   : > { %4722 = vst [vmem:[%s2362_s25] sm:$0xff] %v4721_v26  }
 0x27d   : > { %v3831_v27 = vld [vmem:[%s2362_s25] sm:$0xf]  ;;  %v3833_v28 = vld [vmem:[%s2362_s25 + $0x4] sm:$0xf] }
 0x27e   : > { %3832 = vst [vmem:[%s3814_s5] sm:$0xf] %v3831_v27 }
 0x27f   : > { %3834 = vst [vmem:[%s3814_s5 + $0x8] sm:$0xf] %v3833_v28 }
 0x280 PF: > { %s13_s20 = sadd.s32 1, %s4871_s20   ;;  %s5715_s12 = smov %s4843_s13 }
 0x281   : > { %p10_p2 = scmp.ge.s32.totalorder %s13_s20, 6   ;;  %s5716_s13 = smov %s4966_s4 }
 0x282   : > { %s5717_s14 = smov %s4851_s15  ;;  %s5718_s15 = smov %s4955_s27 }
 0x283   : > { %s5719_s16 = smov %s4863_s18  ;;  %s5720_s17 = smov %s4867_s19 }
 0x284   : > { %s5721_s18 = smov %s5724_s22  ;;  %s5722_s19 = smov %s5728_s23 }
 0x285   :  { %12 = sbr.rel (!%p10_p2) target bundleno = 5 (0x5), region = 178 }

// kernel: discriminator_forward.8
= control target key start
LH: loop header
LB: loop body
LE: loop exit
PB: predicated region body
PF: predicated region fallthrough
CT: control target
= control target key end

     0   :  { %s7852_s0 = inlined_call_operand.vmem [shape: bf16[2,9,4096], index: 0, kind: input, shape index: {}]   ;;  %s7853_s1 = inlined_call_operand.vmem [shape: bf16[4096,512], index: 1, kind: input, shape index: {}]   ;;  %s7854_s2 = inlined_call_operand.vmem [shape: f32[1,512], index: 2, kind: input, shape index: {}]   ;;  %s7855_s3 = inlined_call_operand.vmem [shape: bf16[2,9,512], index: 3, kind: output, shape index: {}]  }
   0x1   :  { %7858 = sst [smem:[#allocation9_spill]] %s7852_s0 }
   0x2   :  { %7859 = sst [smem:[#allocation10_spill]] %s7855_s3 }
   0x3   :  { %s6444_s12 = smov 0   ;;  %s6446_s13 = smov 0  }
   0x4   :  { %s6448_s14 = smov 0   ;;  %s6450_s15 = smov 0  }
   0x5   :  { %s6452_s16 = smov 0   ;;  %s6454_s17 = smov 0  }
   0x6   :  { %s6456_s18 = smov 0   ;;  %s6458_s19 = smov 0  }
   0x7   :  { %s6460_s20 = smov 0   ;;  %s6462_s21 = smov 0  }
   0x8   :  { %s6464_s22 = smov 0   ;;  %s6466_s23 = smov 0  }
   0x9   :  { %s6468_s24 = smov 0  }
   0xa LB: > { %7860 = sst [smem:[#allocation6_spill]] %s6404_s20  ;;  %s28_s26 = sadd.s32 1, %s6408_s21  ;;  %s6420_s24 = sphi %s6468_s24, %s13_s24   ;;  %s6416_s23 = sphi %s6466_s23, %s7887_s23   ;;  %s6412_s22 = sphi %s6464_s22, %s7886_s22   ;;  %s6408_s21 = sphi %s6462_s21, %s7885_s21   ;;  %s6404_s20 = sphi %s6460_s20, %s7884_s20   ;;  %s6400_s19 = sphi %s6458_s19, %s7883_s19   ;;  %s6396_s18 = sphi %s6456_s18, %s7882_s18   ;;  %s6392_s17 = sphi %s6454_s17, %s7881_s17   ;;  %s6388_s16 = sphi %s6452_s16, %s7880_s16   ;;  %s6384_s15 = sphi %s6450_s15, %s7879_s15   ;;  %s6380_s14 = sphi %s6448_s14, %s7878_s14   ;;  %s6376_s13 = sphi %s6446_s13, %s7877_s13   ;;  %s6372_s12 = sphi %s6444_s12, %s7876_s12  }
   0xb   : > { %p29_p0 = scmp.ge.s32.totalorder %s28_s26, 2  ;;  %s31_s27 = sadd.s32 1, %s6412_s22 }
   0xc   : > { %s39_s28 = sadd.s32 1, %s6416_s23  ;;  %s50_s29 = sadd.s32 1, %s6392_s17 }
   0xd   : > { %s7889_s26 = smov (%p29_p0, %s28_s26), 0  ;;  %s7891_s27 = smov (!%p29_p0, %s31_s27), %s6412_s22 }
   0xe   : > { %7861 = sst [smem:[#allocation7_spill]] %s7889_s26  ;;  %s46_s30 = ssub.s32 %s6408_s21, %s7889_s26 }
   0xf   : > { %p57_p1 = scmp.ne.s32.totalorder %s6392_s17, %s6388_s16  ;;  %p33_p2 = scmp.ge.s32.totalorder %s7891_s27, 2 }
  0x10   : > { %p58_p3 = scmp.eq.s32.totalorder %s6420_s24, 0  ;;  %s78_s4 = sadd.s32 1, %s6384_s15 }
  0x11   : > { %p85_p4 = scmp.ne.s32.totalorder %s6384_s15, %s6380_s14  ;;  %s7893_s27 = smov (%p33_p2, %s7891_s27), 0 }
  0x12   : > { %7862 = sst [smem:[#allocation8_spill]] %s7893_s27  ;;  %s7895_s28 = smov (!%p33_p2, %s39_s28), %s6416_s23 }
  0x13   : > { %p6528_p5 = por %p58_p3, %p57_p1  ;;  %s74_s6 = ssub.s32 %s6412_s22, %s7893_s27 }
  0x14   : > { %p41_p6 = scmp.ge.s32.totalorder %s7895_s28, 2  ;;  %s75_s7 = sor.u32 %s74_s6, %s46_s30 }
  0x15   : > { %p76_p7 = scmp.eq.s32.totalorder %s75_s7, 0  ;;  %p6534_p8 = por %p85_p4, %p58_p3 }
  0x16   : > { %s7897_s28 = smov (%p41_p6, %s7895_s28), 0  ;;  %s134_s11 = sadd.s32 1, %s6376_s13 }
  0x17   : > { %s6541_s9 = scalar_select %p76_p7, %s6384_s15, %s78_s4  }
  0x18   : > { %s43_s10 = ssub.s32 %s6416_s23, %s7897_s28  ;;  %p144_p11 = scmp.ne.s32.totalorder %s6376_s13, %s6372_s12 }
  0x19   : > { %s47_s25 = sor.u32 %s46_s30, %s43_s10  ;;  %s131_s26 = sor.u32 %s74_s6, %s43_s10 }
  0x1a   : > { %p48_p9 = scmp.eq.s32.totalorder %s47_s25, 0  ;;  %p132_p10 = scmp.eq.s32.totalorder %s131_s26, 0 }
  0x1b   : > { %s7865_s27 = sadd.s32 4294967295, %s6420_s24   ;;  %p4822_p0 = scmp.ge.s32.totalorder %s6420_s24, 8 }
  0x1c   : > { %p145_p12 = scmp.eq.s32.totalorder %s7865_s27, 7 }
  0x1d   : > { %s6551_s3 = scalar_select %p48_p9, %s6392_s17, %s50_s29  }
  0x1e   : > { %s6554_s7 = scalar_select %p132_p10, %s6376_s13, %s134_s11  }
  0x1f   : > { %p6556_p13 = por %p145_p12, %p144_p11  ;;  %167 = sbr.rel (%p4822_p0) target bundleno = 325 (0x145), region = 16 }
  0x24   : > { %170 = sbr.rel (!%p6528_p5) target bundleno = 62 (0x3e), region = 20  ;;  %s172_s25 = sand.u32 (%p6528_p5), 1, %s6392_s17  }
  0x25   : > { %s4824_s26 = sshll.u32 (%p6528_p5), %s6408_s21, 4  ;;  %s4823_s27 = sshll.u32 (%p6528_p5), %s172_s25, 7 }
  0x26   : > { %s4825_s29 = sshll.u32 (%p6528_p5), %s6416_s23, 6  ;;  %s7867_s0 = sld [smem:[#allocation9_spill]] (%p6528_p5) }
  0x27   : > { %s180_s30 = sadd.s32 (%p6528_p5), %s4825_s29, %s4824_s26  ;;  %s174_s5 = scalar_lea.vmem (%p6528_p5), [#allocation3], %s4823_s27 }
  0x28   : > { %s4826_s4 = sshll.u32 (%p6528_p5), %s180_s30, 2 }
  0x2c   : > { %s6569_s11 = scalar_lea.vmem %s7867_s0, %s4826_s4 }
  0x2d   : > { %v195_v0 = vld [vmem:[%s6569_s11] sm:$0xff]  ;;  %v197_v1 = vld [vmem:[%s6569_s11 + $0x8] sm:$0xff]  ;;  %v199_v2 = vld [vmem:[%s6569_s11 + $0x10] sm:$0xff] }
  0x2e   : > { %196 = vst [vmem:[%s174_s5] sm:$0xff] %v195_v0  ;;  %v201_v3 = vld [vmem:[%s6569_s11 + $0x18] sm:$0xff]  ;;  %v203_v4 = vld [vmem:[%s6569_s11 + $0x20] sm:$0xff]  ;;  %v205_v5 = vld [vmem:[%s6569_s11 + $0x28] sm:$0xff] }
  0x2f   : > { %198 = vst [vmem:[%s174_s5 + $0x8] sm:$0xff] %v197_v1  ;;  %v207_v6 = vld [vmem:[%s6569_s11 + $0x30] sm:$0xff]  ;;  %v209_v7 = vld [vmem:[%s6569_s11 + $0x38] sm:$0xff]  ;;  %v211_v8 = vld [vmem:[%s6569_s11 + $0x80] sm:$0xff] }
  0x30   : > { %200 = vst [vmem:[%s174_s5 + $0x10] sm:$0xff] %v199_v2  ;;  %v213_v9 = vld [vmem:[%s6569_s11 + $0x88] sm:$0xff]  ;;  %v215_v10 = vld [vmem:[%s6569_s11 + $0x90] sm:$0xff]  ;;  %v217_v11 = vld [vmem:[%s6569_s11 + $0x98] sm:$0xff] }
  0x31   : > { %202 = vst [vmem:[%s174_s5 + $0x18] sm:$0xff] %v201_v3  ;;  %v219_v12 = vld [vmem:[%s6569_s11 + $0xa0] sm:$0xff]  ;;  %v221_v13 = vld [vmem:[%s6569_s11 + $0xa8] sm:$0xff]  ;;  %v223_v14 = vld [vmem:[%s6569_s11 + $0xb0] sm:$0xff] }
  0x32   : > { %204 = vst [vmem:[%s174_s5 + $0x20] sm:$0xff] %v203_v4  ;;  %v225_v15 = vld [vmem:[%s6569_s11 + $0xb8] sm:$0xff] }
  0x33   : > { %206 = vst [vmem:[%s174_s5 + $0x28] sm:$0xff] %v205_v5 }
  0x34   : > { %208 = vst [vmem:[%s174_s5 + $0x30] sm:$0xff] %v207_v6 }
  0x35   : > { %210 = vst [vmem:[%s174_s5 + $0x38] sm:$0xff] %v209_v7 }
  0x36   : > { %212 = vst [vmem:[%s174_s5 + $0x40] sm:$0xff] %v211_v8 }
  0x37   : > { %214 = vst [vmem:[%s174_s5 + $0x48] sm:$0xff] %v213_v9 }
  0x38   : > { %216 = vst [vmem:[%s174_s5 + $0x50] sm:$0xff] %v215_v10 }
  0x39   : > { %218 = vst [vmem:[%s174_s5 + $0x58] sm:$0xff] %v217_v11 }
  0x3a   : > { %220 = vst [vmem:[%s174_s5 + $0x60] sm:$0xff] %v219_v12 }
  0x3b   : > { %222 = vst [vmem:[%s174_s5 + $0x68] sm:$0xff] %v221_v13 }
  0x3c   : > { %224 = vst [vmem:[%s174_s5 + $0x70] sm:$0xff] %v223_v14 }
  0x3d   : > { %226 = vst [vmem:[%s174_s5 + $0x78] sm:$0xff] %v225_v15 }
  0x3e PF: > { %232 = sbr.rel (!%p6534_p8) target bundleno = 325 (0x145), region = 43  ;;  %s234_s25 = sand.u32 (%p6534_p8), 1, %s6384_s15  }
  0x3f   : > { %s4829_s26 = sshll.u32 (%p6534_p8), %s6412_s22, 1  ;;  %s4827_s27 = sshll.u32 (%p6534_p8), %s234_s25, 11 }
  0x40   : > { %s5933_s29 = sshll.u32 (%p6534_p8), %s6408_s21, 10  ;;  %s6600_s8 = scalar_lea.vmem (%p6534_p8), [#allocation4], %s4827_s27 }
  0x41   : > { %s240_s30 = sadd.s32 (%p6534_p8), %s5933_s29, %s4829_s26 }
  0x42   : > { %s4831_s4 = sshll.u32 (%p6534_p8), %s240_s30, 2 }
  0x43   : > { %s6595_s11 = scalar_lea.vmem %s7853_s1, %s4831_s4 }
  0x44   : > { %v782_v16 = vld [vmem:[%s6595_s11] sm:$0xff]  ;;  %v784_v17 = vld [vmem:[%s6595_s11 + $0x10] sm:$0xff] }
  0x45   : > { %v786_v18 = vld [vmem:[%s6595_s11 + $0x20] sm:$0xff]  ;;  %783 = vst [vmem:[%s6600_s8] sm:$0xff] %v782_v16  ;;  %v788_v19 = vld [vmem:[%s6595_s11 + $0x30] sm:$0xff] }
  0x46   : > { %785 = vst [vmem:[%s6600_s8 + $0x8] sm:$0xff] %v784_v17  ;;  %v790_v20 = vld [vmem:[%s6595_s11 + $0x40] sm:$0xff]  ;;  %v792_v21 = vld [vmem:[%s6595_s11 + $0x50] sm:$0xff] }
  0x47   : > { %787 = vst [vmem:[%s6600_s8 + $0x10] sm:$0xff] %v786_v18  ;;  %v794_v22 = vld [vmem:[%s6595_s11 + $0x60] sm:$0xff]  ;;  %v796_v23 = vld [vmem:[%s6595_s11 + $0x70] sm:$0xff] }
  0x48   : > { %789 = vst [vmem:[%s6600_s8 + $0x18] sm:$0xff] %v788_v19  ;;  %v798_v24 = vld [vmem:[%s6595_s11 + $0x80] sm:$0xff]  ;;  %v800_v25 = vld [vmem:[%s6595_s11 + $0x90] sm:$0xff] }
  0x49   : > { %791 = vst [vmem:[%s6600_s8 + $0x20] sm:$0xff] %v790_v20  ;;  %v802_v26 = vld [vmem:[%s6595_s11 + $0xa0] sm:$0xff]  ;;  %v804_v27 = vld [vmem:[%s6595_s11 + $0xb0] sm:$0xff] }
  0x4a   : > { %793 = vst [vmem:[%s6600_s8 + $0x28] sm:$0xff] %v792_v21  ;;  %v806_v28 = vld [vmem:[%s6595_s11 + $0xc0] sm:$0xff]  ;;  %v808_v29 = vld [vmem:[%s6595_s11 + $0xd0] sm:$0xff] }
  0x4b   : > { %795 = vst [vmem:[%s6600_s8 + $0x30] sm:$0xff] %v794_v22  ;;  %v810_v30 = vld [vmem:[%s6595_s11 + $0xe0] sm:$0xff]  ;;  %v812_v31 = vld [vmem:[%s6595_s11 + $0xf0] sm:$0xff] }
  0x4c   : > { %797 = vst [vmem:[%s6600_s8 + $0x38] sm:$0xff] %v796_v23  ;;  %v814_v32 = vld [vmem:[%s6595_s11 + $0x100] sm:$0xff]  ;;  %v816_v33 = vld [vmem:[%s6595_s11 + $0x110] sm:$0xff] }
  0x4d   : > { %799 = vst [vmem:[%s6600_s8 + $0x40] sm:$0xff] %v798_v24  ;;  %v818_v34 = vld [vmem:[%s6595_s11 + $0x120] sm:$0xff]  ;;  %v820_v35 = vld [vmem:[%s6595_s11 + $0x130] sm:$0xff] }
  0x4e   : > { %801 = vst [vmem:[%s6600_s8 + $0x48] sm:$0xff] %v800_v25  ;;  %v822_v36 = vld [vmem:[%s6595_s11 + $0x140] sm:$0xff]  ;;  %v824_v37 = vld [vmem:[%s6595_s11 + $0x150] sm:$0xff] }
  0x4f   : > { %803 = vst [vmem:[%s6600_s8 + $0x50] sm:$0xff] %v802_v26  ;;  %v826_v38 = vld [vmem:[%s6595_s11 + $0x160] sm:$0xff]  ;;  %v828_v39 = vld [vmem:[%s6595_s11 + $0x170] sm:$0xff] }
  0x50   : > { %805 = vst [vmem:[%s6600_s8 + $0x58] sm:$0xff] %v804_v27  ;;  %v830_v40 = vld [vmem:[%s6595_s11 + $0x180] sm:$0xff]  ;;  %v832_v41 = vld [vmem:[%s6595_s11 + $0x190] sm:$0xff] }
  0x51   : > { %807 = vst [vmem:[%s6600_s8 + $0x60] sm:$0xff] %v806_v28  ;;  %v834_v42 = vld [vmem:[%s6595_s11 + $0x1a0] sm:$0xff]  ;;  %v836_v43 = vld [vmem:[%s6595_s11 + $0x1b0] sm:$0xff] }
  0x52   : > { %809 = vst [vmem:[%s6600_s8 + $0x68] sm:$0xff] %v808_v29  ;;  %v838_v44 = vld [vmem:[%s6595_s11 + $0x1c0] sm:$0xff]  ;;  %v840_v45 = vld [vmem:[%s6595_s11 + $0x1d0] sm:$0xff] }
  0x53   : > { %811 = vst [vmem:[%s6600_s8 + $0x70] sm:$0xff] %v810_v30  ;;  %v842_v46 = vld [vmem:[%s6595_s11 + $0x1e0] sm:$0xff]  ;;  %v844_v47 = vld [vmem:[%s6595_s11 + $0x1f0] sm:$0xff] }
  0x54   : > { %813 = vst [vmem:[%s6600_s8 + $0x78] sm:$0xff] %v812_v31  ;;  %v846_v48 = vld [vmem:[%s6595_s11 + $0x200] sm:$0xff]  ;;  %v848_v49 = vld [vmem:[%s6595_s11 + $0x210] sm:$0xff] }
  0x55   : > { %815 = vst [vmem:[%s6600_s8 + $0x80] sm:$0xff] %v814_v32  ;;  %v850_v50 = vld [vmem:[%s6595_s11 + $0x220] sm:$0xff]  ;;  %v852_v51 = vld [vmem:[%s6595_s11 + $0x230] sm:$0xff] }
  0x56   : > { %817 = vst [vmem:[%s6600_s8 + $0x88] sm:$0xff] %v816_v33  ;;  %v854_v52 = vld [vmem:[%s6595_s11 + $0x240] sm:$0xff]  ;;  %v856_v53 = vld [vmem:[%s6595_s11 + $0x250] sm:$0xff] }
  0x57   : > { %819 = vst [vmem:[%s6600_s8 + $0x90] sm:$0xff] %v818_v34  ;;  %v858_v54 = vld [vmem:[%s6595_s11 + $0x260] sm:$0xff]  ;;  %v860_v55 = vld [vmem:[%s6595_s11 + $0x270] sm:$0xff] }
  0x58   : > { %821 = vst [vmem:[%s6600_s8 + $0x98] sm:$0xff] %v820_v35  ;;  %v862_v56 = vld [vmem:[%s6595_s11 + $0x280] sm:$0xff]  ;;  %v864_v57 = vld [vmem:[%s6595_s11 + $0x290] sm:$0xff] }
  0x59   : > { %823 = vst [vmem:[%s6600_s8 + $0xa0] sm:$0xff] %v822_v36  ;;  %v866_v58 = vld [vmem:[%s6595_s11 + $0x2a0] sm:$0xff]  ;;  %v868_v59 = vld [vmem:[%s6595_s11 + $0x2b0] sm:$0xff] }
  0x5a   : > { %825 = vst [vmem:[%s6600_s8 + $0xa8] sm:$0xff] %v824_v37  ;;  %v870_v60 = vld [vmem:[%s6595_s11 + $0x2c0] sm:$0xff]  ;;  %v872_v61 = vld [vmem:[%s6595_s11 + $0x2d0] sm:$0xff] }
  0x5b   : > { %827 = vst [vmem:[%s6600_s8 + $0xb0] sm:$0xff] %v826_v38  ;;  %v874_v62 = vld [vmem:[%s6595_s11 + $0x2e0] sm:$0xff]  ;;  %v876_v63 = vld [vmem:[%s6595_s11 + $0x2f0] sm:$0xff] }
  0x5c   : > { %829 = vst [vmem:[%s6600_s8 + $0xb8] sm:$0xff] %v828_v39  ;;  %v878_v0 = vld [vmem:[%s6595_s11 + $0x300] sm:$0xff]  ;;  %v880_v1 = vld [vmem:[%s6595_s11 + $0x310] sm:$0xff] }
  0x5d   : > { %831 = vst [vmem:[%s6600_s8 + $0xc0] sm:$0xff] %v830_v40  ;;  %v882_v2 = vld [vmem:[%s6595_s11 + $0x320] sm:$0xff]  ;;  %v884_v3 = vld [vmem:[%s6595_s11 + $0x330] sm:$0xff] }
  0x5e   : > { %833 = vst [vmem:[%s6600_s8 + $0xc8] sm:$0xff] %v832_v41  ;;  %v886_v4 = vld [vmem:[%s6595_s11 + $0x340] sm:$0xff]  ;;  %v888_v5 = vld [vmem:[%s6595_s11 + $0x350] sm:$0xff] }
  0x5f   : > { %835 = vst [vmem:[%s6600_s8 + $0xd0] sm:$0xff] %v834_v42  ;;  %v890_v6 = vld [vmem:[%s6595_s11 + $0x360] sm:$0xff]  ;;  %v892_v7 = vld [vmem:[%s6595_s11 + $0x370] sm:$0xff] }
  0x60   : > { %837 = vst [vmem:[%s6600_s8 + $0xd8] sm:$0xff] %v836_v43  ;;  %v894_v8 = vld [vmem:[%s6595_s11 + $0x380] sm:$0xff]  ;;  %v896_v9 = vld [vmem:[%s6595_s11 + $0x390] sm:$0xff] }
  0x61   : > { %839 = vst [vmem:[%s6600_s8 + $0xe0] sm:$0xff] %v838_v44  ;;  %v898_v10 = vld [vmem:[%s6595_s11 + $0x3a0] sm:$0xff]  ;;  %v900_v11 = vld [vmem:[%s6595_s11 + $0x3b0] sm:$0xff] }
  0x62   : > { %841 = vst [vmem:[%s6600_s8 + $0xe8] sm:$0xff] %v840_v45  ;;  %v902_v12 = vld [vmem:[%s6595_s11 + $0x3c0] sm:$0xff]  ;;  %v904_v13 = vld [vmem:[%s6595_s11 + $0x3d0] sm:$0xff] }
  0x63   : > { %843 = vst [vmem:[%s6600_s8 + $0xf0] sm:$0xff] %v842_v46  ;;  %v906_v14 = vld [vmem:[%s6595_s11 + $0x3e0] sm:$0xff]  ;;  %v908_v15 = vld [vmem:[%s6595_s11 + $0x3f0] sm:$0xff] }
  0x64   : > { %845 = vst [vmem:[%s6600_s8 + $0xf8] sm:$0xff] %v844_v47  ;;  %v910_v16 = vld [vmem:[%s6595_s11 + $0x400] sm:$0xff]  ;;  %v912_v17 = vld [vmem:[%s6595_s11 + $0x410] sm:$0xff] }
  0x65   : > { %847 = vst [vmem:[%s6600_s8 + $0x100] sm:$0xff] %v846_v48  ;;  %v914_v18 = vld [vmem:[%s6595_s11 + $0x420] sm:$0xff]  ;;  %v916_v19 = vld [vmem:[%s6595_s11 + $0x430] sm:$0xff] }
  0x66   : > { %849 = vst [vmem:[%s6600_s8 + $0x108] sm:$0xff] %v848_v49  ;;  %v918_v20 = vld [vmem:[%s6595_s11 + $0x440] sm:$0xff]  ;;  %v920_v21 = vld [vmem:[%s6595_s11 + $0x450] sm:$0xff] }
  0x67   : > { %851 = vst [vmem:[%s6600_s8 + $0x110] sm:$0xff] %v850_v50  ;;  %v922_v22 = vld [vmem:[%s6595_s11 + $0x460] sm:$0xff]  ;;  %v924_v23 = vld [vmem:[%s6595_s11 + $0x470] sm:$0xff] }
  0x68   : > { %853 = vst [vmem:[%s6600_s8 + $0x118] sm:$0xff] %v852_v51  ;;  %v926_v24 = vld [vmem:[%s6595_s11 + $0x480] sm:$0xff]  ;;  %v928_v25 = vld [vmem:[%s6595_s11 + $0x490] sm:$0xff] }
  0x69   : > { %855 = vst [vmem:[%s6600_s8 + $0x120] sm:$0xff] %v854_v52  ;;  %v930_v26 = vld [vmem:[%s6595_s11 + $0x4a0] sm:$0xff]  ;;  %v932_v27 = vld [vmem:[%s6595_s11 + $0x4b0] sm:$0xff] }
  0x6a   : > { %857 = vst [vmem:[%s6600_s8 + $0x128] sm:$0xff] %v856_v53  ;;  %v934_v28 = vld [vmem:[%s6595_s11 + $0x4c0] sm:$0xff]  ;;  %v936_v29 = vld [vmem:[%s6595_s11 + $0x4d0] sm:$0xff] }
  0x6b   : > { %859 = vst [vmem:[%s6600_s8 + $0x130] sm:$0xff] %v858_v54  ;;  %v938_v30 = vld [vmem:[%s6595_s11 + $0x4e0] sm:$0xff]  ;;  %v940_v31 = vld [vmem:[%s6595_s11 + $0x4f0] sm:$0xff] }
  0x6c   : > { %861 = vst [vmem:[%s6600_s8 + $0x138] sm:$0xff] %v860_v55  ;;  %v942_v32 = vld [vmem:[%s6595_s11 + $0x500] sm:$0xff]  ;;  %v944_v33 = vld [vmem:[%s6595_s11 + $0x510] sm:$0xff] }
  0x6d   : > { %863 = vst [vmem:[%s6600_s8 + $0x140] sm:$0xff] %v862_v56  ;;  %v946_v34 = vld [vmem:[%s6595_s11 + $0x520] sm:$0xff]  ;;  %v948_v35 = vld [vmem:[%s6595_s11 + $0x530] sm:$0xff] }
  0x6e   : > { %865 = vst [vmem:[%s6600_s8 + $0x148] sm:$0xff] %v864_v57  ;;  %v950_v36 = vld [vmem:[%s6595_s11 + $0x540] sm:$0xff]  ;;  %v952_v37 = vld [vmem:[%s6595_s11 + $0x550] sm:$0xff] }
  0x6f   : > { %867 = vst [vmem:[%s6600_s8 + $0x150] sm:$0xff] %v866_v58  ;;  %v954_v38 = vld [vmem:[%s6595_s11 + $0x560] sm:$0xff]  ;;  %v956_v39 = vld [vmem:[%s6595_s11 + $0x570] sm:$0xff] }
  0x70   : > { %869 = vst [vmem:[%s6600_s8 + $0x158] sm:$0xff] %v868_v59  ;;  %v958_v40 = vld [vmem:[%s6595_s11 + $0x580] sm:$0xff]  ;;  %v960_v41 = vld [vmem:[%s6595_s11 + $0x590] sm:$0xff] }
  0x71   : > { %871 = vst [vmem:[%s6600_s8 + $0x160] sm:$0xff] %v870_v60  ;;  %v962_v42 = vld [vmem:[%s6595_s11 + $0x5a0] sm:$0xff]  ;;  %v964_v43 = vld [vmem:[%s6595_s11 + $0x5b0] sm:$0xff] }
  0x72   : > { %873 = vst [vmem:[%s6600_s8 + $0x168] sm:$0xff] %v872_v61  ;;  %v966_v44 = vld [vmem:[%s6595_s11 + $0x5c0] sm:$0xff]  ;;  %v968_v45 = vld [vmem:[%s6595_s11 + $0x5d0] sm:$0xff] }
  0x73   : > { %875 = vst [vmem:[%s6600_s8 + $0x170] sm:$0xff] %v874_v62  ;;  %v970_v46 = vld [vmem:[%s6595_s11 + $0x5e0] sm:$0xff]  ;;  %v972_v47 = vld [vmem:[%s6595_s11 + $0x5f0] sm:$0xff] }
  0x74   : > { %877 = vst [vmem:[%s6600_s8 + $0x178] sm:$0xff] %v876_v63  ;;  %v974_v48 = vld [vmem:[%s6595_s11 + $0x600] sm:$0xff]  ;;  %v976_v49 = vld [vmem:[%s6595_s11 + $0x610] sm:$0xff] }
  0x75   : > { %879 = vst [vmem:[%s6600_s8 + $0x180] sm:$0xff] %v878_v0  ;;  %v978_v50 = vld [vmem:[%s6595_s11 + $0x620] sm:$0xff]  ;;  %v980_v51 = vld [vmem:[%s6595_s11 + $0x630] sm:$0xff] }
  0x76   : > { %881 = vst [vmem:[%s6600_s8 + $0x188] sm:$0xff] %v880_v1  ;;  %v982_v52 = vld [vmem:[%s6595_s11 + $0x640] sm:$0xff]  ;;  %v984_v53 = vld [vmem:[%s6595_s11 + $0x650] sm:$0xff] }
  0x77   : > { %883 = vst [vmem:[%s6600_s8 + $0x190] sm:$0xff] %v882_v2  ;;  %v986_v54 = vld [vmem:[%s6595_s11 + $0x660] sm:$0xff]  ;;  %v988_v55 = vld [vmem:[%s6595_s11 + $0x670] sm:$0xff] }
  0x78   : > { %885 = vst [vmem:[%s6600_s8 + $0x198] sm:$0xff] %v884_v3  ;;  %v990_v56 = vld [vmem:[%s6595_s11 + $0x680] sm:$0xff]  ;;  %v992_v57 = vld [vmem:[%s6595_s11 + $0x690] sm:$0xff] }
  0x79   : > { %887 = vst [vmem:[%s6600_s8 + $0x1a0] sm:$0xff] %v886_v4  ;;  %v994_v58 = vld [vmem:[%s6595_s11 + $0x6a0] sm:$0xff]  ;;  %v996_v59 = vld [vmem:[%s6595_s11 + $0x6b0] sm:$0xff] }
  0x7a   : > { %889 = vst [vmem:[%s6600_s8 + $0x1a8] sm:$0xff] %v888_v5  ;;  %v998_v60 = vld [vmem:[%s6595_s11 + $0x6c0] sm:$0xff]  ;;  %v1000_v61 = vld [vmem:[%s6595_s11 + $0x6d0] sm:$0xff] }
  0x7b   : > { %891 = vst [vmem:[%s6600_s8 + $0x1b0] sm:$0xff] %v890_v6  ;;  %v1002_v62 = vld [vmem:[%s6595_s11 + $0x6e0] sm:$0xff]  ;;  %v1004_v63 = vld [vmem:[%s6595_s11 + $0x6f0] sm:$0xff] }
  0x7c   : > { %893 = vst [vmem:[%s6600_s8 + $0x1b8] sm:$0xff] %v892_v7  ;;  %v1006_v0 = vld [vmem:[%s6595_s11 + $0x700] sm:$0xff]  ;;  %v1008_v1 = vld [vmem:[%s6595_s11 + $0x710] sm:$0xff] }
  0x7d   : > { %895 = vst [vmem:[%s6600_s8 + $0x1c0] sm:$0xff] %v894_v8  ;;  %v1010_v2 = vld [vmem:[%s6595_s11 + $0x720] sm:$0xff]  ;;  %v1012_v3 = vld [vmem:[%s6595_s11 + $0x730] sm:$0xff] }
  0x7e   : > { %897 = vst [vmem:[%s6600_s8 + $0x1c8] sm:$0xff] %v896_v9  ;;  %v1014_v4 = vld [vmem:[%s6595_s11 + $0x740] sm:$0xff]  ;;  %v1016_v5 = vld [vmem:[%s6595_s11 + $0x750] sm:$0xff] }
  0x7f   : > { %899 = vst [vmem:[%s6600_s8 + $0x1d0] sm:$0xff] %v898_v10  ;;  %v1018_v6 = vld [vmem:[%s6595_s11 + $0x760] sm:$0xff]  ;;  %v1020_v7 = vld [vmem:[%s6595_s11 + $0x770] sm:$0xff] }
  0x80   : > { %901 = vst [vmem:[%s6600_s8 + $0x1d8] sm:$0xff] %v900_v11  ;;  %v1022_v8 = vld [vmem:[%s6595_s11 + $0x780] sm:$0xff]  ;;  %v1024_v9 = vld [vmem:[%s6595_s11 + $0x790] sm:$0xff] }
  0x81   : > { %903 = vst [vmem:[%s6600_s8 + $0x1e0] sm:$0xff] %v902_v12  ;;  %v1026_v10 = vld [vmem:[%s6595_s11 + $0x7a0] sm:$0xff]  ;;  %v1028_v11 = vld [vmem:[%s6595_s11 + $0x7b0] sm:$0xff] }
  0x82   : > { %905 = vst [vmem:[%s6600_s8 + $0x1e8] sm:$0xff] %v904_v13  ;;  %v1030_v12 = vld [vmem:[%s6595_s11 + $0x7c0] sm:$0xff]  ;;  %v1032_v13 = vld [vmem:[%s6595_s11 + $0x7d0] sm:$0xff] }
  0x83   : > { %907 = vst [vmem:[%s6600_s8 + $0x1f0] sm:$0xff] %v906_v14  ;;  %v1034_v14 = vld [vmem:[%s6595_s11 + $0x7e0] sm:$0xff] }
  0x84   : > { %909 = vst [vmem:[%s6600_s8 + $0x1f8] sm:$0xff] %v908_v15  ;;  %v1036_v15 = vld [vmem:[%s6595_s11 + $0x7f0] sm:$0xff] }
  0x85   : > { %911 = vst [vmem:[%s6600_s8 + $0x200] sm:$0xff] %v910_v16  ;;  %v1038_v16 = vld [vmem:[%s6595_s11 + $0x800] sm:$0xff] }
  0x86   : > { %913 = vst [vmem:[%s6600_s8 + $0x208] sm:$0xff] %v912_v17  ;;  %v1040_v17 = vld [vmem:[%s6595_s11 + $0x810] sm:$0xff] }
  0x87   : > { %915 = vst [vmem:[%s6600_s8 + $0x210] sm:$0xff] %v914_v18  ;;  %v1042_v18 = vld [vmem:[%s6595_s11 + $0x820] sm:$0xff] }
  0x88   : > { %917 = vst [vmem:[%s6600_s8 + $0x218] sm:$0xff] %v916_v19  ;;  %v1044_v19 = vld [vmem:[%s6595_s11 + $0x830] sm:$0xff] }
  0x89   : > { %919 = vst [vmem:[%s6600_s8 + $0x220] sm:$0xff] %v918_v20  ;;  %v1046_v20 = vld [vmem:[%s6595_s11 + $0x840] sm:$0xff] }
  0x8a   : > { %921 = vst [vmem:[%s6600_s8 + $0x228] sm:$0xff] %v920_v21  ;;  %v1048_v21 = vld [vmem:[%s6595_s11 + $0x850] sm:$0xff] }
  0x8b   : > { %923 = vst [vmem:[%s6600_s8 + $0x230] sm:$0xff] %v922_v22  ;;  %v1050_v22 = vld [vmem:[%s6595_s11 + $0x860] sm:$0xff] }
  0x8c   : > { %925 = vst [vmem:[%s6600_s8 + $0x238] sm:$0xff] %v924_v23  ;;  %v1052_v23 = vld [vmem:[%s6595_s11 + $0x870] sm:$0xff] }
  0x8d   : > { %927 = vst [vmem:[%s6600_s8 + $0x240] sm:$0xff] %v926_v24  ;;  %v1054_v24 = vld [vmem:[%s6595_s11 + $0x880] sm:$0xff] }
  0x8e   : > { %929 = vst [vmem:[%s6600_s8 + $0x248] sm:$0xff] %v928_v25  ;;  %v1056_v25 = vld [vmem:[%s6595_s11 + $0x890] sm:$0xff] }
  0x8f   : > { %931 = vst [vmem:[%s6600_s8 + $0x250] sm:$0xff] %v930_v26  ;;  %v1058_v26 = vld [vmem:[%s6595_s11 + $0x8a0] sm:$0xff] }
  0x90   : > { %933 = vst [vmem:[%s6600_s8 + $0x258] sm:$0xff] %v932_v27  ;;  %v1060_v27 = vld [vmem:[%s6595_s11 + $0x8b0] sm:$0xff] }
  0x91   : > { %935 = vst [vmem:[%s6600_s8 + $0x260] sm:$0xff] %v934_v28  ;;  %v1062_v28 = vld [vmem:[%s6595_s11 + $0x8c0] sm:$0xff] }
  0x92   : > { %937 = vst [vmem:[%s6600_s8 + $0x268] sm:$0xff] %v936_v29  ;;  %v1064_v29 = vld [vmem:[%s6595_s11 + $0x8d0] sm:$0xff] }
  0x93   : > { %939 = vst [vmem:[%s6600_s8 + $0x270] sm:$0xff] %v938_v30  ;;  %v1066_v30 = vld [vmem:[%s6595_s11 + $0x8e0] sm:$0xff] }
  0x94   : > { %941 = vst [vmem:[%s6600_s8 + $0x278] sm:$0xff] %v940_v31  ;;  %v1068_v31 = vld [vmem:[%s6595_s11 + $0x8f0] sm:$0xff] }
  0x95   : > { %943 = vst [vmem:[%s6600_s8 + $0x280] sm:$0xff] %v942_v32  ;;  %v1070_v32 = vld [vmem:[%s6595_s11 + $0x900] sm:$0xff] }
  0x96   : > { %945 = vst [vmem:[%s6600_s8 + $0x288] sm:$0xff] %v944_v33  ;;  %v1072_v33 = vld [vmem:[%s6595_s11 + $0x910] sm:$0xff] }
  0x97   : > { %947 = vst [vmem:[%s6600_s8 + $0x290] sm:$0xff] %v946_v34  ;;  %v1074_v34 = vld [vmem:[%s6595_s11 + $0x920] sm:$0xff] }
  0x98   : > { %949 = vst [vmem:[%s6600_s8 + $0x298] sm:$0xff] %v948_v35  ;;  %v1076_v35 = vld [vmem:[%s6595_s11 + $0x930] sm:$0xff] }
  0x99   : > { %951 = vst [vmem:[%s6600_s8 + $0x2a0] sm:$0xff] %v950_v36  ;;  %v1078_v36 = vld [vmem:[%s6595_s11 + $0x940] sm:$0xff] }
  0x9a   : > { %953 = vst [vmem:[%s6600_s8 + $0x2a8] sm:$0xff] %v952_v37  ;;  %v1080_v37 = vld [vmem:[%s6595_s11 + $0x950] sm:$0xff] }
  0x9b   : > { %955 = vst [vmem:[%s6600_s8 + $0x2b0] sm:$0xff] %v954_v38  ;;  %v1082_v38 = vld [vmem:[%s6595_s11 + $0x960] sm:$0xff] }
  0x9c   : > { %957 = vst [vmem:[%s6600_s8 + $0x2b8] sm:$0xff] %v956_v39  ;;  %v1084_v39 = vld [vmem:[%s6595_s11 + $0x970] sm:$0xff] }
  0x9d   : > { %959 = vst [vmem:[%s6600_s8 + $0x2c0] sm:$0xff] %v958_v40  ;;  %v1086_v40 = vld [vmem:[%s6595_s11 + $0x980] sm:$0xff] }
  0x9e   : > { %961 = vst [vmem:[%s6600_s8 + $0x2c8] sm:$0xff] %v960_v41  ;;  %v1088_v41 = vld [vmem:[%s6595_s11 + $0x990] sm:$0xff] }
  0x9f   : > { %963 = vst [vmem:[%s6600_s8 + $0x2d0] sm:$0xff] %v962_v42  ;;  %v1090_v42 = vld [vmem:[%s6595_s11 + $0x9a0] sm:$0xff] }
  0xa0   : > { %965 = vst [vmem:[%s6600_s8 + $0x2d8] sm:$0xff] %v964_v43  ;;  %v1092_v43 = vld [vmem:[%s6595_s11 + $0x9b0] sm:$0xff] }
  0xa1   : > { %967 = vst [vmem:[%s6600_s8 + $0x2e0] sm:$0xff] %v966_v44  ;;  %v1094_v44 = vld [vmem:[%s6595_s11 + $0x9c0] sm:$0xff] }
  0xa2   : > { %969 = vst [vmem:[%s6600_s8 + $0x2e8] sm:$0xff] %v968_v45  ;;  %v1096_v45 = vld [vmem:[%s6595_s11 + $0x9d0] sm:$0xff] }
  0xa3   : > { %971 = vst [vmem:[%s6600_s8 + $0x2f0] sm:$0xff] %v970_v46  ;;  %v1098_v46 = vld [vmem:[%s6595_s11 + $0x9e0] sm:$0xff] }
  0xa4   : > { %973 = vst [vmem:[%s6600_s8 + $0x2f8] sm:$0xff] %v972_v47  ;;  %v1100_v47 = vld [vmem:[%s6595_s11 + $0x9f0] sm:$0xff] }
  0xa5   : > { %975 = vst [vmem:[%s6600_s8 + $0x300] sm:$0xff] %v974_v48  ;;  %v1102_v48 = vld [vmem:[%s6595_s11 + $0xa00] sm:$0xff] }
  0xa6   : > { %977 = vst [vmem:[%s6600_s8 + $0x308] sm:$0xff] %v976_v49  ;;  %v1104_v49 = vld [vmem:[%s6595_s11 + $0xa10] sm:$0xff] }
  0xa7   : > { %979 = vst [vmem:[%s6600_s8 + $0x310] sm:$0xff] %v978_v50  ;;  %v1106_v50 = vld [vmem:[%s6595_s11 + $0xa20] sm:$0xff] }
  0xa8   : > { %981 = vst [vmem:[%s6600_s8 + $0x318] sm:$0xff] %v980_v51  ;;  %v1108_v51 = vld [vmem:[%s6595_s11 + $0xa30] sm:$0xff] }
  0xa9   : > { %983 = vst [vmem:[%s6600_s8 + $0x320] sm:$0xff] %v982_v52  ;;  %v1110_v52 = vld [vmem:[%s6595_s11 + $0xa40] sm:$0xff] }
  0xaa   : > { %985 = vst [vmem:[%s6600_s8 + $0x328] sm:$0xff] %v984_v53  ;;  %v1112_v53 = vld [vmem:[%s6595_s11 + $0xa50] sm:$0xff] }
  0xab   : > { %987 = vst [vmem:[%s6600_s8 + $0x330] sm:$0xff] %v986_v54  ;;  %v1114_v54 = vld [vmem:[%s6595_s11 + $0xa60] sm:$0xff] }
  0xac   : > { %989 = vst [vmem:[%s6600_s8 + $0x338] sm:$0xff] %v988_v55  ;;  %v1116_v55 = vld [vmem:[%s6595_s11 + $0xa70] sm:$0xff] }
  0xad   : > { %991 = vst [vmem:[%s6600_s8 + $0x340] sm:$0xff] %v990_v56  ;;  %v1118_v56 = vld [vmem:[%s6595_s11 + $0xa80] sm:$0xff] }
  0xae   : > { %993 = vst [vmem:[%s6600_s8 + $0x348] sm:$0xff] %v992_v57  ;;  %v1120_v57 = vld [vmem:[%s6595_s11 + $0xa90] sm:$0xff] }
  0xaf   : > { %995 = vst [vmem:[%s6600_s8 + $0x350] sm:$0xff] %v994_v58  ;;  %v1122_v58 = vld [vmem:[%s6595_s11 + $0xaa0] sm:$0xff] }
  0xb0   : > { %997 = vst [vmem:[%s6600_s8 + $0x358] sm:$0xff] %v996_v59  ;;  %v1124_v59 = vld [vmem:[%s6595_s11 + $0xab0] sm:$0xff] }
  0xb1   : > { %999 = vst [vmem:[%s6600_s8 + $0x360] sm:$0xff] %v998_v60  ;;  %v1126_v60 = vld [vmem:[%s6595_s11 + $0xac0] sm:$0xff] }
  0xb2   : > { %1001 = vst [vmem:[%s6600_s8 + $0x368] sm:$0xff] %v1000_v61  ;;  %v1128_v61 = vld [vmem:[%s6595_s11 + $0xad0] sm:$0xff] }
  0xb3   : > { %1003 = vst [vmem:[%s6600_s8 + $0x370] sm:$0xff] %v1002_v62  ;;  %v1130_v62 = vld [vmem:[%s6595_s11 + $0xae0] sm:$0xff] }
  0xb4   : > { %1005 = vst [vmem:[%s6600_s8 + $0x378] sm:$0xff] %v1004_v63  ;;  %v1132_v63 = vld [vmem:[%s6595_s11 + $0xaf0] sm:$0xff] }
  0xb5   : > { %1007 = vst [vmem:[%s6600_s8 + $0x380] sm:$0xff] %v1006_v0  ;;  %v1134_v0 = vld [vmem:[%s6595_s11 + $0xb00] sm:$0xff] }
  0xb6   : > { %1009 = vst [vmem:[%s6600_s8 + $0x388] sm:$0xff] %v1008_v1  ;;  %v1136_v1 = vld [vmem:[%s6595_s11 + $0xb10] sm:$0xff] }
  0xb7   : > { %1011 = vst [vmem:[%s6600_s8 + $0x390] sm:$0xff] %v1010_v2  ;;  %v1138_v2 = vld [vmem:[%s6595_s11 + $0xb20] sm:$0xff] }
  0xb8   : > { %1013 = vst [vmem:[%s6600_s8 + $0x398] sm:$0xff] %v1012_v3  ;;  %v1140_v3 = vld [vmem:[%s6595_s11 + $0xb30] sm:$0xff] }
  0xb9   : > { %1015 = vst [vmem:[%s6600_s8 + $0x3a0] sm:$0xff] %v1014_v4  ;;  %v1142_v4 = vld [vmem:[%s6595_s11 + $0xb40] sm:$0xff] }
  0xba   : > { %1017 = vst [vmem:[%s6600_s8 + $0x3a8] sm:$0xff] %v1016_v5  ;;  %v1144_v5 = vld [vmem:[%s6595_s11 + $0xb50] sm:$0xff] }
  0xbb   : > { %1019 = vst [vmem:[%s6600_s8 + $0x3b0] sm:$0xff] %v1018_v6  ;;  %v1146_v6 = vld [vmem:[%s6595_s11 + $0xb60] sm:$0xff] }
  0xbc   : > { %1021 = vst [vmem:[%s6600_s8 + $0x3b8] sm:$0xff] %v1020_v7  ;;  %v1148_v7 = vld [vmem:[%s6595_s11 + $0xb70] sm:$0xff] }
  0xbd   : > { %1023 = vst [vmem:[%s6600_s8 + $0x3c0] sm:$0xff] %v1022_v8  ;;  %v1150_v8 = vld [vmem:[%s6595_s11 + $0xb80] sm:$0xff] }
  0xbe   : > { %1025 = vst [vmem:[%s6600_s8 + $0x3c8] sm:$0xff] %v1024_v9  ;;  %v1152_v9 = vld [vmem:[%s6595_s11 + $0xb90] sm:$0xff] }
  0xbf   : > { %1027 = vst [vmem:[%s6600_s8 + $0x3d0] sm:$0xff] %v1026_v10  ;;  %v1154_v10 = vld [vmem:[%s6595_s11 + $0xba0] sm:$0xff] }
  0xc0   : > { %1029 = vst [vmem:[%s6600_s8 + $0x3d8] sm:$0xff] %v1028_v11  ;;  %v1156_v11 = vld [vmem:[%s6595_s11 + $0xbb0] sm:$0xff] }
  0xc1   : > { %1031 = vst [vmem:[%s6600_s8 + $0x3e0] sm:$0xff] %v1030_v12  ;;  %v1158_v12 = vld [vmem:[%s6595_s11 + $0xbc0] sm:$0xff] }
  0xc2   : > { %1033 = vst [vmem:[%s6600_s8 + $0x3e8] sm:$0xff] %v1032_v13  ;;  %v1160_v13 = vld [vmem:[%s6595_s11 + $0xbd0] sm:$0xff] }
  0xc3   : > { %1035 = vst [vmem:[%s6600_s8 + $0x3f0] sm:$0xff] %v1034_v14  ;;  %v1162_v14 = vld [vmem:[%s6595_s11 + $0xbe0] sm:$0xff] }
  0xc4   : > { %1037 = vst [vmem:[%s6600_s8 + $0x3f8] sm:$0xff] %v1036_v15  ;;  %v1164_v15 = vld [vmem:[%s6595_s11 + $0xbf0] sm:$0xff] }
  0xc5   : > { %1039 = vst [vmem:[%s6600_s8 + $0x400] sm:$0xff] %v1038_v16  ;;  %v1166_v16 = vld [vmem:[%s6595_s11 + $0xc00] sm:$0xff] }
  0xc6   : > { %1041 = vst [vmem:[%s6600_s8 + $0x408] sm:$0xff] %v1040_v17  ;;  %v1168_v17 = vld [vmem:[%s6595_s11 + $0xc10] sm:$0xff] }
  0xc7   : > { %1043 = vst [vmem:[%s6600_s8 + $0x410] sm:$0xff] %v1042_v18  ;;  %v1170_v18 = vld [vmem:[%s6595_s11 + $0xc20] sm:$0xff] }
  0xc8   : > { %1045 = vst [vmem:[%s6600_s8 + $0x418] sm:$0xff] %v1044_v19  ;;  %v1172_v19 = vld [vmem:[%s6595_s11 + $0xc30] sm:$0xff] }
  0xc9   : > { %1047 = vst [vmem:[%s6600_s8 + $0x420] sm:$0xff] %v1046_v20  ;;  %v1174_v20 = vld [vmem:[%s6595_s11 + $0xc40] sm:$0xff] }
  0xca   : > { %1049 = vst [vmem:[%s6600_s8 + $0x428] sm:$0xff] %v1048_v21  ;;  %v1176_v21 = vld [vmem:[%s6595_s11 + $0xc50] sm:$0xff] }
  0xcb   : > { %1051 = vst [vmem:[%s6600_s8 + $0x430] sm:$0xff] %v1050_v22  ;;  %v1178_v22 = vld [vmem:[%s6595_s11 + $0xc60] sm:$0xff] }
  0xcc   : > { %1053 = vst [vmem:[%s6600_s8 + $0x438] sm:$0xff] %v1052_v23  ;;  %v1180_v23 = vld [vmem:[%s6595_s11 + $0xc70] sm:$0xff] }
  0xcd   : > { %1055 = vst [vmem:[%s6600_s8 + $0x440] sm:$0xff] %v1054_v24  ;;  %v1182_v24 = vld [vmem:[%s6595_s11 + $0xc80] sm:$0xff] }
  0xce   : > { %1057 = vst [vmem:[%s6600_s8 + $0x448] sm:$0xff] %v1056_v25  ;;  %v1184_v25 = vld [vmem:[%s6595_s11 + $0xc90] sm:$0xff] }
  0xcf   : > { %1059 = vst [vmem:[%s6600_s8 + $0x450] sm:$0xff] %v1058_v26  ;;  %v1186_v26 = vld [vmem:[%s6595_s11 + $0xca0] sm:$0xff] }
  0xd0   : > { %1061 = vst [vmem:[%s6600_s8 + $0x458] sm:$0xff] %v1060_v27  ;;  %v1188_v27 = vld [vmem:[%s6595_s11 + $0xcb0] sm:$0xff] }
  0xd1   : > { %1063 = vst [vmem:[%s6600_s8 + $0x460] sm:$0xff] %v1062_v28  ;;  %v1190_v28 = vld [vmem:[%s6595_s11 + $0xcc0] sm:$0xff] }
  0xd2   : > { %1065 = vst [vmem:[%s6600_s8 + $0x468] sm:$0xff] %v1064_v29  ;;  %v1192_v29 = vld [vmem:[%s6595_s11 + $0xcd0] sm:$0xff] }
  0xd3   : > { %1067 = vst [vmem:[%s6600_s8 + $0x470] sm:$0xff] %v1066_v30  ;;  %v1194_v30 = vld [vmem:[%s6595_s11 + $0xce0] sm:$0xff] }
  0xd4   : > { %1069 = vst [vmem:[%s6600_s8 + $0x478] sm:$0xff] %v1068_v31  ;;  %v1196_v31 = vld [vmem:[%s6595_s11 + $0xcf0] sm:$0xff] }
  0xd5   : > { %1071 = vst [vmem:[%s6600_s8 + $0x480] sm:$0xff] %v1070_v32  ;;  %v1198_v32 = vld [vmem:[%s6595_s11 + $0xd00] sm:$0xff] }
  0xd6   : > { %1073 = vst [vmem:[%s6600_s8 + $0x488] sm:$0xff] %v1072_v33  ;;  %v1200_v33 = vld [vmem:[%s6595_s11 + $0xd10] sm:$0xff] }
  0xd7   : > { %1075 = vst [vmem:[%s6600_s8 + $0x490] sm:$0xff] %v1074_v34  ;;  %v1202_v34 = vld [vmem:[%s6595_s11 + $0xd20] sm:$0xff] }
  0xd8   : > { %1077 = vst [vmem:[%s6600_s8 + $0x498] sm:$0xff] %v1076_v35  ;;  %v1204_v35 = vld [vmem:[%s6595_s11 + $0xd30] sm:$0xff] }
  0xd9   : > { %1079 = vst [vmem:[%s6600_s8 + $0x4a0] sm:$0xff] %v1078_v36  ;;  %v1206_v36 = vld [vmem:[%s6595_s11 + $0xd40] sm:$0xff] }
  0xda   : > { %1081 = vst [vmem:[%s6600_s8 + $0x4a8] sm:$0xff] %v1080_v37  ;;  %v1208_v37 = vld [vmem:[%s6595_s11 + $0xd50] sm:$0xff] }
  0xdb   : > { %1083 = vst [vmem:[%s6600_s8 + $0x4b0] sm:$0xff] %v1082_v38  ;;  %v1210_v38 = vld [vmem:[%s6595_s11 + $0xd60] sm:$0xff] }
  0xdc   : > { %1085 = vst [vmem:[%s6600_s8 + $0x4b8] sm:$0xff] %v1084_v39  ;;  %v1212_v39 = vld [vmem:[%s6595_s11 + $0xd70] sm:$0xff] }
  0xdd   : > { %1087 = vst [vmem:[%s6600_s8 + $0x4c0] sm:$0xff] %v1086_v40  ;;  %v1214_v40 = vld [vmem:[%s6595_s11 + $0xd80] sm:$0xff] }
  0xde   : > { %1089 = vst [vmem:[%s6600_s8 + $0x4c8] sm:$0xff] %v1088_v41  ;;  %v1216_v41 = vld [vmem:[%s6595_s11 + $0xd90] sm:$0xff] }
  0xdf   : > { %1091 = vst [vmem:[%s6600_s8 + $0x4d0] sm:$0xff] %v1090_v42  ;;  %v1218_v42 = vld [vmem:[%s6595_s11 + $0xda0] sm:$0xff] }
  0xe0   : > { %1093 = vst [vmem:[%s6600_s8 + $0x4d8] sm:$0xff] %v1092_v43  ;;  %v1220_v43 = vld [vmem:[%s6595_s11 + $0xdb0] sm:$0xff] }
  0xe1   : > { %1095 = vst [vmem:[%s6600_s8 + $0x4e0] sm:$0xff] %v1094_v44  ;;  %v1222_v44 = vld [vmem:[%s6595_s11 + $0xdc0] sm:$0xff] }
  0xe2   : > { %1097 = vst [vmem:[%s6600_s8 + $0x4e8] sm:$0xff] %v1096_v45  ;;  %v1224_v45 = vld [vmem:[%s6595_s11 + $0xdd0] sm:$0xff] }
  0xe3   : > { %1099 = vst [vmem:[%s6600_s8 + $0x4f0] sm:$0xff] %v1098_v46  ;;  %v1226_v46 = vld [vmem:[%s6595_s11 + $0xde0] sm:$0xff] }
  0xe4   : > { %1101 = vst [vmem:[%s6600_s8 + $0x4f8] sm:$0xff] %v1100_v47  ;;  %v1228_v47 = vld [vmem:[%s6595_s11 + $0xdf0] sm:$0xff] }
  0xe5   : > { %1103 = vst [vmem:[%s6600_s8 + $0x500] sm:$0xff] %v1102_v48  ;;  %v1230_v48 = vld [vmem:[%s6595_s11 + $0xe00] sm:$0xff] }
  0xe6   : > { %1105 = vst [vmem:[%s6600_s8 + $0x508] sm:$0xff] %v1104_v49  ;;  %v1232_v49 = vld [vmem:[%s6595_s11 + $0xe10] sm:$0xff] }
  0xe7   : > { %1107 = vst [vmem:[%s6600_s8 + $0x510] sm:$0xff] %v1106_v50  ;;  %v1234_v50 = vld [vmem:[%s6595_s11 + $0xe20] sm:$0xff] }
  0xe8   : > { %1109 = vst [vmem:[%s6600_s8 + $0x518] sm:$0xff] %v1108_v51  ;;  %v1236_v51 = vld [vmem:[%s6595_s11 + $0xe30] sm:$0xff] }
  0xe9   : > { %1111 = vst [vmem:[%s6600_s8 + $0x520] sm:$0xff] %v1110_v52  ;;  %v1238_v52 = vld [vmem:[%s6595_s11 + $0xe40] sm:$0xff] }
  0xea   : > { %1113 = vst [vmem:[%s6600_s8 + $0x528] sm:$0xff] %v1112_v53  ;;  %v1240_v53 = vld [vmem:[%s6595_s11 + $0xe50] sm:$0xff] }
  0xeb   : > { %1115 = vst [vmem:[%s6600_s8 + $0x530] sm:$0xff] %v1114_v54  ;;  %v1242_v54 = vld [vmem:[%s6595_s11 + $0xe60] sm:$0xff] }
  0xec   : > { %1117 = vst [vmem:[%s6600_s8 + $0x538] sm:$0xff] %v1116_v55  ;;  %v1244_v55 = vld [vmem:[%s6595_s11 + $0xe70] sm:$0xff] }
  0xed   : > { %1119 = vst [vmem:[%s6600_s8 + $0x540] sm:$0xff] %v1118_v56  ;;  %v1246_v56 = vld [vmem:[%s6595_s11 + $0xe80] sm:$0xff] }
  0xee   : > { %1121 = vst [vmem:[%s6600_s8 + $0x548] sm:$0xff] %v1120_v57  ;;  %v1248_v57 = vld [vmem:[%s6595_s11 + $0xe90] sm:$0xff] }
  0xef   : > { %1123 = vst [vmem:[%s6600_s8 + $0x550] sm:$0xff] %v1122_v58  ;;  %v1250_v58 = vld [vmem:[%s6595_s11 + $0xea0] sm:$0xff] }
  0xf0   : > { %1125 = vst [vmem:[%s6600_s8 + $0x558] sm:$0xff] %v1124_v59  ;;  %v1252_v59 = vld [vmem:[%s6595_s11 + $0xeb0] sm:$0xff] }
  0xf1   : > { %1127 = vst [vmem:[%s6600_s8 + $0x560] sm:$0xff] %v1126_v60  ;;  %v1254_v60 = vld [vmem:[%s6595_s11 + $0xec0] sm:$0xff] }
  0xf2   : > { %1129 = vst [vmem:[%s6600_s8 + $0x568] sm:$0xff] %v1128_v61  ;;  %v1256_v61 = vld [vmem:[%s6595_s11 + $0xed0] sm:$0xff] }
  0xf3   : > { %1131 = vst [vmem:[%s6600_s8 + $0x570] sm:$0xff] %v1130_v62  ;;  %v1258_v62 = vld [vmem:[%s6595_s11 + $0xee0] sm:$0xff] }
  0xf4   : > { %1133 = vst [vmem:[%s6600_s8 + $0x578] sm:$0xff] %v1132_v63  ;;  %v1260_v63 = vld [vmem:[%s6595_s11 + $0xef0] sm:$0xff] }
  0xf5   : > { %1135 = vst [vmem:[%s6600_s8 + $0x580] sm:$0xff] %v1134_v0  ;;  %v1262_v0 = vld [vmem:[%s6595_s11 + $0xf00] sm:$0xff] }
  0xf6   : > { %1137 = vst [vmem:[%s6600_s8 + $0x588] sm:$0xff] %v1136_v1  ;;  %v1264_v1 = vld [vmem:[%s6595_s11 + $0xf10] sm:$0xff] }
  0xf7   : > { %1139 = vst [vmem:[%s6600_s8 + $0x590] sm:$0xff] %v1138_v2  ;;  %v1266_v2 = vld [vmem:[%s6595_s11 + $0xf20] sm:$0xff] }
  0xf8   : > { %1141 = vst [vmem:[%s6600_s8 + $0x598] sm:$0xff] %v1140_v3  ;;  %v1268_v3 = vld [vmem:[%s6595_s11 + $0xf30] sm:$0xff] }
  0xf9   : > { %1143 = vst [vmem:[%s6600_s8 + $0x5a0] sm:$0xff] %v1142_v4  ;;  %v1270_v4 = vld [vmem:[%s6595_s11 + $0xf40] sm:$0xff] }
  0xfa   : > { %1145 = vst [vmem:[%s6600_s8 + $0x5a8] sm:$0xff] %v1144_v5  ;;  %v1272_v5 = vld [vmem:[%s6595_s11 + $0xf50] sm:$0xff] }
  0xfb   : > { %1147 = vst [vmem:[%s6600_s8 + $0x5b0] sm:$0xff] %v1146_v6  ;;  %v1274_v6 = vld [vmem:[%s6595_s11 + $0xf60] sm:$0xff] }
  0xfc   : > { %1149 = vst [vmem:[%s6600_s8 + $0x5b8] sm:$0xff] %v1148_v7  ;;  %v1276_v7 = vld [vmem:[%s6595_s11 + $0xf70] sm:$0xff] }
  0xfd   : > { %1151 = vst [vmem:[%s6600_s8 + $0x5c0] sm:$0xff] %v1150_v8  ;;  %v1278_v8 = vld [vmem:[%s6595_s11 + $0xf80] sm:$0xff] }
  0xfe   : > { %1153 = vst [vmem:[%s6600_s8 + $0x5c8] sm:$0xff] %v1152_v9  ;;  %v1280_v9 = vld [vmem:[%s6595_s11 + $0xf90] sm:$0xff] }
  0xff   : > { %1155 = vst [vmem:[%s6600_s8 + $0x5d0] sm:$0xff] %v1154_v10  ;;  %v1282_v10 = vld [vmem:[%s6595_s11 + $0xfa0] sm:$0xff] }
 0x100   : > { %1157 = vst [vmem:[%s6600_s8 + $0x5d8] sm:$0xff] %v1156_v11  ;;  %v1284_v11 = vld [vmem:[%s6595_s11 + $0xfb0] sm:$0xff] }
 0x101   : > { %1159 = vst [vmem:[%s6600_s8 + $0x5e0] sm:$0xff] %v1158_v12  ;;  %v1286_v12 = vld [vmem:[%s6595_s11 + $0xfc0] sm:$0xff] }
 0x102   : > { %1161 = vst [vmem:[%s6600_s8 + $0x5e8] sm:$0xff] %v1160_v13  ;;  %v1288_v13 = vld [vmem:[%s6595_s11 + $0xfd0] sm:$0xff] }
 0x103   : > { %1163 = vst [vmem:[%s6600_s8 + $0x5f0] sm:$0xff] %v1162_v14  ;;  %v1290_v14 = vld [vmem:[%s6595_s11 + $0xfe0] sm:$0xff] }
 0x104   : > { %1165 = vst [vmem:[%s6600_s8 + $0x5f8] sm:$0xff] %v1164_v15  ;;  %v1292_v15 = vld [vmem:[%s6595_s11 + $0xff0] sm:$0xff] }
 0x105   : > { %1167 = vst [vmem:[%s6600_s8 + $0x600] sm:$0xff] %v1166_v16 }
 0x106   : > { %1169 = vst [vmem:[%s6600_s8 + $0x608] sm:$0xff] %v1168_v17 }
 0x107   : > { %1171 = vst [vmem:[%s6600_s8 + $0x610] sm:$0xff] %v1170_v18 }
 0x108   : > { %1173 = vst [vmem:[%s6600_s8 + $0x618] sm:$0xff] %v1172_v19 }
 0x109   : > { %1175 = vst [vmem:[%s6600_s8 + $0x620] sm:$0xff] %v1174_v20 }
 0x10a   : > { %1177 = vst [vmem:[%s6600_s8 + $0x628] sm:$0xff] %v1176_v21 }
 0x10b   : > { %1179 = vst [vmem:[%s6600_s8 + $0x630] sm:$0xff] %v1178_v22 }
 0x10c   : > { %1181 = vst [vmem:[%s6600_s8 + $0x638] sm:$0xff] %v1180_v23 }
 0x10d   : > { %1183 = vst [vmem:[%s6600_s8 + $0x640] sm:$0xff] %v1182_v24 }
 0x10e   : > { %1185 = vst [vmem:[%s6600_s8 + $0x648] sm:$0xff] %v1184_v25 }
 0x10f   : > { %1187 = vst [vmem:[%s6600_s8 + $0x650] sm:$0xff] %v1186_v26 }
 0x110   : > { %1189 = vst [vmem:[%s6600_s8 + $0x658] sm:$0xff] %v1188_v27 }
 0x111   : > { %1191 = vst [vmem:[%s6600_s8 + $0x660] sm:$0xff] %v1190_v28 }
 0x112   : > { %1193 = vst [vmem:[%s6600_s8 + $0x668] sm:$0xff] %v1192_v29 }
 0x113   : > { %1195 = vst [vmem:[%s6600_s8 + $0x670] sm:$0xff] %v1194_v30 }
 0x114   : > { %1197 = vst [vmem:[%s6600_s8 + $0x678] sm:$0xff] %v1196_v31 }
 0x115   : > { %1199 = vst [vmem:[%s6600_s8 + $0x680] sm:$0xff] %v1198_v32 }
 0x116   : > { %1201 = vst [vmem:[%s6600_s8 + $0x688] sm:$0xff] %v1200_v33 }
 0x117   : > { %1203 = vst [vmem:[%s6600_s8 + $0x690] sm:$0xff] %v1202_v34 }
 0x118   : > { %1205 = vst [vmem:[%s6600_s8 + $0x698] sm:$0xff] %v1204_v35 }
 0x119   : > { %1207 = vst [vmem:[%s6600_s8 + $0x6a0] sm:$0xff] %v1206_v36 }
 0x11a   : > { %1209 = vst [vmem:[%s6600_s8 + $0x6a8] sm:$0xff] %v1208_v37 }
 0x11b   : > { %1211 = vst [vmem:[%s6600_s8 + $0x6b0] sm:$0xff] %v1210_v38 }
 0x11c   : > { %1213 = vst [vmem:[%s6600_s8 + $0x6b8] sm:$0xff] %v1212_v39 }
 0x11d   : > { %1215 = vst [vmem:[%s6600_s8 + $0x6c0] sm:$0xff] %v1214_v40 }
 0x11e   : > { %1217 = vst [vmem:[%s6600_s8 + $0x6c8] sm:$0xff] %v1216_v41 }
 0x11f   : > { %1219 = vst [vmem:[%s6600_s8 + $0x6d0] sm:$0xff] %v1218_v42 }
 0x120   : > { %1221 = vst [vmem:[%s6600_s8 + $0x6d8] sm:$0xff] %v1220_v43 }
 0x121   : > { %1223 = vst [vmem:[%s6600_s8 + $0x6e0] sm:$0xff] %v1222_v44 }
 0x122   : > { %1225 = vst [vmem:[%s6600_s8 + $0x6e8] sm:$0xff] %v1224_v45 }
 0x123   : > { %1227 = vst [vmem:[%s6600_s8 + $0x6f0] sm:$0xff] %v1226_v46 }
 0x124   : > { %1229 = vst [vmem:[%s6600_s8 + $0x6f8] sm:$0xff] %v1228_v47 }
 0x125   : > { %1231 = vst [vmem:[%s6600_s8 + $0x700] sm:$0xff] %v1230_v48 }
 0x126   : > { %1233 = vst [vmem:[%s6600_s8 + $0x708] sm:$0xff] %v1232_v49 }
 0x127   : > { %1235 = vst [vmem:[%s6600_s8 + $0x710] sm:$0xff] %v1234_v50 }
 0x128   : > { %1237 = vst [vmem:[%s6600_s8 + $0x718] sm:$0xff] %v1236_v51 }
 0x129   : > { %1239 = vst [vmem:[%s6600_s8 + $0x720] sm:$0xff] %v1238_v52 }
 0x12a   : > { %1241 = vst [vmem:[%s6600_s8 + $0x728] sm:$0xff] %v1240_v53 }
 0x12b   : > { %1243 = vst [vmem:[%s6600_s8 + $0x730] sm:$0xff] %v1242_v54 }
 0x12c   : > { %1245 = vst [vmem:[%s6600_s8 + $0x738] sm:$0xff] %v1244_v55 }
 0x12d   : > { %1247 = vst [vmem:[%s6600_s8 + $0x740] sm:$0xff] %v1246_v56 }
 0x12e   : > { %1249 = vst [vmem:[%s6600_s8 + $0x748] sm:$0xff] %v1248_v57 }
 0x12f   : > { %1251 = vst [vmem:[%s6600_s8 + $0x750] sm:$0xff] %v1250_v58 }
 0x130   : > { %1253 = vst [vmem:[%s6600_s8 + $0x758] sm:$0xff] %v1252_v59 }
 0x131   : > { %1255 = vst [vmem:[%s6600_s8 + $0x760] sm:$0xff] %v1254_v60 }
 0x132   : > { %1257 = vst [vmem:[%s6600_s8 + $0x768] sm:$0xff] %v1256_v61 }
 0x133   : > { %1259 = vst [vmem:[%s6600_s8 + $0x770] sm:$0xff] %v1258_v62 }
 0x134   : > { %1261 = vst [vmem:[%s6600_s8 + $0x778] sm:$0xff] %v1260_v63 }
 0x135   : > { %1263 = vst [vmem:[%s6600_s8 + $0x780] sm:$0xff] %v1262_v0 }
 0x136   : > { %1265 = vst [vmem:[%s6600_s8 + $0x788] sm:$0xff] %v1264_v1 }
 0x137   : > { %1267 = vst [vmem:[%s6600_s8 + $0x790] sm:$0xff] %v1266_v2 }
 0x138   : > { %1269 = vst [vmem:[%s6600_s8 + $0x798] sm:$0xff] %v1268_v3 }
 0x139   : > { %1271 = vst [vmem:[%s6600_s8 + $0x7a0] sm:$0xff] %v1270_v4 }
 0x13a   : > { %1273 = vst [vmem:[%s6600_s8 + $0x7a8] sm:$0xff] %v1272_v5 }
 0x13b   : > { %1275 = vst [vmem:[%s6600_s8 + $0x7b0] sm:$0xff] %v1274_v6 }
 0x13c   : > { %1277 = vst [vmem:[%s6600_s8 + $0x7b8] sm:$0xff] %v1276_v7 }
 0x13d   : > { %1279 = vst [vmem:[%s6600_s8 + $0x7c0] sm:$0xff] %v1278_v8 }
 0x13e   : > { %1281 = vst [vmem:[%s6600_s8 + $0x7c8] sm:$0xff] %v1280_v9 }
 0x13f   : > { %1283 = vst [vmem:[%s6600_s8 + $0x7d0] sm:$0xff] %v1282_v10 }
 0x140   : > { %1285 = vst [vmem:[%s6600_s8 + $0x7d8] sm:$0xff] %v1284_v11 }
 0x141   : > { %1287 = vst [vmem:[%s6600_s8 + $0x7e0] sm:$0xff] %v1286_v12 }
 0x142   : > { %1289 = vst [vmem:[%s6600_s8 + $0x7e8] sm:$0xff] %v1288_v13 }
 0x143   : > { %1291 = vst [vmem:[%s6600_s8 + $0x7f0] sm:$0xff] %v1290_v14 }
 0x144   : > { %1293 = vst [vmem:[%s6600_s8 + $0x7f8] sm:$0xff] %v1292_v15 }
 0x145 PF: > { %p4832_p1 = scmp.ge.s32.totalorder %s6420_s24, 1  ;;  %p2365_p2 = scmp.lt.s32.totalorder %s6420_s24, 9 }
 0x147   : > { %p2366_p3 = pnand %p4832_p1, %p2365_p2 }
 0x148   : > { %s2372_s5 = sand.u32 (!%p2366_p3), 1, %s6388_s16   ;;  %s2379_s25 = sand.u32 (!%p2366_p3), 1, %s6380_s14  }
 0x149   : > { %2369 = sbr.rel (%p2366_p3) target bundleno = 842 (0x34a), region = 99  ;;  %s4833_s26 = sshll.u32 (!%p2366_p3), %s2372_s5, 7 }
 0x14a   : > { %s4834_s27 = sshll.u32 (!%p2366_p3), %s2379_s25, 11  ;;  %s2406_s29 = sand.u32 (!%p2366_p3), 1, %s6372_s12  }
 0x14b   : > { %s7117_s30 = sshll.u32 (!%p2366_p3), %s6400_s19, 1  ;;  %s4835_s4 = sshll.u32 (!%p2366_p3), %s2406_s29, 4 }
 0x14c   : > { %p2414_p4 = scmp.lt.s32.totalorder (!%p2366_p3), %s7117_s30, 3  ;;  %s7127_s0 = scalar_lea.vmem (!%p2366_p3), [#allocation3], %s4833_s26 }
 0x14d   : > { %s7129_s16 = scalar_lea.vmem (!%p2366_p3), [#allocation4], %s4834_s27  ;;  %s7131_s14 = scalar_lea.vmem (!%p2366_p3), [#allocation5], %s4835_s4 }
 0x14e   : > { %s7121_s6 = scalar_select %p2414_p4, %s7117_s30, 3 }
 0x14f   : > { %p4837_p5 = scmp.ne.s32.totalorder %s6396_s18, 0 }
 0x150   : > { %s2416_s8 = scalar_lea.vmem %s7854_s2, %s7121_s6 }
 0x151   : > { %2423 = sbr.rel (%p4837_p5) target bundleno = 347 (0x15b), region = 111 }
 0x156   : > { %v6422_v16 = vmov 0.0  }
 0x157   : > { %2424 = vst [vmem:[#allocation2 + $0x10] sm:$0xff] %v6422_v16 }
 0x158   : > { %2425 = vst [vmem:[#allocation2] sm:$0xff] %v6422_v16 }
 0x159   : > { %2426 = vst [vmem:[#allocation2 + $0x18] sm:$0x1] %v6422_v16 }
 0x15a   : > { %2427 = vst [vmem:[#allocation2 + $0x8] sm:$0x1] %v6422_v16 }
 0x15b PF: > { %v4960_v17 = vld [vmem:[%s7129_s16 + $0x70] sm:$0xf]  ;;  %v5965_v18 = vld [vmem:[%s7129_s16 + $0x74] sm:$0xf0]  ;;  %v4952_v28 = vld [vmem:[%s7129_s16 + $0x60] sm:$0xf] }
 0x15c   : > { %v5024_v19 = vld [vmem:[%s7129_s16 + $0xf0] sm:$0xf]  ;;  %v4961_v20 = vor.u32 %v5965_v18, %v4960_v17  ;;  %v5981_v21 = vld [vmem:[%s7129_s16 + $0xf4] sm:$0xf0]  ;;  %v5963_v30 = vld [vmem:[%s7129_s16 + $0x64] sm:$0xf0] }
 0x15d   : > { %v5088_v22 = vld [vmem:[%s7129_s16 + $0x170] sm:$0xf]  ;;  %v5997_v23 = vld [vmem:[%s7129_s16 + $0x174] sm:$0xf0]  ;;  %v5025_v24 = vor.u32 %v5981_v21, %v5024_v19  ;;  %v5016_v31 = vld [vmem:[%s7129_s16 + $0xe0] sm:$0xf]  ;;  %v4953_v33 = vor.u32 %v5963_v30, %v4952_v28 }
 0x15e   : > { %v5089_v25 = vor.u32 %v5997_v23, %v5088_v22  ;;  %v5152_v26 = vld [vmem:[%s7129_s16 + $0x1f0] sm:$0xf]  ;;  %v6013_v27 = vld [vmem:[%s7129_s16 + $0x1f4] sm:$0xf0]  ;;  %4064 = vmatpush.bf16.msra.mxu0 %v4961_v20  ;;  %v5979_v32 = vld [vmem:[%s7129_s16 + $0xe4] sm:$0xf0] }
 0x15f   : > { %v5153_v29 = vor.u32 %v6013_v27, %v5152_v26  ;;  %4078 = vmatpush.bf16.msra.mxu1 %v5025_v24  ;;  %v5017_v34 = vor.u32 %v5979_v32, %v5016_v31  ;;  %v5080_v35 = vld [vmem:[%s7129_s16 + $0x160] sm:$0xf]  ;;  %v5995_v36 = vld [vmem:[%s7129_s16 + $0x164] sm:$0xf0]  ;;  %v4944_v40 = vld [vmem:[%s7129_s16 + $0x50] sm:$0xf] }
 0x160   : > { %4092 = vmatpush.bf16.msra.mxu2 %v5089_v25  ;;  %v5144_v37 = vld [vmem:[%s7129_s16 + $0x1e0] sm:$0xf]  ;;  %v5081_v38 = vor.u32 %v5995_v36, %v5080_v35  ;;  %v6011_v39 = vld [vmem:[%s7129_s16 + $0x1e4] sm:$0xf0]  ;;  %v5961_v41 = vld [vmem:[%s7129_s16 + $0x54] sm:$0xf0] }
 0x161   : > { %4106 = vmatpush.bf16.msra.mxu3 %v5153_v29  ;;  %v5145_v42 = vor.u32 %v6011_v39, %v5144_v37  ;;  %v5008_v43 = vld [vmem:[%s7129_s16 + $0xd0] sm:$0xf]  ;;  %v5977_v44 = vld [vmem:[%s7129_s16 + $0xd4] sm:$0xf0]  ;;  %v4945_v46 = vor.u32 %v5961_v41, %v4944_v40  ;;  %v4936_v52 = vld [vmem:[%s7129_s16 + $0x40] sm:$0xf] }
 0x162   : > { %v5072_v45 = vld [vmem:[%s7129_s16 + $0x150] sm:$0xf]  ;;  %4065 = vmatpush.bf16.msra.mxu0 %v4953_v33  ;;  %v5993_v47 = vld [vmem:[%s7129_s16 + $0x154] sm:$0xf0]  ;;  %v5009_v50 = vor.u32 %v5977_v44, %v5008_v43  ;;  %v5959_v53 = vld [vmem:[%s7129_s16 + $0x44] sm:$0xf0] }
 0x163   : > { %v5136_v48 = vld [vmem:[%s7129_s16 + $0x1d0] sm:$0xf]  ;;  %v6009_v49 = vld [vmem:[%s7129_s16 + $0x1d4] sm:$0xf0]  ;;  %4079 = vmatpush.bf16.msra.mxu1 %v5017_v34  ;;  %v5073_v51 = vor.u32 %v5993_v47, %v5072_v45  ;;  %v5000_v54 = vld [vmem:[%s7129_s16 + $0xc0] sm:$0xf]  ;;  %v4937_v61 = vor.u32 %v5959_v53, %v4936_v52 }
 0x164   : > { %4093 = vmatpush.bf16.msra.mxu2 %v5081_v38  ;;  %v5137_v55 = vor.u32 %v6009_v49, %v5136_v48  ;;  %v5975_v56 = vld [vmem:[%s7129_s16 + $0xc4] sm:$0xf0]  ;;  %v5064_v57 = vld [vmem:[%s7129_s16 + $0x140] sm:$0xf]  ;;  %v4928_v0 = vld [vmem:[%s7129_s16 + $0x30] sm:$0xf] }
 0x165   : > { %4107 = vmatpush.bf16.msra.mxu3 %v5145_v42  ;;  %v5991_v58 = vld [vmem:[%s7129_s16 + $0x144] sm:$0xf0]  ;;  %v5128_v59 = vld [vmem:[%s7129_s16 + $0x1c0] sm:$0xf]  ;;  %v5001_v62 = vor.u32 %v5975_v56, %v5000_v54  ;;  %v5957_v1 = vld [vmem:[%s7129_s16 + $0x34] sm:$0xf0] }
 0x166   : > { %v6007_v60 = vld [vmem:[%s7129_s16 + $0x1c4] sm:$0xf0]  ;;  %4066 = vmatpush.bf16.msra.mxu0 %v4945_v46  ;;  %v5065_v63 = vor.u32 %v5991_v58, %v5064_v57  ;;  %v4992_v2 = vld [vmem:[%s7129_s16 + $0xb0] sm:$0xf]  ;;  %v5973_v4 = vld [vmem:[%s7129_s16 + $0xb4] sm:$0xf0]  ;;  %v4929_v9 = vor.u32 %v5957_v1, %v4928_v0 }
 0x167   : > { %4080 = vmatpush.bf16.msra.mxu1 %v5009_v50  ;;  %v5129_v3 = vor.u32 %v6007_v60, %v5128_v59  ;;  %v5056_v5 = vld [vmem:[%s7129_s16 + $0x130] sm:$0xf]  ;;  %v5989_v6 = vld [vmem:[%s7129_s16 + $0x134] sm:$0xf0]  ;;  %v4993_v10 = vor.u32 %v5973_v4, %v4992_v2  ;;  %v4920_v12 = vld [vmem:[%s7129_s16 + $0x20] sm:$0xf] }
 0x168   : > { %4094 = vmatpush.bf16.msra.mxu2 %v5073_v51  ;;  %v5120_v7 = vld [vmem:[%s7129_s16 + $0x1b0] sm:$0xf]  ;;  %v6005_v8 = vld [vmem:[%s7129_s16 + $0x1b4] sm:$0xf0]  ;;  %v5057_v11 = vor.u32 %v5989_v6, %v5056_v5  ;;  %v5955_v13 = vld [vmem:[%s7129_s16 + $0x24] sm:$0xf0] }
 0x169   : > { %4108 = vmatpush.bf16.msra.mxu3 %v5137_v55  ;;  %v4984_v14 = vld [vmem:[%s7129_s16 + $0xa0] sm:$0xf]  ;;  %v5121_v15 = vor.u32 %v6005_v8, %v5120_v7  ;;  %v5971_v16 = vld [vmem:[%s7129_s16 + $0xa4] sm:$0xf0]  ;;  %v4921_v21 = vor.u32 %v5955_v13, %v4920_v12  ;;  %v4912_v24 = vld [vmem:[%s7129_s16 + $0x10] sm:$0xf] }
 0x16a   : > { %4067 = vmatpush.bf16.msra.mxu0 %v4937_v61  ;;  %v5048_v17 = vld [vmem:[%s7129_s16 + $0x120] sm:$0xf]  ;;  %v5987_v18 = vld [vmem:[%s7129_s16 + $0x124] sm:$0xf0]  ;;  %v4985_v22 = vor.u32 %v5971_v16, %v4984_v14  ;;  %v5953_v25 = vld [vmem:[%s7129_s16 + $0x14] sm:$0xf0] }
 0x16b   : > { %4081 = vmatpush.bf16.msra.mxu1 %v5001_v62  ;;  %v5112_v19 = vld [vmem:[%s7129_s16 + $0x1a0] sm:$0xf]  ;;  %v6003_v20 = vld [vmem:[%s7129_s16 + $0x1a4] sm:$0xf0]  ;;  %v5049_v23 = vor.u32 %v5987_v18, %v5048_v17  ;;  %v4976_v26 = vld [vmem:[%s7129_s16 + $0x90] sm:$0xf]  ;;  %v4913_v33 = vor.u32 %v5953_v25, %v4912_v24 }
 0x16c   : > { %4095 = vmatpush.bf16.msra.mxu2 %v5065_v63  ;;  %v5113_v27 = vor.u32 %v6003_v20, %v5112_v19  ;;  %v5969_v28 = vld [vmem:[%s7129_s16 + $0x94] sm:$0xf0]  ;;  %v5040_v29 = vld [vmem:[%s7129_s16 + $0x110] sm:$0xf]  ;;  %v4904_v34 = vld [vmem:[%s7129_s16] sm:$0xf] }
 0x16d   : > { %4109 = vmatpush.bf16.msra.mxu3 %v5129_v3  ;;  %v5985_v30 = vld [vmem:[%s7129_s16 + $0x114] sm:$0xf0]  ;;  %v5104_v31 = vld [vmem:[%s7129_s16 + $0x190] sm:$0xf]  ;;  %v5951_v35 = vld [vmem:[%s7129_s16 + $0x4] sm:$0xf0]  ;;  %v4977_v36 = vor.u32 %v5969_v28, %v4976_v26 }
 0x16e   : > { %4068 = vmatpush.bf16.msra.mxu0 %v4929_v9  ;;  %v6001_v32 = vld [vmem:[%s7129_s16 + $0x194] sm:$0xf0]  ;;  %v5041_v37 = vor.u32 %v5985_v30, %v5040_v29  ;;  %v4968_v38 = vld [vmem:[%s7129_s16 + $0x80] sm:$0xf]  ;;  %v5967_v39 = vld [vmem:[%s7129_s16 + $0x84] sm:$0xf0]  ;;  %v4905_v48 = vor.u32 %v5951_v35, %v4904_v34 }
 0x16f   : > { %4082 = vmatpush.bf16.msra.mxu1 %v4993_v10  ;;  %v5032_v40 = vld [vmem:[%s7129_s16 + $0x100] sm:$0xf]  ;;  %v5105_v41 = vor.u32 %v6001_v32, %v5104_v31  ;;  %v5983_v42 = vld [vmem:[%s7129_s16 + $0x104] sm:$0xf0]  ;;  %v5216_v45 = vld [vmem:[%s7129_s16 + $0x270] sm:$0xf]  ;;  %v4969_v52 = vor.u32 %v5967_v39, %v4968_v38 }
 0x170   : > { %4096 = vmatpush.bf16.msra.mxu2 %v5057_v11  ;;  %v5096_v43 = vld [vmem:[%s7129_s16 + $0x180] sm:$0xf]  ;;  %v5999_v44 = vld [vmem:[%s7129_s16 + $0x184] sm:$0xf0]  ;;  %v6029_v46 = vld [vmem:[%s7129_s16 + $0x274] sm:$0xf0]  ;;  %v5033_v53 = vor.u32 %v5983_v42, %v5032_v40 }
 0x171   : > { %4110 = vmatpush.bf16.msra.mxu3 %v5121_v15  ;;  %v5280_v47 = vld [vmem:[%s7129_s16 + $0x2f0] sm:$0xf]  ;;  %v6045_v49 = vld [vmem:[%s7129_s16 + $0x2f4] sm:$0xf0]  ;;  %v5097_v56 = vor.u32 %v5999_v44, %v5096_v43  ;;  %v5217_v57 = vor.u32 %v6029_v46, %v5216_v45  ;;  %v5208_v58 = vld [vmem:[%s7129_s16 + $0x260] sm:$0xf] }
 0x172   : > { %4069 = vmatpush.bf16.msra.mxu0 %v4921_v21  ;;  %v5344_v50 = vld [vmem:[%s7129_s16 + $0x370] sm:$0xf]  ;;  %v6061_v51 = vld [vmem:[%s7129_s16 + $0x374] sm:$0xf0]  ;;  %v6027_v59 = vld [vmem:[%s7129_s16 + $0x264] sm:$0xf0]  ;;  %v5281_v60 = vor.u32 %v6045_v49, %v5280_v47 }
 0x173   : > { %4083 = vmatpush.bf16.msra.mxu1 %v4985_v22  ;;  %v5408_v54 = vld [vmem:[%s7129_s16 + $0x3f0] sm:$0xf]  ;;  %v6077_v55 = vld [vmem:[%s7129_s16 + $0x3f4] sm:$0xf0]  ;;  %v5345_v61 = vor.u32 %v6061_v51, %v5344_v50  ;;  %v5272_v62 = vld [vmem:[%s7129_s16 + $0x2e0] sm:$0xf]  ;;  %v5209_v8 = vor.u32 %v6027_v59, %v5208_v58 }
 0x174   : > { %4097 = vmatpush.bf16.msra.mxu2 %v5049_v23  ;;  %v6043_v63 = vld [vmem:[%s7129_s16 + $0x2e4] sm:$0xf0]  ;;  %v5336_v0 = vld [vmem:[%s7129_s16 + $0x360] sm:$0xf]  ;;  %v5409_v1 = vor.u32 %v6077_v55, %v5408_v54  ;;  %v5200_v9 = vld [vmem:[%s7129_s16 + $0x250] sm:$0xf] }
 0x175   : > { %4111 = vmatpush.bf16.msra.mxu3 %v5113_v27  ;;  %v6059_v2 = vld [vmem:[%s7129_s16 + $0x364] sm:$0xf0]  ;;  %v5400_v3 = vld [vmem:[%s7129_s16 + $0x3e0] sm:$0xf]  ;;  %v6025_v10 = vld [vmem:[%s7129_s16 + $0x254] sm:$0xf0]  ;;  %v5273_v13 = vor.u32 %v6043_v63, %v5272_v62 }
 0x176   : > { %4070 = vmatpush.bf16.msra.mxu0 %v4913_v33  ;;  %v6075_v4 = vld [vmem:[%s7129_s16 + $0x3e4] sm:$0xf0]  ;;  %v4840_v5 = vld [vmem:[%s7127_s0] sm:$0xf]  ;;  %v5337_v14 = vor.u32 %v6059_v2, %v5336_v0  ;;  %v5264_v15 = vld [vmem:[%s7129_s16 + $0x2d0] sm:$0xf]  ;;  %v5201_v26 = vor.u32 %v6025_v10, %v5200_v9 }
 0x177   : > { %4084 = vmatpush.bf16.msra.mxu1 %v4977_v36  ;;  %v5942_v6 = vld [vmem:[%s7127_s0 + $0x3c] sm:$0x10]  ;;  %v4848_v7 = vld [vmem:[%s7127_s0 + $0x8] sm:$0xf]  ;;  %v6041_v16 = vld [vmem:[%s7129_s16 + $0x2d4] sm:$0xf0]  ;;  %v5401_v19 = vor.u32 %v6075_v4, %v5400_v3 }
 0x178   : > { %4098 = vmatpush.bf16.msra.mxu2 %v5041_v37  ;;  %v7219_v11 = vor.u32 %v5942_v6, %v4840_v5  ;;  %v5943_v12 = vld [vmem:[%s7127_s0 + $0x44] sm:$0x10]  ;;  %v5328_v17 = vld [vmem:[%s7129_s16 + $0x350] sm:$0xf]  ;;  %v6057_v20 = vld [vmem:[%s7129_s16 + $0x354] sm:$0xf0]  ;;  %v5265_v29 = vor.u32 %v6041_v16, %v5264_v15 }
 0x179   : > { %4112 = vmatpush.bf16.msra.mxu3 %v5105_v41  ;;  %v7225_v18 = vor.u32 %v5943_v12, %v4848_v7  ;;  %v5392_v21 = vld [vmem:[%s7129_s16 + $0x3d0] sm:$0xf]  ;;  %v6073_v22 = vld [vmem:[%s7129_s16 + $0x3d4] sm:$0xf0]  ;;  %v5934_v23 = vld [vmem:[%s7127_s0 + $0x4] sm:$0xf]  ;;  %v5329_v30 = vor.u32 %v6057_v20, %v5328_v17 }
 0x17a   : > { %4071 = vmatpush.bf16.msra.mxu0 %v4905_v48  ;;  %v4842_v24 = vld [vmem:[%s7127_s0 + $0x40] sm:$0x10]  ;;  %v5935_v25 = vld [vmem:[%s7127_s0 + $0xc] sm:$0xf]  ;;  %v5192_v31 = vld [vmem:[%s7129_s16 + $0x240] sm:$0xf]  ;;  %v5393_v35 = vor.u32 %v6073_v22, %v5392_v21 }
 0x17b   : > { %4085 = vmatpush.bf16.msra.mxu1 %v4969_v52  ;;  %v7235_v27 = vor.u32 %v5934_v23, %v4842_v24  ;;  %v4850_v28 = vld [vmem:[%s7127_s0 + $0x48] sm:$0x10]  ;;  %v6023_v32 = vld [vmem:[%s7129_s16 + $0x244] sm:$0xf0]  ;;  %v5256_v33 = vld [vmem:[%s7129_s16 + $0x2c0] sm:$0xf] }
 0x17c   : > { %4099 = vmatpush.bf16.msra.mxu2 %v5033_v53  ;;  %v7241_v34 = vor.u32 %v5935_v25, %v4850_v28  ;;  %v6039_v36 = vld [vmem:[%s7129_s16 + $0x2c4] sm:$0xf0]  ;;  %v5320_v37 = vld [vmem:[%s7129_s16 + $0x340] sm:$0xf]  ;;  %v5193_v41 = vor.u32 %v6023_v32, %v5192_v31  ;;  %v5184_v44 = vld [vmem:[%s7129_s16 + $0x230] sm:$0xf] }
 0x17d   : > { %4113 = vmatpush.bf16.msra.mxu3 %v5097_v56  ;;  %4072 = vmatmul.bf16.vlgmr.msra.gmra.mxu0 %v7219_v11  ;;  %v6055_v38 = vld [vmem:[%s7129_s16 + $0x344] sm:$0xf0]  ;;  %v5384_v39 = vld [vmem:[%s7129_s16 + $0x3c0] sm:$0xf]  ;;  %v5257_v42 = vor.u32 %v6039_v36, %v5256_v33  ;;  %v6021_v45 = vld [vmem:[%s7129_s16 + $0x234] sm:$0xf0] }
 0x17e   : > { %4120 = vmatpush.bf16.msrb.mxu0 %v5217_v57  ;;  %4086 = vmatmul.bf16.vlgmr.msra.gmra.mxu1 %v7235_v27  ;;  %v6071_v40 = vld [vmem:[%s7129_s16 + $0x3c4] sm:$0xf0]  ;;  %v5321_v43 = vor.u32 %v6055_v38, %v5320_v37  ;;  %v5248_v46 = vld [vmem:[%s7129_s16 + $0x2b0] sm:$0xf]  ;;  %v6037_v48 = vld [vmem:[%s7129_s16 + $0x2b4] sm:$0xf0]  ;;  %v5185_v53 = vor.u32 %v6021_v45, %v5184_v44 }
 0x17f   : > { %4134 = vmatpush.bf16.msrb.mxu1 %v5281_v60  ;;  %4100 = vmatmul.bf16.vlgmr.msra.gmra.mxu2 %v7225_v18  ;;  %v5385_v47 = vor.u32 %v6071_v40, %v5384_v39  ;;  %v5312_v49 = vld [vmem:[%s7129_s16 + $0x330] sm:$0xf]  ;;  %v6053_v50 = vld [vmem:[%s7129_s16 + $0x334] sm:$0xf0]  ;;  %v5249_v54 = vor.u32 %v6037_v48, %v5248_v46  ;;  %v5176_v56 = vld [vmem:[%s7129_s16 + $0x220] sm:$0xf] }
 0x180   : > { %4148 = vmatpush.bf16.msrb.mxu2 %v5345_v61  ;;  %4114 = vmatmul.bf16.vlgmr.msra.gmra.mxu3 %v7241_v34  ;;  %v5376_v51 = vld [vmem:[%s7129_s16 + $0x3b0] sm:$0xf]  ;;  %v6069_v52 = vld [vmem:[%s7129_s16 + $0x3b4] sm:$0xf0]  ;;  %v5313_v55 = vor.u32 %v6053_v50, %v5312_v49  ;;  %v6019_v57 = vld [vmem:[%s7129_s16 + $0x224] sm:$0xf0] }
 0x181   : > { %4162 = vmatpush.bf16.msrb.mxu3 %v5409_v1  ;;  %v5240_v58 = vld [vmem:[%s7129_s16 + $0x2a0] sm:$0xf]  ;;  %v5377_v59 = vor.u32 %v6069_v52, %v5376_v51  ;;  %v6035_v60 = vld [vmem:[%s7129_s16 + $0x2a4] sm:$0xf0]  ;;  %v5177_v1 = vor.u32 %v6019_v57, %v5176_v56  ;;  %v5168_v2 = vld [vmem:[%s7129_s16 + $0x210] sm:$0xf] }
 0x182   : > { %4121 = vmatpush.bf16.msrb.mxu0 %v5209_v8  ;;  %v5304_v61 = vld [vmem:[%s7129_s16 + $0x320] sm:$0xf]  ;;  %v6051_v62 = vld [vmem:[%s7129_s16 + $0x324] sm:$0xf0]  ;;  %v5241_v3 = vor.u32 %v6035_v60, %v5240_v58  ;;  %v6017_v5 = vld [vmem:[%s7129_s16 + $0x214] sm:$0xf0] }
 0x183   : > { %4135 = vmatpush.bf16.msrb.mxu1 %v5273_v13  ;;  %v5368_v63 = vld [vmem:[%s7129_s16 + $0x3a0] sm:$0xf]  ;;  %v6067_v0 = vld [vmem:[%s7129_s16 + $0x3a4] sm:$0xf0]  ;;  %v5305_v4 = vor.u32 %v6051_v62, %v5304_v61  ;;  %v5232_v6 = vld [vmem:[%s7129_s16 + $0x290] sm:$0xf]  ;;  %v5169_v16 = vor.u32 %v6017_v5, %v5168_v2 }
 0x184   : > { %4149 = vmatpush.bf16.msrb.mxu2 %v5337_v14  ;;  %v6033_v7 = vld [vmem:[%s7129_s16 + $0x294] sm:$0xf0]  ;;  %v5369_v8 = vor.u32 %v6067_v0, %v5368_v63  ;;  %v5296_v9 = vld [vmem:[%s7129_s16 + $0x310] sm:$0xf]  ;;  %v5160_v14 = vld [vmem:[%s7129_s16 + $0x200] sm:$0xf] }
 0x185   : > { %4163 = vmatpush.bf16.msrb.mxu3 %v5401_v19  ;;  %v6049_v10 = vld [vmem:[%s7129_s16 + $0x314] sm:$0xf0]  ;;  %v5360_v12 = vld [vmem:[%s7129_s16 + $0x390] sm:$0xf]  ;;  %v6015_v15 = vld [vmem:[%s7129_s16 + $0x204] sm:$0xf0]  ;;  %v5233_v22 = vor.u32 %v6033_v7, %v5232_v6 }
 0x186   : > { %4122 = vmatpush.bf16.msrb.mxu0 %v5201_v26  ;;  %v6065_v13 = vld [vmem:[%s7129_s16 + $0x394] sm:$0xf0]  ;;  %v5224_v17 = vld [vmem:[%s7129_s16 + $0x280] sm:$0xf]  ;;  %v6031_v19 = vld [vmem:[%s7129_s16 + $0x284] sm:$0xf0]  ;;  %v5297_v23 = vor.u32 %v6049_v10, %v5296_v9  ;;  %v5161_v36 = vor.u32 %v6015_v15, %v5160_v14 }
 0x187   : > { %4136 = vmatpush.bf16.msrb.mxu1 %v5265_v29  ;;  %v5288_v20 = vld [vmem:[%s7129_s16 + $0x300] sm:$0xf]  ;;  %v6047_v21 = vld [vmem:[%s7129_s16 + $0x304] sm:$0xf0]  ;;  %v5472_v26 = vld [vmem:[%s7129_s16 + $0x470] sm:$0xf]  ;;  %v5361_v28 = vor.u32 %v6065_v13, %v5360_v12  ;;  %v5225_v40 = vor.u32 %v6031_v19, %v5224_v17 }
 0x188   : > { %4150 = vmatpush.bf16.msrb.mxu2 %v5329_v30  ;;  %v5352_v24 = vld [vmem:[%s7129_s16 + $0x380] sm:$0xf]  ;;  %v6063_v25 = vld [vmem:[%s7129_s16 + $0x384] sm:$0xf0]  ;;  %v6093_v29 = vld [vmem:[%s7129_s16 + $0x474] sm:$0xf0] }
 0x189   : > { %4164 = vmatpush.bf16.msrb.mxu3 %v5393_v35  ;;  %v5536_v30 = vld [vmem:[%s7129_s16 + $0x4f0] sm:$0xf]  ;;  %v6109_v31 = vld [vmem:[%s7129_s16 + $0x4f4] sm:$0xf0]  ;;  %v5936_v44 = vld [vmem:[%s7127_s0 + $0x14] sm:$0xf]  ;;  %v5353_v45 = vor.u32 %v6063_v25, %v5352_v24  ;;  %v5473_v46 = vor.u32 %v6093_v29, %v5472_v26 }
 0x18a   : > { %4123 = vmatpush.bf16.msrb.mxu0 %v5193_v41  ;;  %v5600_v32 = vld [vmem:[%s7129_s16 + $0x570] sm:$0xf]  ;;  %v6125_v33 = vld [vmem:[%s7129_s16 + $0x574] sm:$0xf0]  ;;  %v5289_v41 = vor.u32 %v6047_v21, %v5288_v20  ;;  %v5937_v48 = vld [vmem:[%s7127_s0 + $0x1c] sm:$0xf]  ;;  %v5537_v50 = vor.u32 %v6109_v31, %v5536_v30 }
 0x18b   : > { %4137 = vmatpush.bf16.msrb.mxu1 %v5257_v42  ;;  %v5664_v35 = vld [vmem:[%s7129_s16 + $0x5f0] sm:$0xf]  ;;  %v6141_v37 = vld [vmem:[%s7129_s16 + $0x5f4] sm:$0xf0]  ;;  %v4866_v49 = vld [vmem:[%s7127_s0 + $0x58] sm:$0x10]  ;;  %v5601_v51 = vor.u32 %v6125_v33, %v5600_v32 }
 0x18c   : > { %4151 = vmatpush.bf16.msrb.mxu2 %v5321_v43  ;;  %v4856_v38 = vld [vmem:[%s7127_s0 + $0x10] sm:$0xf]  ;;  %v4864_v42 = vld [vmem:[%s7127_s0 + $0x18] sm:$0xf]  ;;  %v5464_v52 = vld [vmem:[%s7129_s16 + $0x460] sm:$0xf]  ;;  %v7312_v0 = vor.u32 %v5937_v48, %v4866_v49 }
 0x18d   : > { %4165 = vmatpush.bf16.msrb.mxu3 %v5385_v47  ;;  %v5944_v39 = vld [vmem:[%s7127_s0 + $0x4c] sm:$0x10]  ;;  %v5945_v43 = vld [vmem:[%s7127_s0 + $0x54] sm:$0x10]  ;;  %v4858_v47 = vld [vmem:[%s7127_s0 + $0x50] sm:$0x10] }
 0x18e   : > { %4124 = vmatpush.bf16.msrb.mxu0 %v5185_v53  ;;  %v6091_v53 = vld [vmem:[%s7129_s16 + $0x464] sm:$0xf0]  ;;  %v7301_v56 = vor.u32 %v5944_v39, %v4856_v38  ;;  %v5592_v58 = vld [vmem:[%s7129_s16 + $0x560] sm:$0xf]  ;;  %v7306_v60 = vor.u32 %v5945_v43, %v4864_v42  ;;  %v7308_v61 = vor.u32 %v5936_v44, %v4858_v47  ;;  %v6089_v5 = vld [vmem:[%s7129_s16 + $0x454] sm:$0xf0] }
 0x18f   : > { %4138 = vmatpush.bf16.msrb.mxu1 %v5249_v54  ;;  %v5528_v54 = vld [vmem:[%s7129_s16 + $0x4e0] sm:$0xf]  ;;  %v6107_v57 = vld [vmem:[%s7129_s16 + $0x4e4] sm:$0xf0]  ;;  %v5520_v6 = vld [vmem:[%s7129_s16 + $0x4d0] sm:$0xf] }
 0x190   : > { %4152 = vmatpush.bf16.msrb.mxu2 %v5313_v55  ;;  %v5665_v55 = vor.u32 %v6141_v37, %v5664_v35  ;;  %v5656_v62 = vld [vmem:[%s7129_s16 + $0x5e0] sm:$0xf]  ;;  %v6139_v63 = vld [vmem:[%s7129_s16 + $0x5e4] sm:$0xf0]  ;;  %v5529_v2 = vor.u32 %v6107_v57, %v5528_v54  ;;  %v5584_v9 = vld [vmem:[%s7129_s16 + $0x550] sm:$0xf] }
 0x191   : > { %4166 = vmatpush.bf16.msrb.mxu3 %v5377_v59  ;;  %v6123_v59 = vld [vmem:[%s7129_s16 + $0x564] sm:$0xf0]  ;;  %v5657_v7 = vor.u32 %v6139_v63, %v5656_v62  ;;  %v6121_v10 = vld [vmem:[%s7129_s16 + $0x554] sm:$0xf0]  ;;  %v5648_v12 = vld [vmem:[%s7129_s16 + $0x5d0] sm:$0xf] }
 0x192   : > { %4125 = vmatpush.bf16.msrb.mxu0 %v5177_v1  ;;  %v5465_v1 = vor.u32 %v6091_v53, %v5464_v52  ;;  %v6137_v13 = vld [vmem:[%s7129_s16 + $0x5d4] sm:$0xf0]  ;;  %v5448_v17 = vld [vmem:[%s7129_s16 + $0x440] sm:$0xf]  ;;  %v6087_v19 = vld [vmem:[%s7129_s16 + $0x444] sm:$0xf0] }
 0x193   : > { %4139 = vmatpush.bf16.msrb.mxu1 %v5241_v3  ;;  %v5593_v3 = vor.u32 %v6123_v59, %v5592_v58  ;;  %v5512_v20 = vld [vmem:[%s7129_s16 + $0x4c0] sm:$0xf]  ;;  %v5649_v21 = vor.u32 %v6137_v13, %v5648_v12  ;;  %v6119_v24 = vld [vmem:[%s7129_s16 + $0x544] sm:$0xf0]  ;;  %v5440_v31 = vld [vmem:[%s7129_s16 + $0x430] sm:$0xf] }
 0x194   : > { %4153 = vmatpush.bf16.msrb.mxu2 %v5305_v4  ;;  %v5456_v4 = vld [vmem:[%s7129_s16 + $0x450] sm:$0xf]  ;;  %v5640_v25 = vld [vmem:[%s7129_s16 + $0x5c0] sm:$0xf]  ;;  %v6135_v26 = vld [vmem:[%s7129_s16 + $0x5c4] sm:$0xf0] }
 0x195   : > { %4167 = vmatpush.bf16.msrb.mxu3 %v5369_v8  ;;  %v6105_v8 = vld [vmem:[%s7129_s16 + $0x4d4] sm:$0xf0]  ;;  %v5457_v14 = vor.u32 %v6089_v5, %v5456_v4  ;;  %v5504_v33 = vld [vmem:[%s7129_s16 + $0x4b0] sm:$0xf]  ;;  %v5641_v35 = vor.u32 %v6135_v26, %v5640_v25  ;;  %v5432_v44 = vld [vmem:[%s7129_s16 + $0x420] sm:$0xf] }
 0x196   : > { %4126 = vmatpush.bf16.msrb.mxu0 %v5169_v16  ;;  %v5521_v15 = vor.u32 %v6105_v8, %v5520_v6  ;;  %v5585_v16 = vor.u32 %v6121_v10, %v5584_v9  ;;  %v6085_v32 = vld [vmem:[%s7129_s16 + $0x434] sm:$0xf0]  ;;  %v5568_v37 = vld [vmem:[%s7129_s16 + $0x530] sm:$0xf]  ;;  %v6099_v48 = vld [vmem:[%s7129_s16 + $0x4a4] sm:$0xf0] }
 0x197   : > { %4140 = vmatpush.bf16.msrb.mxu1 %v5233_v22  ;;  %v6103_v22 = vld [vmem:[%s7129_s16 + $0x4c4] sm:$0xf0]  ;;  %v6117_v38 = vld [vmem:[%s7129_s16 + $0x534] sm:$0xf0]  ;;  %v5632_v39 = vld [vmem:[%s7129_s16 + $0x5b0] sm:$0xf] }
 0x198   : > { %4154 = vmatpush.bf16.msrb.mxu2 %v5297_v23  ;;  %v5576_v23 = vld [vmem:[%s7129_s16 + $0x540] sm:$0xf]  ;;  %v5513_v29 = vor.u32 %v6103_v22, %v5512_v20  ;;  %v5569_v43 = vor.u32 %v6117_v38, %v5568_v37  ;;  %v6131_v52 = vld [vmem:[%s7129_s16 + $0x5a4] sm:$0xf0]  ;;  %v5424_v54 = vld [vmem:[%s7129_s16 + $0x410] sm:$0xf] }
 0x199   : > { %4168 = vmatpush.bf16.msrb.mxu3 %v5361_v28  ;;  %v5449_v28 = vor.u32 %v6087_v19, %v5448_v17  ;;  %v5577_v30 = vor.u32 %v6119_v24, %v5576_v23  ;;  %v5560_v49 = vld [vmem:[%s7129_s16 + $0x520] sm:$0xf]  ;;  %v6081_v58 = vld [vmem:[%s7129_s16 + $0x414] sm:$0xf0]  ;;  %v5488_v59 = vld [vmem:[%s7129_s16 + $0x490] sm:$0xf] }
 0x19a   : > { %4127 = vmatpush.bf16.msrb.mxu0 %v5161_v36  ;;  %v6101_v36 = vld [vmem:[%s7129_s16 + $0x4b4] sm:$0xf0]  ;;  %v5416_v5 = vld [vmem:[%s7129_s16 + $0x400] sm:$0xf]  ;;  %v6079_v6 = vld [vmem:[%s7129_s16 + $0x404] sm:$0xf0] }
 0x19b   : > { %4141 = vmatpush.bf16.msrb.mxu1 %v5225_v40  ;;  %v6133_v40 = vld [vmem:[%s7129_s16 + $0x5b4] sm:$0xf0]  ;;  %v5505_v42 = vor.u32 %v6101_v36, %v5504_v33  ;;  %v5480_v8 = vld [vmem:[%s7129_s16 + $0x480] sm:$0xf]  ;;  %v6095_v9 = vld [vmem:[%s7129_s16 + $0x484] sm:$0xf0]  ;;  %v5417_v26 = vor.u32 %v6079_v6, %v5416_v5 }
 0x19c   : > { %4155 = vmatpush.bf16.msrb.mxu2 %v5289_v41  ;;  %v5441_v41 = vor.u32 %v6085_v32, %v5440_v31  ;;  %v5633_v47 = vor.u32 %v6133_v40, %v5632_v39  ;;  %v6097_v62 = vld [vmem:[%s7129_s16 + $0x494] sm:$0xf0]  ;;  %v5544_v10 = vld [vmem:[%s7129_s16 + $0x500] sm:$0xf]  ;;  %v6111_v12 = vld [vmem:[%s7129_s16 + $0x504] sm:$0xf0]  ;;  %v5481_v31 = vor.u32 %v6095_v9, %v5480_v8 }
 0x19d   : > { %4169 = vmatpush.bf16.msrb.mxu3 %v5353_v45  ;;  %4128 = vmatmul.bf16.vlgmr.msrb.gmra.mxu0 %v7301_v56  ;;  %v6083_v45 = vld [vmem:[%s7129_s16 + $0x424] sm:$0xf0]  ;;  %v6129_v4 = vld [vmem:[%s7129_s16 + $0x594] sm:$0xf0]  ;;  %v5489_v13 = vor.u32 %v6097_v62, %v5488_v59  ;;  %v5728_v17 = vld [vmem:[%s7129_s16 + $0x670] sm:$0xf]  ;;  %v5545_v32 = vor.u32 %v6111_v12, %v5544_v10 }
 0x19e   : > { %4176 = vmatpush.bf16.msra.mxu0 %v5473_v46  ;;  %4142 = vmatmul.bf16.vlgmr.msrb.gmra.mxu1 %v7308_v61  ;;  %v5496_v46 = vld [vmem:[%s7129_s16 + $0x4a0] sm:$0xf]  ;;  %v5433_v53 = vor.u32 %v6083_v45, %v5432_v44  ;;  %v6157_v20 = vld [vmem:[%s7129_s16 + $0x674] sm:$0xf0]  ;;  %v5856_v23 = vld [vmem:[%s7129_s16 + $0x770] sm:$0xf] }
 0x19f   : > { %4190 = vmatpush.bf16.msra.mxu1 %v5537_v50  ;;  %4156 = vmatmul.bf16.vlgmr.msrb.gmra.mxu2 %v7306_v60  ;;  %v6115_v50 = vld [vmem:[%s7129_s16 + $0x524] sm:$0xf0]  ;;  %v6173_v22 = vld [vmem:[%s7129_s16 + $0x6f4] sm:$0xf0]  ;;  %v5920_v25 = vld [vmem:[%s7129_s16 + $0x7f0] sm:$0xf]  ;;  %v5729_v38 = vor.u32 %v6157_v20, %v5728_v17 }
 0x1a0   : > { %4204 = vmatpush.bf16.msra.mxu2 %v5601_v51  ;;  %4170 = vmatmul.bf16.vlgmr.msrb.gmra.mxu3 %v7312_v0  ;;  %v5624_v51 = vld [vmem:[%s7129_s16 + $0x5a0] sm:$0xf]  ;;  %v5561_v57 = vor.u32 %v6115_v50, %v5560_v49  ;;  %v6189_v24 = vld [vmem:[%s7129_s16 + $0x774] sm:$0xf0]  ;;  %v4880_v33 = vld [vmem:[%s7127_s0 + $0x28] sm:$0xf] }
 0x1a1   : > { %4218 = vmatpush.bf16.msra.mxu3 %v5665_v55  ;;  %v5497_v55 = vor.u32 %v6099_v48, %v5496_v46  ;;  %v5625_v63 = vor.u32 %v6131_v52, %v5624_v51  ;;  %v5938_v36 = vld [vmem:[%s7127_s0 + $0x24] sm:$0xf]  ;;  %v5939_v40 = vld [vmem:[%s7127_s0 + $0x2c] sm:$0xf]  ;;  %v5720_v44 = vld [vmem:[%s7129_s16 + $0x660] sm:$0xf] }
 0x1a2   : > { %4177 = vmatpush.bf16.msra.mxu0 %v5465_v1  ;;  %v5552_v1 = vld [vmem:[%s7129_s16 + $0x510] sm:$0xf]  ;;  %v4874_v39 = vld [vmem:[%s7127_s0 + $0x60] sm:$0x10]  ;;  %v6155_v45 = vld [vmem:[%s7129_s16 + $0x664] sm:$0xf0] }
 0x1a3   : > { %4191 = vmatpush.bf16.msra.mxu1 %v5529_v2  ;;  %v6113_v2 = vld [vmem:[%s7129_s16 + $0x514] sm:$0xf0]  ;;  %v5784_v46 = vld [vmem:[%s7129_s16 + $0x6e0] sm:$0xf]  ;;  %v6171_v49 = vld [vmem:[%s7129_s16 + $0x6e4] sm:$0xf0] }
 0x1a4   : > { %4205 = vmatpush.bf16.msra.mxu2 %v5593_v3  ;;  %v5616_v3 = vld [vmem:[%s7129_s16 + $0x590] sm:$0xf]  ;;  %v5848_v50 = vld [vmem:[%s7129_s16 + $0x760] sm:$0xf]  ;;  %v6187_v51 = vld [vmem:[%s7129_s16 + $0x764] sm:$0xf0]  ;;  %v5785_v59 = vor.u32 %v6171_v49, %v5784_v46 }
 0x1a5   : > { %4219 = vmatpush.bf16.msra.mxu3 %v5657_v7  ;;  %v5425_v7 = vor.u32 %v6081_v58, %v5424_v54  ;;  %v5617_v19 = vor.u32 %v6129_v4, %v5616_v3  ;;  %v5912_v54 = vld [vmem:[%s7129_s16 + $0x7e0] sm:$0xf]  ;;  %v5721_v58 = vor.u32 %v6155_v45, %v5720_v44  ;;  %v5849_v62 = vor.u32 %v6187_v51, %v5848_v50  ;;  %v6169_v4 = vld [vmem:[%s7129_s16 + $0x6d4] sm:$0xf0]  ;;  %v5840_v5 = vld [vmem:[%s7129_s16 + $0x750] sm:$0xf] }
 0x1a6   : > { %4178 = vmatpush.bf16.msra.mxu0 %v5457_v14  ;;  %v5553_v14 = vor.u32 %v6113_v2, %v5552_v1  ;;  %v6153_v1 = vld [vmem:[%s7129_s16 + $0x654] sm:$0xf0]  ;;  %v5776_v2 = vld [vmem:[%s7129_s16 + $0x6d0] sm:$0xf]  ;;  %v6167_v17 = vld [vmem:[%s7129_s16 + $0x6c4] sm:$0xf0] }
 0x1a7   : > { %4192 = vmatpush.bf16.msra.mxu1 %v5521_v15  ;;  %v5608_v15 = vld [vmem:[%s7129_s16 + $0x580] sm:$0xf]  ;;  %v6185_v6 = vld [vmem:[%s7129_s16 + $0x754] sm:$0xf0]  ;;  %v5777_v10 = vor.u32 %v6169_v4, %v5776_v2  ;;  %v6183_v20 = vld [vmem:[%s7129_s16 + $0x744] sm:$0xf0] }
 0x1a8   : > { %4206 = vmatpush.bf16.msra.mxu2 %v5585_v16  ;;  %v6127_v16 = vld [vmem:[%s7129_s16 + $0x584] sm:$0xf0]  ;;  %v6201_v8 = vld [vmem:[%s7129_s16 + $0x7d4] sm:$0xf0]  ;;  %v5841_v12 = vor.u32 %v6185_v6, %v5840_v5  ;;  %v5816_v45 = vld [vmem:[%s7129_s16 + $0x720] sm:$0xf] }
 0x1a9   : > { %4220 = vmatpush.bf16.msra.mxu3 %v5649_v21  ;;  %v5792_v21 = vld [vmem:[%s7129_s16 + $0x6f0] sm:$0xf]  ;;  %v5609_v37 = vor.u32 %v6127_v16, %v5608_v15  ;;  %v5768_v15 = vld [vmem:[%s7129_s16 + $0x6c0] sm:$0xf]  ;;  %v6163_v44 = vld [vmem:[%s7129_s16 + $0x6a4] sm:$0xf0] }
 0x1aa   : > { %4179 = vmatpush.bf16.msra.mxu0 %v5449_v28  ;;  %v6205_v28 = vld [vmem:[%s7129_s16 + $0x7f4] sm:$0xf0]  ;;  %v6179_v46 = vld [vmem:[%s7129_s16 + $0x724] sm:$0xf0]  ;;  %v5680_v51 = vld [vmem:[%s7129_s16 + $0x610] sm:$0xf] }
 0x1ab   : > { %4193 = vmatpush.bf16.msra.mxu1 %v5513_v29  ;;  %v4872_v29 = vld [vmem:[%s7127_s0 + $0x20] sm:$0xf]  ;;  %v6195_v49 = vld [vmem:[%s7129_s16 + $0x7a4] sm:$0xf0]  ;;  %v6177_v2 = vld [vmem:[%s7129_s16 + $0x714] sm:$0xf0] }
 0x1ac   : > { %4207 = vmatpush.bf16.msra.mxu2 %v5577_v30  ;;  %v5946_v30 = vld [vmem:[%s7127_s0 + $0x5c] sm:$0x10]  ;;  %v6193_v4 = vld [vmem:[%s7129_s16 + $0x794] sm:$0xf0]  ;;  %v6143_v6 = vld [vmem:[%s7129_s16 + $0x604] sm:$0xf0] }
 0x1ad   : > { %4221 = vmatpush.bf16.msra.mxu3 %v5641_v35  ;;  %v5947_v35 = vld [vmem:[%s7127_s0 + $0x64] sm:$0x10]  ;;  %v7385_v48 = vor.u32 %v5946_v30, %v4872_v29  ;;  %v5760_v29 = vld [vmem:[%s7129_s16 + $0x6b0] sm:$0xf]  ;;  %v5672_v5 = vld [vmem:[%s7129_s16 + $0x600] sm:$0xf] }
 0x1ae   : > { %4180 = vmatpush.bf16.msra.mxu0 %v5441_v41  ;;  %v4882_v41 = vld [vmem:[%s7127_s0 + $0x68] sm:$0x10]  ;;  %v7390_v52 = vor.u32 %v5947_v35, %v4880_v33  ;;  %v6181_v33 = vld [vmem:[%s7129_s16 + $0x734] sm:$0xf0]  ;;  %v5888_v35 = vld [vmem:[%s7129_s16 + $0x7b0] sm:$0xf] }
 0x1af   : > { %4194 = vmatpush.bf16.msra.mxu1 %v5505_v42  ;;  %v5793_v42 = vor.u32 %v6173_v22, %v5792_v21  ;;  %v5896_v21 = vld [vmem:[%s7129_s16 + $0x7c0] sm:$0xf]  ;;  %v6199_v22 = vld [vmem:[%s7129_s16 + $0x7c4] sm:$0xf0]  ;;  %p5926_p6 = scmp.ne.s32.totalorder %s6396_s18, 1 }
 0x1b0   : > { %4208 = vmatpush.bf16.msra.mxu2 %v5569_v43  ;;  %v5857_v43 = vor.u32 %v6189_v24, %v5856_v23  ;;  %v5769_v24 = vor.u32 %v6167_v17, %v5768_v15  ;;  %v5897_v30 = vor.u32 %v6199_v22, %v5896_v21  ;;  %v5864_v15 = vld [vmem:[%s7129_s16 + $0x780] sm:$0xf]  ;;  %v5964_v17 = vld [vmem:[%s7129_s16 + $0x74] sm:$0xf]  ;;  %v5026_v22 = vld [vmem:[%s7129_s16 + $0xf8] sm:$0xf0] }
 0x1b1   : > { %4222 = vmatpush.bf16.msra.mxu3 %v5633_v47  ;;  %v5921_v47 = vor.u32 %v6205_v28, %v5920_v25  ;;  %v6149_v28 = vld [vmem:[%s7129_s16 + $0x634] sm:$0xf0]  ;;  %v5980_v21 = vld [vmem:[%s7129_s16 + $0xf4] sm:$0xf] }
 0x1b2   : > { %4181 = vmatpush.bf16.msra.mxu0 %v5433_v53  ;;  %v7392_v53 = vor.u32 %v5938_v36, %v4874_v39  ;;  %v6197_v36 = vld [vmem:[%s7129_s16 + $0x7b4] sm:$0xf0] }
 0x1b3   : > { %4195 = vmatpush.bf16.msra.mxu1 %v5497_v55  ;;  %v6203_v55 = vld [vmem:[%s7129_s16 + $0x7e4] sm:$0xf0] }
 0x1b4   : > { %4209 = vmatpush.bf16.msra.mxu2 %v5561_v57  ;;  %v7396_v57 = vor.u32 %v5939_v40, %v4882_v41  ;;  %v5913_v3 = vor.u32 %v6203_v55, %v5912_v54  ;;  %v5688_v40 = vld [vmem:[%s7129_s16 + $0x620] sm:$0xf]  ;;  %v6147_v41 = vld [vmem:[%s7129_s16 + $0x624] sm:$0xf0]  ;;  %v5817_v55 = vor.u32 %v6179_v46, %v5816_v45  ;;  %v4954_v45 = vld [vmem:[%s7129_s16 + $0x68] sm:$0xf0] }
 0x1b5   : > { %4223 = vmatpush.bf16.msra.mxu3 %v5625_v63  ;;  %v5712_v63 = vld [vmem:[%s7129_s16 + $0x650] sm:$0xf]  ;;  %v5689_v50 = vor.u32 %v6147_v41, %v5688_v40  ;;  %v5941_v40 = vld [vmem:[%s7127_s0 + $0x3c] sm:$0xf]  ;;  %v5978_v46 = vld [vmem:[%s7129_s16 + $0xe4] sm:$0xf] }
 0x1b6   : > { %4182 = vmatpush.bf16.msra.mxu0 %v5425_v7  ;;  %v5904_v7 = vld [vmem:[%s7129_s16 + $0x7d0] sm:$0xf]  ;;  %v5713_v9 = vor.u32 %v6153_v1, %v5712_v63  ;;  %v4898_v41 = vld [vmem:[%s7127_s0 + $0x78] sm:$0x10] }
 0x1b7   : > { %4196 = vmatpush.bf16.msra.mxu1 %v5489_v13  ;;  %v5704_v13 = vld [vmem:[%s7129_s16 + $0x640] sm:$0xf]  ;;  %v5905_v16 = vor.u32 %v6201_v8, %v5904_v7  ;;  %v5808_v1 = vld [vmem:[%s7129_s16 + $0x710] sm:$0xf] }
 0x1b8   : > { %4210 = vmatpush.bf16.msra.mxu2 %v5553_v14  ;;  %v6151_v14 = vld [vmem:[%s7129_s16 + $0x644] sm:$0xf0]  ;;  %v5736_v8 = vld [vmem:[%s7129_s16 + $0x680] sm:$0xf] }
 0x1b9   : > { %4224 = vmatpush.bf16.msra.mxu3 %v5617_v19  ;;  %v5832_v19 = vld [vmem:[%s7129_s16 + $0x740] sm:$0xf]  ;;  %v5705_v23 = vor.u32 %v6151_v14, %v5704_v13  ;;  %v5809_v14 = vor.u32 %v6177_v2, %v5808_v1 }
 0x1ba   : > { %4183 = vmatpush.bf16.msra.mxu0 %v5417_v26  ;;  %v5833_v25 = vor.u32 %v6183_v20, %v5832_v19  ;;  %v5696_v26 = vld [vmem:[%s7129_s16 + $0x630] sm:$0xf]  ;;  %v4962_v20 = vld [vmem:[%s7129_s16 + $0x78] sm:$0xf0] }
 0x1bb   : > { %4197 = vmatpush.bf16.msra.mxu1 %v5481_v31  ;;  %v6165_v31 = vld [vmem:[%s7129_s16 + $0x6b4] sm:$0xf0] }
 0x1bc   : > { %4211 = vmatpush.bf16.msra.mxu2 %v5545_v32  ;;  %v5824_v32 = vld [vmem:[%s7129_s16 + $0x730] sm:$0xf] }
 0x1bd   : > { %4225 = vmatpush.bf16.msra.mxu3 %v5609_v37  ;;  %4184 = vmatmul.bf16.vlgmr.msra.gmra.mxu0 %v7385_v48  ;;  %v5697_v37 = vor.u32 %v6149_v28, %v5696_v26  ;;  %v5825_v39 = vor.u32 %v6181_v33, %v5824_v32  ;;  %v5673_v26 = vor.u32 %v6143_v6, %v5672_v5  ;;  %v5154_v28 = vld [vmem:[%s7129_s16 + $0x1f8] sm:$0xf0]  ;;  %v4896_v33 = vld [vmem:[%s7127_s0 + $0x38] sm:$0xf]  ;;  %v5976_v6 = vld [vmem:[%s7129_s16 + $0xd4] sm:$0xf] }
 0x1be   : > { %4232 = vmatpush.bf16.msrb.mxu0 %v5729_v38  ;;  %4198 = vmatmul.bf16.vlgmr.msra.gmra.mxu1 %v7392_v53  ;;  %v5761_v38 = vor.u32 %v6165_v31, %v5760_v29  ;;  %v4888_v29 = vld [vmem:[%s7127_s0 + $0x30] sm:$0xf]  ;;  %v4946_v5 = vld [vmem:[%s7129_s16 + $0x58] sm:$0xf0] }
 0x1bf   : > { %4246 = vmatpush.bf16.msrb.mxu1 %v5793_v42  ;;  %4212 = vmatmul.bf16.vlgmr.msra.gmra.mxu2 %v7390_v52  ;;  %v5752_v42 = vld [vmem:[%s7129_s16 + $0x6a0] sm:$0xf] }
 0x1c0   : > { %4260 = vmatpush.bf16.msrb.mxu2 %v5857_v43  ;;  %4226 = vmatmul.bf16.vlgmr.msra.gmra.mxu3 %v7396_v57  ;;  %v5889_v43 = vor.u32 %v6197_v36, %v5888_v35  ;;  %v5753_v54 = vor.u32 %v6163_v44, %v5752_v42  ;;  %v5949_v35 = vld [vmem:[%s7127_s0 + $0x74] sm:$0x10]  ;;  %v5940_v36 = vld [vmem:[%s7127_s0 + $0x34] sm:$0xf]  ;;  %v5029_v42 = vor.u32 %v5980_v21, %v5026_v22  ;;  %v5962_v44 = vld [vmem:[%s7129_s16 + $0x64] sm:$0xf] }
 0x1c1   : > { %4274 = vmatpush.bf16.msrb.mxu3 %v5921_v47  ;;  %v5880_v47 = vld [vmem:[%s7129_s16 + $0x7a0] sm:$0xf]  ;;  %v4957_v1 = vor.u32 %v5962_v44, %v4954_v45  ;;  %v5002_v22 = vld [vmem:[%s7129_s16 + $0xc8] sm:$0xf0]  ;;  %v5954_v44 = vld [vmem:[%s7129_s16 + $0x24] sm:$0xf] }
 0x1c2   : > { %4233 = vmatpush.bf16.msrb.mxu0 %v5721_v58  ;;  %v6145_v58 = vld [vmem:[%s7129_s16 + $0x614] sm:$0xf0]  ;;  %v5881_v63 = vor.u32 %v6195_v49, %v5880_v47  ;;  %v4922_v45 = vld [vmem:[%s7129_s16 + $0x28] sm:$0xf0] }
 0x1c3   : > { %4247 = vmatpush.bf16.msrb.mxu1 %v5785_v59  ;;  %v5744_v59 = vld [vmem:[%s7129_s16 + $0x690] sm:$0xf]  ;;  %v5681_v7 = vor.u32 %v6145_v58, %v5680_v51  ;;  %v5994_v51 = vld [vmem:[%s7129_s16 + $0x164] sm:$0xf] }
 0x1c4   : > { %4261 = vmatpush.bf16.msrb.mxu2 %v5849_v62  ;;  %v6161_v62 = vld [vmem:[%s7129_s16 + $0x694] sm:$0xf0] }
 0x1c5   : > { %4275 = vmatpush.bf16.msrb.mxu3 %v5913_v3  ;;  %v5872_v3 = vld [vmem:[%s7129_s16 + $0x790] sm:$0xf]  ;;  %v5745_v13 = vor.u32 %v6161_v62, %v5744_v59  ;;  %v6010_v59 = vld [vmem:[%s7129_s16 + $0x1e4] sm:$0xf]  ;;  %v5146_v62 = vld [vmem:[%s7129_s16 + $0x1e8] sm:$0xf0] }
 0x1c6   : > { %4234 = vmatpush.bf16.msrb.mxu0 %v5713_v9  ;;  %v6159_v9 = vld [vmem:[%s7129_s16 + $0x684] sm:$0xf0]  ;;  %v5873_v19 = vor.u32 %v6193_v4, %v5872_v3  ;;  %v5960_v4 = vld [vmem:[%s7129_s16 + $0x54] sm:$0xf] }
 0x1c7   : > { %4248 = vmatpush.bf16.msrb.mxu1 %v5777_v10  ;;  %v5800_v10 = vld [vmem:[%s7129_s16 + $0x700] sm:$0xf]  ;;  %v5737_v31 = vor.u32 %v6159_v9, %v5736_v8  ;;  %v5010_v8 = vld [vmem:[%s7129_s16 + $0xd8] sm:$0xf0]  ;;  %v5992_v9 = vld [vmem:[%s7129_s16 + $0x154] sm:$0xf] }
 0x1c8   : > { %4262 = vmatpush.bf16.msrb.mxu2 %v5841_v12  ;;  %v6175_v12 = vld [vmem:[%s7129_s16 + $0x704] sm:$0xf0] }
 0x1c9   : > { %4276 = vmatpush.bf16.msrb.mxu3 %v5905_v16  ;;  %v6191_v16 = vld [vmem:[%s7129_s16 + $0x784] sm:$0xf0]  ;;  %v5801_v32 = vor.u32 %v6175_v12, %v5800_v10  ;;  %v5074_v10 = vld [vmem:[%s7129_s16 + $0x158] sm:$0xf0]  ;;  %v6008_v12 = vld [vmem:[%s7129_s16 + $0x1d4] sm:$0xf] }
 0x1ca   : > { %4235 = vmatpush.bf16.msrb.mxu0 %v5705_v23  ;;  %v5996_v23 = vld [vmem:[%s7129_s16 + $0x174] sm:$0xf] }
 0x1cb   : > { %4249 = vmatpush.bf16.msrb.mxu1 %v5769_v24  ;;  %v5090_v24 = vld [vmem:[%s7129_s16 + $0x178] sm:$0xf0] }
 0x1cc   : > { %4263 = vmatpush.bf16.msrb.mxu2 %v5833_v25  ;;  %v6012_v25 = vld [vmem:[%s7129_s16 + $0x1f4] sm:$0xf] }
 0x1cd   : > { %4277 = vmatpush.bf16.msrb.mxu3 %v5897_v30  ;;  %v5948_v30 = vld [vmem:[%s7127_s0 + $0x6c] sm:$0x10]  ;;  %v5157_v47 = vor.u32 %v6012_v25, %v5154_v28  ;;  %v6006_v25 = vld [vmem:[%s7129_s16 + $0x1c4] sm:$0xf] }
 0x1ce   : > { %4236 = vmatpush.bf16.msrb.mxu0 %v5697_v37  ;;  %v5865_v37 = vor.u32 %v6191_v16, %v5864_v15  ;;  %v7469_v49 = vor.u32 %v5948_v30, %v4888_v29  ;;  %v5013_v15 = vor.u32 %v5976_v6, %v5010_v8  ;;  %v5077_v16 = vor.u32 %v5992_v9, %v5074_v10  ;;  %v5968_v6 = vld [vmem:[%s7129_s16 + $0x94] sm:$0xf]  ;;  %v4978_v8 = vld [vmem:[%s7129_s16 + $0x98] sm:$0xf0] }
 0x1cf   : > { %4250 = vmatpush.bf16.msrb.mxu1 %v5761_v38  ;;  %v4965_v38 = vor.u32 %v5964_v17, %v4962_v20  ;;  %v5958_v17 = vld [vmem:[%s7129_s16 + $0x44] sm:$0xf]  ;;  %v5984_v9 = vld [vmem:[%s7129_s16 + $0x114] sm:$0xf]  ;;  %v5042_v10 = vld [vmem:[%s7129_s16 + $0x118] sm:$0xf0] }
 0x1d0   : > { %4264 = vmatpush.bf16.msrb.mxu2 %v5825_v39  ;;  %v4890_v39 = vld [vmem:[%s7127_s0 + $0x70] sm:$0x10]  ;;  %v5974_v20 = vld [vmem:[%s7129_s16 + $0xc4] sm:$0xf] }
 0x1d1   : > { %4278 = vmatpush.bf16.msrb.mxu3 %v5889_v43  ;;  %v5093_v43 = vor.u32 %v5996_v23, %v5090_v24  ;;  %v7476_v58 = vor.u32 %v5940_v36, %v4890_v39  ;;  %v5990_v23 = vld [vmem:[%s7129_s16 + $0x144] sm:$0xf]  ;;  %v5066_v24 = vld [vmem:[%s7129_s16 + $0x148] sm:$0xf0]  ;;  %v5005_v29 = vor.u32 %v5974_v20, %v5002_v22  ;;  %v4994_v36 = vld [vmem:[%s7129_s16 + $0xb8] sm:$0xf0] }
 0x1d2   : > { %4237 = vmatpush.bf16.msrb.mxu0 %v5689_v50  ;;  %v5018_v50 = vld [vmem:[%s7129_s16 + $0xe8] sm:$0xf0]  ;;  %v5069_v30 = vor.u32 %v5990_v23, %v5066_v24  ;;  %v6004_v39 = vld [vmem:[%s7129_s16 + $0x1b4] sm:$0xf]  ;;  %v5966_v20 = vld [vmem:[%s7129_s16 + $0x84] sm:$0xf] }
 0x1d3   : > { %4251 = vmatpush.bf16.msrb.mxu1 %v5753_v54  ;;  %v5082_v54 = vld [vmem:[%s7129_s16 + $0x168] sm:$0xf0]  ;;  %v5021_v2 = vor.u32 %v5978_v46, %v5018_v50  ;;  %v5970_v46 = vld [vmem:[%s7129_s16 + $0xa4] sm:$0xf] }
 0x1d4   : > { %4265 = vmatpush.bf16.msrb.mxu2 %v5817_v55  ;;  %v7474_v55 = vor.u32 %v5949_v35, %v4896_v33  ;;  %v5085_v3 = vor.u32 %v5994_v51, %v5082_v54  ;;  %v5972_v33 = vld [vmem:[%s7129_s16 + $0xb4] sm:$0xf]  ;;  %v4986_v50 = vld [vmem:[%s7129_s16 + $0xa8] sm:$0xf0]  ;;  %v5986_v51 = vld [vmem:[%s7129_s16 + $0x124] sm:$0xf] }
 0x1d5   : > { %4279 = vmatpush.bf16.msrb.mxu3 %v5881_v63  ;;  %v7480_v63 = vor.u32 %v5941_v40, %v4898_v41  ;;  %v5122_v40 = vld [vmem:[%s7129_s16 + $0x1b8] sm:$0xf0]  ;;  %v5050_v54 = vld [vmem:[%s7129_s16 + $0x128] sm:$0xf0]  ;;  %v5982_v22 = vld [vmem:[%s7129_s16 + $0x104] sm:$0xf] }
 0x1d6   : > { %4238 = vmatpush.bf16.msrb.mxu0 %v5681_v7  ;;  %v5149_v7 = vor.u32 %v6010_v59, %v5146_v62  ;;  %v6002_v59 = vld [vmem:[%s7129_s16 + $0x1a4] sm:$0xf]  ;;  %v5114_v62 = vld [vmem:[%s7129_s16 + $0x1a8] sm:$0xf0] }
 0x1d7   : > { %4252 = vmatpush.bf16.msrb.mxu1 %v5745_v13  ;;  %v5138_v13 = vld [vmem:[%s7129_s16 + $0x1d8] sm:$0xf0]  ;;  %v5034_v24 = vld [vmem:[%s7129_s16 + $0x108] sm:$0xf0] }
 0x1d8   : > { %4266 = vmatpush.bf16.msrb.mxu2 %v5809_v14  ;;  %v4949_v14 = vor.u32 %v5960_v4, %v4946_v5  ;;  %v5141_v21 = vor.u32 %v6008_v12, %v5138_v13  ;;  %v5952_v4 = vld [vmem:[%s7129_s16 + $0x14] sm:$0xf]  ;;  %v4914_v5 = vld [vmem:[%s7129_s16 + $0x18] sm:$0xf0] }
 0x1d9   : > { %4280 = vmatpush.bf16.msrb.mxu3 %v5873_v19  ;;  %v4938_v19 = vld [vmem:[%s7129_s16 + $0x48] sm:$0xf0]  ;;  %v6000_v12 = vld [vmem:[%s7129_s16 + $0x194] sm:$0xf]  ;;  %v5106_v13 = vld [vmem:[%s7129_s16 + $0x198] sm:$0xf0] }
 0x1da   : > { %4239 = vmatpush.bf16.msrb.mxu0 %v5673_v26  ;;  %v5130_v26 = vld [vmem:[%s7129_s16 + $0x1c8] sm:$0xf0]  ;;  %v4941_v28 = vor.u32 %v5958_v17, %v4938_v19  ;;  %v4981_v17 = vor.u32 %v5968_v6, %v4978_v8  ;;  %v5045_v19 = vor.u32 %v5984_v9, %v5042_v10  ;;  %v5109_v23 = vor.u32 %v6000_v12, %v5106_v13  ;;  %v6040_v6 = vld [vmem:[%s7129_s16 + $0x2d4] sm:$0xf]  ;;  %v5266_v8 = vld [vmem:[%s7129_s16 + $0x2d8] sm:$0xf0] }
 0x1db   : > { %4253 = vmatpush.bf16.msrb.mxu1 %v5737_v31  ;;  %v5956_v31 = vld [vmem:[%s7129_s16 + $0x34] sm:$0xf]  ;;  %v5133_v35 = vor.u32 %v6006_v25, %v5130_v26  ;;  %v5998_v25 = vld [vmem:[%s7129_s16 + $0x184] sm:$0xf]  ;;  %v5098_v26 = vld [vmem:[%s7129_s16 + $0x188] sm:$0xf0] }
 0x1dc   : > { %4267 = vmatpush.bf16.msrb.mxu2 %v5801_v32  ;;  %v4930_v32 = vld [vmem:[%s7129_s16 + $0x38] sm:$0xf0]  ;;  %v6056_v9 = vld [vmem:[%s7129_s16 + $0x354] sm:$0xf] }
 0x1dd   : > { %4281 = vmatpush.bf16.msrb.mxu3 %v5865_v37  ;;  %4240 = vmatmul.bf16.vlgmr.msrb.gmra.mxu0 %v7469_v49  ;;  %v5988_v37 = vld [vmem:[%s7129_s16 + $0x134] sm:$0xf]  ;;  %v4933_v41 = vor.u32 %v5956_v31, %v4930_v32  ;;  %v5282_v32 = vld [vmem:[%s7129_s16 + $0x2f8] sm:$0xf0] }
 0x1de   : > { %4288 = vmatpush.bf16.msra.mxu0 %v4965_v38  ;;  %4254 = vmatmul.bf16.vlgmr.msrb.gmra.mxu1 %v7476_v58  ;;  %v5058_v38 = vld [vmem:[%s7129_s16 + $0x138] sm:$0xf0]  ;;  %v6072_v12 = vld [vmem:[%s7129_s16 + $0x3d4] sm:$0xf] }
 0x1df   : > { %4302 = vmatpush.bf16.msra.mxu1 %v5029_v42  ;;  %4268 = vmatmul.bf16.vlgmr.msrb.gmra.mxu2 %v7474_v55  ;;  %v4997_v42 = vor.u32 %v5972_v33, %v4994_v36  ;;  %v6060_v33 = vld [vmem:[%s7129_s16 + $0x374] sm:$0xf]  ;;  %v5330_v10 = vld [vmem:[%s7129_s16 + $0x358] sm:$0xf0] }
 0x1e0   : > { %4316 = vmatpush.bf16.msra.mxu2 %v5093_v43  ;;  %4282 = vmatmul.bf16.vlgmr.msrb.gmra.mxu3 %v7480_v63  ;;  %v5061_v43 = vor.u32 %v5988_v37, %v5058_v38  ;;  %v5037_v37 = vor.u32 %v5982_v22, %v5034_v24  ;;  %v6076_v38 = vld [vmem:[%s7129_s16 + $0x3f4] sm:$0xf]  ;;  %v5394_v13 = vld [vmem:[%s7129_s16 + $0x3d8] sm:$0xf0]  ;;  %v6070_v22 = vld [vmem:[%s7129_s16 + $0x3c4] sm:$0xf] }
 0x1e1   : > { %4330 = vmatpush.bf16.msra.mxu3 %v5157_v47  ;;  %v5125_v47 = vor.u32 %v6004_v39, %v5122_v40  ;;  %v5410_v39 = vld [vmem:[%s7129_s16 + $0x3f8] sm:$0xf0]  ;;  %v5101_v40 = vor.u32 %v5998_v25, %v5098_v26  ;;  %v6020_v26 = vld [vmem:[%s7129_s16 + $0x234] sm:$0xf] }
 0x1e2   : > { %4289 = vmatpush.bf16.msra.mxu0 %v4957_v1  ;;  %v4925_v1 = vor.u32 %v5954_v44, %v4922_v45  ;;  %v6026_v44 = vld [vmem:[%s7129_s16 + $0x264] sm:$0xf]  ;;  %v5210_v45 = vld [vmem:[%s7129_s16 + $0x268] sm:$0xf0] }
 0x1e3   : > { %4303 = vmatpush.bf16.msra.mxu1 %v5021_v2  ;;  %v4989_v2 = vor.u32 %v5970_v46, %v4986_v50  ;;  %v6042_v46 = vld [vmem:[%s7129_s16 + $0x2e4] sm:$0xf]  ;;  %v5274_v50 = vld [vmem:[%s7129_s16 + $0x2e8] sm:$0xf0] }
 0x1e4   : > { %4317 = vmatpush.bf16.msra.mxu2 %v5085_v3  ;;  %v5053_v3 = vor.u32 %v5986_v51, %v5050_v54  ;;  %v6058_v51 = vld [vmem:[%s7129_s16 + $0x364] sm:$0xf]  ;;  %v5338_v54 = vld [vmem:[%s7129_s16 + $0x368] sm:$0xf0] }
 0x1e5   : > { %4331 = vmatpush.bf16.msra.mxu3 %v5149_v7  ;;  %v5117_v7 = vor.u32 %v6002_v59, %v5114_v62  ;;  %v6074_v59 = vld [vmem:[%s7129_s16 + $0x3e4] sm:$0xf]  ;;  %v5402_v62 = vld [vmem:[%s7129_s16 + $0x3e8] sm:$0xf0] }
 0x1e6   : > { %4290 = vmatpush.bf16.msra.mxu0 %v4949_v14  ;;  %v4917_v14 = vor.u32 %v5952_v4, %v4914_v5  ;;  %v6024_v4 = vld [vmem:[%s7129_s16 + $0x254] sm:$0xf]  ;;  %v5202_v5 = vld [vmem:[%s7129_s16 + $0x258] sm:$0xf0] }
 0x1e7   : > { %4304 = vmatpush.bf16.msra.mxu1 %v5013_v15  ;;  %v5950_v15 = vld [vmem:[%s7129_s16 + $0x4] sm:$0xf] }
 0x1e8   : > { %4318 = vmatpush.bf16.msra.mxu2 %v5077_v16  ;;  %v4906_v16 = vld [vmem:[%s7129_s16 + $0x8] sm:$0xf0] }
 0x1e9   : > { %4332 = vmatpush.bf16.msra.mxu3 %v5141_v21  ;;  %v4970_v21 = vld [vmem:[%s7129_s16 + $0x88] sm:$0xf0]  ;;  %v4909_v31 = vor.u32 %v5950_v15, %v4906_v16  ;;  %v5269_v15 = vor.u32 %v6040_v6, %v5266_v8  ;;  %v5333_v16 = vor.u32 %v6056_v9, %v5330_v10  ;;  %v5298_v6 = vld [vmem:[%s7129_s16 + $0x318] sm:$0xf0]  ;;  %v6014_v10 = vld [vmem:[%s7129_s16 + $0x204] sm:$0xf] }
 0x1ea   : > { %4291 = vmatpush.bf16.msra.mxu0 %v4941_v28  ;;  %v6028_v28 = vld [vmem:[%s7129_s16 + $0x274] sm:$0xf]  ;;  %v4973_v36 = vor.u32 %v5966_v20, %v4970_v21  ;;  %v5258_v20 = vld [vmem:[%s7129_s16 + $0x2c8] sm:$0xf0]  ;;  %v5362_v8 = vld [vmem:[%s7129_s16 + $0x398] sm:$0xf0] }
 0x1eb   : > { %4305 = vmatpush.bf16.msra.mxu1 %v5005_v29  ;;  %v5218_v29 = vld [vmem:[%s7129_s16 + $0x278] sm:$0xf0]  ;;  %v5322_v21 = vld [vmem:[%s7129_s16 + $0x348] sm:$0xf0] }
 0x1ec   : > { %4319 = vmatpush.bf16.msra.mxu2 %v5069_v30  ;;  %v6044_v30 = vld [vmem:[%s7129_s16 + $0x2f4] sm:$0xf] }
 0x1ed   : > { %4333 = vmatpush.bf16.msra.mxu3 %v5133_v35  ;;  %v5346_v35 = vld [vmem:[%s7129_s16 + $0x378] sm:$0xf0] }
 0x1ee   : > { %4292 = vmatpush.bf16.msra.mxu0 %v4933_v41  ;;  %v5221_v41 = vor.u32 %v6028_v28, %v5218_v29  ;;  %v5186_v28 = vld [vmem:[%s7129_s16 + $0x238] sm:$0xf0]  ;;  %v6036_v29 = vld [vmem:[%s7129_s16 + $0x2b4] sm:$0xf] }
 0x1ef   : > { %4306 = vmatpush.bf16.msra.mxu1 %v4997_v42  ;;  %v5285_v42 = vor.u32 %v6044_v30, %v5282_v32  ;;  %v6052_v32 = vld [vmem:[%s7129_s16 + $0x334] sm:$0xf] }
 0x1f0   : > { %4320 = vmatpush.bf16.msra.mxu2 %v5061_v43  ;;  %v5349_v43 = vor.u32 %v6060_v33, %v5346_v35  ;;  %v5314_v33 = vld [vmem:[%s7129_s16 + $0x338] sm:$0xf0]  ;;  %v6068_v35 = vld [vmem:[%s7129_s16 + $0x3b4] sm:$0xf] }
 0x1f1   : > { %4334 = vmatpush.bf16.msra.mxu3 %v5125_v47  ;;  %v5413_v47 = vor.u32 %v6076_v38, %v5410_v39  ;;  %v5317_v39 = vor.u32 %v6052_v32, %v5314_v33 }
 0x1f2   : > { %4293 = vmatpush.bf16.msra.mxu0 %v4925_v1  ;;  %v5213_v1 = vor.u32 %v6026_v44, %v5210_v45  ;;  %v5242_v44 = vld [vmem:[%s7129_s16 + $0x2a8] sm:$0xf0]  ;;  %v6050_v45 = vld [vmem:[%s7129_s16 + $0x324] sm:$0xf] }
 0x1f3   : > { %4307 = vmatpush.bf16.msra.mxu1 %v4989_v2  ;;  %v5277_v2 = vor.u32 %v6042_v46, %v5274_v50  ;;  %v5306_v46 = vld [vmem:[%s7129_s16 + $0x328] sm:$0xf0] }
 0x1f4   : > { %4321 = vmatpush.bf16.msra.mxu2 %v5053_v3  ;;  %v5341_v3 = vor.u32 %v6058_v51, %v5338_v54  ;;  %v5370_v50 = vld [vmem:[%s7129_s16 + $0x3a8] sm:$0xf0] }
 0x1f5   : > { %4335 = vmatpush.bf16.msra.mxu3 %v5117_v7  ;;  %v5405_v7 = vor.u32 %v6074_v59, %v5402_v62  ;;  %v5309_v59 = vor.u32 %v6050_v45, %v5306_v46  ;;  %v6016_v62 = vld [vmem:[%s7129_s16 + $0x214] sm:$0xf] }
 0x1f6   : > { %4294 = vmatpush.bf16.msra.mxu0 %v4917_v14  ;;  %v5205_v14 = vor.u32 %v6024_v4, %v5202_v5  ;;  %v5234_v4 = vld [vmem:[%s7129_s16 + $0x298] sm:$0xf0]  ;;  %v6048_v5 = vld [vmem:[%s7129_s16 + $0x314] sm:$0xf] }
 0x1f7   : > { %4308 = vmatpush.bf16.msra.mxu1 %v4981_v17  ;;  %v5194_v17 = vld [vmem:[%s7129_s16 + $0x248] sm:$0xf0] }
 0x1f8   : > { %4322 = vmatpush.bf16.msra.mxu2 %v5045_v19  ;;  %v6038_v19 = vld [vmem:[%s7129_s16 + $0x2c4] sm:$0xf] }
 0x1f9   : > { %4336 = vmatpush.bf16.msra.mxu3 %v5109_v23  ;;  %v5261_v24 = vor.u32 %v6038_v19, %v5258_v20  ;;  %v5290_v19 = vld [vmem:[%s7129_s16 + $0x308] sm:$0xf0] }
 0x1fa   : > { %4295 = vmatpush.bf16.msra.mxu0 %v4909_v31  ;;  %v5250_v31 = vld [vmem:[%s7129_s16 + $0x2b8] sm:$0xf0]  ;;  %v5354_v20 = vld [vmem:[%s7129_s16 + $0x388] sm:$0xf0] }
 0x1fb   : > { %4309 = vmatpush.bf16.msra.mxu1 %v4973_v36  ;;  %v5378_v36 = vld [vmem:[%s7129_s16 + $0x3b8] sm:$0xf0]  ;;  %v5253_v38 = vor.u32 %v6036_v29, %v5250_v31  ;;  %v6140_v29 = vld [vmem:[%s7129_s16 + $0x5f4] sm:$0xf] }
 0x1fc   : > { %4323 = vmatpush.bf16.msra.mxu2 %v5037_v37  ;;  %v5189_v37 = vor.u32 %v6020_v26, %v5186_v28 }
 0x1fd   : > { %4337 = vmatpush.bf16.msra.mxu3 %v5101_v40  ;;  %4296 = vmatmul.bf16.vlgmr.msra.gmra.mxu0 %v7219_v11  ;;  %v6022_v11 = vld [vmem:[%s7129_s16 + $0x244] sm:$0xf] }
 0x1fe   : > { %4344 = vmatpush.bf16.msrb.mxu0 %v5221_v41  ;;  %4310 = vmatmul.bf16.vlgmr.msra.gmra.mxu1 %v7235_v27  ;;  %v6054_v27 = vld [vmem:[%s7129_s16 + $0x344] sm:$0xf]  ;;  %v5197_v23 = vor.u32 %v6022_v11, %v5194_v17  ;;  %v5178_v41 = vld [vmem:[%s7129_s16 + $0x228] sm:$0xf0] }
 0x1ff   : > { %4358 = vmatpush.bf16.msrb.mxu1 %v5285_v42  ;;  %4324 = vmatmul.bf16.vlgmr.msra.gmra.mxu2 %v7225_v18  ;;  %v5397_v18 = vor.u32 %v6072_v12, %v5394_v13  ;;  %v5325_v25 = vor.u32 %v6054_v27, %v5322_v21  ;;  %v6018_v40 = vld [vmem:[%s7129_s16 + $0x224] sm:$0xf]  ;;  %v5162_v12 = vld [vmem:[%s7129_s16 + $0x208] sm:$0xf0]  ;;  %v6092_v27 = vld [vmem:[%s7129_s16 + $0x474] sm:$0xf] }
 0x200   : > { %4372 = vmatpush.bf16.msrb.mxu2 %v5349_v43  ;;  %4338 = vmatmul.bf16.vlgmr.msra.gmra.mxu3 %v7241_v34  ;;  %v5386_v34 = vld [vmem:[%s7129_s16 + $0x3c8] sm:$0xf0]  ;;  %v6034_v42 = vld [vmem:[%s7129_s16 + $0x2a4] sm:$0xf]  ;;  %v5381_v43 = vor.u32 %v6068_v35, %v5378_v36  ;;  %v5181_v51 = vor.u32 %v6018_v40, %v5178_v41  ;;  %v5474_v21 = vld [vmem:[%s7129_s16 + $0x478] sm:$0xf0] }
 0x201   : > { %4386 = vmatpush.bf16.msrb.mxu3 %v5413_v47  ;;  %v5389_v30 = vor.u32 %v6070_v22, %v5386_v34  ;;  %v6066_v47 = vld [vmem:[%s7129_s16 + $0x3a4] sm:$0xf]  ;;  %v5245_v54 = vor.u32 %v6034_v42, %v5242_v44  ;;  %v6108_v22 = vld [vmem:[%s7129_s16 + $0x4f4] sm:$0xf]  ;;  %v5165_v34 = vor.u32 %v6014_v10, %v5162_v12  ;;  %v5477_v32 = vor.u32 %v6092_v27, %v5474_v21  ;;  %v5530_v40 = vld [vmem:[%s7129_s16 + $0x4e8] sm:$0xf0] }
 0x202   : > { %4345 = vmatpush.bf16.msrb.mxu0 %v5213_v1  ;;  %v5170_v1 = vld [vmem:[%s7129_s16 + $0x218] sm:$0xf0]  ;;  %v6046_v11 = vld [vmem:[%s7129_s16 + $0x304] sm:$0xf]  ;;  %v5594_v42 = vld [vmem:[%s7129_s16 + $0x568] sm:$0xf0] }
 0x203   : > { %4359 = vmatpush.bf16.msrb.mxu1 %v5277_v2  ;;  %v6032_v2 = vld [vmem:[%s7129_s16 + $0x294] sm:$0xf]  ;;  %v5173_v9 = vor.u32 %v6016_v62, %v5170_v1  ;;  %v5293_v28 = vor.u32 %v6046_v11, %v5290_v19  ;;  %v6090_v36 = vld [vmem:[%s7129_s16 + $0x464] sm:$0xf]  ;;  %v5658_v44 = vld [vmem:[%s7129_s16 + $0x5e8] sm:$0xf0] }
 0x204   : > { %4373 = vmatpush.bf16.msrb.mxu2 %v5341_v3  ;;  %v5373_v3 = vor.u32 %v6066_v47, %v5370_v50  ;;  %v5237_v13 = vor.u32 %v6032_v2, %v5234_v4  ;;  %v6122_v41 = vld [vmem:[%s7129_s16 + $0x564] sm:$0xf]  ;;  %v6088_v50 = vld [vmem:[%s7129_s16 + $0x454] sm:$0xf]  ;;  %v5522_v62 = vld [vmem:[%s7129_s16 + $0x4d8] sm:$0xf0] }
 0x205   : > { %4387 = vmatpush.bf16.msrb.mxu3 %v5405_v7  ;;  %v6064_v7 = vld [vmem:[%s7129_s16 + $0x394] sm:$0xf]  ;;  %v5597_v47 = vor.u32 %v6122_v41, %v5594_v42  ;;  %v5586_v2 = vld [vmem:[%s7129_s16 + $0x558] sm:$0xf0]  ;;  %v6118_v10 = vld [vmem:[%s7129_s16 + $0x544] sm:$0xf] }
 0x206   : > { %4346 = vmatpush.bf16.msrb.mxu0 %v5205_v14  ;;  %v5301_v14 = vor.u32 %v6048_v5, %v5298_v6  ;;  %v5365_v17 = vor.u32 %v6064_v7, %v5362_v8  ;;  %v6120_v1 = vld [vmem:[%s7129_s16 + $0x554] sm:$0xf]  ;;  %v5650_v4 = vld [vmem:[%s7129_s16 + $0x5d8] sm:$0xf0]  ;;  %v6086_v7 = vld [vmem:[%s7129_s16 + $0x444] sm:$0xf] }
 0x207   : > { %4360 = vmatpush.bf16.msrb.mxu1 %v5269_v15  ;;  %v6030_v15 = vld [vmem:[%s7129_s16 + $0x284] sm:$0xf]  ;;  %v5589_v6 = vor.u32 %v6120_v1, %v5586_v2  ;;  %v6084_v11 = vld [vmem:[%s7129_s16 + $0x434] sm:$0xf]  ;;  %v5570_v21 = vld [vmem:[%s7129_s16 + $0x538] sm:$0xf0] }
 0x208   : > { %4374 = vmatpush.bf16.msrb.mxu2 %v5333_v16  ;;  %v5226_v16 = vld [vmem:[%s7129_s16 + $0x288] sm:$0xf0]  ;;  %v6102_v8 = vld [vmem:[%s7129_s16 + $0x4c4] sm:$0xf]  ;;  %v6100_v19 = vld [vmem:[%s7129_s16 + $0x4b4] sm:$0xf] }
 0x209   : > { %4388 = vmatpush.bf16.msrb.mxu3 %v5397_v18  ;;  %v6062_v18 = vld [vmem:[%s7129_s16 + $0x384] sm:$0xf]  ;;  %v5229_v26 = vor.u32 %v6030_v15, %v5226_v16  ;;  %v6116_v27 = vld [vmem:[%s7129_s16 + $0x534] sm:$0xf] }
 0x20a   : > { %4347 = vmatpush.bf16.msrb.mxu0 %v5197_v23  ;;  %v5538_v23 = vld [vmem:[%s7129_s16 + $0x4f8] sm:$0xf0]  ;;  %v5357_v31 = vor.u32 %v6062_v18, %v5354_v20  ;;  %v6134_v12 = vld [vmem:[%s7129_s16 + $0x5c4] sm:$0xf]  ;;  %v6080_v42 = vld [vmem:[%s7129_s16 + $0x414] sm:$0xf] }
 0x20b   : > { %4361 = vmatpush.bf16.msrb.mxu1 %v5261_v24  ;;  %v6124_v24 = vld [vmem:[%s7129_s16 + $0x574] sm:$0xf]  ;;  %v5541_v33 = vor.u32 %v6108_v22, %v5538_v23  ;;  %v5506_v20 = vld [vmem:[%s7129_s16 + $0x4b8] sm:$0xf0]  ;;  %v7644_v22 = vpop.f32.mrf.mxu0  ;;  %v6078_v2 = vld [vmem:[%s7129_s16 + $0x404] sm:$0xf] }
 0x20c   : > { %4375 = vmatpush.bf16.msrb.mxu2 %v5325_v25  ;;  %v5602_v25 = vld [vmem:[%s7129_s16 + $0x578] sm:$0xf0] }
 0x20d   : > { %4389 = vmatpush.bf16.msrb.mxu3 %v5389_v30  ;;  %v5666_v30 = vld [vmem:[%s7129_s16 + $0x5f8] sm:$0xf0]  ;;  %v5605_v35 = vor.u32 %v6124_v24, %v5602_v25  ;;  %v7648_v24 = vpop.f32.mrf.mxu1 }
 0x20e   : > { %4348 = vmatpush.bf16.msrb.mxu0 %v5189_v37  ;;  %v5466_v37 = vld [vmem:[%s7129_s16 + $0x468] sm:$0xf0]  ;;  %v5634_v23 = vld [vmem:[%s7129_s16 + $0x5b8] sm:$0xf0] }
 0x20f   : > { %4362 = vmatpush.bf16.msrb.mxu1 %v5253_v38  ;;  %v6106_v38 = vld [vmem:[%s7129_s16 + $0x4e4] sm:$0xf]  ;;  %v5469_v45 = vor.u32 %v6090_v36, %v5466_v37  ;;  %v5562_v36 = vld [vmem:[%s7129_s16 + $0x528] sm:$0xf0] }
 0x210   : > { %4376 = vmatpush.bf16.msrb.mxu2 %v5317_v39  ;;  %v5669_v39 = vor.u32 %v6140_v29, %v5666_v30  ;;  %v5533_v46 = vor.u32 %v6106_v38, %v5530_v40  ;;  %v6082_v29 = vld [vmem:[%s7129_s16 + $0x424] sm:$0xf]  ;;  %v5434_v30 = vld [vmem:[%s7129_s16 + $0x428] sm:$0xf0] }
 0x211   : > { %4390 = vmatpush.bf16.msrb.mxu3 %v5381_v43  ;;  %v6138_v43 = vld [vmem:[%s7129_s16 + $0x5e4] sm:$0xf]  ;;  %v5626_v38 = vld [vmem:[%s7129_s16 + $0x5a8] sm:$0xf0] }
 0x212   : > { %4349 = vmatpush.bf16.msrb.mxu0 %v5181_v51  ;;  %v5458_v51 = vld [vmem:[%s7129_s16 + $0x458] sm:$0xf0]  ;;  %v6130_v37 = vld [vmem:[%s7129_s16 + $0x5a4] sm:$0xf] }
 0x213   : > { %4363 = vmatpush.bf16.msrb.mxu1 %v5245_v54  ;;  %v6104_v54 = vld [vmem:[%s7129_s16 + $0x4d4] sm:$0xf] }
 0x214   : > { %4377 = vmatpush.bf16.msrb.mxu2 %v5309_v59  ;;  %v5661_v59 = vor.u32 %v6138_v43, %v5658_v44  ;;  %v5525_v5 = vor.u32 %v6104_v54, %v5522_v62  ;;  %v5426_v43 = vld [vmem:[%s7129_s16 + $0x418] sm:$0xf0]  ;;  %v6096_v44 = vld [vmem:[%s7129_s16 + $0x494] sm:$0xf]  ;;  %v7666_v54 = vpop.f32.mrf.mxu3 }
 0x215   : > { %4391 = vmatpush.bf16.msrb.mxu3 %v5373_v3  ;;  %v6136_v3 = vld [vmem:[%s7129_s16 + $0x5d4] sm:$0xf]  ;;  %v5618_v62 = vld [vmem:[%s7129_s16 + $0x598] sm:$0xf0]  ;;  %v5429_v1 = vor.u32 %v6080_v42, %v5426_v43 }
 0x216   : > { %4350 = vmatpush.bf16.msrb.mxu0 %v5173_v9  ;;  %v5514_v9 = vld [vmem:[%s7129_s16 + $0x4c8] sm:$0xf0] }
 0x217   : > { %4364 = vmatpush.bf16.msrb.mxu1 %v5237_v13  ;;  %v5642_v13 = vld [vmem:[%s7129_s16 + $0x5c8] sm:$0xf0]  ;;  %v5517_v15 = vor.u32 %v6102_v8, %v5514_v9  ;;  %v7677_v8 = vpop.f32.mrf.mxu1 }
 0x218   : > { %4378 = vmatpush.bf16.msrb.mxu2 %v5301_v14  ;;  %v5645_v18 = vor.u32 %v6134_v12, %v5642_v13  ;;  %v5546_v9 = vld [vmem:[%s7129_s16 + $0x508] sm:$0xf0]  ;;  %v6156_v12 = vld [vmem:[%s7129_s16 + $0x674] sm:$0xf]  ;;  %v5730_v13 = vld [vmem:[%s7129_s16 + $0x678] sm:$0xf0] }
 0x219   : > { %4392 = vmatpush.bf16.msrb.mxu3 %v5365_v17  ;;  %v5442_v17 = vld [vmem:[%s7129_s16 + $0x438] sm:$0xf0] }
 0x21a   : > { %4351 = vmatpush.bf16.msrb.mxu0 %v5165_v34  ;;  %v6132_v34 = vld [vmem:[%s7129_s16 + $0x5b4] sm:$0xf]  ;;  %v5445_v25 = vor.u32 %v6084_v11, %v5442_v17  ;;  %v5858_v17 = vld [vmem:[%s7129_s16 + $0x778] sm:$0xf0] }
 0x21b   : > { %4365 = vmatpush.bf16.msrb.mxu1 %v5229_v26  ;;  %v5509_v26 = vor.u32 %v6100_v19, %v5506_v20  ;;  %v6188_v11 = vld [vmem:[%s7129_s16 + $0x774] sm:$0xf] }
 0x21c   : > { %4379 = vmatpush.bf16.msrb.mxu2 %v5293_v28  ;;  %v5573_v28 = vor.u32 %v6116_v27, %v5570_v21  ;;  %v6204_v20 = vld [vmem:[%s7129_s16 + $0x7f4] sm:$0xf]  ;;  %v5922_v27 = vld [vmem:[%s7129_s16 + $0x7f8] sm:$0xf0] }
 0x21d   : > { %4393 = vmatpush.bf16.msrb.mxu3 %v5357_v31  ;;  %4352 = vmatmul.bf16.vlgmr.msrb.gmra.mxu0 %v7301_v56  ;;  %v5461_v56 = vor.u32 %v6088_v50, %v5458_v51  ;;  %v6098_v31 = vld [vmem:[%s7129_s16 + $0x4a4] sm:$0xf]  ;;  %v6112_v50 = vld [vmem:[%s7129_s16 + $0x514] sm:$0xf]  ;;  %v5554_v51 = vld [vmem:[%s7129_s16 + $0x518] sm:$0xf0] }
 0x21e   : > { %4400 = vmatpush.bf16.msra.mxu0 %v5477_v32  ;;  %4366 = vmatmul.bf16.vlgmr.msrb.gmra.mxu1 %v7308_v61  ;;  %v5653_v61 = vor.u32 %v6136_v3, %v5650_v4  ;;  %v5637_v32 = vor.u32 %v6132_v34, %v5634_v23  ;;  %v5418_v3 = vld [vmem:[%s7129_s16 + $0x408] sm:$0xf0]  ;;  %v7672_v4 = vpop.f32.mrf.mxu0  ;;  %v5733_v34 = vor.u32 %v6156_v12, %v5730_v13 }
 0x21f   : > { %4414 = vmatpush.bf16.msra.mxu1 %v5541_v33  ;;  %4380 = vmatmul.bf16.vlgmr.msrb.gmra.mxu2 %v7306_v60  ;;  %v5450_v60 = vld [vmem:[%s7129_s16 + $0x448] sm:$0xf0] }
 0x220   : > { %4428 = vmatpush.bf16.msra.mxu2 %v5605_v35  ;;  %4394 = vmatmul.bf16.vlgmr.msrb.gmra.mxu3 %v7312_v0  ;;  %v5578_v0 = vld [vmem:[%s7129_s16 + $0x548] sm:$0xf0]  ;;  %v5453_v14 = vor.u32 %v6086_v7, %v5450_v60  ;;  %v6114_v35 = vld [vmem:[%s7129_s16 + $0x524] sm:$0xf] }
 0x221   : > { %4442 = vmatpush.bf16.msra.mxu3 %v5669_v39  ;;  %v5581_v16 = vor.u32 %v6118_v10, %v5578_v0  ;;  %v5498_v33 = vld [vmem:[%s7129_s16 + $0x4a8] sm:$0xf0]  ;;  %v5437_v39 = vor.u32 %v6082_v29, %v5434_v30  ;;  %v5565_v41 = vor.u32 %v6114_v35, %v5562_v36  ;;  %v6110_v60 = vld [vmem:[%s7129_s16 + $0x504] sm:$0xf]  ;;  %v7698_v36 = vpop.f32.mrf.mxu3 }
 0x222   : > { %4401 = vmatpush.bf16.msra.mxu0 %v5469_v45  ;;  %v5501_v40 = vor.u32 %v6098_v31, %v5498_v33  ;;  %v7661_v45 = vpop.f32.mrf.mxu2  ;;  %v5482_v7 = vld [vmem:[%s7129_s16 + $0x488] sm:$0xf0]  ;;  %v6126_v10 = vld [vmem:[%s7129_s16 + $0x584] sm:$0xf]  ;;  %v5925_v31 = vor.u32 %v6204_v20, %v5922_v27  ;;  %v5826_v20 = vld [vmem:[%s7129_s16 + $0x738] sm:$0xf0] }
 0x223   : > { %4415 = vmatpush.bf16.msra.mxu1 %v5533_v46  ;;  %v5629_v46 = vor.u32 %v6130_v37, %v5626_v38  ;;  %v5610_v0 = vld [vmem:[%s7129_s16 + $0x588] sm:$0xf0]  ;;  %v6170_v29 = vld [vmem:[%s7129_s16 + $0x6e4] sm:$0xf] }
 0x224   : > { %4429 = vmatpush.bf16.msra.mxu2 %v5597_v47  ;;  %v5490_v47 = vld [vmem:[%s7129_s16 + $0x498] sm:$0xf0]  ;;  %v5613_v21 = vor.u32 %v6126_v10, %v5610_v0  ;;  %v6186_v33 = vld [vmem:[%s7129_s16 + $0x764] sm:$0xf]  ;;  %v5850_v35 = vld [vmem:[%s7129_s16 + $0x768] sm:$0xf0] }
 0x225   : > { %4443 = vmatpush.bf16.msra.mxu3 %v5661_v59  ;;  %v6128_v59 = vld [vmem:[%s7129_s16 + $0x594] sm:$0xf]  ;;  %v6202_v37 = vld [vmem:[%s7129_s16 + $0x7e4] sm:$0xf]  ;;  %v5914_v38 = vld [vmem:[%s7129_s16 + $0x7e8] sm:$0xf0]  ;;  %v5853_v43 = vor.u32 %v6186_v33, %v5850_v35 }
 0x226   : > { %4402 = vmatpush.bf16.msra.mxu0 %v5461_v56  ;;  %v5493_v56 = vor.u32 %v6096_v44, %v5490_v47  ;;  %v6152_v44 = vld [vmem:[%s7129_s16 + $0x654] sm:$0xf]  ;;  %v6162_v33 = vld [vmem:[%s7129_s16 + $0x6a4] sm:$0xf] }
 0x227   : > { %4416 = vmatpush.bf16.msra.mxu1 %v5525_v5  ;;  %v5557_v5 = vor.u32 %v6112_v50, %v5554_v51  ;;  %v6168_v47 = vld [vmem:[%s7129_s16 + $0x6d4] sm:$0xf]  ;;  %v7707_v50 = vpop.f32.mrf.mxu1  ;;  %v5917_v51 = vor.u32 %v6202_v37, %v5914_v38  ;;  %v5818_v37 = vld [vmem:[%s7129_s16 + $0x728] sm:$0xf0]  ;;  %v6194_v38 = vld [vmem:[%s7129_s16 + $0x7a4] sm:$0xf] }
 0x228   : > { %4430 = vmatpush.bf16.msra.mxu2 %v5589_v6  ;;  %v6094_v6 = vld [vmem:[%s7129_s16 + $0x484] sm:$0xf] }
 0x229   : > { %4444 = vmatpush.bf16.msra.mxu3 %v5653_v61  ;;  %v5621_v61 = vor.u32 %v6128_v59, %v5618_v62  ;;  %v5485_v19 = vor.u32 %v6094_v6, %v5482_v7  ;;  %v5778_v59 = vld [vmem:[%s7129_s16 + $0x6d8] sm:$0xf0]  ;;  %v6200_v62 = vld [vmem:[%s7129_s16 + $0x7d4] sm:$0xf]  ;;  %v5770_v7 = vld [vmem:[%s7129_s16 + $0x6c8] sm:$0xf0]  ;;  %v7730_v12 = vpop.f32.mrf.mxu3 }
 0x22a   : > { %4403 = vmatpush.bf16.msra.mxu0 %v5453_v14  ;;  %v6172_v14 = vld [vmem:[%s7129_s16 + $0x6f4] sm:$0xf]  ;;  %v7693_v30 = vpop.f32.mrf.mxu2 }
 0x22b   : > { %4417 = vmatpush.bf16.msra.mxu1 %v5517_v15  ;;  %v5421_v15 = vor.u32 %v6078_v2, %v5418_v3  ;;  %v5781_v3 = vor.u32 %v6168_v47, %v5778_v59  ;;  %v5682_v47 = vld [vmem:[%s7129_s16 + $0x618] sm:$0xf0] }
 0x22c   : > { %4431 = vmatpush.bf16.msra.mxu2 %v5581_v16  ;;  %v5794_v16 = vld [vmem:[%s7129_s16 + $0x6f8] sm:$0xf0] }
 0x22d   : > { %4445 = vmatpush.bf16.msra.mxu3 %v5645_v18  ;;  %v5549_v18 = vor.u32 %v6110_v60, %v5546_v9  ;;  %v5797_v23 = vor.u32 %v6172_v14, %v5794_v16  ;;  %v5834_v60 = vld [vmem:[%s7129_s16 + $0x748] sm:$0xf0]  ;;  %v5698_v16 = vld [vmem:[%s7129_s16 + $0x638] sm:$0xf0] }
 0x22e   : > { %4404 = vmatpush.bf16.msra.mxu0 %v5445_v25  ;;  %v5861_v25 = vor.u32 %v6188_v11, %v5858_v17  ;;  %v5898_v9 = vld [vmem:[%s7129_s16 + $0x7c8] sm:$0xf0]  ;;  %v6164_v11 = vld [vmem:[%s7129_s16 + $0x6b4] sm:$0xf] }
 0x22f   : > { %4418 = vmatpush.bf16.msra.mxu1 %v5509_v26  ;;  %v6154_v26 = vld [vmem:[%s7129_s16 + $0x664] sm:$0xf] }
 0x230   : > { %4432 = vmatpush.bf16.msra.mxu2 %v5573_v28  ;;  %v5722_v28 = vld [vmem:[%s7129_s16 + $0x668] sm:$0xf0] }
 0x231   : > { %4446 = vmatpush.bf16.msra.mxu3 %v5637_v32  ;;  %v5786_v32 = vld [vmem:[%s7129_s16 + $0x6e8] sm:$0xf0] }
 0x232   : > { %4405 = vmatpush.bf16.msra.mxu0 %v5437_v39  ;;  %v5725_v39 = vor.u32 %v6154_v26, %v5722_v28  ;;  %v5789_v42 = vor.u32 %v6170_v29, %v5786_v32  ;;  %v5690_v32 = vld [vmem:[%s7129_s16 + $0x628] sm:$0xf0] }
 0x233   : > { %4419 = vmatpush.bf16.msra.mxu1 %v5501_v40  ;;  %v4088_v40 = vadd.f32 %v7648_v24, %v7644_v22  ;;  %v6184_v22 = vld [vmem:[%s7129_s16 + $0x754] sm:$0xf]  ;;  %v5842_v24 = vld [vmem:[%s7129_s16 + $0x758] sm:$0xf0] }
 0x234   : > { %4433 = vmatpush.bf16.msra.mxu2 %v5565_v41  ;;  %v4129_v41 = vpop.f32.mrf.mxu0 }
 0x235   : > { %4447 = vmatpush.bf16.msra.mxu3 %v5629_v46  ;;  %v5714_v46 = vld [vmem:[%s7129_s16 + $0x658] sm:$0xf0]  ;;  %v4102_v2 = vadd.f32 %v7661_v45, %v4088_v40  ;;  %v7727_v45 = vpop.f32.mrf.mxu2 }
 0x236   : > { %4406 = vmatpush.bf16.msra.mxu0 %v5429_v1  ;;  %v5906_v1 = vld [vmem:[%s7129_s16 + $0x7d8] sm:$0xf0] }
 0x237   : > { %4420 = vmatpush.bf16.msra.mxu1 %v5493_v56  ;;  %v5845_v56 = vor.u32 %v6184_v22, %v5842_v24  ;;  %v5909_v6 = vor.u32 %v6200_v62, %v5906_v1  ;;  %v4116_v0 = vadd.f32 %v7666_v54, %v4102_v2  ;;  %v6196_v54 = vld [vmem:[%s7129_s16 + $0x7b4] sm:$0xf]  ;;  %v5746_v24 = vld [vmem:[%s7129_s16 + $0x698] sm:$0xf0]  ;;  %v4173_v1 = vpop.f32.mrf.mxu3 }
 0x238   : > { %4434 = vmatpush.bf16.msra.mxu2 %v5557_v5  ;;  %v5706_v5 = vld [vmem:[%s7129_s16 + $0x648] sm:$0xf0]  ;;  %v5810_v62 = vld [vmem:[%s7129_s16 + $0x718] sm:$0xf0] }
 0x239   : > { %4448 = vmatpush.bf16.msra.mxu3 %v5621_v61  ;;  %v6198_v61 = vld [vmem:[%s7129_s16 + $0x7c4] sm:$0xf]  ;;  %v4130_v26 = vadd.f32 %v4129_v41, %v4116_v0  ;;  %v5874_v2 = vld [vmem:[%s7129_s16 + $0x798] sm:$0xf0] }
 0x23a   : > { %4407 = vmatpush.bf16.msra.mxu0 %v5421_v15  ;;  %v6148_v15 = vld [vmem:[%s7129_s16 + $0x634] sm:$0xf]  ;;  %v5901_v17 = vor.u32 %v6198_v61, %v5898_v9  ;;  %v5738_v9 = vld [vmem:[%s7129_s16 + $0x688] sm:$0xf0] }
 0x23b   : > { %4421 = vmatpush.bf16.msra.mxu1 %v5485_v19  ;;  %v5762_v19 = vld [vmem:[%s7129_s16 + $0x6b8] sm:$0xf0] }
 0x23c   : > { %4435 = vmatpush.bf16.msra.mxu2 %v5549_v18  ;;  %v6180_v18 = vld [vmem:[%s7129_s16 + $0x734] sm:$0xf]  ;;  %v4131_v27 = vpop.f32.mrf.mxu0  ;;  %v5765_v28 = vor.u32 %v6164_v11, %v5762_v19 }
 0x23d   : > { %4449 = vmatpush.bf16.msra.mxu3 %v5613_v21  ;;  %4408 = vmatmul.bf16.vlgmr.msra.gmra.mxu0 %v7385_v48  ;;  %v5717_v48 = vor.u32 %v6152_v44, %v5714_v46  ;;  %v5890_v21 = vld [vmem:[%s7129_s16 + $0x7b8] sm:$0xf0]  ;;  %v5829_v29 = vor.u32 %v6180_v18, %v5826_v20  ;;  %v6144_v46 = vld [vmem:[%s7129_s16 + $0x614] sm:$0xf]  ;;  %v4159_v59 = vpop.f32.mrf.mxu2 }
 0x23e   : > { %4456 = vmatpush.bf16.msrb.mxu0 %v5733_v34  ;;  %4422 = vmatmul.bf16.vlgmr.msra.gmra.mxu1 %v7392_v53  ;;  %v6166_v53 = vld [vmem:[%s7129_s16 + $0x6c4] sm:$0xf]  ;;  %v4090_v34 = vadd.f32 %v7677_v8, %v7672_v4  ;;  %v5893_v35 = vor.u32 %v6196_v54, %v5890_v21  ;;  %v5754_v4 = vld [vmem:[%s7129_s16 + $0x6a8] sm:$0xf0] }
 0x23f   : > { %4470 = vmatpush.bf16.msrb.mxu1 %v5797_v23  ;;  %4436 = vmatmul.bf16.vlgmr.msra.gmra.mxu2 %v7390_v52  ;;  %v6150_v52 = vld [vmem:[%s7129_s16 + $0x644] sm:$0xf]  ;;  %v5773_v13 = vor.u32 %v6166_v53, %v5770_v7  ;;  %v7742_v23 = vpop.f32.mrf.mxu1 }
 0x240   : > { %4484 = vmatpush.bf16.msrb.mxu2 %v5861_v25  ;;  %4450 = vmatmul.bf16.vlgmr.msra.gmra.mxu3 %v7396_v57  ;;  %v6182_v57 = vld [vmem:[%s7129_s16 + $0x744] sm:$0xf]  ;;  %v5709_v10 = vor.u32 %v6150_v52, %v5706_v5  ;;  %v5701_v25 = vor.u32 %v6148_v15, %v5698_v16  ;;  %v4104_v40 = vadd.f32 %v7693_v30, %v4090_v34  ;;  %v6176_v30 = vld [vmem:[%s7129_s16 + $0x714] sm:$0xf] }
 0x241   : > { %4498 = vmatpush.bf16.msrb.mxu3 %v5925_v31  ;;  %v5837_v14 = vor.u32 %v6182_v57, %v5834_v60  ;;  %v6146_v31 = vld [vmem:[%s7129_s16 + $0x624] sm:$0xf]  ;;  %v5685_v52 = vor.u32 %v6144_v46, %v5682_v47  ;;  %v5674_v57 = vld [vmem:[%s7129_s16 + $0x608] sm:$0xf0] }
 0x242   : > { %4457 = vmatpush.bf16.msrb.mxu0 %v5725_v39  ;;  %v6178_v8 = vld [vmem:[%s7129_s16 + $0x724] sm:$0xf]  ;;  %v5882_v39 = vld [vmem:[%s7129_s16 + $0x7a8] sm:$0xf0]  ;;  %v5693_v41 = vor.u32 %v6146_v31, %v5690_v32 }
 0x243   : > { %4471 = vmatpush.bf16.msrb.mxu1 %v5789_v42  ;;  %v4144_v42 = vadd.f32 %v7707_v50, %v4130_v26  ;;  %v5821_v44 = vor.u32 %v6178_v8, %v5818_v37  ;;  %v5885_v22 = vor.u32 %v6194_v38, %v5882_v39  ;;  %v6142_v7 = vld [vmem:[%s7129_s16 + $0x604] sm:$0xf]  ;;  %v4227_v54 = vpop.f32.mrf.mxu3 }
 0x244   : > { %4485 = vmatpush.bf16.msrb.mxu2 %v5853_v43  ;;  %v5757_v43 = vor.u32 %v6162_v33, %v5754_v4  ;;  %v4185_v50 = vpop.f32.mrf.mxu0  ;;  %v6158_v60 = vld [vmem:[%s7129_s16 + $0x684] sm:$0xf]  ;;  %v5677_v15 = vor.u32 %v6142_v7, %v5674_v57 }
 0x245   : > { %4499 = vmatpush.bf16.msrb.mxu3 %v5917_v51  ;;  %v6160_v51 = vld [vmem:[%s7129_s16 + $0x694] sm:$0xf]  ;;  %v4158_v5 = vadd.f32 %v7727_v45, %v4144_v42  ;;  %v5741_v45 = vor.u32 %v6158_v60, %v5738_v9 }
 0x246   : > { %4458 = vmatpush.bf16.msrb.mxu0 %v5717_v48  ;;  %v6192_v48 = vld [vmem:[%s7129_s16 + $0x794] sm:$0xf]  ;;  %v5749_v53 = vor.u32 %v6160_v51, %v5746_v24 }
 0x247   : > { %4472 = vmatpush.bf16.msrb.mxu1 %v5781_v3  ;;  %v4118_v3 = vadd.f32 %v7698_v36, %v4104_v40  ;;  %v5877_v61 = vor.u32 %v6192_v48, %v5874_v2  ;;  %v5802_v36 = vld [vmem:[%s7129_s16 + $0x708] sm:$0xf0]  ;;  %v4172_v16 = vadd.f32 %v7730_v12, %v4158_v5 }
 0x248   : > { %4486 = vmatpush.bf16.msrb.mxu2 %v5845_v56  ;;  %v4199_v56 = vpop.f32.mrf.mxu1 }
 0x249   : > { %4500 = vmatpush.bf16.msrb.mxu3 %v5909_v6  ;;  %v5813_v6 = vor.u32 %v6176_v30, %v5810_v62  ;;  %v4132_v0 = vadd.f32 %v4131_v27, %v4118_v3  ;;  %v4186_v20 = vadd.f32 %v4185_v50, %v4172_v16 }
 0x24a   : > { %4459 = vmatpush.bf16.msrb.mxu0 %v5709_v10  ;;  %v6174_v10 = vld [vmem:[%s7129_s16 + $0x704] sm:$0xf] }
 0x24b   : > { %4473 = vmatpush.bf16.msrb.mxu1 %v5773_v13  ;;  %v6190_v13 = vld [vmem:[%s7129_s16 + $0x784] sm:$0xf]  ;;  %v5805_v11 = vor.u32 %v6174_v10, %v5802_v36  ;;  %v4146_v18 = vadd.f32 %v7742_v23, %v4132_v0  ;;  %v4229_v31 = vpop.f32.mrf.mxu3 }
 0x24c   : > { %4487 = vmatpush.bf16.msrb.mxu2 %v5837_v14  ;;  %v5866_v14 = vld [vmem:[%s7129_s16 + $0x788] sm:$0xf0]  ;;  %v4187_v27 = vpop.f32.mrf.mxu0 }
 0x24d   : > { %4501 = vmatpush.bf16.msrb.mxu3 %v5901_v17  ;;  %v4213_v17 = vpop.f32.mrf.mxu2  ;;  %v5869_v19 = vor.u32 %v6190_v13, %v5866_v14  ;;  %v4160_v21 = vadd.f32 %v4159_v59, %v4146_v18  ;;  %v2430_v59 = vld [vmem:[#allocation2 + $0x18] sm:$0x1] }
 0x24e   : > { %4460 = vmatpush.bf16.msrb.mxu0 %v5701_v25  ;;  %v4200_v25 = vadd.f32 %v4199_v56, %v4186_v20 }
 0x24f   : > { %4474 = vmatpush.bf16.msrb.mxu1 %v5765_v28  ;;  %v4174_v12 = vadd.f32 %v4173_v1, %v4160_v21 }
 0x250   : > { %4488 = vmatpush.bf16.msrb.mxu2 %v5829_v29  ;;  %v4201_v34 = vpop.f32.mrf.mxu1  ;;  %v4214_v26 = vadd.f32 %v4213_v17, %v4200_v25 }
 0x251   : > { %4502 = vmatpush.bf16.msrb.mxu3 %v5893_v35  ;;  %v4188_v23 = vadd.f32 %v4187_v27, %v4174_v12 }
 0x252   : > { %4461 = vmatpush.bf16.msrb.mxu0 %v5693_v41  ;;  %v4228_v29 = vadd.f32 %v4227_v54, %v4214_v26 }
 0x253   : > { %4475 = vmatpush.bf16.msrb.mxu1 %v5757_v43  ;;  %v4202_v35 = vadd.f32 %v4201_v34, %v4188_v23 }
 0x254   : > { %4489 = vmatpush.bf16.msrb.mxu2 %v5821_v44 }
 0x255   : > { %4503 = vmatpush.bf16.msrb.mxu3 %v5885_v22  ;;  %v4215_v28 = vpop.f32.mrf.mxu2 }
 0x256   : > { %4462 = vmatpush.bf16.msrb.mxu0 %v5685_v52  ;;  %v4216_v8 = vadd.f32 %v4215_v28, %v4202_v35 }
 0x257   : > { %4476 = vmatpush.bf16.msrb.mxu1 %v5749_v53 }
 0x258   : > { %4490 = vmatpush.bf16.msrb.mxu2 %v5813_v6 }
 0x259   : > { %4504 = vmatpush.bf16.msrb.mxu3 %v5877_v61 }
 0x25a   : > { %4463 = vmatpush.bf16.msrb.mxu0 %v5677_v15  ;;  %v4241_v32 = vpop.f32.mrf.mxu0 }
 0x25b   : > { %4477 = vmatpush.bf16.msrb.mxu1 %v5741_v45  ;;  %v4255_v33 = vpop.f32.mrf.mxu1  ;;  %v4242_v4 = vadd.f32 %v4241_v32, %v4228_v29 }
 0x25c   : > { %4491 = vmatpush.bf16.msrb.mxu2 %v5805_v11 }
 0x25d   : > { %4505 = vmatpush.bf16.msrb.mxu3 %v5869_v19  ;;  %4464 = vmatmul.bf16.vlgmr.msrb.gmra.mxu0 %v7469_v49  ;;  %v4256_v37 = vadd.f32 %v4255_v33, %v4242_v4  ;;  %v4230_v49 = vadd.f32 %v4229_v31, %v4216_v8 }
 0x25e   : > { %4478 = vmatmul.bf16.vlgmr.msrb.gmra.mxu1 %v7476_v58 }
 0x25f   : > { %4492 = vmatmul.bf16.vlgmr.msrb.gmra.mxu2 %v7474_v55  ;;  %v2428_v55 = vld [vmem:[#allocation2 + $0x10] sm:$0xff] }
 0x260   : > { %4506 = vmatmul.bf16.vlgmr.msrb.gmra.mxu3 %v7480_v63 }
 0x262   : > { %v4269_v38 = vpop.f32.mrf.mxu2  ;;  %v4243_v58 = vpop.f32.mrf.mxu0 }
 0x263   : > { %v4270_v39 = vadd.f32 %v4269_v38, %v4256_v37  ;;  %v4283_v40 = vpop.f32.mrf.mxu3  ;;  %v4244_v41 = vadd.f32 %v4243_v58, %v4230_v49  ;;  %v4257_v43 = vpop.f32.mrf.mxu1 }
 0x265   : > { %v4284_v42 = vadd.f32 %v4283_v40, %v4270_v39  ;;  %v4258_v44 = vadd.f32 %v4257_v43, %v4244_v41 }
 0x267   : > { %v4512_v63 = vadd.f32 %v4284_v42, %v2428_v55  ;;  %v2429_v42 = vld [vmem:[#allocation2] sm:$0xff] }
 0x269   : > { %4516 = vst [vmem:[#allocation2 + $0x10] sm:$0xff] %v4512_v63 }
 0x26a   : > { %v4271_v46 = vpop.f32.mrf.mxu2 }
 0x26b   : > { %v4272_v47 = vadd.f32 %v4271_v46, %v4258_v44  ;;  %v4285_v51 = vpop.f32.mrf.mxu3 }
 0x26d   : > { %v4286_v22 = vadd.f32 %v4285_v51, %v4272_v47 }
 0x26f   : > { %v4514_v24 = vadd.f32 %v4286_v22, %v2430_v59  ;;  %v2431_v22 = vld [vmem:[#allocation2 + $0x8] sm:$0x1] }
 0x271   : > { %4518 = vst [vmem:[#allocation2 + $0x18] sm:$0x1] %v4514_v24 }
 0x27a   : > { %v4297_v30 = vpop.f32.mrf.mxu0 }
 0x27b   : > { %v4311_v62 = vpop.f32.mrf.mxu1 }
 0x27c   : > { %v4312_v52 = vadd.f32 %v4311_v62, %v4297_v30 }
 0x282   : > { %v4325_v1 = vpop.f32.mrf.mxu2  ;;  %v4299_v48 = vpop.f32.mrf.mxu0 }
 0x283   : > { %v4339_v50 = vpop.f32.mrf.mxu3  ;;  %v4313_v2 = vpop.f32.mrf.mxu1  ;;  %v4326_v6 = vadd.f32 %v4325_v1, %v4312_v52 }
 0x284   : > { %v4314_v9 = vadd.f32 %v4313_v2, %v4299_v48 }
 0x285   : > { %v4340_v57 = vadd.f32 %v4339_v50, %v4326_v6 }
 0x28a   : > { %v4327_v3 = vpop.f32.mrf.mxu2 }
 0x28b   : > { %v4341_v56 = vpop.f32.mrf.mxu3  ;;  %v4328_v0 = vadd.f32 %v4327_v3, %v4314_v9 }
 0x28d   : > { %v4342_v45 = vadd.f32 %v4341_v56, %v4328_v0 }
 0x29a   : > { %v4353_v5 = vpop.f32.mrf.mxu0 }
 0x29b   : > { %v4367_v53 = vpop.f32.mrf.mxu1  ;;  %v4354_v10 = vadd.f32 %v4353_v5, %v4340_v57 }
 0x29d   : > { %v4368_v13 = vadd.f32 %v4367_v53, %v4354_v10 }
 0x2a2   : > { %v4381_v7 = vpop.f32.mrf.mxu2  ;;  %v4355_v61 = vpop.f32.mrf.mxu0 }
 0x2a3   : > { %v4395_v60 = vpop.f32.mrf.mxu3  ;;  %v4369_v36 = vpop.f32.mrf.mxu1  ;;  %v4382_v11 = vadd.f32 %v4381_v7, %v4368_v13  ;;  %v4356_v19 = vadd.f32 %v4355_v61, %v4342_v45 }
 0x2a5   : > { %v4396_v18 = vadd.f32 %v4395_v60, %v4382_v11  ;;  %v4370_v54 = vadd.f32 %v4369_v36, %v4356_v19 }
 0x2aa   : > { %v4383_v14 = vpop.f32.mrf.mxu2 }
 0x2ab   : > { %v4397_v15 = vpop.f32.mrf.mxu3  ;;  %v4384_v34 = vadd.f32 %v4383_v14, %v4370_v54 }
 0x2ad   : > { %v4398_v23 = vadd.f32 %v4397_v15, %v4384_v34 }
 0x2ba   : > { %v4409_v16 = vpop.f32.mrf.mxu0 }
 0x2bb   : > { %v4423_v17 = vpop.f32.mrf.mxu1  ;;  %v4410_v21 = vadd.f32 %v4409_v16, %v4396_v18 }
 0x2bd   : > { %v4424_v12 = vadd.f32 %v4423_v17, %v4410_v21 }
 0x2c2   : > { %v4437_v20 = vpop.f32.mrf.mxu2  ;;  %v4411_v25 = vpop.f32.mrf.mxu0 }
 0x2c3   : > { %v4451_v27 = vpop.f32.mrf.mxu3  ;;  %v4425_v26 = vpop.f32.mrf.mxu1  ;;  %v4438_v28 = vadd.f32 %v4437_v20, %v4424_v12  ;;  %v4412_v29 = vadd.f32 %v4411_v25, %v4398_v23 }
 0x2c5   : > { %v4452_v32 = vadd.f32 %v4451_v27, %v4438_v28  ;;  %v4426_v4 = vadd.f32 %v4425_v26, %v4412_v29 }
 0x2ca   : > { %v4439_v31 = vpop.f32.mrf.mxu2 }
 0x2cb   : > { %v4453_v33 = vpop.f32.mrf.mxu3  ;;  %v4440_v38 = vadd.f32 %v4439_v31, %v4426_v4 }
 0x2cd   : > { %v4454_v58 = vadd.f32 %v4453_v33, %v4440_v38 }
 0x2da   : > { %v4465_v35 = vpop.f32.mrf.mxu0 }
 0x2db   : > { %v4466_v8 = vadd.f32 %v4465_v35, %v4452_v32  ;;  %v4479_v37 = vpop.f32.mrf.mxu1 }
 0x2dd   : > { %v4480_v49 = vadd.f32 %v4479_v37, %v4466_v8 }
 0x2e2   : > { %v4493_v39 = vpop.f32.mrf.mxu2  ;;  %v4467_v41 = vpop.f32.mrf.mxu0 }
 0x2e3   : > { %v4494_v40 = vadd.f32 %v4493_v39, %v4480_v49  ;;  %v4507_v55 = vpop.f32.mrf.mxu3  ;;  %v4468_v63 = vadd.f32 %v4467_v41, %v4454_v58  ;;  %v4481_v46 = vpop.f32.mrf.mxu1 }
 0x2e5   : > { %v4508_v43 = vadd.f32 %v4507_v55, %v4494_v40  ;;  %v4482_v47 = vadd.f32 %v4481_v46, %v4468_v63 }
 0x2e7   : > { %v4513_v44 = vadd.f32 %v4508_v43, %v2429_v42 }
 0x2e9   : > { %4517 = vst [vmem:[#allocation2] sm:$0xff] %v4513_v44 }
 0x2ea   : > { %v4495_v51 = vpop.f32.mrf.mxu2 }
 0x2eb   : > { %v4496_v59 = vadd.f32 %v4495_v51, %v4482_v47  ;;  %v4509_v24 = vpop.f32.mrf.mxu3 }
 0x2ed   : > { %v4510_v30 = vadd.f32 %v4509_v24, %v4496_v59  ;;  %4523 = sbr.rel (%p5926_p6) target bundleno = 830 (0x33e), region = 115 }
 0x2ef   : > { %v4515_v62 = vadd.f32 %v4510_v30, %v2431_v22 }
 0x2f1   : > { %4519 = vst [vmem:[#allocation2 + $0x8] sm:$0x1] %v4515_v62 }
 0x2f2   : > { %v4524_v1 = vld [vmem:[#allocation2 + $0x10] sm:$0xff]  ;;  %v4525_v50 = vld [vmem:[#allocation2] sm:$0xff]  ;;  %v4526_v48 = vld [vmem:[#allocation2 + $0x18] sm:$0x1]  ;;  %v6423_v56 = vmov 9.0   ;;  %vm4538_vm0 = vcmask 1040384  }
 0x2f3   : > { %v4528_v3 = vld [vmem:[%s2416_s8] sm:$0x3]  ;;  %6312 = vrcp.f32 %v6423_v56  ;;  %vm4632_vm8 = vsmask.f32 256  ;;  %vm4634_vm9 = vcmask 1044484  }
 0x2f4   : > { %v4530_v52 = vperm.slane %v4528_v3, 0  ;;  %v4531_v5 = vperm.slane %v4528_v3, 1  ;;  %vm4635_vm10 = vsmask.f32 4352  ;;  %vm7789_vm11 = vmand %vm4538_vm0, %vm4632_vm8 }
 0x2f5   : > { %vm4636_vm14 = vmand %vm4634_vm9, %vm4635_vm10 }
 0x2f6   : > { %v4534_v53 = vadd.f32 %v4530_v52, %v4524_v1  ;;  %v4535_v6 = vadd.f32 %v4531_v5, %v4525_v50  ;;  %v4536_v7 = vadd.f32 %v4530_v52, %v4526_v48 }
 0x2f8   : > { %v4527_v2 = vld [vmem:[#allocation2 + $0x8] sm:$0x1]  ;;  %v4539_v60 = vsel %vm4538_vm0, %v4536_v7, 0.0 }
 0x2f9   : > { %v4537_v57 = vadd.f32 %v4531_v5, %v4527_v2  ;;  %v6313_v9 = vpop.eup %6312  ;;  %v4540_v10 = vadd.f32 %v4539_v60, %v4534_v53 }
 0x2fa   : > { %v4556_v0 = vmul.f32 9.0, %v6313_v9  ;;  %vm4560_vm1 = vweird.f32 %v6313_v9 }
 0x2fb   : > { %v4547_v61 = vsel %vm4538_vm0, %v4537_v57, 0.0  ;;  %v4541_v13 = vrot.slane %v4540_v10, 4 }
 0x2fc   : > { %v4548_v36 = vadd.f32 %v4547_v61, %v4535_v6  ;;  %v4557_v15 = vsub.f32 1.0, %v4556_v0 }
 0x2fd   : > { %v4542_v16 = vadd.f32 %v4541_v13, %v4540_v10 }
 0x2fe   : > { %v4549_v14 = vrot.slane %v4548_v36, 4  ;;  %v4558_v11 = vmul.f32 %v6313_v9, %v4557_v15 }
 0x2ff   : > { %v4543_v17 = vrot.slane %v4542_v16, 2 }
 0x300   : > { %v4550_v45 = vadd.f32 %v4549_v14, %v4548_v36  ;;  %v4559_v18 = vadd.f32 %v6313_v9, %v4558_v11 }
 0x301   : > { %v4544_v20 = vadd.f32 %v4543_v17, %v4542_v16 }
 0x302   : > { %v4551_v19 = vrot.slane %v4550_v45, 2  ;;  %v4561_v34 = vsel %vm4560_vm1, %v6313_v9, %v4559_v18 }
 0x303   : > { %v4545_v21 = vrot.slane %v4544_v20, 1 }
 0x304   : > { %v4552_v54 = vadd.f32 %v4551_v19, %v4550_v45 }
 0x305   : > { %v4546_v25 = vadd.f32 %v4545_v21, %v4544_v20  ;;  %v4638_v20 = vld [vmem:[%s7131_s14 + $0x8] sm:$0x11] }
 0x306   : > { %v4553_v27 = vrot.slane %v4552_v54, 1 }
 0x307   : > { %v4562_v26 = vmul.f32 %v4561_v34, %v4546_v25 }
 0x308   : > { %v4554_v12 = vadd.f32 %v4553_v27, %v4552_v54 }
 0x309   : > { %v4564_v28 = vsub.f32 %v4534_v53, %v4562_v26  ;;  %v4566_v31 = vsub.f32 %v4536_v7, %v4562_v26 }
 0x30a   : > { %v4563_v23 = vmul.f32 %v4561_v34, %v4554_v12 }
 0x30b   : > { %v4568_v33 = vmul.f32 %v4564_v28, %v4564_v28  ;;  %v4570_v4 = vmul.f32 %v4566_v31, %v4566_v31 }
 0x30c   : > { %v4565_v29 = vsub.f32 %v4535_v6, %v4563_v23  ;;  %v4567_v32 = vsub.f32 %v4537_v57, %v4563_v23 }
 0x30d   : > { %v4572_v37 = vsel %vm4538_vm0, %v4570_v4, 0.0 }
 0x30e   : > { %v4569_v35 = vmul.f32 %v4565_v29, %v4565_v29  ;;  %v4571_v8 = vmul.f32 %v4567_v32, %v4567_v32  ;;  %v4573_v49 = vadd.f32 %v4572_v37, %v4568_v33 }
 0x310   : > { %v4580_v38 = vsel %vm4538_vm0, %v4571_v8, 0.0  ;;  %v4574_v58 = vrot.slane %v4573_v49, 4  ;;  %vm4637_vm0 = vmor %vm4636_vm14, %vm7789_vm11 }
 0x311   : > { %v4581_v39 = vadd.f32 %v4580_v38, %v4569_v35 }
 0x312   : > { %v4575_v55 = vadd.f32 %v4574_v58, %v4573_v49 }
 0x313   : > { %v4582_v40 = vrot.slane %v4581_v39, 4 }
 0x314   : > { %v4576_v42 = vrot.slane %v4575_v55, 2 }
 0x315   : > { %v4583_v41 = vadd.f32 %v4582_v40, %v4581_v39 }
 0x316   : > { %v4577_v63 = vadd.f32 %v4576_v42, %v4575_v55 }
 0x317   : > { %v4584_v43 = vrot.slane %v4583_v41, 2 }
 0x318   : > { %v4578_v46 = vrot.slane %v4577_v63, 1 }
 0x319   : > { %v4585_v44 = vadd.f32 %v4584_v43, %v4583_v41 }
 0x31a   : > { %v4579_v51 = vadd.f32 %v4578_v46, %v4577_v63 }
 0x31b   : > { %v4586_v47 = vrot.slane %v4585_v44, 1 }
 0x31c   : > { %v4588_v22 = vmul.f32 %v4579_v51, %v4561_v34 }
 0x31d   : > { %v4587_v59 = vadd.f32 %v4586_v47, %v4585_v44 }
 0x31e   : > { %v4590_v30 = vadd.f32 1e-05, %v4588_v22 }
 0x31f   : > { %v4589_v24 = vmul.f32 %v4587_v59, %v4561_v34 }
 0x320   : > { %6314 = vrsqrt.f32 %v4590_v30  ;;  %vm4598_vm2 = vweird.f32 %v4590_v30 }
 0x321   : > { %v4591_v62 = vadd.f32 1e-05, %v4589_v24 }
 0x323   : > { %6316 = vrsqrt.f32 %v4591_v62  ;;  %vm4608_vm4 = vweird.f32 %v4591_v62 }
 0x326   : > { %v6315_v1 = vpop.eup %6314 }
 0x327   : > { %v4593_v48 = vmul.f32 %v6315_v1, %v4590_v30  ;;  %vm4599_vm3 = vweird.f32 %v6315_v1 }
 0x328   : > { %vm4600_vm6 = vmor %vm4598_vm2, %vm4599_vm3 }
 0x329   : > { %v6317_v50 = vpop.eup %6316  ;;  %v4594_v3 = vmul.f32 %v6315_v1, %v4593_v48 }
 0x32a   : > { %v4603_v2 = vmul.f32 %v6317_v50, %v4591_v62  ;;  %vm4609_vm5 = vweird.f32 %v6317_v50 }
 0x32b   : > { %v4595_v52 = vmul.f32 0.5, %v4594_v3  ;;  %vm4610_vm7 = vmor %vm4608_vm4, %vm4609_vm5 }
 0x32c   : > { %v4604_v56 = vmul.f32 %v6317_v50, %v4603_v2 }
 0x32d   : > { %v4596_v53 = vsub.f32 1.5, %v4595_v52 }
 0x32e   : > { %v4605_v5 = vmul.f32 0.5, %v4604_v56 }
 0x32f   : > { %v4597_v7 = vmul.f32 %v6315_v1, %v4596_v53 }
 0x330   : > { %v4606_v6 = vsub.f32 1.5, %v4605_v5 }
 0x331   : > { %v4601_v60 = vsel %vm4600_vm6, %v6315_v1, %v4597_v7 }
 0x332   : > { %v4607_v57 = vmul.f32 %v6317_v50, %v4606_v6  ;;  %v4612_v9 = vmul.f32 %v4601_v60, %v4564_v28  ;;  %v4614_v10 = vmul.f32 %v4601_v60, %v4566_v31 }
 0x334   : > { %v4611_v61 = vsel %vm4610_vm7, %v6317_v50, %v4607_v57  ;;  %vm4616_vm12 = vcmp.ge.f32.partialorder %v4612_v9, 0.0  ;;  %v4620_v14 = vmul.f32 0.2, %v4612_v9  ;;  %vm4618_vm13 = vcmp.ge.f32.partialorder %v4614_v10, 0.0 }
 0x335   : > { %v4613_v36 = vmul.f32 %v4611_v61, %v4565_v29  ;;  %v4615_v0 = vmul.f32 %v4611_v61, %v4567_v32  ;;  %v4622_v15 = vmul.f32 0.2, %v4614_v10 }
 0x336   : > { %v4624_v11 = vsel %vm4616_vm12, %v4612_v9, %v4620_v14 }
 0x337   : > { %vm4617_vm15 = vcmp.ge.f32.partialorder %v4613_v36, 0.0  ;;  %v4621_v16 = vmul.f32 0.2, %v4613_v36  ;;  %vm4619_vm1 = vcmp.ge.f32.partialorder %v4615_v0, 0.0  ;;  %v4623_v45 = vmul.f32 0.2, %v4615_v0 }
 0x338   : > { %v4626_v17 = vsel %vm4618_vm13, %v4614_v10, %v4622_v15 }
 0x339   : > { %v4625_v19 = vsel %vm4617_vm15, %v4613_v36, %v4621_v16  ;;  %v4627_v18 = vsel %vm4619_vm1, %v4615_v0, %v4623_v45 }
 0x33a   : > { %v4628_v54 = vpack.c.bf16 %v4625_v19, %v4624_v11  ;;  %v4629_v21 = vpack.c.bf16 %v4627_v18, %v4626_v17 }
 0x33c   : > { %4630 = vst [vmem:[%s7131_s14] sm:$0xff] %v4628_v54  ;;  %v4639_v27 = vsel %vm4637_vm0, %v4629_v21, %v4638_v20 }
 0x33d   : > { %4640 = vst [vmem:[%s7131_s14 + $0x8] sm:$0x11] %v4639_v27 }
 0x33e PF: > { %4647 = sbr.rel (!%p6556_p13) target bundleno = 842 (0x34a), region = 119  ;;  %s7870_s18 = sld [smem:[#allocation6_spill]] (%p6556_p13) }
 0x33f   : > { %s7871_s29 = sld [smem:[#allocation10_spill]] (%p6556_p13) }
 0x343   : > { %v4686_v34 = vld [vmem:[%s7131_s14] sm:$0xff] }
 0x344   : > { %s5929_s19 = sshll.u32 %s7870_s18, 3  ;;  %v4688_v25 = vld [vmem:[%s7131_s14 + $0x8] sm:$0xff] }
 0x345   : > { %s4653_s5 = sadd.s32 %s5929_s19, %s7117_s30 }
 0x346   : > { %s5930_s25 = sshll.u32 %s4653_s5, 2 }
 0x347   : > { %s4655_s4 = scalar_lea.vmem %s7871_s29, %s5930_s25 }
 0x348   : > { %4687 = vst [vmem:[%s4655_s4] sm:$0xff] %v4686_v34 }
 0x349   : > { %4689 = vst [vmem:[%s4655_s4 + $0x10] sm:$0xff] %v4688_v25 }
 0x34a PF: > { %s13_s24 = sadd.s32 1, %s6420_s24   ;;  %s7873_s30 = sld [smem:[#allocation7_spill]] }
 0x34b   : > { %p7808_p7 = scmp.ge.s32.totalorder %s13_s24, 10   ;;  %s7874_s6 = sld [smem:[#allocation8_spill]] }
 0x34c   : > { %s7876_s12 = smov %s6376_s13  ;;  %s7877_s13 = smov %s6554_s7 }
 0x34d   : > { %s7878_s14 = smov %s6384_s15  ;;  %s7879_s15 = smov %s6541_s9 }
 0x34e   : > { %s7880_s16 = smov %s6392_s17  ;;  %s7881_s17 = smov %s6551_s3 }
 0x34f   : > { %s7882_s18 = smov %s6408_s21  ;;  %s7883_s19 = smov %s6412_s22 }
 0x350   : > { %s7884_s20 = smov %s6416_s23  ;;  %s7885_s21 = smov %s7873_s30 }
 0x351   : > { %s7886_s22 = smov %s7874_s6  ;;  %s7887_s23 = smov %s7897_s28 }
 0x352   :  { %12 = sbr.rel (!%p7808_p7) target bundleno = 10 (0xa), region = 205 }

// kernel: discriminator_forward.9
= control target key start
LH: loop header
LB: loop body
LE: loop exit
PB: predicated region body
PF: predicated region fallthrough
CT: control target
= control target key end

     0   :  { %s2466_s12 = smov 0   ;;  %s2468_s13 = smov 0   ;;  %s2674_s0 = inlined_call_operand.vmem [shape: bf16[2,4,8192], index: 0, kind: input, shape index: {}]   ;;  %s2675_s1 = inlined_call_operand.vmem [shape: bf16[8192,128], index: 1, kind: input, shape index: {}]   ;;  %s2676_s2 = inlined_call_operand.vmem [shape: f32[1,128], index: 2, kind: input, shape index: {}]   ;;  %s2677_s3 = inlined_call_operand.vmem [shape: f32[2,1,128], index: 3, kind: output, shape index: {}]  }
   0x1   :  { %s2470_s14 = smov 0   ;;  %s2472_s15 = smov 0  }
   0x2   :  { %s2474_s16 = smov 0  }
   0x3 LB: > { %s28_s17 = sadd.s32 1, %s2434_s14  ;;  %s39_s18 = sadd.s32 1, %s2438_s15  ;;  %s2442_s16 = sphi %s2474_s16, %s13_s16   ;;  %s2438_s15 = sphi %s2472_s15, %s2681_s15   ;;  %s2434_s14 = sphi %s2470_s14, %s2680_s14   ;;  %s2430_s13 = sphi %s2468_s13, %s2679_s13   ;;  %s2426_s12 = sphi %s2466_s12, %s2678_s12  }
   0x4   : > { %p29_p0 = scmp.ge.s32.totalorder %s28_s17, 4  ;;  %p1709_p1 = scmp.ge.s32.totalorder %s2442_s16, 1 }
   0x5   : > { %p202_p2 = scmp.lt.s32.totalorder %s2442_s16, 9 }
   0x6   : > { %s2683_s17 = smov (%p29_p0, %s28_s17), 0  ;;  %s2685_s18 = smov (!%p29_p0, %s39_s18), %s2438_s15 }
   0x7   : > { %p203_p3 = pnand %p1709_p1, %p202_p2  ;;  %p41_p4 = scmp.ge.s32.totalorder %s2685_s18, 2 }
   0x8   : > { %s1710_s19 = sshll.u32 (!%p203_p3), %s2426_s12, 4  ;;  %p247_p5 = scmp.lt.s32.totalorder (!%p203_p3), %s2430_s13, 1 }
   0x9   : > { %s2687_s18 = smov (%p41_p4, %s2685_s18), 0  ;;  %206 = sbr.rel (%p203_p3) target bundleno = 320 (0x140), region = 32 }
   0xa   : > { %p251_p6 = scmp.lt.s32.totalorder (!%p203_p3), %s1710_s19, 63  ;;  %s1713_s20 = sshll.u32 (!%p203_p3), %s2426_s12, 8 }
   0xb   : > { %p261_p7 = scmp.lt.s32.totalorder (!%p203_p3), %s1713_s20, 1023  ;;  %p1715_p8 = scmp.ne.s32.totalorder (!%p203_p3), %s2426_s12, 0 }
   0xe   : > { %s2689_s13 = smov (!%p247_p5, %s2430_s13), 1  ;;  %s2691_s19 = smov (!%p251_p6, %s1710_s19), 63 }
   0xf   : > { %s1711_s21 = sshll.u32 %s2689_s13, 6  ;;  %s277_s25 = scalar_lea.vmem %s2677_s3, %s2689_s13 }
  0x10   : > { %s256_s22 = sadd.s32 %s1711_s21, %s2691_s19  ;;  %s2693_s20 = smov (!%p261_p7, %s1713_s20), 1023 }
  0x11   : > { %s1712_s26 = sshll.u32 %s256_s22, 1  ;;  %s1714_s30 = sshll.u32 %s2693_s20, 2 }
  0x12   : > { %s2510_s29 = scalar_lea.vmem %s2674_s0, %s1712_s26  ;;  %s2515_s6 = scalar_lea.vmem %s2675_s1, %s1714_s30 }
  0x13   : > { %281 = sbr.rel (%p1715_p8) target bundleno = 26 (0x1a), region = 36 }
  0x18   : > { %v2444_v0 = vmov 0.0  }
  0x19   : > { %282 = vst [vmem:[#allocation2] sm:$0xf] %v2444_v0 }
  0x1a PF: > { %v2238_v1 = vld [vmem:[%s2515_s6 + $0x38] sm:$0xff]  ;;  %v2237_v5 = vld [vmem:[%s2515_s6 + $0x30] sm:$0xff]  ;;  %v2236_v9 = vld [vmem:[%s2515_s6 + $0x28] sm:$0xff]  ;;  %p2228_p9 = scmp.ne.s32.totalorder %s2426_s12, 3 }
  0x1b   : > { %v2246_v2 = vld [vmem:[%s2515_s6 + $0x78] sm:$0xff]  ;;  %1353 = vmatpush.bf16.msra.mxu0 %v2238_v1  ;;  %v2245_v6 = vld [vmem:[%s2515_s6 + $0x70] sm:$0xff]  ;;  %v2244_v10 = vld [vmem:[%s2515_s6 + $0x68] sm:$0xff] }
  0x1c   : > { %v2254_v3 = vld [vmem:[%s2515_s6 + $0xb8] sm:$0xff]  ;;  %1366 = vmatpush.bf16.msra.mxu1 %v2246_v2  ;;  %v2253_v7 = vld [vmem:[%s2515_s6 + $0xb0] sm:$0xff]  ;;  %v2252_v11 = vld [vmem:[%s2515_s6 + $0xa8] sm:$0xff] }
  0x1d   : > { %v2262_v4 = vld [vmem:[%s2515_s6 + $0xf8] sm:$0xff]  ;;  %1379 = vmatpush.bf16.msra.mxu2 %v2254_v3  ;;  %v2261_v8 = vld [vmem:[%s2515_s6 + $0xf0] sm:$0xff]  ;;  %v2260_v12 = vld [vmem:[%s2515_s6 + $0xe8] sm:$0xff] }
  0x1e   : > { %1392 = vmatpush.bf16.msra.mxu3 %v2262_v4  ;;  %v2235_v13 = vld [vmem:[%s2515_s6 + $0x20] sm:$0xff]  ;;  %v2234_v17 = vld [vmem:[%s2515_s6 + $0x18] sm:$0xff]  ;;  %v2233_v22 = vld [vmem:[%s2515_s6 + $0x10] sm:$0xff] }
  0x1f   : > { %1354 = vmatpush.bf16.msra.mxu0 %v2237_v5  ;;  %v2243_v14 = vld [vmem:[%s2515_s6 + $0x60] sm:$0xff]  ;;  %v2242_v18 = vld [vmem:[%s2515_s6 + $0x58] sm:$0xff]  ;;  %v2241_v23 = vld [vmem:[%s2515_s6 + $0x50] sm:$0xff] }
  0x20   : > { %1367 = vmatpush.bf16.msra.mxu1 %v2245_v6  ;;  %v2251_v15 = vld [vmem:[%s2515_s6 + $0xa0] sm:$0xff]  ;;  %v2250_v19 = vld [vmem:[%s2515_s6 + $0x98] sm:$0xff]  ;;  %v2249_v24 = vld [vmem:[%s2515_s6 + $0x90] sm:$0xff] }
  0x21   : > { %1380 = vmatpush.bf16.msra.mxu2 %v2253_v7  ;;  %v2259_v16 = vld [vmem:[%s2515_s6 + $0xe0] sm:$0xff]  ;;  %v2258_v20 = vld [vmem:[%s2515_s6 + $0xd8] sm:$0xff]  ;;  %v2257_v25 = vld [vmem:[%s2515_s6 + $0xd0] sm:$0xff] }
  0x22   : > { %1393 = vmatpush.bf16.msra.mxu3 %v2261_v8  ;;  %v284_v21 = vld [vmem:[%s2510_s29] sm:$0xff]  ;;  %v2232_v26 = vld [vmem:[%s2515_s6 + $0x8] sm:$0xff]  ;;  %v286_v32 = vld [vmem:[%s2510_s29 + $0x10] sm:$0xff] }
  0x23   : > { %1355 = vmatpush.bf16.msra.mxu0 %v2236_v9  ;;  %545 = vst [vmem:[#allocation1] ss:$4 sm:$0xff] %v284_v21  ;;  %v2240_v27 = vld [vmem:[%s2515_s6 + $0x48] sm:$0xff]  ;;  %v2231_v30 = vld [vmem:[%s2515_s6] sm:$0xff]  ;;  %v2270_v39 = vld [vmem:[%s2515_s6 + $0x138] sm:$0xff] }
  0x24   : > { %1368 = vmatpush.bf16.msra.mxu1 %v2244_v10  ;;  %v2248_v28 = vld [vmem:[%s2515_s6 + $0x88] sm:$0xff]  ;;  %v2239_v31 = vld [vmem:[%s2515_s6 + $0x40] sm:$0xff]  ;;  %v2278_v40 = vld [vmem:[%s2515_s6 + $0x178] sm:$0xff] }
  0x25   : > { %1381 = vmatpush.bf16.msra.mxu2 %v2252_v11  ;;  %v2256_v29 = vld [vmem:[%s2515_s6 + $0xc8] sm:$0xff]  ;;  %v2247_v37 = vld [vmem:[%s2515_s6 + $0x80] sm:$0xff]  ;;  %v2286_v41 = vld [vmem:[%s2515_s6 + $0x1b8] sm:$0xff] }
  0x26   : > { %1394 = vmatpush.bf16.msra.mxu3 %v2260_v12  ;;  %v2255_v38 = vld [vmem:[%s2515_s6 + $0xc0] sm:$0xff]  ;;  %v2294_v42 = vld [vmem:[%s2515_s6 + $0x1f8] sm:$0xff]  ;;  %v285_v43 = vld [vmem:[%s2510_s29 + $0x8] sm:$0xff] }
  0x27   : > { %1356 = vmatpush.bf16.msra.mxu0 %v2235_v13  ;;  %548 = vst [vmem:[#allocation1 + $0x20] ss:$4 sm:$0xff] %v285_v43  ;;  %v2269_v44 = vld [vmem:[%s2515_s6 + $0x130] sm:$0xff]  ;;  %v2268_v48 = vld [vmem:[%s2515_s6 + $0x128] sm:$0xff]  ;;  %v287_v55 = vld [vmem:[%s2510_s29 + $0x18] sm:$0xff] }
  0x28   : > { %1369 = vmatpush.bf16.msra.mxu1 %v2243_v14  ;;  %v2277_v45 = vld [vmem:[%s2515_s6 + $0x170] sm:$0xff]  ;;  %v2276_v49 = vld [vmem:[%s2515_s6 + $0x168] sm:$0xff]  ;;  %v2267_v57 = vld [vmem:[%s2515_s6 + $0x120] sm:$0xff] }
  0x29   : > { %1382 = vmatpush.bf16.msra.mxu2 %v2251_v15  ;;  %v2285_v46 = vld [vmem:[%s2515_s6 + $0x1b0] sm:$0xff]  ;;  %v2284_v50 = vld [vmem:[%s2515_s6 + $0x1a8] sm:$0xff]  ;;  %v2275_v58 = vld [vmem:[%s2515_s6 + $0x160] sm:$0xff] }
  0x2a   : > { %1395 = vmatpush.bf16.msra.mxu3 %v2259_v16  ;;  %v551_v33 = vld.sshfl [vmem:[#allocation1 + $0x10] sm:$0xff pattern:$0x73625140]  ;;  %v549_v34 = vld.sshfl [vmem:[#allocation1] sm:$0xff pattern:$0x73625140] }
  0x2b   : > { %1357 = vmatpush.bf16.msra.mxu0 %v2234_v17  ;;  %v552_v35 = vld.sshfl [vmem:[#allocation1 + $0x18] sm:$0xff pattern:$0x73625140]  ;;  %v550_v36 = vld.sshfl [vmem:[#allocation1 + $0x8] sm:$0xff pattern:$0x73625140] }
  0x2c   : > { %1370 = vmatpush.bf16.msra.mxu1 %v2242_v18  ;;  %558 = vst [vmem:[#allocation1] ss:$4 sm:$0xff] %v286_v32  ;;  %v2293_v47 = vld [vmem:[%s2515_s6 + $0x1f0] sm:$0xff]  ;;  %v2292_v51 = vld [vmem:[%s2515_s6 + $0x1e8] sm:$0xff]  ;;  %v2283_v59 = vld [vmem:[%s2515_s6 + $0x1a0] sm:$0xff] }
  0x2d   : > { %1383 = vmatpush.bf16.msra.mxu2 %v2250_v19  ;;  %v2291_v60 = vld [vmem:[%s2515_s6 + $0x1e0] sm:$0xff]  ;;  %v2266_v61 = vld [vmem:[%s2515_s6 + $0x118] sm:$0xff]  ;;  %v2265_v1 = vld [vmem:[%s2515_s6 + $0x110] sm:$0xff] }
  0x2e   : > { %1396 = vmatpush.bf16.msra.mxu3 %v2258_v20  ;;  %v555_v52 = vld.sshfl [vmem:[#allocation1 + $0x30] sm:$0xff pattern:$0x73625140]  ;;  %v553_v53 = vld.sshfl [vmem:[#allocation1 + $0x20] sm:$0xff pattern:$0x73625140] }
  0x2f   : > { %1358 = vmatpush.bf16.msra.mxu0 %v2233_v22  ;;  %v556_v54 = vld.sshfl [vmem:[#allocation1 + $0x38] sm:$0xff pattern:$0x73625140]  ;;  %v554_v56 = vld.sshfl [vmem:[#allocation1 + $0x28] sm:$0xff pattern:$0x73625140] }
  0x30   : > { %1371 = vmatpush.bf16.msra.mxu1 %v2241_v23  ;;  %560 = vst [vmem:[#allocation1 + $0x20] ss:$4 sm:$0xff] %v287_v55  ;;  %v2274_v62 = vld [vmem:[%s2515_s6 + $0x158] sm:$0xff]  ;;  %v2273_v2 = vld [vmem:[%s2515_s6 + $0x150] sm:$0xff]  ;;  %v2264_v5 = vld [vmem:[%s2515_s6 + $0x108] sm:$0xff] }
  0x31   : > { %1384 = vmatpush.bf16.msra.mxu2 %v2249_v24  ;;  %v2282_v63 = vld [vmem:[%s2515_s6 + $0x198] sm:$0xff]  ;;  %v2281_v3 = vld [vmem:[%s2515_s6 + $0x190] sm:$0xff]  ;;  %v2272_v6 = vld [vmem:[%s2515_s6 + $0x148] sm:$0xff] }
  0x32   : > { %1397 = vmatpush.bf16.msra.mxu3 %v2257_v25  ;;  %v2290_v0 = vld [vmem:[%s2515_s6 + $0x1d8] sm:$0xff]  ;;  %v2289_v4 = vld [vmem:[%s2515_s6 + $0x1d0] sm:$0xff]  ;;  %v2280_v7 = vld [vmem:[%s2515_s6 + $0x188] sm:$0xff] }
  0x33   : > { %1359 = vmatpush.bf16.msra.mxu0 %v2232_v26  ;;  %v2288_v8 = vld [vmem:[%s2515_s6 + $0x1c8] sm:$0xff]  ;;  %v2263_v9 = vld [vmem:[%s2515_s6 + $0x100] sm:$0xff]  ;;  %v2302_v13 = vld [vmem:[%s2515_s6 + $0x238] sm:$0xff] }
  0x34   : > { %1372 = vmatpush.bf16.msra.mxu1 %v2240_v27  ;;  %v2271_v10 = vld [vmem:[%s2515_s6 + $0x140] sm:$0xff]  ;;  %v2310_v14 = vld [vmem:[%s2515_s6 + $0x278] sm:$0xff]  ;;  %v2301_v17 = vld [vmem:[%s2515_s6 + $0x230] sm:$0xff] }
  0x35   : > { %1385 = vmatpush.bf16.msra.mxu2 %v2248_v28  ;;  %v2279_v11 = vld [vmem:[%s2515_s6 + $0x180] sm:$0xff]  ;;  %v2318_v15 = vld [vmem:[%s2515_s6 + $0x2b8] sm:$0xff]  ;;  %v2309_v18 = vld [vmem:[%s2515_s6 + $0x270] sm:$0xff] }
  0x36   : > { %1398 = vmatpush.bf16.msra.mxu3 %v2256_v29  ;;  %v2287_v12 = vld [vmem:[%s2515_s6 + $0x1c0] sm:$0xff]  ;;  %v2326_v16 = vld [vmem:[%s2515_s6 + $0x2f8] sm:$0xff]  ;;  %v2317_v19 = vld [vmem:[%s2515_s6 + $0x2b0] sm:$0xff] }
  0x37   : > { %1360 = vmatpush.bf16.msra.mxu0 %v2231_v30  ;;  %v2325_v20 = vld [vmem:[%s2515_s6 + $0x2f0] sm:$0xff]  ;;  %v2300_v21 = vld [vmem:[%s2515_s6 + $0x228] sm:$0xff]  ;;  %v2299_v25 = vld [vmem:[%s2515_s6 + $0x220] sm:$0xff] }
  0x38   : > { %1373 = vmatpush.bf16.msra.mxu1 %v2239_v31  ;;  %v2308_v22 = vld [vmem:[%s2515_s6 + $0x268] sm:$0xff]  ;;  %v2307_v26 = vld [vmem:[%s2515_s6 + $0x260] sm:$0xff]  ;;  %v2298_v29 = vld [vmem:[%s2515_s6 + $0x218] sm:$0xff] }
  0x39   : > { %1386 = vmatpush.bf16.msra.mxu2 %v2247_v37  ;;  %v2316_v23 = vld [vmem:[%s2515_s6 + $0x2a8] sm:$0xff]  ;;  %v2315_v27 = vld [vmem:[%s2515_s6 + $0x2a0] sm:$0xff]  ;;  %v2306_v30 = vld [vmem:[%s2515_s6 + $0x258] sm:$0xff] }
  0x3a   : > { %1399 = vmatpush.bf16.msra.mxu3 %v2255_v38  ;;  %1361 = vmatmul.bf16.vlgmr.msra.gmra.mxu0 %v549_v34  ;;  %v2324_v24 = vld [vmem:[%s2515_s6 + $0x2e8] sm:$0xff]  ;;  %v2323_v28 = vld [vmem:[%s2515_s6 + $0x2e0] sm:$0xff]  ;;  %v2314_v31 = vld [vmem:[%s2515_s6 + $0x298] sm:$0xff] }
  0x3b   : > { %1405 = vmatpush.bf16.msrb.mxu0 %v2270_v39  ;;  %1374 = vmatmul.bf16.vlgmr.msra.gmra.mxu1 %v550_v36  ;;  %v2322_v32 = vld [vmem:[%s2515_s6 + $0x2d8] sm:$0xff]  ;;  %v2305_v34 = vld [vmem:[%s2515_s6 + $0x250] sm:$0xff]  ;;  %v2296_v37 = vld [vmem:[%s2515_s6 + $0x208] sm:$0xff] }
  0x3c   : > { %1418 = vmatpush.bf16.msrb.mxu1 %v2278_v40  ;;  %1387 = vmatmul.bf16.vlgmr.msra.gmra.mxu2 %v551_v33  ;;  %v2297_v33 = vld [vmem:[%s2515_s6 + $0x210] sm:$0xff]  ;;  %v2304_v38 = vld [vmem:[%s2515_s6 + $0x248] sm:$0xff]  ;;  %v2311_v43 = vld [vmem:[%s2515_s6 + $0x280] sm:$0xff] }
  0x3d   : > { %1431 = vmatpush.bf16.msrb.mxu2 %v2286_v41  ;;  %1400 = vmatmul.bf16.vlgmr.msra.gmra.mxu3 %v552_v35  ;;  %v2313_v35 = vld [vmem:[%s2515_s6 + $0x290] sm:$0xff]  ;;  %v2312_v39 = vld [vmem:[%s2515_s6 + $0x288] sm:$0xff]  ;;  %v2295_v41 = vld [vmem:[%s2515_s6 + $0x200] sm:$0xff] }
  0x3e   : > { %1444 = vmatpush.bf16.msrb.mxu3 %v2294_v42  ;;  %v2321_v36 = vld [vmem:[%s2515_s6 + $0x2d0] sm:$0xff]  ;;  %v2320_v40 = vld [vmem:[%s2515_s6 + $0x2c8] sm:$0xff]  ;;  %v2303_v42 = vld [vmem:[%s2515_s6 + $0x240] sm:$0xff] }
  0x3f   : > { %1406 = vmatpush.bf16.msrb.mxu0 %v2269_v44  ;;  %v2319_v44 = vld [vmem:[%s2515_s6 + $0x2c0] sm:$0xff]  ;;  %v2349_v55 = vld [vmem:[%s2515_s6 + $0x3b0] sm:$0xff] }
  0x40   : > { %1419 = vmatpush.bf16.msrb.mxu1 %v2277_v45  ;;  %v2334_v45 = vld [vmem:[%s2515_s6 + $0x338] sm:$0xff] }
  0x41   : > { %1432 = vmatpush.bf16.msrb.mxu2 %v2285_v46  ;;  %v2342_v46 = vld [vmem:[%s2515_s6 + $0x378] sm:$0xff] }
  0x42   : > { %1445 = vmatpush.bf16.msrb.mxu3 %v2293_v47  ;;  %v2350_v47 = vld [vmem:[%s2515_s6 + $0x3b8] sm:$0xff] }
  0x43   : > { %1407 = vmatpush.bf16.msrb.mxu0 %v2268_v48  ;;  %v2358_v48 = vld [vmem:[%s2515_s6 + $0x3f8] sm:$0xff] }
  0x44   : > { %1420 = vmatpush.bf16.msrb.mxu1 %v2276_v49  ;;  %v561_v49 = vld.sshfl [vmem:[#allocation1] sm:$0xff pattern:$0x73625140] }
  0x45   : > { %1433 = vmatpush.bf16.msrb.mxu2 %v2284_v50  ;;  %v563_v50 = vld.sshfl [vmem:[#allocation1 + $0x10] sm:$0xff pattern:$0x73625140] }
  0x46   : > { %1446 = vmatpush.bf16.msrb.mxu3 %v2292_v51  ;;  %v562_v51 = vld.sshfl [vmem:[#allocation1 + $0x8] sm:$0xff pattern:$0x73625140] }
  0x47   : > { %1408 = vmatpush.bf16.msrb.mxu0 %v2267_v57  ;;  %v2332_v57 = vld [vmem:[%s2515_s6 + $0x328] sm:$0xff] }
  0x48   : > { %1421 = vmatpush.bf16.msrb.mxu1 %v2275_v58  ;;  %v2340_v58 = vld [vmem:[%s2515_s6 + $0x368] sm:$0xff] }
  0x49   : > { %1434 = vmatpush.bf16.msrb.mxu2 %v2283_v59  ;;  %v2348_v59 = vld [vmem:[%s2515_s6 + $0x3a8] sm:$0xff] }
  0x4a   : > { %1447 = vmatpush.bf16.msrb.mxu3 %v2291_v60  ;;  %v2356_v60 = vld [vmem:[%s2515_s6 + $0x3e8] sm:$0xff] }
  0x4b   : > { %1409 = vmatpush.bf16.msrb.mxu0 %v2266_v61  ;;  %v2331_v61 = vld [vmem:[%s2515_s6 + $0x320] sm:$0xff] }
  0x4c   : > { %1422 = vmatpush.bf16.msrb.mxu1 %v2274_v62  ;;  %v2339_v62 = vld [vmem:[%s2515_s6 + $0x360] sm:$0xff] }
  0x4d   : > { %1435 = vmatpush.bf16.msrb.mxu2 %v2282_v63  ;;  %v2347_v63 = vld [vmem:[%s2515_s6 + $0x3a0] sm:$0xff] }
  0x4e   : > { %1448 = vmatpush.bf16.msrb.mxu3 %v2290_v0  ;;  %v2355_v0 = vld [vmem:[%s2515_s6 + $0x3e0] sm:$0xff] }
  0x4f   : > { %1410 = vmatpush.bf16.msrb.mxu0 %v2265_v1  ;;  %v2330_v1 = vld [vmem:[%s2515_s6 + $0x318] sm:$0xff] }
  0x50   : > { %1423 = vmatpush.bf16.msrb.mxu1 %v2273_v2  ;;  %v2338_v2 = vld [vmem:[%s2515_s6 + $0x358] sm:$0xff] }
  0x51   : > { %1436 = vmatpush.bf16.msrb.mxu2 %v2281_v3  ;;  %v2346_v3 = vld [vmem:[%s2515_s6 + $0x398] sm:$0xff] }
  0x52   : > { %1449 = vmatpush.bf16.msrb.mxu3 %v2289_v4  ;;  %v2354_v4 = vld [vmem:[%s2515_s6 + $0x3d8] sm:$0xff] }
  0x53   : > { %1411 = vmatpush.bf16.msrb.mxu0 %v2264_v5  ;;  %v2329_v5 = vld [vmem:[%s2515_s6 + $0x310] sm:$0xff] }
  0x54   : > { %1424 = vmatpush.bf16.msrb.mxu1 %v2272_v6  ;;  %v2337_v6 = vld [vmem:[%s2515_s6 + $0x350] sm:$0xff] }
  0x55   : > { %1437 = vmatpush.bf16.msrb.mxu2 %v2280_v7  ;;  %v2345_v7 = vld [vmem:[%s2515_s6 + $0x390] sm:$0xff] }
  0x56   : > { %1450 = vmatpush.bf16.msrb.mxu3 %v2288_v8  ;;  %v2353_v8 = vld [vmem:[%s2515_s6 + $0x3d0] sm:$0xff] }
  0x57   : > { %1412 = vmatpush.bf16.msrb.mxu0 %v2263_v9  ;;  %v2328_v9 = vld [vmem:[%s2515_s6 + $0x308] sm:$0xff] }
  0x58   : > { %1425 = vmatpush.bf16.msrb.mxu1 %v2271_v10  ;;  %v2336_v10 = vld [vmem:[%s2515_s6 + $0x348] sm:$0xff] }
  0x59   : > { %1438 = vmatpush.bf16.msrb.mxu2 %v2279_v11  ;;  %v2344_v11 = vld [vmem:[%s2515_s6 + $0x388] sm:$0xff] }
  0x5a   : > { %1451 = vmatpush.bf16.msrb.mxu3 %v2287_v12  ;;  %1413 = vmatmul.bf16.vlgmr.msrb.gmra.mxu0 %v553_v53  ;;  %v2333_v53 = vld [vmem:[%s2515_s6 + $0x330] sm:$0xff]  ;;  %v2352_v12 = vld [vmem:[%s2515_s6 + $0x3c8] sm:$0xff] }
  0x5b   : > { %1457 = vmatpush.bf16.msra.mxu0 %v2302_v13  ;;  %1426 = vmatmul.bf16.vlgmr.msrb.gmra.mxu1 %v554_v56  ;;  %v2357_v56 = vld [vmem:[%s2515_s6 + $0x3f0] sm:$0xff]  ;;  %v2327_v13 = vld [vmem:[%s2515_s6 + $0x300] sm:$0xff] }
  0x5c   : > { %1470 = vmatpush.bf16.msra.mxu1 %v2310_v14  ;;  %1439 = vmatmul.bf16.vlgmr.msrb.gmra.mxu2 %v555_v52  ;;  %v564_v52 = vld.sshfl [vmem:[#allocation1 + $0x18] sm:$0xff pattern:$0x73625140]  ;;  %v2335_v14 = vld [vmem:[%s2515_s6 + $0x340] sm:$0xff] }
  0x5d   : > { %1483 = vmatpush.bf16.msra.mxu2 %v2318_v15  ;;  %1452 = vmatmul.bf16.vlgmr.msrb.gmra.mxu3 %v556_v54  ;;  %v2341_v54 = vld [vmem:[%s2515_s6 + $0x370] sm:$0xff]  ;;  %v2343_v15 = vld [vmem:[%s2515_s6 + $0x380] sm:$0xff] }
  0x5e   : > { %1496 = vmatpush.bf16.msra.mxu3 %v2326_v16  ;;  %v2351_v16 = vld [vmem:[%s2515_s6 + $0x3c0] sm:$0xff] }
  0x5f   : > { %1458 = vmatpush.bf16.msra.mxu0 %v2301_v17  ;;  %v565_v17 = vld.sshfl [vmem:[#allocation1 + $0x20] sm:$0xff pattern:$0x73625140] }
  0x60   : > { %1471 = vmatpush.bf16.msra.mxu1 %v2309_v18  ;;  %v566_v18 = vld.sshfl [vmem:[#allocation1 + $0x28] sm:$0xff pattern:$0x73625140] }
  0x61   : > { %1484 = vmatpush.bf16.msra.mxu2 %v2317_v19  ;;  %v567_v19 = vld.sshfl [vmem:[#allocation1 + $0x30] sm:$0xff pattern:$0x73625140] }
  0x62   : > { %1497 = vmatpush.bf16.msra.mxu3 %v2325_v20  ;;  %v568_v20 = vld.sshfl [vmem:[#allocation1 + $0x38] sm:$0xff pattern:$0x73625140] }
  0x63   : > { %1459 = vmatpush.bf16.msra.mxu0 %v2300_v21 }
  0x64   : > { %1472 = vmatpush.bf16.msra.mxu1 %v2308_v22 }
  0x65   : > { %1485 = vmatpush.bf16.msra.mxu2 %v2316_v23 }
  0x66   : > { %1498 = vmatpush.bf16.msra.mxu3 %v2324_v24 }
  0x67   : > { %1460 = vmatpush.bf16.msra.mxu0 %v2299_v25 }
  0x68   : > { %1473 = vmatpush.bf16.msra.mxu1 %v2307_v26 }
  0x69   : > { %1486 = vmatpush.bf16.msra.mxu2 %v2315_v27 }
  0x6a   : > { %1499 = vmatpush.bf16.msra.mxu3 %v2323_v28 }
  0x6b   : > { %1461 = vmatpush.bf16.msra.mxu0 %v2298_v29 }
  0x6c   : > { %1474 = vmatpush.bf16.msra.mxu1 %v2306_v30 }
  0x6d   : > { %1487 = vmatpush.bf16.msra.mxu2 %v2314_v31 }
  0x6e   : > { %1500 = vmatpush.bf16.msra.mxu3 %v2322_v32 }
  0x6f   : > { %1462 = vmatpush.bf16.msra.mxu0 %v2297_v33 }
  0x70   : > { %1475 = vmatpush.bf16.msra.mxu1 %v2305_v34 }
  0x71   : > { %1488 = vmatpush.bf16.msra.mxu2 %v2313_v35 }
  0x72   : > { %1501 = vmatpush.bf16.msra.mxu3 %v2321_v36 }
  0x73   : > { %1463 = vmatpush.bf16.msra.mxu0 %v2296_v37 }
  0x74   : > { %1476 = vmatpush.bf16.msra.mxu1 %v2304_v38 }
  0x75   : > { %1489 = vmatpush.bf16.msra.mxu2 %v2312_v39 }
  0x76   : > { %1502 = vmatpush.bf16.msra.mxu3 %v2320_v40 }
  0x77   : > { %1464 = vmatpush.bf16.msra.mxu0 %v2295_v41 }
  0x78   : > { %1477 = vmatpush.bf16.msra.mxu1 %v2303_v42 }
  0x79   : > { %1490 = vmatpush.bf16.msra.mxu2 %v2311_v43 }
  0x7a   : > { %1503 = vmatpush.bf16.msra.mxu3 %v2319_v44  ;;  %1465 = vmatmul.bf16.vlgmr.msra.gmra.mxu0 %v561_v49 }
  0x7b   : > { %1509 = vmatpush.bf16.msrb.mxu0 %v2334_v45  ;;  %1478 = vmatmul.bf16.vlgmr.msra.gmra.mxu1 %v562_v51 }
  0x7c   : > { %1522 = vmatpush.bf16.msrb.mxu1 %v2342_v46  ;;  %1491 = vmatmul.bf16.vlgmr.msra.gmra.mxu2 %v563_v50 }
  0x7d   : > { %1535 = vmatpush.bf16.msrb.mxu2 %v2350_v47  ;;  %1504 = vmatmul.bf16.vlgmr.msra.gmra.mxu3 %v564_v52 }
  0x7e   : > { %1548 = vmatpush.bf16.msrb.mxu3 %v2358_v48 }
  0x7f   : > { %1510 = vmatpush.bf16.msrb.mxu0 %v2333_v53 }
  0x80   : > { %1523 = vmatpush.bf16.msrb.mxu1 %v2341_v54 }
  0x81   : > { %1536 = vmatpush.bf16.msrb.mxu2 %v2349_v55 }
  0x82   : > { %1549 = vmatpush.bf16.msrb.mxu3 %v2357_v56 }
  0x83   : > { %1511 = vmatpush.bf16.msrb.mxu0 %v2332_v57 }
  0x84   : > { %1524 = vmatpush.bf16.msrb.mxu1 %v2340_v58 }
  0x85   : > { %1537 = vmatpush.bf16.msrb.mxu2 %v2348_v59 }
  0x86   : > { %1550 = vmatpush.bf16.msrb.mxu3 %v2356_v60 }
  0x87   : > { %1512 = vmatpush.bf16.msrb.mxu0 %v2331_v61 }
  0x88   : > { %1525 = vmatpush.bf16.msrb.mxu1 %v2339_v62 }
  0x89   : > { %1538 = vmatpush.bf16.msrb.mxu2 %v2347_v63 }
  0x8a   : > { %1551 = vmatpush.bf16.msrb.mxu3 %v2355_v0 }
  0x8b   : > { %1513 = vmatpush.bf16.msrb.mxu0 %v2330_v1  ;;  %v283_v1 = vld [vmem:[#allocation2] sm:$0xf] }
  0x8c   : > { %1526 = vmatpush.bf16.msrb.mxu1 %v2338_v2 }
  0x8d   : > { %1539 = vmatpush.bf16.msrb.mxu2 %v2346_v3 }
  0x8e   : > { %1552 = vmatpush.bf16.msrb.mxu3 %v2354_v4 }
  0x8f   : > { %1514 = vmatpush.bf16.msrb.mxu0 %v2329_v5 }
  0x90   : > { %1527 = vmatpush.bf16.msrb.mxu1 %v2337_v6 }
  0x91   : > { %1540 = vmatpush.bf16.msrb.mxu2 %v2345_v7 }
  0x92   : > { %1553 = vmatpush.bf16.msrb.mxu3 %v2353_v8 }
  0x93   : > { %1515 = vmatpush.bf16.msrb.mxu0 %v2328_v9 }
  0x94   : > { %1528 = vmatpush.bf16.msrb.mxu1 %v2336_v10 }
  0x95   : > { %1541 = vmatpush.bf16.msrb.mxu2 %v2344_v11 }
  0x96   : > { %1554 = vmatpush.bf16.msrb.mxu3 %v2352_v12 }
  0x97   : > { %1516 = vmatpush.bf16.msrb.mxu0 %v2327_v13 }
  0x98   : > { %1529 = vmatpush.bf16.msrb.mxu1 %v2335_v14 }
  0x99   : > { %1542 = vmatpush.bf16.msrb.mxu2 %v2343_v15 }
  0x9a   : > { %1555 = vmatpush.bf16.msrb.mxu3 %v2351_v16  ;;  %1517 = vmatmul.bf16.vlgmr.msrb.gmra.mxu0 %v565_v17 }
  0x9b   : > { %1530 = vmatmul.bf16.vlgmr.msrb.gmra.mxu1 %v566_v18 }
  0x9c   : > { %1543 = vmatmul.bf16.vlgmr.msrb.gmra.mxu2 %v567_v19 }
  0x9d   : > { %1556 = vmatmul.bf16.vlgmr.msrb.gmra.mxu3 %v568_v20 }
  0xb7   : > { %v1362_v21 = vpop.f32.mrf.mxu0 }
  0xb8   : > { %v1375_v22 = vpop.f32.mrf.mxu1 }
  0xb9   : > { %v1376_v23 = vadd.f32 %v1375_v22, %v1362_v21 }
  0xbf   : > { %v1388_v24 = vpop.f32.mrf.mxu2  ;;  %v1364_v27 = vpop.f32.mrf.mxu0 }
  0xc0   : > { %v1389_v25 = vadd.f32 %v1388_v24, %v1376_v23  ;;  %v1401_v26 = vpop.f32.mrf.mxu3  ;;  %v1377_v29 = vpop.f32.mrf.mxu1 }
  0xc2   : > { %v1402_v28 = vadd.f32 %v1401_v26, %v1389_v25 }
  0xc7   : > { %v1390_v30 = vpop.f32.mrf.mxu2 }
  0xc8   : > { %v1403_v31 = vpop.f32.mrf.mxu3 }
  0xd7   : > { %v1414_v32 = vpop.f32.mrf.mxu0 }
  0xd8   : > { %v1427_v33 = vpop.f32.mrf.mxu1  ;;  %v1415_v42 = vadd.f32 %v1414_v32, %v1402_v28 }
  0xda   : > { %v1428_v46 = vadd.f32 %v1427_v33, %v1415_v42 }
  0xdf   : > { %v1440_v34 = vpop.f32.mrf.mxu2  ;;  %v1416_v36 = vpop.f32.mrf.mxu0 }
  0xe0   : > { %v1453_v35 = vpop.f32.mrf.mxu3  ;;  %v1429_v37 = vpop.f32.mrf.mxu1  ;;  %v1441_v48 = vadd.f32 %v1440_v34, %v1428_v46 }
  0xe2   : > { %v1454_v51 = vadd.f32 %v1453_v35, %v1441_v48 }
  0xe7   : > { %v1442_v38 = vpop.f32.mrf.mxu2 }
  0xe8   : > { %v1455_v39 = vpop.f32.mrf.mxu3 }
  0xf7   : > { %v1466_v40 = vpop.f32.mrf.mxu0 }
  0xf8   : > { %v1479_v41 = vpop.f32.mrf.mxu1  ;;  %v1467_v52 = vadd.f32 %v1466_v40, %v1454_v51 }
  0xfa   : > { %v1480_v53 = vadd.f32 %v1479_v41, %v1467_v52 }
  0xff   : > { %v1492_v43 = vpop.f32.mrf.mxu2  ;;  %v1468_v45 = vpop.f32.mrf.mxu0 }
 0x100   : > { %v1505_v44 = vpop.f32.mrf.mxu3  ;;  %v1481_v47 = vpop.f32.mrf.mxu1  ;;  %v1493_v54 = vadd.f32 %v1492_v43, %v1480_v53 }
 0x102   : > { %v1506_v55 = vadd.f32 %v1505_v44, %v1493_v54 }
 0x107   : > { %v1494_v49 = vpop.f32.mrf.mxu2 }
 0x108   : > { %v1507_v50 = vpop.f32.mrf.mxu3 }
 0x117   : > { %v1518_v56 = vpop.f32.mrf.mxu0 }
 0x118   : > { %v1531_v57 = vpop.f32.mrf.mxu1  ;;  %v1519_v58 = vadd.f32 %v1518_v56, %v1506_v55 }
 0x11a   : > { %v1532_v59 = vadd.f32 %v1531_v57, %v1519_v58 }
 0x11f   : > { %v1544_v60 = vpop.f32.mrf.mxu2  ;;  %v1520_v63 = vpop.f32.mrf.mxu0 }
 0x120   : > { %v1557_v61 = vpop.f32.mrf.mxu3  ;;  %v1545_v62 = vadd.f32 %v1544_v60, %v1532_v59  ;;  %v1533_v0 = vpop.f32.mrf.mxu1 }
 0x122   : > { %v1558_v2 = vadd.f32 %v1557_v61, %v1545_v62 }
 0x124   : > { %v1561_v3 = vadd.f32 %v1558_v2, %v283_v1  ;;  %1566 = sbr.rel (%p2228_p9) target bundleno = 320 (0x140), region = 40 }
 0x126   : > { %1562 = vst [vmem:[#allocation2] sm:$0xf] %v1561_v3 }
 0x127   : > { %v1546_v4 = vpop.f32.mrf.mxu2 }
 0x128   : > { %v1559_v5 = vpop.f32.mrf.mxu3 }
 0x129   : > { %v2401_v7 = vld [vmem:[%s2676_s2] ss:$0 sm:$0xff]  ;;  %vm1573_vm0 = vcmask 1043456   ;;  %v2445_v9 = vmov 4.0  }
 0x12a   : > { %2402 = vrcp.f32 %v2445_v9 }
 0x12d   : > { %v1567_v6 = vld [vmem:[#allocation2] sm:$0xf] }
 0x12e   : > { %v1572_v8 = vadd.f32 %v2401_v7, %v1567_v6 }
 0x130   : > { %v1574_v10 = vsel %vm1573_vm0, %v1572_v8, 0.0  ;;  %v2403_v13 = vpop.eup %2402 }
 0x131   : > { %v1575_v11 = vrot.slane %v1574_v10, 4  ;;  %v1582_v15 = vmul.f32 4.0, %v2403_v13  ;;  %vm1586_vm1 = vweird.f32 %v2403_v13 }
 0x133   : > { %v1576_v12 = vadd.f32 %v1575_v11, %v1574_v10  ;;  %v1583_v17 = vsub.f32 1.0, %v1582_v15 }
 0x135   : > { %v1577_v14 = vrot.slane %v1576_v12, 2  ;;  %v1584_v19 = vmul.f32 %v2403_v13, %v1583_v17 }
 0x137   : > { %v1578_v16 = vadd.f32 %v1577_v14, %v1576_v12  ;;  %v1585_v21 = vadd.f32 %v2403_v13, %v1584_v19 }
 0x139   : > { %v1579_v18 = vrot.slane %v1578_v16, 1  ;;  %v1587_v22 = vsel %vm1586_vm1, %v2403_v13, %v1585_v21 }
 0x13b   : > { %v1580_v20 = vadd.f32 %v1579_v18, %v1578_v16 }
 0x13d   : > { %v1588_v23 = vmul.f32 %v1587_v22, %v1580_v20 }
 0x13f   : > { %1589 = vst [vmem:[%s277_s25] sm:$0x1] %v1588_v23 }
 0x140 PF: > { %s13_s16 = sadd.s32 1, %s2442_s16   ;;  %s2678_s12 = smov %s2434_s14 }
 0x141   : > { %p10_p10 = scmp.ge.s32.totalorder %s13_s16, 10   ;;  %s2679_s13 = smov %s2438_s15 }
 0x142   : > { %s2680_s14 = smov %s2683_s17  ;;  %s2681_s15 = smov %s2687_s18 }
 0x143   :  { %12 = sbr.rel (!%p10_p10) target bundleno = 3 (0x3), region = 77 }

</bundles_post_ra>
